<compile_context>
chip_gen: v7x
topology: tpu7x:2x2x1
jax: 0.10.0
libtpu: 0.0.40
codegen_flags: <defaults>
</compile_context>

<pallas_src>
import functools
import math

import jax
import jax.numpy as jnp
from jax.experimental import pallas as pl
from jax.experimental.pallas import tpu as pltpu

VMEM_SPEC = pl.BlockSpec(memory_space=pltpu.MemorySpace.VMEM)
VMEM_LIMIT = 48 * 1024 * 1024   # fits v7x's 64 MiB physical VMEM with headroom


def _round_up(x, m):
    return (x + m - 1) // m * m


def _pad2d(a, rows, cols):
    return jnp.pad(a, ((0, rows - a.shape[0]), (0, cols - a.shape[1])))


# --------------------------- tiled linear (matmul) ----------------------------

def _linear_kernel(x_ref, w_ref, b_ref, *rest, act, scale, has_res):
    if has_res:
        r_ref, o_ref, acc_ref = rest
    else:
        o_ref, acc_ref = rest
    kk = pl.program_id(2)

    @pl.when(kk == 0)
    def _():
        acc_ref[...] = jnp.zeros_like(acc_ref)

    acc_ref[...] += jnp.dot(x_ref[...].astype(jnp.bfloat16),
                            w_ref[...].astype(jnp.bfloat16),
                            preferred_element_type=jnp.float32)

    @pl.when(kk == pl.num_programs(2) - 1)
    def _():
        y = acc_ref[...] + b_ref[...]
        if act == "relu":
            y = jnp.maximum(y, 0.0)
        elif act == "silu":
            y = y * jax.nn.sigmoid(y)
        if scale != 1.0:
            y = y * scale
        if has_res:
            y = y + r_ref[...]
        o_ref[...] = y.astype(o_ref.dtype)


def linear(x2d, w, b, act="none", scale=1.0, residual=None):
    """(M,K)@(K,N)+b with optional fused activation / output scale / residual.

    Tiled (tm,tn,tk) grid, bf16 MXU operands with f32 accumulation, outputs
    padded to lane-dense 128-multiples and sliced back in JAX glue."""
    M, K = x2d.shape
    N = w.shape[1]
    tm = 128 if M >= 128 else _round_up(M, 8)
    tn, tk = 128, 128
    Mp, Kp, Np = _round_up(M, tm), _round_up(K, tk), _round_up(N, tn)

    args = [_pad2d(x2d, Mp, Kp), _pad2d(w, Kp, Np), _pad2d(b.reshape(1, N), 1, Np)]
    in_specs = [pl.BlockSpec((tm, tk), lambda i, j, k: (i, k)),
                pl.BlockSpec((tk, tn), lambda i, j, k: (k, j)),
                pl.BlockSpec((1, tn), lambda i, j, k: (0, j))]
    if residual is not None:
        args.append(_pad2d(residual, Mp, Np))
        in_specs.append(pl.BlockSpec((tm, tn), lambda i, j, k: (i, j)))

    out = pl.pallas_call(
        functools.partial(_linear_kernel, act=act, scale=scale,
                          has_res=residual is not None),
        out_shape=jax.ShapeDtypeStruct((Mp, Np), jnp.float32),
        grid_spec=pltpu.PrefetchScalarGridSpec(
            num_scalar_prefetch=0,
            grid=(Mp // tm, Np // tn, Kp // tk),
            in_specs=in_specs,
            out_specs=pl.BlockSpec((tm, tn), lambda i, j, k: (i, j)),
            scratch_shapes=[pltpu.VMEM((tm, tn), jnp.float32)]),
        compiler_params=pltpu.CompilerParams(
            dimension_semantics=("parallel", "parallel", "arbitrary"),
            vmem_limit_bytes=VMEM_LIMIT),
    )(*args)
    return out[:M, :N]


# --------------------------- pw1 matmul + fused GLU ---------------------------

def _linear_glu_kernel(x_ref, wv_ref, wg_ref, bv_ref, bg_ref, o_ref,
                       accv_ref, accg_ref):
    kk = pl.program_id(2)

    @pl.when(kk == 0)
    def _():
        accv_ref[...] = jnp.zeros_like(accv_ref)
        accg_ref[...] = jnp.zeros_like(accg_ref)

    xb = x_ref[...].astype(jnp.bfloat16)
    accv_ref[...] += jnp.dot(xb, wv_ref[...].astype(jnp.bfloat16),
                             preferred_element_type=jnp.float32)
    accg_ref[...] += jnp.dot(xb, wg_ref[...].astype(jnp.bfloat16),
                             preferred_element_type=jnp.float32)

    @pl.when(kk == pl.num_programs(2) - 1)
    def _():
        a = accv_ref[...] + bv_ref[...]
        g = accg_ref[...] + bg_ref[...]
        o_ref[...] = (a * jax.nn.sigmoid(g)).astype(o_ref.dtype)


def linear_glu(x2d, w, b):
    """Fused pointwise conv (K -> 2C) + GLU: out = (x@Wv+bv) * sigmoid(x@Wg+bg)."""
    M, K = x2d.shape
    C = w.shape[1] // 2
    tm = 128 if M >= 128 else _round_up(M, 8)
    tn, tk = 128, 128
    Mp, Kp, Cp = _round_up(M, tm), _round_up(K, tk), _round_up(C, tn)

    out = pl.pallas_call(
        _linear_glu_kernel,
        out_shape=jax.ShapeDtypeStruct((Mp, Cp), jnp.float32),
        grid_spec=pltpu.PrefetchScalarGridSpec(
            num_scalar_prefetch=0,
            grid=(Mp // tm, Cp // tn, Kp // tk),
            in_specs=[pl.BlockSpec((tm, tk), lambda i, j, k: (i, k)),
                      pl.BlockSpec((tk, tn), lambda i, j, k: (k, j)),
                      pl.BlockSpec((tk, tn), lambda i, j, k: (k, j)),
                      pl.BlockSpec((1, tn), lambda i, j, k: (0, j)),
                      pl.BlockSpec((1, tn), lambda i, j, k: (0, j))],
            out_specs=pl.BlockSpec((tm, tn), lambda i, j, k: (i, j)),
            scratch_shapes=[pltpu.VMEM((tm, tn), jnp.float32),
                            pltpu.VMEM((tm, tn), jnp.float32)]),
        compiler_params=pltpu.CompilerParams(
            dimension_semantics=("parallel", "parallel", "arbitrary"),
            vmem_limit_bytes=VMEM_LIMIT),
    )(_pad2d(x2d, Mp, Kp),
      _pad2d(w[:, :C], Kp, Cp), _pad2d(w[:, C:], Kp, Cp),
      _pad2d(b[:C].reshape(1, C), 1, Cp), _pad2d(b[C:].reshape(1, C), 1, Cp))
    return out[:M, :C]


# --------------------------- layernorm (row-tiled) -----------------------------

def _layernorm_kernel(x_ref, g_ref, b_ref, o_ref, *, eps, act):
    x = x_ref[...].astype(jnp.float32)
    mean = jnp.mean(x, axis=-1, keepdims=True)
    c = x - mean
    var = jnp.mean(c * c, axis=-1, keepdims=True)
    y = c * jax.lax.rsqrt(var + eps) * g_ref[...] + b_ref[...]
    if act == "silu":
        y = y * jax.nn.sigmoid(y)
    o_ref[...] = y.astype(o_ref.dtype)


def layernorm(x, gamma, beta, eps=1e-5, act="none"):
    shape = x.shape
    D = shape[-1]
    x2 = x.reshape(-1, D)
    M = x2.shape[0]
    tm = 256 if M >= 256 else _round_up(M, 8)
    Mp = _round_up(M, tm)
    xp = jnp.pad(x2, ((0, Mp - M), (0, 0)))
    y = pl.pallas_call(
        functools.partial(_layernorm_kernel, eps=eps, act=act),
        out_shape=jax.ShapeDtypeStruct((Mp, D), jnp.float32),
        grid_spec=pltpu.PrefetchScalarGridSpec(
            num_scalar_prefetch=0,
            grid=(Mp // tm,),
            in_specs=[pl.BlockSpec((tm, D), lambda i: (i, 0)),
                      pl.BlockSpec((1, D), lambda i: (0, 0)),
                      pl.BlockSpec((1, D), lambda i: (0, 0))],
            out_specs=pl.BlockSpec((tm, D), lambda i: (i, 0))),
        compiler_params=pltpu.CompilerParams(
            dimension_semantics=("parallel",),
            vmem_limit_bytes=VMEM_LIMIT),
    )(xp, gamma.reshape(1, D), beta.reshape(1, D))
    return y[:M].reshape(shape)


# --------------------------- flash attention -----------------------------------

def _flash_attn_kernel(q_ref, k_ref, v_ref, o_ref, m_sc, l_sc, acc_sc,
                       *, scale, kv_len, tkv):
    j = pl.program_id(1)

    @pl.when(j == 0)
    def _():
        m_sc[...] = jnp.full_like(m_sc, -1e30)
        l_sc[...] = jnp.zeros_like(l_sc)
        acc_sc[...] = jnp.zeros_like(acc_sc)

    s = jnp.einsum("bqd,bkd->bqk",
                   q_ref[...].astype(jnp.bfloat16),
                   k_ref[...].astype(jnp.bfloat16),
                   preferred_element_type=jnp.float32) * scale
    kv_pos = j * tkv + jax.lax.broadcasted_iota(jnp.int32, s.shape, 2)
    s = jnp.where(kv_pos < kv_len, s, -1e30)          # mask padded KV tail

    m_prev = m_sc[...]
    m_new = jnp.maximum(m_prev, jnp.max(s, axis=-1, keepdims=True))
    alpha = jnp.exp(m_prev - m_new)
    p = jnp.exp(s - m_new)
    l_sc[...] = alpha * l_sc[...] + jnp.sum(p, axis=-1, keepdims=True)
    acc_sc[...] = alpha * acc_sc[...] + jnp.einsum(
        "bqk,bkd->bqd", p.astype(jnp.bfloat16), v_ref[...].astype(jnp.bfloat16),
        preferred_element_type=jnp.float32)
    m_sc[...] = m_new

    @pl.when(j == pl.num_programs(1) - 1)
    def _():
        o_ref[...] = (acc_sc[...] *
                      pl.reciprocal(l_sc[...], approx=True)).astype(o_ref.dtype)


def flash_attention(q, k, v, kv_len):
    """q,k,v: (B*H, T_pad, dk).  Online-softmax attention, KV tiled on a grid."""
    BH, Tp, dk = q.shape
    tq = Tp if Tp <= 128 else 128
    tkv = tq
    scale = 1.0 / math.sqrt(dk)
    return pl.pallas_call(
        functools.partial(_flash_attn_kernel, scale=scale, kv_len=kv_len, tkv=tkv),
        out_shape=jax.ShapeDtypeStruct((BH, Tp, dk), jnp.float32),
        grid_spec=pltpu.PrefetchScalarGridSpec(
            num_scalar_prefetch=0,
            grid=(Tp // tq, Tp // tkv),
            in_specs=[pl.BlockSpec((BH, tq, dk), lambda i, j: (0, i, 0)),
                      pl.BlockSpec((BH, tkv, dk), lambda i, j: (0, j, 0)),
                      pl.BlockSpec((BH, tkv, dk), lambda i, j: (0, j, 0))],
            out_specs=pl.BlockSpec((BH, tq, dk), lambda i, j: (0, i, 0)),
            scratch_shapes=[pltpu.VMEM((BH, tq, 1), jnp.float32),
                            pltpu.VMEM((BH, tq, 1), jnp.float32),
                            pltpu.VMEM((BH, tq, dk), jnp.float32)]),
        compiler_params=pltpu.CompilerParams(
            dimension_semantics=("parallel", "arbitrary"),
            vmem_limit_bytes=VMEM_LIMIT),
    )(q, k, v)


# --------------------------- depthwise conv (strided) --------------------------

def _dwconv_kernel(xph_ref, wph_ref, b_ref, o_ref, *, S, Q):
    # xph: (B, S, T_ph, C) phase-split padded input; wph: (S, Q, C).
    x = xph_ref[...].astype(jnp.float32)
    w = wph_ref[...].astype(jnp.float32)
    T_out = o_ref.shape[1]
    acc = jnp.zeros(o_ref.shape, jnp.float32)
    for r in range(S):                       # small static unrolled loops
        xr = x[:, r]
        for q in range(Q):
            acc = acc + xr[:, q:q + T_out, :] * w[r, q][None, None, :]
    o_ref[...] = (acc + b_ref[...][None, :, :]).astype(o_ref.dtype)


def depthwise_conv1d(x, w, b, kernel_size, stride):
    """PyTorch Conv1d(C,C,K,stride,padding=(K-1)//2,groups=C) on (B,T,C).
    Only the strided outputs are computed (phase-decomposed input)."""
    B, T, C = x.shape
    K = kernel_size
    pad = (K - 1) // 2
    T_out = (T + 2 * pad - K) // stride + 1
    Q = -(-K // stride)
    T_ph = T_out + Q - 1
    xp = jnp.pad(x, ((0, 0), (pad, pad), (0, 0)))
    phases = []
    for r in range(stride):
        ph = xp[:, r::stride, :]
        if ph.shape[1] < T_ph:
            ph = jnp.pad(ph, ((0, 0), (0, T_ph - ph.shape[1]), (0, 0)))
        else:
            ph = ph[:, :T_ph, :]
        phases.append(ph)
    xph = jnp.stack(phases, axis=1)                       # (B, S, T_ph, C)
    wph = jnp.stack([jnp.stack([w[stride * q + r] if stride * q + r < K
                                else jnp.zeros((C,), w.dtype)
                                for q in range(Q)]) for r in range(stride)])
    return pl.pallas_call(
        functools.partial(_dwconv_kernel, S=stride, Q=Q),
        out_shape=jax.ShapeDtypeStruct((B, T_out, C), jnp.float32),
        in_specs=[VMEM_SPEC, VMEM_SPEC, VMEM_SPEC],
        out_specs=VMEM_SPEC,
    )(xph, wph, b.reshape(1, C))


# --------------------------- average pool --------------------------------------

def _avgpool_kernel(x_ref, inv_ref, o_ref):
    x = x_ref[...].astype(jnp.float32)          # (B, T_out, k, C)
    s = jnp.sum(x, axis=2)
    o_ref[...] = (s * inv_ref[...]).astype(o_ref.dtype)


def avg_pool1d_ceil(x, kernel_size, stride):
    """PyTorch AvgPool1d(k, s, padding=0, ceil_mode=True,
    count_include_pad=False) along time of (B, T, C)."""
    assert kernel_size == stride
    B, T, C = x.shape
    T_out = -(-T // stride)
    pad = T_out * stride - T
    xp = jnp.pad(x, ((0, 0), (0, pad), (0, 0)))
    x4 = xp.reshape(B, T_out, stride, C)
    starts = jnp.arange(T_out) * stride
    counts = jnp.minimum(starts + stride, T) - starts
    inv = (1.0 / counts.astype(jnp.float32)).reshape(1, T_out, 1)
    return pl.pallas_call(
        _avgpool_kernel,
        out_shape=jax.ShapeDtypeStruct((B, T_out, C), jnp.float32),
        in_specs=[VMEM_SPEC, VMEM_SPEC],
        out_specs=VMEM_SPEC,
    )(x4, inv)


# --------------------------- model glue -----------------------------------------

def attention_block(x, p, heads):
    # TODO(synk): GroupedMultiHeadedAttention definition not provided; using
    # standard scaled-dot-product MHA (mask is empty at inference, so unused).
    B, T, D = x.shape
    dk = D // heads
    x2 = x.reshape(B * T, D)
    wqkv = jnp.concatenate([p["q"]["w"], p["k"]["w"], p["v"]["w"]], axis=1)
    bqkv = jnp.concatenate([p["q"]["b"], p["k"]["b"], p["v"]["b"]], axis=0)
    qkv = linear(x2, wqkv, bqkv)                           # one fused QKV matmul
    q, k, v = jnp.split(qkv, 3, axis=-1)

    t_tile = 128 if T >= 128 else _round_up(T, 8)
    Tp = _round_up(T, t_tile)

    def heads_layout(t):
        t = t.reshape(B, T, heads, dk).transpose(0, 2, 1, 3).reshape(B * heads, T, dk)
        return jnp.pad(t, ((0, 0), (0, Tp - T), (0, 0)))

    ctx = flash_attention(heads_layout(q), heads_layout(k), heads_layout(v), T)
    ctx = ctx[:, :T, :].reshape(B, heads, T, dk).transpose(0, 2, 1, 3)
    ctx = ctx.reshape(B * T, D)
    y = linear(ctx, p["o"]["w"], p["o"]["b"], residual=x2)  # fused residual add
    return y.reshape(B, T, D)


def conv_module(x, residual2d, p, kernel_size, stride):
    # pointwise(C->2C)+GLU (fused) -> depthwise(K,stride) -> LN+SiLU ->
    # pointwise(C->C) with fused residual add.
    B, T, D = x.shape
    h = linear_glu(x.reshape(B * T, D), p["pw1"]["w"], p["pw1"]["b"])
    h = depthwise_conv1d(h.reshape(B, T, D), p["dw"]["w"], p["dw"]["b"],
                         kernel_size, stride)
    h = layernorm(h, p["ln"]["g"], p["ln"]["b"], act="silu")
    Bo, To, _ = h.shape
    y = linear(h.reshape(Bo * To, D), p["pw2"]["w"], p["pw2"]["b"],
               residual=residual2d)
    return y.reshape(Bo, To, D)


def feed_forward_block(x, p):
    B, T, D = x.shape
    x2 = x.reshape(B * T, D)
    h = linear(x2, p["w1"]["w"], p["w1"]["b"], act="relu")
    y = linear(h, p["w2"]["w"], p["w2"]["b"], scale=0.5, residual=x2)
    return y.reshape(B, T, D)


def conformer_encoder_layer(x, mask, p, heads, kernel_size):
    # TODO(synk): exact ConformerEncoderLayer definition not provided; mirrors
    # the given DownSampleLayer residual structure with a stride-1 conv module.
    x = attention_block(x, p["att"], heads)
    B, T, D = x.shape
    x = conv_module(x, x.reshape(B * T, D), p["conv"], kernel_size, stride=1)
    x = feed_forward_block(x, p["ff"])
    x = layernorm(x, p["norm"]["g"], p["norm"]["b"])
    return x, mask


def downsample_layer(x, mask, p, heads, kernel_size, stride):
    x = attention_block(x, p["att"], heads)
    pooled = avg_pool1d_ceil(x, stride, stride)            # AvgPool1d residual path
    Bo, To, D = pooled.shape
    xs = conv_module(x, pooled.reshape(Bo * To, D), p["conv"], kernel_size, stride)
    xs = feed_forward_block(xs, p["ff"])
    xs = layernorm(xs, p["norm"]["g"], p["norm"]["b"])
    if mask.size > 0 and stride > 1:
        mask = mask[:, :, ::stride]
    return xs, mask


def conv2d_subsampling2(x, mask, p):
    # PyTorch: x.unsqueeze(1) -> Conv2d(1, D, 3, stride=2) -> ReLU ->
    # Linear(D * ((F-1)//2 ...), D); implemented as im2col + Pallas matmuls.
    B, T, F = x.shape
    To = (T - 3) // 2 + 1
    Fo = (F - 3) // 2 + 1
    cols = []
    for kh in range(3):
        for kw in range(3):
            cols.append(x[:, kh:kh + 2 * To - 1:2, kw:kw + 2 * Fo - 1:2])
    patches = jnp.stack(cols, axis=-1)                     # (B, To, Fo, 9)
    y = linear(patches.reshape(B * To * Fo, 9),
               p["conv"]["w"], p["conv"]["b"], act="relu")
    D = y.shape[-1]
    y = y.reshape(B, To, Fo, D).transpose(0, 1, 3, 2).reshape(B, To, D * Fo)
    y = linear(y.reshape(B * To, D * Fo), p["out"]["w"], p["out"]["b"])
    y = y.reshape(B, To, D)
    # TODO(synk): positional encoding inside Conv2dSubsampling2 omitted
    # (pos_enc class not provided; dropout is identity at inference).
    if mask.size > 0:
        mask = mask[:, :, 2::2]
    return y, mask


def efficient_conformer_forward(params, kinds, xs, heads, cnn_kernel, stride):
    mask = jnp.ones((0, 0, 0), dtype=jnp.bool_)   # train_flag = False
    xs, mask = conv2d_subsampling2(xs, mask, params["subsample"])
    for p, kind in zip(params["layers"], kinds):
        if kind == "enc":
            xs, mask = conformer_encoder_layer(xs, mask, p, heads, cnn_kernel)
        else:
            xs, mask = downsample_layer(xs, mask, p, heads, cnn_kernel, stride)
    B, T, D = xs.shape
    out = linear(xs.reshape(B * T, D),
                 params["linear"]["w"], params["linear"]["b"])
    return out.reshape(B, T, -1), mask


# --------------------------- parameter init ------------------------------------

def init_params(key, input_size, out_size, vocab_size, heads, cnn_kernel, N):
    keys = iter(jax.random.split(key, 256))

    def lin(din, dout):
        return {"w": 0.02 * jax.random.normal(next(keys), (din, dout), jnp.float32),
                "b": jnp.zeros((dout,), jnp.float32)}

    def ln(d):
        return {"g": jnp.ones((d,), jnp.float32),
                "b": jnp.zeros((d,), jnp.float32)}

    def block(d, k):
        return {
            "att": {"q": lin(d, d), "k": lin(d, d), "v": lin(d, d), "o": lin(d, d)},
            "ff": {"w1": lin(d, d), "w2": lin(d, d)},
            "conv": {
                "pw1": lin(d, 2 * d),
                "dw": {"w": 0.02 * jax.random.normal(next(keys), (k, d), jnp.float32),
                       "b": jnp.zeros((d,), jnp.float32)},
                "ln": ln(d),
                "pw2": lin(d, d),
            },
            "norm": ln(d),
        }

    fsub = (input_size - 3) // 2 + 1
    params = {
        "subsample": {"conv": lin(9, out_size),
                      "out": lin(out_size * fsub, out_size)},
        "layers": [],
        "linear": lin(out_size, vocab_size),
    }
    kinds = []
    for i in range(3 * N):
        params["layers"].append(block(out_size, cnn_kernel)); kinds.append("enc")
        if i % N == N - 1 and i < 3 * N - 1:
            params["layers"].append(block(out_size, cnn_kernel)); kinds.append("down")
    return params, kinds


# --------------------------- main -----------------------------------------------

if __name__ == "__main__":
    B, T, F = 2, 32, 16            # batch, input frames, input feature dim
    out_size, heads, cnn_kernel, stride, vocab, N = 32, 2, 9, 2, 11, 1

    key = jax.random.PRNGKey(0)
    pkey, xkey = jax.random.split(key)
    params, kinds = init_params(pkey, F, out_size, vocab, heads, cnn_kernel, N)
    xs = jax.random.normal(xkey, (B, T, F), jnp.float32)

    def run(params, xs):
        return efficient_conformer_forward(params, kinds, xs,
                                           heads, cnn_kernel, stride)

    out, mask = jax.jit(run)(params, xs)
    out = jax.block_until_ready(out)

    # Expected time trajectory: 32 -> 15 (subsample) -> 8 -> 4 (two downsamples)
    assert out.shape == (B, 4, vocab), out.shape
    assert mask.shape == (0, 0, 0)
    assert bool(jnp.all(jnp.isfinite(out)))
    print("KERNEL_OK")
</pallas_src>

<mosaic_0001>
module attributes {stable_mosaic.version = 11 : i64} {
  func.func @_linear_kernel(%arg0: i32, %arg1: i32, %arg2: i32, %arg3: memref<128x128xf32, #tpu.memory_space<vmem>>, %arg4: memref<128x128xf32, #tpu.memory_space<vmem>>, %arg5: memref<1x128xf32, #tpu.memory_space<vmem>>, %arg6: memref<128x128xf32, #tpu.memory_space<vmem>>, %arg7: memref<128x128xf32, #tpu.memory_space<vmem>>) attributes {dimension_semantics = [#tpu.dimension_semantics<parallel>, #tpu.dimension_semantics<parallel>, #tpu.dimension_semantics<arbitrary>], iteration_bounds = array<i64: 2, 1, 1>, scalar_prefetch = 0 : i64, scratch_operands = 1 : i64, tpu.core_type = #tpu.core_type<tc>, window_params = [{transform_indices = @transform_0, window_bounds = array<i64: 128, 128>}, {transform_indices = @transform_1, window_bounds = array<i64: 128, 128>}, {transform_indices = @transform_2, window_bounds = array<i64: 1, 128>}, {transform_indices = @transform_3, window_bounds = array<i64: 128, 128>}]} {
    %c0_i32 = arith.constant 0 : i32
    %0 = arith.cmpi eq, %arg2, %c0_i32 : i32
    %1 = arith.extui %0 : i1 to i32
    %c0_i32_0 = arith.constant 0 : i32
    %2 = arith.cmpi ne, %1, %c0_i32_0 : i32
    scf.if %2 {
      %cst_10 = arith.constant 0.000000e+00 : f32
      %14 = vector.broadcast %cst_10 : f32 to vector<128x128xf32>
      %c0_11 = arith.constant 0 : index
      %c0_12 = arith.constant 0 : index
      %15 = vector.load %arg7[%c0_11, %c0_12] : memref<128x128xf32, #tpu.memory_space<vmem>>, vector<128x128xf32>
      tpu.vector_store %arg7[%c0_11, %c0_12], %14 {strides = array<i32>} : memref<128x128xf32, #tpu.memory_space<vmem>>, vector<128x128xf32>,
    } else {
    }
    %c0 = arith.constant 0 : index
    %c0_1 = arith.constant 0 : index
    %3 = vector.load %arg7[%c0, %c0_1] : memref<128x128xf32, #tpu.memory_space<vmem>>, vector<128x128xf32>
    %c0_2 = arith.constant 0 : index
    %c0_3 = arith.constant 0 : index
    %4 = vector.load %arg3[%c0_2, %c0_3] : memref<128x128xf32, #tpu.memory_space<vmem>>, vector<128x128xf32>
    %5 = arith.truncf %4 : vector<128x128xf32> to vector<128x128xbf16>
    %c0_4 = arith.constant 0 : index
    %c0_5 = arith.constant 0 : index
    %6 = vector.load %arg4[%c0_4, %c0_5] : memref<128x128xf32, #tpu.memory_space<vmem>>, vector<128x128xf32>
    %7 = arith.truncf %6 : vector<128x128xf32> to vector<128x128xbf16>
    %cst = arith.constant dense<0.000000e+00> : vector<128x128xf32>
    %8 = tpu.matmul %5, %7, %cst {dimension_numbers = #tpu.dot_dimension_numbers<[1], [0], [0], [1], [0, 0, 1, 1], [], []>} : vector<128x128xbf16>, vector<128x128xbf16>, vector<128x128xf32> -> vector<128x128xf32>
    %9 = arith.addf %3, %8 : vector<128x128xf32>
    %c0_6 = arith.constant 0 : index
    %c0_7 = arith.constant 0 : index
    %10 = vector.load %arg7[%c0_6, %c0_7] : memref<128x128xf32, #tpu.memory_space<vmem>>, vector<128x128xf32>
    tpu.vector_store %arg7[%c0_6, %c0_7], %9 {strides = array<i32>} : memref<128x128xf32, #tpu.memory_space<vmem>>, vector<128x128xf32>,
    %c0_i32_8 = arith.constant 0 : i32
    %11 = arith.cmpi eq, %arg2, %c0_i32_8 : i32
    %12 = arith.extui %11 : i1 to i32
    %c0_i32_9 = arith.constant 0 : i32
    %13 = arith.cmpi ne, %12, %c0_i32_9 : i32
    scf.if %13 {
      %c0_10 = arith.constant 0 : index
      %c0_11 = arith.constant 0 : index
      %14 = vector.load %arg7[%c0_10, %c0_11] : memref<128x128xf32, #tpu.memory_space<vmem>>, vector<128x128xf32>
      %c0_12 = arith.constant 0 : index
      %c0_13 = arith.constant 0 : index
      %15 = vector.load %arg5[%c0_12, %c0_13] : memref<1x128xf32, #tpu.memory_space<vmem>>, vector<1x128xf32>
      %16 = vector.broadcast %15 : vector<1x128xf32> to vector<128x128xf32>
      %17 = arith.addf %14, %16 : vector<128x128xf32>
      %cst_14 = arith.constant 0.000000e+00 : f32
      %18 = vector.broadcast %cst_14 : f32 to vector<128x128xf32>
      %19 = arith.maximumf %17, %18 : vector<128x128xf32>
      %c0_15 = arith.constant 0 : index
      %c0_16 = arith.constant 0 : index
      %20 = vector.load %arg6[%c0_15, %c0_16] : memref<128x128xf32, #tpu.memory_space<vmem>>, vector<128x128xf32>
      tpu.vector_store %arg6[%c0_15, %c0_16], %19 {strides = array<i32>} : memref<128x128xf32, #tpu.memory_space<vmem>>, vector<128x128xf32>,
    } else {
    }
    return
  }
  func.func @transform_0(%arg0: i32, %arg1: i32, %arg2: i32) -> (i32, i32) {
    %c0_i32 = arith.constant 0 : i32
    return %arg0, %arg2 : i32, i32
  }
  func.func @transform_1(%arg0: i32, %arg1: i32, %arg2: i32) -> (i32, i32) {
    %c0_i32 = arith.constant 0 : i32
    return %arg2, %arg1 : i32, i32
  }
  func.func @transform_2(%arg0: i32, %arg1: i32, %arg2: i32) -> (i32, i32) {
    %c0_i32 = arith.constant 0 : i32
    %c0_i32_0 = arith.constant 0 : i32
    return %c0_i32, %arg1 : i32, i32
  }
  func.func @transform_3(%arg0: i32, %arg1: i32, %arg2: i32) -> (i32, i32) {
    %c0_i32 = arith.constant 0 : i32
    return %arg0, %arg1 : i32, i32
  }
}

module attributes {stable_mosaic.version = 11 : i64} {
  func.func @_linear_kernel(%arg0: i32, %arg1: i32, %arg2: i32, %arg3: memref<32x128xf32, #tpu.memory_space<vmem>>, %arg4: memref<128x128xf32, #tpu.memory_space<vmem>>, %arg5: memref<1x128xf32, #tpu.memory_space<vmem>>, %arg6: memref<32x128xf32, #tpu.memory_space<vmem>>, %arg7: memref<32x128xf32, #tpu.memory_space<vmem>>) attributes {dimension_semantics = [#tpu.dimension_semantics<parallel>, #tpu.dimension_semantics<parallel>, #tpu.dimension_semantics<arbitrary>], iteration_bounds = array<i64: 1, 1, 2>, scalar_prefetch = 0 : i64, scratch_operands = 1 : i64, tpu.core_type = #tpu.core_type<tc>, window_params = [{transform_indices = @transform_0, window_bounds = array<i64: 32, 128>}, {transform_indices = @transform_1, window_bounds = array<i64: 128, 128>}, {transform_indices = @transform_2, window_bounds = array<i64: 1, 128>}, {transform_indices = @transform_3, window_bounds = array<i64: 32, 128>}]} {
    %c0_i32 = arith.constant 0 : i32
    %0 = arith.cmpi eq, %arg2, %c0_i32 : i32
    %1 = arith.extui %0 : i1 to i32
    %c0_i32_0 = arith.constant 0 : i32
    %2 = arith.cmpi ne, %1, %c0_i32_0 : i32
    scf.if %2 {
      %cst_9 = arith.constant 0.000000e+00 : f32
      %14 = vector.broadcast %cst_9 : f32 to vector<32x128xf32>
      %c0_10 = arith.constant 0 : index
      %c0_11 = arith.constant 0 : index
      %15 = vector.load %arg7[%c0_10, %c0_11] : memref<32x128xf32, #tpu.memory_space<vmem>>, vector<32x128xf32>
      tpu.vector_store %arg7[%c0_10, %c0_11], %14 {strides = array<i32>} : memref<32x128xf32, #tpu.memory_space<vmem>>, vector<32x128xf32>,
    } else {
    }
    %c0 = arith.constant 0 : index
    %c0_1 = arith.constant 0 : index
    %3 = vector.load %arg7[%c0, %c0_1] : memref<32x128xf32, #tpu.memory_space<vmem>>, vector<32x128xf32>
    %c0_2 = arith.constant 0 : index
    %c0_3 = arith.constant 0 : index
    %4 = vector.load %arg3[%c0_2, %c0_3] : memref<32x128xf32, #tpu.memory_space<vmem>>, vector<32x128xf32>
    %5 = arith.truncf %4 : vector<32x128xf32> to vector<32x128xbf16>
    %c0_4 = arith.constant 0 : index
    %c0_5 = arith.constant 0 : index
    %6 = vector.load %arg4[%c0_4, %c0_5] : memref<128x128xf32, #tpu.memory_space<vmem>>, vector<128x128xf32>
    %7 = arith.truncf %6 : vector<128x128xf32> to vector<128x128xbf16>
    %cst = arith.constant dense<0.000000e+00> : vector<32x128xf32>
    %8 = tpu.matmul %5, %7, %cst {dimension_numbers = #tpu.dot_dimension_numbers<[1], [0], [0], [1], [0, 0, 1, 1], [], []>} : vector<32x128xbf16>, vector<128x128xbf16>, vector<32x128xf32> -> vector<32x128xf32>
    %9 = arith.addf %3, %8 : vector<32x128xf32>
    %c0_6 = arith.constant 0 : index
    %c0_7 = arith.constant 0 : index
    %10 = vector.load %arg7[%c0_6, %c0_7] : memref<32x128xf32, #tpu.memory_space<vmem>>, vector<32x128xf32>
    tpu.vector_store %arg7[%c0_6, %c0_7], %9 {strides = array<i32>} : memref<32x128xf32, #tpu.memory_space<vmem>>, vector<32x128xf32>,
    %c1_i32 = arith.constant 1 : i32
    %11 = arith.cmpi eq, %arg2, %c1_i32 : i32
    %12 = arith.extui %11 : i1 to i32
    %c0_i32_8 = arith.constant 0 : i32
    %13 = arith.cmpi ne, %12, %c0_i32_8 : i32
    scf.if %13 {
      %c0_9 = arith.constant 0 : index
      %c0_10 = arith.constant 0 : index
      %14 = vector.load %arg7[%c0_9, %c0_10] : memref<32x128xf32, #tpu.memory_space<vmem>>, vector<32x128xf32>
      %c0_11 = arith.constant 0 : index
      %c0_12 = arith.constant 0 : index
      %15 = vector.load %arg5[%c0_11, %c0_12] : memref<1x128xf32, #tpu.memory_space<vmem>>, vector<1x128xf32>
      %16 = vector.broadcast %15 : vector<1x128xf32> to vector<32x128xf32>
      %17 = arith.addf %14, %16 : vector<32x128xf32>
      %c0_13 = arith.constant 0 : index
      %c0_14 = arith.constant 0 : index
      %18 = vector.load %arg6[%c0_13, %c0_14] : memref<32x128xf32, #tpu.memory_space<vmem>>, vector<32x128xf32>
      tpu.vector_store %arg6[%c0_13, %c0_14], %17 {strides = array<i32>} : memref<32x128xf32, #tpu.memory_space<vmem>>, vector<32x128xf32>,
    } else {
    }
    return
  }
  func.func @transform_0(%arg0: i32, %arg1: i32, %arg2: i32) -> (i32, i32) {
    %c0_i32 = arith.constant 0 : i32
    return %arg0, %arg2 : i32, i32
  }
  func.func @transform_1(%arg0: i32, %arg1: i32, %arg2: i32) -> (i32, i32) {
    %c0_i32 = arith.constant 0 : i32
    return %arg2, %arg1 : i32, i32
  }
  func.func @transform_2(%arg0: i32, %arg1: i32, %arg2: i32) -> (i32, i32) {
    %c0_i32 = arith.constant 0 : i32
    %c0_i32_0 = arith.constant 0 : i32
    return %c0_i32, %arg1 : i32, i32
  }
  func.func @transform_3(%arg0: i32, %arg1: i32, %arg2: i32) -> (i32, i32) {
    %c0_i32 = arith.constant 0 : i32
    return %arg0, %arg1 : i32, i32
  }
}

module attributes {stable_mosaic.version = 11 : i64} {
  func.func @_linear_kernel(%arg0: i32, %arg1: i32, %arg2: i32, %arg3: memref<32x128xf32, #tpu.memory_space<vmem>>, %arg4: memref<128x128xf32, #tpu.memory_space<vmem>>, %arg5: memref<1x128xf32, #tpu.memory_space<vmem>>, %arg6: memref<32x128xf32, #tpu.memory_space<vmem>>, %arg7: memref<32x128xf32, #tpu.memory_space<vmem>>) attributes {dimension_semantics = [#tpu.dimension_semantics<parallel>, #tpu.dimension_semantics<parallel>, #tpu.dimension_semantics<arbitrary>], iteration_bounds = array<i64: 1, 1, 1>, scalar_prefetch = 0 : i64, scratch_operands = 1 : i64, tpu.core_type = #tpu.core_type<tc>, window_params = [{transform_indices = @transform_0, window_bounds = array<i64: 32, 128>}, {transform_indices = @transform_1, window_bounds = array<i64: 128, 128>}, {transform_indices = @transform_2, window_bounds = array<i64: 1, 128>}, {transform_indices = @transform_3, window_bounds = array<i64: 32, 128>}]} {
    %c0_i32 = arith.constant 0 : i32
    %0 = arith.cmpi eq, %arg2, %c0_i32 : i32
    %1 = arith.extui %0 : i1 to i32
    %c0_i32_0 = arith.constant 0 : i32
    %2 = arith.cmpi ne, %1, %c0_i32_0 : i32
    scf.if %2 {
      %cst_10 = arith.constant 0.000000e+00 : f32
      %14 = vector.broadcast %cst_10 : f32 to vector<32x128xf32>
      %c0_11 = arith.constant 0 : index
      %c0_12 = arith.constant 0 : index
      %15 = vector.load %arg7[%c0_11, %c0_12] : memref<32x128xf32, #tpu.memory_space<vmem>>, vector<32x128xf32>
      tpu.vector_store %arg7[%c0_11, %c0_12], %14 {strides = array<i32>} : memref<32x128xf32, #tpu.memory_space<vmem>>, vector<32x128xf32>,
    } else {
    }
    %c0 = arith.constant 0 : index
    %c0_1 = arith.constant 0 : index
    %3 = vector.load %arg7[%c0, %c0_1] : memref<32x128xf32, #tpu.memory_space<vmem>>, vector<32x128xf32>
    %c0_2 = arith.constant 0 : index
    %c0_3 = arith.constant 0 : index
    %4 = vector.load %arg3[%c0_2, %c0_3] : memref<32x128xf32, #tpu.memory_space<vmem>>, vector<32x128xf32>
    %5 = arith.truncf %4 : vector<32x128xf32> to vector<32x128xbf16>
    %c0_4 = arith.constant 0 : index
    %c0_5 = arith.constant 0 : index
    %6 = vector.load %arg4[%c0_4, %c0_5] : memref<128x128xf32, #tpu.memory_space<vmem>>, vector<128x128xf32>
    %7 = arith.truncf %6 : vector<128x128xf32> to vector<128x128xbf16>
    %cst = arith.constant dense<0.000000e+00> : vector<32x128xf32>
    %8 = tpu.matmul %5, %7, %cst {dimension_numbers = #tpu.dot_dimension_numbers<[1], [0], [0], [1], [0, 0, 1, 1], [], []>} : vector<32x128xbf16>, vector<128x128xbf16>, vector<32x128xf32> -> vector<32x128xf32>
    %9 = arith.addf %3, %8 : vector<32x128xf32>
    %c0_6 = arith.constant 0 : index
    %c0_7 = arith.constant 0 : index
    %10 = vector.load %arg7[%c0_6, %c0_7] : memref<32x128xf32, #tpu.memory_space<vmem>>, vector<32x128xf32>
    tpu.vector_store %arg7[%c0_6, %c0_7], %9 {strides = array<i32>} : memref<32x128xf32, #tpu.memory_space<vmem>>, vector<32x128xf32>,
    %c0_i32_8 = arith.constant 0 : i32
    %11 = arith.cmpi eq, %arg2, %c0_i32_8 : i32
    %12 = arith.extui %11 : i1 to i32
    %c0_i32_9 = arith.constant 0 : i32
    %13 = arith.cmpi ne, %12, %c0_i32_9 : i32
    scf.if %13 {
      %c0_10 = arith.constant 0 : index
      %c0_11 = arith.constant 0 : index
      %14 = vector.load %arg7[%c0_10, %c0_11] : memref<32x128xf32, #tpu.memory_space<vmem>>, vector<32x128xf32>
      %c0_12 = arith.constant 0 : index
      %c0_13 = arith.constant 0 : index
      %15 = vector.load %arg5[%c0_12, %c0_13] : memref<1x128xf32, #tpu.memory_space<vmem>>, vector<1x128xf32>
      %16 = vector.broadcast %15 : vector<1x128xf32> to vector<32x128xf32>
      %17 = arith.addf %14, %16 : vector<32x128xf32>
      %c0_14 = arith.constant 0 : index
      %c0_15 = arith.constant 0 : index
      %18 = vector.load %arg6[%c0_14, %c0_15] : memref<32x128xf32, #tpu.memory_space<vmem>>, vector<32x128xf32>
      tpu.vector_store %arg6[%c0_14, %c0_15], %17 {strides = array<i32>} : memref<32x128xf32, #tpu.memory_space<vmem>>, vector<32x128xf32>,
    } else {
    }
    return
  }
  func.func @transform_0(%arg0: i32, %arg1: i32, %arg2: i32) -> (i32, i32) {
    %c0_i32 = arith.constant 0 : i32
    return %arg0, %arg2 : i32, i32
  }
  func.func @transform_1(%arg0: i32, %arg1: i32, %arg2: i32) -> (i32, i32) {
    %c0_i32 = arith.constant 0 : i32
    return %arg2, %arg1 : i32, i32
  }
  func.func @transform_2(%arg0: i32, %arg1: i32, %arg2: i32) -> (i32, i32) {
    %c0_i32 = arith.constant 0 : i32
    %c0_i32_0 = arith.constant 0 : i32
    return %c0_i32, %arg1 : i32, i32
  }
  func.func @transform_3(%arg0: i32, %arg1: i32, %arg2: i32) -> (i32, i32) {
    %c0_i32 = arith.constant 0 : i32
    return %arg0, %arg1 : i32, i32
  }
}

module attributes {stable_mosaic.version = 11 : i64} {
  func.func @_flash_attn_kernel(%arg0: i32, %arg1: i32, %arg2: memref<4x16x16xf32, #tpu.memory_space<vmem>>, %arg3: memref<4x16x16xf32, #tpu.memory_space<vmem>>, %arg4: memref<4x16x16xf32, #tpu.memory_space<vmem>>, %arg5: memref<4x16x16xf32, #tpu.memory_space<vmem>>, %arg6: memref<4x16x1xf32, #tpu.memory_space<vmem>>, %arg7: memref<4x16x1xf32, #tpu.memory_space<vmem>>, %arg8: memref<4x16x16xf32, #tpu.memory_space<vmem>>) attributes {dimension_semantics = [#tpu.dimension_semantics<parallel>, #tpu.dimension_semantics<arbitrary>], iteration_bounds = array<i64: 1, 1>, scalar_prefetch = 0 : i64, scratch_operands = 3 : i64, tpu.core_type = #tpu.core_type<tc>, window_params = [{transform_indices = @transform_0, window_bounds = array<i64: 4, 16, 16>}, {transform_indices = @transform_1, window_bounds = array<i64: 4, 16, 16>}, {transform_indices = @transform_2, window_bounds = array<i64: 4, 16, 16>}, {transform_indices = @transform_3, window_bounds = array<i64: 4, 16, 16>}]} {
    %c0_i32 = arith.constant 0 : i32
    %0 = arith.cmpi eq, %arg1, %c0_i32 : i32
    %1 = arith.extui %0 : i1 to i32
    %c0_i32_0 = arith.constant 0 : i32
    %2 = arith.cmpi ne, %1, %c0_i32_0 : i32
    scf.if %2 {
      %cst_34 = arith.constant -1.000000e+30 : f32
      %46 = vector.broadcast %cst_34 : f32 to vector<4x16x1xf32>
      %c0_35 = arith.constant 0 : index
      %c0_36 = arith.constant 0 : index
      %c0_37 = arith.constant 0 : index
      %47 = vector.load %arg6[%c0_35, %c0_36, %c0_37] : memref<4x16x1xf32, #tpu.memory_space<vmem>>, vector<4x16x1xf32>
      tpu.vector_store %arg6[%c0_35, %c0_36, %c0_37], %46 {strides = array<i32>} : memref<4x16x1xf32, #tpu.memory_space<vmem>>, vector<4x16x1xf32>,
      %cst_38 = arith.constant 0.000000e+00 : f32
      %48 = vector.broadcast %cst_38 : f32 to vector<4x16x1xf32>
      %c0_39 = arith.constant 0 : index
      %c0_40 = arith.constant 0 : index
      %c0_41 = arith.constant 0 : index
      %49 = vector.load %arg7[%c0_39, %c0_40, %c0_41] : memref<4x16x1xf32, #tpu.memory_space<vmem>>, vector<4x16x1xf32>
      tpu.vector_store %arg7[%c0_39, %c0_40, %c0_41], %48 {strides = array<i32>} : memref<4x16x1xf32, #tpu.memory_space<vmem>>, vector<4x16x1xf32>,
      %cst_42 = arith.constant 0.000000e+00 : f32
      %50 = vector.broadcast %cst_42 : f32 to vector<4x16x16xf32>
      %c0_43 = arith.constant 0 : index
      %c0_44 = arith.constant 0 : index
      %c0_45 = arith.constant 0 : index
      %51 = vector.load %arg8[%c0_43, %c0_44, %c0_45] : memref<4x16x16xf32, #tpu.memory_space<vmem>>, vector<4x16x16xf32>
      tpu.vector_store %arg8[%c0_43, %c0_44, %c0_45], %50 {strides = array<i32>} : memref<4x16x16xf32, #tpu.memory_space<vmem>>, vector<4x16x16xf32>,
    } else {
    }
    %c0 = arith.constant 0 : index
    %c0_1 = arith.constant 0 : index
    %c0_2 = arith.constant 0 : index
    %3 = vector.load %arg2[%c0, %c0_1, %c0_2] : memref<4x16x16xf32, #tpu.memory_space<vmem>>, vector<4x16x16xf32>
    %4 = arith.truncf %3 : vector<4x16x16xf32> to vector<4x16x16xbf16>
    %c0_3 = arith.constant 0 : index
    %c0_4 = arith.constant 0 : index
    %c0_5 = arith.constant 0 : index
    %5 = vector.load %arg3[%c0_3, %c0_4, %c0_5] : memref<4x16x16xf32, #tpu.memory_space<vmem>>, vector<4x16x16xf32>
    %6 = arith.truncf %5 : vector<4x16x16xf32> to vector<4x16x16xbf16>
    "tpu.trace_start"() <{level = 10 : i32, message = "bqd,bkd->bqk"}> : () -> ()
    %cst = arith.constant dense<0.000000e+00> : vector<4x16x16xf32>
    %7 = tpu.matmul %4, %6, %cst {dimension_numbers = #tpu.dot_dimension_numbers<[2], [2], [1], [1], [0, 0, 0, 1, 1, 1], [0], [0]>} : vector<4x16x16xbf16>, vector<4x16x16xbf16>, vector<4x16x16xf32> -> vector<4x16x16xf32>
    "tpu.trace_stop"() : () -> ()
    %cst_6 = arith.constant 2.500000e-01 : f32
    %8 = vector.broadcast %cst_6 : f32 to vector<4x16x16xf32>
    %9 = arith.mulf %7, %8 : vector<4x16x16xf32>
    %c16_i32 = arith.constant 16 : i32
    %10 = arith.muli %arg1, %c16_i32 : i32
    %11 = tpu.iota {dimensions = array<i32: 2>} : vector<4x16x16xi32>
    %12 = vector.broadcast %10 : i32 to vector<4x16x16xi32>
    %13 = arith.addi %12, %11 : vector<4x16x16xi32>
    %c15_i32 = arith.constant 15 : i32
    %14 = vector.broadcast %c15_i32 : i32 to vector<4x16x16xi32>
    %15 = arith.cmpi slt, %13, %14 : vector<4x16x16xi32>
    %cst_7 = arith.constant -1.000000e+30 : f32
    %16 = vector.broadcast %cst_7 : f32 to vector<4x16x16xf32>
    %17 = arith.select %15, %9, %16 : vector<4x16x16xi1>, vector<4x16x16xf32>
    %c0_8 = arith.constant 0 : index
    %c0_9 = arith.constant 0 : index
    %c0_10 = arith.constant 0 : index
    %18 = vector.load %arg6[%c0_8, %c0_9, %c0_10] : memref<4x16x1xf32, #tpu.memory_space<vmem>>, vector<4x16x1xf32>
    %cst_11 = arith.constant dense<0xFF800000> : vector<4x16xf32>
    %19 = vector.multi_reduction <maximumf>, %17, %cst_11 [2] : vector<4x16x16xf32> to vector<4x16xf32>
    %20 = vector.shape_cast %19 : vector<4x16xf32> to vector<4x16x1xf32>
    %21 = arith.maximumf %18, %20 : vector<4x16x1xf32>
    %22 = arith.subf %18, %21 : vector<4x16x1xf32>
    %23 = math.exp %22 : vector<4x16x1xf32>
    %24 = vector.broadcast %21 : vector<4x16x1xf32> to vector<4x16x16xf32>
    %25 = arith.subf %17, %24 : vector<4x16x16xf32>
    %26 = math.exp %25 : vector<4x16x16xf32>
    %c0_12 = arith.constant 0 : index
    %c0_13 = arith.constant 0 : index
    %c0_14 = arith.constant 0 : index
    %27 = vector.load %arg7[%c0_12, %c0_13, %c0_14] : memref<4x16x1xf32, #tpu.memory_space<vmem>>, vector<4x16x1xf32>
    %28 = arith.mulf %23, %27 : vector<4x16x1xf32>
    %cst_15 = arith.constant dense<0.000000e+00> : vector<4x16xf32>
    %29 = vector.multi_reduction <add>, %26, %cst_15 [2] : vector<4x16x16xf32> to vector<4x16xf32>
    %30 = vector.shape_cast %29 : vector<4x16xf32> to vector<4x16x1xf32>
    %31 = arith.addf %28, %30 : vector<4x16x1xf32>
    %c0_16 = arith.constant 0 : index
    %c0_17 = arith.constant 0 : index
    %c0_18 = arith.constant 0 : index
    %32 = vector.load %arg7[%c0_16, %c0_17, %c0_18] : memref<4x16x1xf32, #tpu.memory_space<vmem>>, vector<4x16x1xf32>
    tpu.vector_store %arg7[%c0_16, %c0_17, %c0_18], %31 {strides = array<i32>} : memref<4x16x1xf32, #tpu.memory_space<vmem>>, vector<4x16x1xf32>,
    %c0_19 = arith.constant 0 : index
    %c0_20 = arith.constant 0 : index
    %c0_21 = arith.constant 0 : index
    %33 = vector.load %arg8[%c0_19, %c0_20, %c0_21] : memref<4x16x16xf32, #tpu.memory_space<vmem>>, vector<4x16x16xf32>
    %34 = vector.broadcast %23 : vector<4x16x1xf32> to vector<4x16x16xf32>
    %35 = arith.mulf %34, %33 : vector<4x16x16xf32>
    %36 = arith.truncf %26 : vector<4x16x16xf32> to vector<4x16x16xbf16>
    %c0_22 = arith.constant 0 : index
    %c0_23 = arith.constant 0 : index
    %c0_24 = arith.constant 0 : index
    %37 = vector.load %arg4[%c0_22, %c0_23, %c0_24] : memref<4x16x16xf32, #tpu.memory_space<vmem>>, vector<4x16x16xf32>
    %38 = arith.truncf %37 : vector<4x16x16xf32> to vector<4x16x16xbf16>
    "tpu.trace_start"() <{level = 10 : i32, message = "bqk,bkd->bqd"}> : () -> ()
    %cst_25 = arith.constant dense<0.000000e+00> : vector<4x16x16xf32>
    %39 = tpu.matmul %36, %38, %cst_25 {dimension_numbers = #tpu.dot_dimension_numbers<[2], [1], [1], [2], [0, 0, 0, 1, 1, 2], [0], [0]>} : vector<4x16x16xbf16>, vector<4x16x16xbf16>, vector<4x16x16xf32> -> vector<4x16x16xf32>
    "tpu.trace_stop"() : () -> ()
    %40 = arith.addf %35, %39 : vector<4x16x16xf32>
    %c0_26 = arith.constant 0 : index
    %c0_27 = arith.constant 0 : index
    %c0_28 = arith.constant 0 : index
    %41 = vector.load %arg8[%c0_26, %c0_27, %c0_28] : memref<4x16x16xf32, #tpu.memory_space<vmem>>, vector<4x16x16xf32>
    tpu.vector_store %arg8[%c0_26, %c0_27, %c0_28], %40 {strides = array<i32>} : memref<4x16x16xf32, #tpu.memory_space<vmem>>, vector<4x16x16xf32>,
    %c0_29 = arith.constant 0 : index
    %c0_30 = arith.constant 0 : index
    %c0_31 = arith.constant 0 : index
    %42 = vector.load %arg6[%c0_29, %c0_30, %c0_31] : memref<4x16x1xf32, #tpu.memory_space<vmem>>, vector<4x16x1xf32>
    tpu.vector_store %arg6[%c0_29, %c0_30, %c0_31], %21 {strides = array<i32>} : memref<4x16x1xf32, #tpu.memory_space<vmem>>, vector<4x16x1xf32>,
    %c0_i32_32 = arith.constant 0 : i32
    %43 = arith.cmpi eq, %arg1, %c0_i32_32 : i32
    %44 = arith.extui %43 : i1 to i32
    %c0_i32_33 = arith.constant 0 : i32
    %45 = arith.cmpi ne, %44, %c0_i32_33 : i32
    scf.if %45 {
      %c0_34 = arith.constant 0 : index
      %c0_35 = arith.constant 0 : index
      %c0_36 = arith.constant 0 : index
      %46 = vector.load %arg8[%c0_34, %c0_35, %c0_36] : memref<4x16x16xf32, #tpu.memory_space<vmem>>, vector<4x16x16xf32>
      %c0_37 = arith.constant 0 : index
      %c0_38 = arith.constant 0 : index
      %c0_39 = arith.constant 0 : index
      %47 = vector.load %arg7[%c0_37, %c0_38, %c0_39] : memref<4x16x1xf32, #tpu.memory_space<vmem>>, vector<4x16x1xf32>
      %48 = tpu.reciprocal %47 {approx = true} : vector<4x16x1xf32> -> vector<4x16x1xf32>
      %49 = vector.broadcast %48 : vector<4x16x1xf32> to vector<4x16x16xf32>
      %50 = arith.mulf %46, %49 : vector<4x16x16xf32>
      %c0_40 = arith.constant 0 : index
      %c0_41 = arith.constant 0 : index
      %c0_42 = arith.constant 0 : index
      %51 = vector.load %arg5[%c0_40, %c0_41, %c0_42] : memref<4x16x16xf32, #tpu.memory_space<vmem>>, vector<4x16x16xf32>
      tpu.vector_store %arg5[%c0_40, %c0_41, %c0_42], %50 {strides = array<i32>} : memref<4x16x16xf32, #tpu.memory_space<vmem>>, vector<4x16x16xf32>,
    } else {
    }
    return
  }
  func.func @transform_0(%arg0: i32, %arg1: i32) -> (i32, i32, i32) {
    %c0_i32 = arith.constant 0 : i32
    %c0_i32_0 = arith.constant 0 : i32
    %c0_i32_1 = arith.constant 0 : i32
    return %c0_i32, %arg0, %c0_i32_0 : i32, i32, i32
  }
  func.func @transform_1(%arg0: i32, %arg1: i32) -> (i32, i32, i32) {
    %c0_i32 = arith.constant 0 : i32
    %c0_i32_0 = arith.constant 0 : i32
    %c0_i32_1 = arith.constant 0 : i32
    return %c0_i32, %arg1, %c0_i32_0 : i32, i32, i32
  }
  func.func @transform_2(%arg0: i32, %arg1: i32) -> (i32, i32, i32) {
    %c0_i32 = arith.constant 0 : i32
    %c0_i32_0 = arith.constant 0 : i32
    %c0_i32_1 = arith.constant 0 : i32
    return %c0_i32, %arg1, %c0_i32_0 : i32, i32, i32
  }
  func.func @transform_3(%arg0: i32, %arg1: i32) -> (i32, i32, i32) {
    %c0_i32 = arith.constant 0 : i32
    %c0_i32_0 = arith.constant 0 : i32
    %c0_i32_1 = arith.constant 0 : i32
    return %c0_i32, %arg0, %c0_i32_0 : i32, i32, i32
  }
}

module attributes {stable_mosaic.version = 11 : i64} {
  func.func @_linear_kernel(%arg0: i32, %arg1: i32, %arg2: i32, %arg3: memref<32x128xf32, #tpu.memory_space<vmem>>, %arg4: memref<128x128xf32, #tpu.memory_space<vmem>>, %arg5: memref<1x128xf32, #tpu.memory_space<vmem>>, %arg6: memref<32x128xf32, #tpu.memory_space<vmem>>, %arg7: memref<32x128xf32, #tpu.memory_space<vmem>>, %arg8: memref<32x128xf32, #tpu.memory_space<vmem>>) attributes {dimension_semantics = [#tpu.dimension_semantics<parallel>, #tpu.dimension_semantics<parallel>, #tpu.dimension_semantics<arbitrary>], iteration_bounds = array<i64: 1, 1, 1>, scalar_prefetch = 0 : i64, scratch_operands = 1 : i64, tpu.core_type = #tpu.core_type<tc>, window_params = [{transform_indices = @transform_0, window_bounds = array<i64: 32, 128>}, {transform_indices = @transform_1, window_bounds = array<i64: 128, 128>}, {transform_indices = @transform_2, window_bounds = array<i64: 1, 128>}, {transform_indices = @transform_3, window_bounds = array<i64: 32, 128>}, {transform_indices = @transform_4, window_bounds = array<i64: 32, 128>}]} {
    %c0_i32 = arith.constant 0 : i32
    %0 = arith.cmpi eq, %arg2, %c0_i32 : i32
    %1 = arith.extui %0 : i1 to i32
    %c0_i32_0 = arith.constant 0 : i32
    %2 = arith.cmpi ne, %1, %c0_i32_0 : i32
    scf.if %2 {
      %cst_10 = arith.constant 0.000000e+00 : f32
      %14 = vector.broadcast %cst_10 : f32 to vector<32x128xf32>
      %c0_11 = arith.constant 0 : index
      %c0_12 = arith.constant 0 : index
      %15 = vector.load %arg8[%c0_11, %c0_12] : memref<32x128xf32, #tpu.memory_space<vmem>>, vector<32x128xf32>
      tpu.vector_store %arg8[%c0_11, %c0_12], %14 {strides = array<i32>} : memref<32x128xf32, #tpu.memory_space<vmem>>, vector<32x128xf32>,
    } else {
    }
    %c0 = arith.constant 0 : index
    %c0_1 = arith.constant 0 : index
    %3 = vector.load %arg8[%c0, %c0_1] : memref<32x128xf32, #tpu.memory_space<vmem>>, vector<32x128xf32>
    %c0_2 = arith.constant 0 : index
    %c0_3 = arith.constant 0 : index
    %4 = vector.load %arg3[%c0_2, %c0_3] : memref<32x128xf32, #tpu.memory_space<vmem>>, vector<32x128xf32>
    %5 = arith.truncf %4 : vector<32x128xf32> to vector<32x128xbf16>
    %c0_4 = arith.constant 0 : index
    %c0_5 = arith.constant 0 : index
    %6 = vector.load %arg4[%c0_4, %c0_5] : memref<128x128xf32, #tpu.memory_space<vmem>>, vector<128x128xf32>
    %7 = arith.truncf %6 : vector<128x128xf32> to vector<128x128xbf16>
    %cst = arith.constant dense<0.000000e+00> : vector<32x128xf32>
    %8 = tpu.matmul %5, %7, %cst {dimension_numbers = #tpu.dot_dimension_numbers<[1], [0], [0], [1], [0, 0, 1, 1], [], []>} : vector<32x128xbf16>, vector<128x128xbf16>, vector<32x128xf32> -> vector<32x128xf32>
    %9 = arith.addf %3, %8 : vector<32x128xf32>
    %c0_6 = arith.constant 0 : index
    %c0_7 = arith.constant 0 : index
    %10 = vector.load %arg8[%c0_6, %c0_7] : memref<32x128xf32, #tpu.memory_space<vmem>>, vector<32x128xf32>
    tpu.vector_store %arg8[%c0_6, %c0_7], %9 {strides = array<i32>} : memref<32x128xf32, #tpu.memory_space<vmem>>, vector<32x128xf32>,
    %c0_i32_8 = arith.constant 0 : i32
    %11 = arith.cmpi eq, %arg2, %c0_i32_8 : i32
    %12 = arith.extui %11 : i1 to i32
    %c0_i32_9 = arith.constant 0 : i32
    %13 = arith.cmpi ne, %12, %c0_i32_9 : i32
    scf.if %13 {
      %c0_10 = arith.constant 0 : index
      %c0_11 = arith.constant 0 : index
      %14 = vector.load %arg8[%c0_10, %c0_11] : memref<32x128xf32, #tpu.memory_space<vmem>>, vector<32x128xf32>
      %c0_12 = arith.constant 0 : index
      %c0_13 = arith.constant 0 : index
      %15 = vector.load %arg5[%c0_12, %c0_13] : memref<1x128xf32, #tpu.memory_space<vmem>>, vector<1x128xf32>
      %16 = vector.broadcast %15 : vector<1x128xf32> to vector<32x128xf32>
      %17 = arith.addf %14, %16 : vector<32x128xf32>
      %c0_14 = arith.constant 0 : index
      %c0_15 = arith.constant 0 : index
      %18 = vector.load %arg6[%c0_14, %c0_15] : memref<32x128xf32, #tpu.memory_space<vmem>>, vector<32x128xf32>
      %19 = arith.addf %17, %18 : vector<32x128xf32>
      %c0_16 = arith.constant 0 : index
      %c0_17 = arith.constant 0 : index
      %20 = vector.load %arg7[%c0_16, %c0_17] : memref<32x128xf32, #tpu.memory_space<vmem>>, vector<32x128xf32>
      tpu.vector_store %arg7[%c0_16, %c0_17], %19 {strides = array<i32>} : memref<32x128xf32, #tpu.memory_space<vmem>>, vector<32x128xf32>,
    } else {
    }
    return
  }
  func.func @transform_0(%arg0: i32, %arg1: i32, %arg2: i32) -> (i32, i32) {
    %c0_i32 = arith.constant 0 : i32
    return %arg0, %arg2 : i32, i32
  }
  func.func @transform_1(%arg0: i32, %arg1: i32, %arg2: i32) -> (i32, i32) {
    %c0_i32 = arith.constant 0 : i32
    return %arg2, %arg1 : i32, i32
  }
  func.func @transform_2(%arg0: i32, %arg1: i32, %arg2: i32) -> (i32, i32) {
    %c0_i32 = arith.constant 0 : i32
    %c0_i32_0 = arith.constant 0 : i32
    return %c0_i32, %arg1 : i32, i32
  }
  func.func @transform_3(%arg0: i32, %arg1: i32, %arg2: i32) -> (i32, i32) {
    %c0_i32 = arith.constant 0 : i32
    return %arg0, %arg1 : i32, i32
  }
  func.func @transform_4(%arg0: i32, %arg1: i32, %arg2: i32) -> (i32, i32) {
    %c0_i32 = arith.constant 0 : i32
    return %arg0, %arg1 : i32, i32
  }
}

module attributes {stable_mosaic.version = 11 : i64} {
  func.func @_linear_glu_kernel(%arg0: i32, %arg1: i32, %arg2: i32, %arg3: memref<32x128xf32, #tpu.memory_space<vmem>>, %arg4: memref<128x128xf32, #tpu.memory_space<vmem>>, %arg5: memref<128x128xf32, #tpu.memory_space<vmem>>, %arg6: memref<1x128xf32, #tpu.memory_space<vmem>>, %arg7: memref<1x128xf32, #tpu.memory_space<vmem>>, %arg8: memref<32x128xf32, #tpu.memory_space<vmem>>, %arg9: memref<32x128xf32, #tpu.memory_space<vmem>>, %arg10: memref<32x128xf32, #tpu.memory_space<vmem>>) attributes {dimension_semantics = [#tpu.dimension_semantics<parallel>, #tpu.dimension_semantics<parallel>, #tpu.dimension_semantics<arbitrary>], iteration_bounds = array<i64: 1, 1, 1>, scalar_prefetch = 0 : i64, scratch_operands = 2 : i64, tpu.core_type = #tpu.core_type<tc>, window_params = [{transform_indices = @transform_0, window_bounds = array<i64: 32, 128>}, {transform_indices = @transform_1, window_bounds = array<i64: 128, 128>}, {transform_indices = @transform_2, window_bounds = array<i64: 128, 128>}, {transform_indices = @transform_3, window_bounds = array<i64: 1, 128>}, {transform_indices = @transform_4, window_bounds = array<i64: 1, 128>}, {transform_indices = @transform_5, window_bounds = array<i64: 32, 128>}]} {
    %c0_i32 = arith.constant 0 : i32
    %0 = arith.cmpi eq, %arg2, %c0_i32 : i32
    %1 = arith.extui %0 : i1 to i32
    %c0_i32_0 = arith.constant 0 : i32
    %2 = arith.cmpi ne, %1, %c0_i32_0 : i32
    scf.if %2 {
      %cst_17 = arith.constant 0.000000e+00 : f32
      %20 = vector.broadcast %cst_17 : f32 to vector<32x128xf32>
      %c0_18 = arith.constant 0 : index
      %c0_19 = arith.constant 0 : index
      %21 = vector.load %arg9[%c0_18, %c0_19] : memref<32x128xf32, #tpu.memory_space<vmem>>, vector<32x128xf32>
      tpu.vector_store %arg9[%c0_18, %c0_19], %20 {strides = array<i32>} : memref<32x128xf32, #tpu.memory_space<vmem>>, vector<32x128xf32>,
      %cst_20 = arith.constant 0.000000e+00 : f32
      %22 = vector.broadcast %cst_20 : f32 to vector<32x128xf32>
      %c0_21 = arith.constant 0 : index
      %c0_22 = arith.constant 0 : index
      %23 = vector.load %arg10[%c0_21, %c0_22] : memref<32x128xf32, #tpu.memory_space<vmem>>, vector<32x128xf32>
      tpu.vector_store %arg10[%c0_21, %c0_22], %22 {strides = array<i32>} : memref<32x128xf32, #tpu.memory_space<vmem>>, vector<32x128xf32>,
    } else {
    }
    %c0 = arith.constant 0 : index
    %c0_1 = arith.constant 0 : index
    %3 = vector.load %arg3[%c0, %c0_1] : memref<32x128xf32, #tpu.memory_space<vmem>>, vector<32x128xf32>
    %4 = arith.truncf %3 : vector<32x128xf32> to vector<32x128xbf16>
    %c0_2 = arith.constant 0 : index
    %c0_3 = arith.constant 0 : index
    %5 = vector.load %arg9[%c0_2, %c0_3] : memref<32x128xf32, #tpu.memory_space<vmem>>, vector<32x128xf32>
    %c0_4 = arith.constant 0 : index
    %c0_5 = arith.constant 0 : index
    %6 = vector.load %arg4[%c0_4, %c0_5] : memref<128x128xf32, #tpu.memory_space<vmem>>, vector<128x128xf32>
    %7 = arith.truncf %6 : vector<128x128xf32> to vector<128x128xbf16>
    %cst = arith.constant dense<0.000000e+00> : vector<32x128xf32>
    %8 = tpu.matmul %4, %7, %cst {dimension_numbers = #tpu.dot_dimension_numbers<[1], [0], [0], [1], [0, 0, 1, 1], [], []>} : vector<32x128xbf16>, vector<128x128xbf16>, vector<32x128xf32> -> vector<32x128xf32>
    %9 = arith.addf %5, %8 : vector<32x128xf32>
    %c0_6 = arith.constant 0 : index
    %c0_7 = arith.constant 0 : index
    %10 = vector.load %arg9[%c0_6, %c0_7] : memref<32x128xf32, #tpu.memory_space<vmem>>, vector<32x128xf32>
    tpu.vector_store %arg9[%c0_6, %c0_7], %9 {strides = array<i32>} : memref<32x128xf32, #tpu.memory_space<vmem>>, vector<32x128xf32>,
    %c0_8 = arith.constant 0 : index
    %c0_9 = arith.constant 0 : index
    %11 = vector.load %arg10[%c0_8, %c0_9] : memref<32x128xf32, #tpu.memory_space<vmem>>, vector<32x128xf32>
    %c0_10 = arith.constant 0 : index
    %c0_11 = arith.constant 0 : index
    %12 = vector.load %arg5[%c0_10, %c0_11] : memref<128x128xf32, #tpu.memory_space<vmem>>, vector<128x128xf32>
    %13 = arith.truncf %12 : vector<128x128xf32> to vector<128x128xbf16>
    %cst_12 = arith.constant dense<0.000000e+00> : vector<32x128xf32>
    %14 = tpu.matmul %4, %13, %cst_12 {dimension_numbers = #tpu.dot_dimension_numbers<[1], [0], [0], [1], [0, 0, 1, 1], [], []>} : vector<32x128xbf16>, vector<128x128xbf16>, vector<32x128xf32> -> vector<32x128xf32>
    %15 = arith.addf %11, %14 : vector<32x128xf32>
    %c0_13 = arith.constant 0 : index
    %c0_14 = arith.constant 0 : index
    %16 = vector.load %arg10[%c0_13, %c0_14] : memref<32x128xf32, #tpu.memory_space<vmem>>, vector<32x128xf32>
    tpu.vector_store %arg10[%c0_13, %c0_14], %15 {strides = array<i32>} : memref<32x128xf32, #tpu.memory_space<vmem>>, vector<32x128xf32>,
    %c0_i32_15 = arith.constant 0 : i32
    %17 = arith.cmpi eq, %arg2, %c0_i32_15 : i32
    %18 = arith.extui %17 : i1 to i32
    %c0_i32_16 = arith.constant 0 : i32
    %19 = arith.cmpi ne, %18, %c0_i32_16 : i32
    scf.if %19 {
      %c0_17 = arith.constant 0 : index
      %c0_18 = arith.constant 0 : index
      %20 = vector.load %arg9[%c0_17, %c0_18] : memref<32x128xf32, #tpu.memory_space<vmem>>, vector<32x128xf32>
      %c0_19 = arith.constant 0 : index
      %c0_20 = arith.constant 0 : index
      %21 = vector.load %arg6[%c0_19, %c0_20] : memref<1x128xf32, #tpu.memory_space<vmem>>, vector<1x128xf32>
      %22 = vector.broadcast %21 : vector<1x128xf32> to vector<32x128xf32>
      %23 = arith.addf %20, %22 : vector<32x128xf32>
      %c0_21 = arith.constant 0 : index
      %c0_22 = arith.constant 0 : index
      %24 = vector.load %arg10[%c0_21, %c0_22] : memref<32x128xf32, #tpu.memory_space<vmem>>, vector<32x128xf32>
      %c0_23 = arith.constant 0 : index
      %c0_24 = arith.constant 0 : index
      %25 = vector.load %arg7[%c0_23, %c0_24] : memref<1x128xf32, #tpu.memory_space<vmem>>, vector<1x128xf32>
      %26 = vector.broadcast %25 : vector<1x128xf32> to vector<32x128xf32>
      %27 = arith.addf %24, %26 : vector<32x128xf32>
      %28 = arith.negf %27 : vector<32x128xf32>
      %29 = math.exp %28 : vector<32x128xf32>
      %cst_25 = arith.constant 1.000000e+00 : f32
      %30 = vector.broadcast %cst_25 : f32 to vector<32x128xf32>
      %31 = arith.addf %30, %29 : vector<32x128xf32>
      %32 = arith.divf %30, %31 : vector<32x128xf32>
      %33 = arith.mulf %23, %32 : vector<32x128xf32>
      %c0_26 = arith.constant 0 : index
      %c0_27 = arith.constant 0 : index
      %34 = vector.load %arg8[%c0_26, %c0_27] : memref<32x128xf32, #tpu.memory_space<vmem>>, vector<32x128xf32>
      tpu.vector_store %arg8[%c0_26, %c0_27], %33 {strides = array<i32>} : memref<32x128xf32, #tpu.memory_space<vmem>>, vector<32x128xf32>,
    } else {
    }
    return
  }
  func.func @transform_0(%arg0: i32, %arg1: i32, %arg2: i32) -> (i32, i32) {
    %c0_i32 = arith.constant 0 : i32
    return %arg0, %arg2 : i32, i32
  }
  func.func @transform_1(%arg0: i32, %arg1: i32, %arg2: i32) -> (i32, i32) {
    %c0_i32 = arith.constant 0 : i32
    return %arg2, %arg1 : i32, i32
  }
  func.func @transform_2(%arg0: i32, %arg1: i32, %arg2: i32) -> (i32, i32) {
    %c0_i32 = arith.constant 0 : i32
    return %arg2, %arg1 : i32, i32
  }
  func.func @transform_3(%arg0: i32, %arg1: i32, %arg2: i32) -> (i32, i32) {
    %c0_i32 = arith.constant 0 : i32
    %c0_i32_0 = arith.constant 0 : i32
    return %c0_i32, %arg1 : i32, i32
  }
  func.func @transform_4(%arg0: i32, %arg1: i32, %arg2: i32) -> (i32, i32) {
    %c0_i32 = arith.constant 0 : i32
    %c0_i32_0 = arith.constant 0 : i32
    return %c0_i32, %arg1 : i32, i32
  }
  func.func @transform_5(%arg0: i32, %arg1: i32, %arg2: i32) -> (i32, i32) {
    %c0_i32 = arith.constant 0 : i32
    return %arg0, %arg1 : i32, i32
  }
}

module attributes {stable_mosaic.version = 11 : i64} {
  func.func @_dwconv_kernel(%arg0: memref<2x1x23x32xf32, #tpu.memory_space<vmem>>, %arg1: memref<1x9x32xf32, #tpu.memory_space<vmem>>, %arg2: memref<1x32xf32, #tpu.memory_space<vmem>>, %arg3: memref<2x15x32xf32, #tpu.memory_space<vmem>>) attributes {dimension_semantics = [], scalar_prefetch = 0 : i64, scratch_operands = 0 : i64, tpu.core_type = #tpu.core_type<tc>} {
    %c0 = arith.constant 0 : index
    %c0_0 = arith.constant 0 : index
    %c0_1 = arith.constant 0 : index
    %c0_2 = arith.constant 0 : index
    %0 = vector.load %arg0[%c0, %c0_0, %c0_1, %c0_2] : memref<2x1x23x32xf32, #tpu.memory_space<vmem>>, vector<2x1x23x32xf32>
    %c0_3 = arith.constant 0 : index
    %c0_4 = arith.constant 0 : index
    %c0_5 = arith.constant 0 : index
    %1 = vector.load %arg1[%c0_3, %c0_4, %c0_5] : memref<1x9x32xf32, #tpu.memory_space<vmem>>, vector<1x9x32xf32>
    %cst = arith.constant 0.000000e+00 : f32
    %2 = vector.broadcast %cst : f32 to vector<2x15x32xf32>
    %3 = vector.shape_cast %0 : vector<2x1x23x32xf32> to vector<2x23x32xf32>
    %4 = vector.extract_strided_slice %3 {offsets = [0, 0, 0], sizes = [2, 15, 32], strides = [1, 1, 1]} : vector<2x23x32xf32> to vector<2x15x32xf32>
    %5 = vector.extract_strided_slice %1 {offsets = [0, 0, 0], sizes = [1, 1, 32], strides = [1, 1, 1]} : vector<1x9x32xf32> to vector<1x1x32xf32>
    %6 = vector.shape_cast %5 : vector<1x1x32xf32> to vector<32xf32>
    %7 = vector.shape_cast %6 : vector<32xf32> to vector<1x1x32xf32>
    %8 = vector.broadcast %7 : vector<1x1x32xf32> to vector<2x15x32xf32>
    %9 = arith.mulf %4, %8 : vector<2x15x32xf32>
    %10 = arith.addf %2, %9 : vector<2x15x32xf32>
    %11 = vector.extract_strided_slice %3 {offsets = [0, 1, 0], sizes = [2, 15, 32], strides = [1, 1, 1]} : vector<2x23x32xf32> to vector<2x15x32xf32>
    %12 = vector.extract_strided_slice %1 {offsets = [0, 1, 0], sizes = [1, 1, 32], strides = [1, 1, 1]} : vector<1x9x32xf32> to vector<1x1x32xf32>
    %13 = vector.shape_cast %12 : vector<1x1x32xf32> to vector<32xf32>
    %14 = vector.shape_cast %13 : vector<32xf32> to vector<1x1x32xf32>
    %15 = vector.broadcast %14 : vector<1x1x32xf32> to vector<2x15x32xf32>
    %16 = arith.mulf %11, %15 : vector<2x15x32xf32>
    %17 = arith.addf %10, %16 : vector<2x15x32xf32>
    %18 = vector.extract_strided_slice %3 {offsets = [0, 2, 0], sizes = [2, 15, 32], strides = [1, 1, 1]} : vector<2x23x32xf32> to vector<2x15x32xf32>
    %19 = vector.extract_strided_slice %1 {offsets = [0, 2, 0], sizes = [1, 1, 32], strides = [1, 1, 1]} : vector<1x9x32xf32> to vector<1x1x32xf32>
    %20 = vector.shape_cast %19 : vector<1x1x32xf32> to vector<32xf32>
    %21 = vector.shape_cast %20 : vector<32xf32> to vector<1x1x32xf32>
    %22 = vector.broadcast %21 : vector<1x1x32xf32> to vector<2x15x32xf32>
    %23 = arith.mulf %18, %22 : vector<2x15x32xf32>
    %24 = arith.addf %17, %23 : vector<2x15x32xf32>
    %25 = vector.extract_strided_slice %3 {offsets = [0, 3, 0], sizes = [2, 15, 32], strides = [1, 1, 1]} : vector<2x23x32xf32> to vector<2x15x32xf32>
    %26 = vector.extract_strided_slice %1 {offsets = [0, 3, 0], sizes = [1, 1, 32], strides = [1, 1, 1]} : vector<1x9x32xf32> to vector<1x1x32xf32>
    %27 = vector.shape_cast %26 : vector<1x1x32xf32> to vector<32xf32>
    %28 = vector.shape_cast %27 : vector<32xf32> to vector<1x1x32xf32>
    %29 = vector.broadcast %28 : vector<1x1x32xf32> to vector<2x15x32xf32>
    %30 = arith.mulf %25, %29 : vector<2x15x32xf32>
    %31 = arith.addf %24, %30 : vector<2x15x32xf32>
    %32 = vector.extract_strided_slice %3 {offsets = [0, 4, 0], sizes = [2, 15, 32], strides = [1, 1, 1]} : vector<2x23x32xf32> to vector<2x15x32xf32>
    %33 = vector.extract_strided_slice %1 {offsets = [0, 4, 0], sizes = [1, 1, 32], strides = [1, 1, 1]} : vector<1x9x32xf32> to vector<1x1x32xf32>
    %34 = vector.shape_cast %33 : vector<1x1x32xf32> to vector<32xf32>
    %35 = vector.shape_cast %34 : vector<32xf32> to vector<1x1x32xf32>
    %36 = vector.broadcast %35 : vector<1x1x32xf32> to vector<2x15x32xf32>
    %37 = arith.mulf %32, %36 : vector<2x15x32xf32>
    %38 = arith.addf %31, %37 : vector<2x15x32xf32>
    %39 = vector.extract_strided_slice %3 {offsets = [0, 5, 0], sizes = [2, 15, 32], strides = [1, 1, 1]} : vector<2x23x32xf32> to vector<2x15x32xf32>
    %40 = vector.extract_strided_slice %1 {offsets = [0, 5, 0], sizes = [1, 1, 32], strides = [1, 1, 1]} : vector<1x9x32xf32> to vector<1x1x32xf32>
    %41 = vector.shape_cast %40 : vector<1x1x32xf32> to vector<32xf32>
    %42 = vector.shape_cast %41 : vector<32xf32> to vector<1x1x32xf32>
    %43 = vector.broadcast %42 : vector<1x1x32xf32> to vector<2x15x32xf32>
    %44 = arith.mulf %39, %43 : vector<2x15x32xf32>
    %45 = arith.addf %38, %44 : vector<2x15x32xf32>
    %46 = vector.extract_strided_slice %3 {offsets = [0, 6, 0], sizes = [2, 15, 32], strides = [1, 1, 1]} : vector<2x23x32xf32> to vector<2x15x32xf32>
    %47 = vector.extract_strided_slice %1 {offsets = [0, 6, 0], sizes = [1, 1, 32], strides = [1, 1, 1]} : vector<1x9x32xf32> to vector<1x1x32xf32>
    %48 = vector.shape_cast %47 : vector<1x1x32xf32> to vector<32xf32>
    %49 = vector.shape_cast %48 : vector<32xf32> to vector<1x1x32xf32>
    %50 = vector.broadcast %49 : vector<1x1x32xf32> to vector<2x15x32xf32>
    %51 = arith.mulf %46, %50 : vector<2x15x32xf32>
    %52 = arith.addf %45, %51 : vector<2x15x32xf32>
    %53 = vector.extract_strided_slice %3 {offsets = [0, 7, 0], sizes = [2, 15, 32], strides = [1, 1, 1]} : vector<2x23x32xf32> to vector<2x15x32xf32>
    %54 = vector.extract_strided_slice %1 {offsets = [0, 7, 0], sizes = [1, 1, 32], strides = [1, 1, 1]} : vector<1x9x32xf32> to vector<1x1x32xf32>
    %55 = vector.shape_cast %54 : vector<1x1x32xf32> to vector<32xf32>
    %56 = vector.shape_cast %55 : vector<32xf32> to vector<1x1x32xf32>
    %57 = vector.broadcast %56 : vector<1x1x32xf32> to vector<2x15x32xf32>
    %58 = arith.mulf %53, %57 : vector<2x15x32xf32>
    %59 = arith.addf %52, %58 : vector<2x15x32xf32>
    %60 = vector.extract_strided_slice %3 {offsets = [0, 8, 0], sizes = [2, 15, 32], strides = [1, 1, 1]} : vector<2x23x32xf32> to vector<2x15x32xf32>
    %61 = vector.extract_strided_slice %1 {offsets = [0, 8, 0], sizes = [1, 1, 32], strides = [1, 1, 1]} : vector<1x9x32xf32> to vector<1x1x32xf32>
    %62 = vector.shape_cast %61 : vector<1x1x32xf32> to vector<32xf32>
    %63 = vector.shape_cast %62 : vector<32xf32> to vector<1x1x32xf32>
    %64 = vector.broadcast %63 : vector<1x1x32xf32> to vector<2x15x32xf32>
    %65 = arith.mulf %60, %64 : vector<2x15x32xf32>
    %66 = arith.addf %59, %65 : vector<2x15x32xf32>
    %c0_6 = arith.constant 0 : index
    %c0_7 = arith.constant 0 : index
    %67 = vector.load %arg2[%c0_6, %c0_7] : memref<1x32xf32, #tpu.memory_space<vmem>>, vector<1x32xf32>
    %68 = vector.shape_cast %67 : vector<1x32xf32> to vector<1x1x32xf32>
    %69 = vector.broadcast %68 : vector<1x1x32xf32> to vector<2x15x32xf32>
    %70 = arith.addf %66, %69 : vector<2x15x32xf32>
    %c0_8 = arith.constant 0 : index
    %c0_9 = arith.constant 0 : index
    %c0_10 = arith.constant 0 : index
    %71 = vector.load %arg3[%c0_8, %c0_9, %c0_10] : memref<2x15x32xf32, #tpu.memory_space<vmem>>, vector<2x15x32xf32>
    tpu.vector_store %arg3[%c0_8, %c0_9, %c0_10], %70 {strides = array<i32>} : memref<2x15x32xf32, #tpu.memory_space<vmem>>, vector<2x15x32xf32>,
    return
  }
}

module attributes {stable_mosaic.version = 11 : i64} {
  func.func @_layernorm_kernel(%arg0: i32, %arg1: memref<32x32xf32, #tpu.memory_space<vmem>>, %arg2: memref<1x32xf32, #tpu.memory_space<vmem>>, %arg3: memref<1x32xf32, #tpu.memory_space<vmem>>, %arg4: memref<32x32xf32, #tpu.memory_space<vmem>>) attributes {dimension_semantics = [#tpu.dimension_semantics<parallel>], iteration_bounds = array<i64: 1>, scalar_prefetch = 0 : i64, scratch_operands = 0 : i64, tpu.core_type = #tpu.core_type<tc>, window_params = [{transform_indices = @transform_0, window_bounds = array<i64: 32, 32>}, {pipeline_mode = #tpu.pipeline_mode<synchronous>, transform_indices = @transform_1, window_bounds = array<i64: 1, 32>}, {pipeline_mode = #tpu.pipeline_mode<synchronous>, transform_indices = @transform_2, window_bounds = array<i64: 1, 32>}, {transform_indices = @transform_3, window_bounds = array<i64: 32, 32>}]} {
    %c0 = arith.constant 0 : index
    %c0_0 = arith.constant 0 : index
    %0 = vector.load %arg1[%c0, %c0_0] : memref<32x32xf32, #tpu.memory_space<vmem>>, vector<32x32xf32>
    %cst = arith.constant dense<0.000000e+00> : vector<32xf32>
    %1 = vector.multi_reduction <add>, %0, %cst [1] : vector<32x32xf32> to vector<32xf32>
    %2 = vector.shape_cast %1 : vector<32xf32> to vector<32x1xf32>
    %cst_1 = arith.constant 3.200000e+01 : f32
    %3 = vector.broadcast %cst_1 : f32 to vector<32x1xf32>
    %4 = arith.divf %2, %3 : vector<32x1xf32>
    %5 = vector.broadcast %4 : vector<32x1xf32> to vector<32x32xf32>
    %6 = arith.subf %0, %5 : vector<32x32xf32>
    %7 = arith.mulf %6, %6 : vector<32x32xf32>
    %cst_2 = arith.constant dense<0.000000e+00> : vector<32xf32>
    %8 = vector.multi_reduction <add>, %7, %cst_2 [1] : vector<32x32xf32> to vector<32xf32>
    %9 = vector.shape_cast %8 : vector<32xf32> to vector<32x1xf32>
    %cst_3 = arith.constant 3.200000e+01 : f32
    %10 = vector.broadcast %cst_3 : f32 to vector<32x1xf32>
    %11 = arith.divf %9, %10 : vector<32x1xf32>
    %cst_4 = arith.constant 9.99999974E-6 : f32
    %12 = vector.broadcast %cst_4 : f32 to vector<32x1xf32>
    %13 = arith.addf %11, %12 : vector<32x1xf32>
    %14 = math.rsqrt %13 : vector<32x1xf32>
    %15 = vector.broadcast %14 : vector<32x1xf32> to vector<32x32xf32>
    %16 = arith.mulf %6, %15 : vector<32x32xf32>
    %c0_5 = arith.constant 0 : index
    %c0_6 = arith.constant 0 : index
    %17 = vector.load %arg2[%c0_5, %c0_6] : memref<1x32xf32, #tpu.memory_space<vmem>>, vector<1x32xf32>
    %18 = vector.broadcast %17 : vector<1x32xf32> to vector<32x32xf32>
    %19 = arith.mulf %16, %18 : vector<32x32xf32>
    %c0_7 = arith.constant 0 : index
    %c0_8 = arith.constant 0 : index
    %20 = vector.load %arg3[%c0_7, %c0_8] : memref<1x32xf32, #tpu.memory_space<vmem>>, vector<1x32xf32>
    %21 = vector.broadcast %20 : vector<1x32xf32> to vector<32x32xf32>
    %22 = arith.addf %19, %21 : vector<32x32xf32>
    %23 = arith.negf %22 : vector<32x32xf32>
    %24 = math.exp %23 : vector<32x32xf32>
    %cst_9 = arith.constant 1.000000e+00 : f32
    %25 = vector.broadcast %cst_9 : f32 to vector<32x32xf32>
    %26 = arith.addf %25, %24 : vector<32x32xf32>
    %27 = arith.divf %25, %26 : vector<32x32xf32>
    %28 = arith.mulf %22, %27 : vector<32x32xf32>
    %c0_10 = arith.constant 0 : index
    %c0_11 = arith.constant 0 : index
    %29 = vector.load %arg4[%c0_10, %c0_11] : memref<32x32xf32, #tpu.memory_space<vmem>>, vector<32x32xf32>
    tpu.vector_store %arg4[%c0_10, %c0_11], %28 {strides = array<i32>} : memref<32x32xf32, #tpu.memory_space<vmem>>, vector<32x32xf32>,
    return
  }
  func.func @transform_0(%arg0: i32) -> (i32, i32) {
    %c0_i32 = arith.constant 0 : i32
    %c0_i32_0 = arith.constant 0 : i32
    return %arg0, %c0_i32 : i32, i32
  }
  func.func @transform_1(%arg0: i32) -> (i32, i32) {
    %c0_i32 = arith.constant 0 : i32
    %c0_i32_0 = arith.constant 0 : i32
    %c0_i32_1 = arith.constant 0 : i32
    return %c0_i32, %c0_i32_0 : i32, i32
  }
  func.func @transform_2(%arg0: i32) -> (i32, i32) {
    %c0_i32 = arith.constant 0 : i32
    %c0_i32_0 = arith.constant 0 : i32
    %c0_i32_1 = arith.constant 0 : i32
    return %c0_i32, %c0_i32_0 : i32, i32
  }
  func.func @transform_3(%arg0: i32) -> (i32, i32) {
    %c0_i32 = arith.constant 0 : i32
    %c0_i32_0 = arith.constant 0 : i32
    return %arg0, %c0_i32 : i32, i32
  }
}

module attributes {stable_mosaic.version = 11 : i64} {
  func.func @_linear_kernel(%arg0: i32, %arg1: i32, %arg2: i32, %arg3: memref<32x128xf32, #tpu.memory_space<vmem>>, %arg4: memref<128x128xf32, #tpu.memory_space<vmem>>, %arg5: memref<1x128xf32, #tpu.memory_space<vmem>>, %arg6: memref<32x128xf32, #tpu.memory_space<vmem>>, %arg7: memref<32x128xf32, #tpu.memory_space<vmem>>, %arg8: memref<32x128xf32, #tpu.memory_space<vmem>>) attributes {dimension_semantics = [#tpu.dimension_semantics<parallel>, #tpu.dimension_semantics<parallel>, #tpu.dimension_semantics<arbitrary>], iteration_bounds = array<i64: 1, 1, 1>, scalar_prefetch = 0 : i64, scratch_operands = 1 : i64, tpu.core_type = #tpu.core_type<tc>, window_params = [{transform_indices = @transform_0, window_bounds = array<i64: 32, 128>}, {transform_indices = @transform_1, window_bounds = array<i64: 128, 128>}, {transform_indices = @transform_2, window_bounds = array<i64: 1, 128>}, {transform_indices = @transform_3, window_bounds = array<i64: 32, 128>}, {transform_indices = @transform_4, window_bounds = array<i64: 32, 128>}]} {
    %c0_i32 = arith.constant 0 : i32
    %0 = arith.cmpi eq, %arg2, %c0_i32 : i32
    %1 = arith.extui %0 : i1 to i32
    %c0_i32_0 = arith.constant 0 : i32
    %2 = arith.cmpi ne, %1, %c0_i32_0 : i32
    scf.if %2 {
      %cst_10 = arith.constant 0.000000e+00 : f32
      %14 = vector.broadcast %cst_10 : f32 to vector<32x128xf32>
      %c0_11 = arith.constant 0 : index
      %c0_12 = arith.constant 0 : index
      %15 = vector.load %arg8[%c0_11, %c0_12] : memref<32x128xf32, #tpu.memory_space<vmem>>, vector<32x128xf32>
      tpu.vector_store %arg8[%c0_11, %c0_12], %14 {strides = array<i32>} : memref<32x128xf32, #tpu.memory_space<vmem>>, vector<32x128xf32>,
    } else {
    }
    %c0 = arith.constant 0 : index
    %c0_1 = arith.constant 0 : index
    %3 = vector.load %arg8[%c0, %c0_1] : memref<32x128xf32, #tpu.memory_space<vmem>>, vector<32x128xf32>
    %c0_2 = arith.constant 0 : index
    %c0_3 = arith.constant 0 : index
    %4 = vector.load %arg3[%c0_2, %c0_3] : memref<32x128xf32, #tpu.memory_space<vmem>>, vector<32x128xf32>
    %5 = arith.truncf %4 : vector<32x128xf32> to vector<32x128xbf16>
    %c0_4 = arith.constant 0 : index
    %c0_5 = arith.constant 0 : index
    %6 = vector.load %arg4[%c0_4, %c0_5] : memref<128x128xf32, #tpu.memory_space<vmem>>, vector<128x128xf32>
    %7 = arith.truncf %6 : vector<128x128xf32> to vector<128x128xbf16>
    %cst = arith.constant dense<0.000000e+00> : vector<32x128xf32>
    %8 = tpu.matmul %5, %7, %cst {dimension_numbers = #tpu.dot_dimension_numbers<[1], [0], [0], [1], [0, 0, 1, 1], [], []>} : vector<32x128xbf16>, vector<128x128xbf16>, vector<32x128xf32> -> vector<32x128xf32>
    %9 = arith.addf %3, %8 : vector<32x128xf32>
    %c0_6 = arith.constant 0 : index
    %c0_7 = arith.constant 0 : index
    %10 = vector.load %arg8[%c0_6, %c0_7] : memref<32x128xf32, #tpu.memory_space<vmem>>, vector<32x128xf32>
    tpu.vector_store %arg8[%c0_6, %c0_7], %9 {strides = array<i32>} : memref<32x128xf32, #tpu.memory_space<vmem>>, vector<32x128xf32>,
    %c0_i32_8 = arith.constant 0 : i32
    %11 = arith.cmpi eq, %arg2, %c0_i32_8 : i32
    %12 = arith.extui %11 : i1 to i32
    %c0_i32_9 = arith.constant 0 : i32
    %13 = arith.cmpi ne, %12, %c0_i32_9 : i32
    scf.if %13 {
      %c0_10 = arith.constant 0 : index
      %c0_11 = arith.constant 0 : index
      %14 = vector.load %arg8[%c0_10, %c0_11] : memref<32x128xf32, #tpu.memory_space<vmem>>, vector<32x128xf32>
      %c0_12 = arith.constant 0 : index
      %c0_13 = arith.constant 0 : index
      %15 = vector.load %arg5[%c0_12, %c0_13] : memref<1x128xf32, #tpu.memory_space<vmem>>, vector<1x128xf32>
      %16 = vector.broadcast %15 : vector<1x128xf32> to vector<32x128xf32>
      %17 = arith.addf %14, %16 : vector<32x128xf32>
      %cst_14 = arith.constant 5.000000e-01 : f32
      %18 = vector.broadcast %cst_14 : f32 to vector<32x128xf32>
      %19 = arith.mulf %17, %18 : vector<32x128xf32>
      %c0_15 = arith.constant 0 : index
      %c0_16 = arith.constant 0 : index
      %20 = vector.load %arg6[%c0_15, %c0_16] : memref<32x128xf32, #tpu.memory_space<vmem>>, vector<32x128xf32>
      %21 = arith.addf %19, %20 : vector<32x128xf32>
      %c0_17 = arith.constant 0 : index
      %c0_18 = arith.constant 0 : index
      %22 = vector.load %arg7[%c0_17, %c0_18] : memref<32x128xf32, #tpu.memory_space<vmem>>, vector<32x128xf32>
      tpu.vector_store %arg7[%c0_17, %c0_18], %21 {strides = array<i32>} : memref<32x128xf32, #tpu.memory_space<vmem>>, vector<32x128xf32>,
    } else {
    }
    return
  }
  func.func @transform_0(%arg0: i32, %arg1: i32, %arg2: i32) -> (i32, i32) {
    %c0_i32 = arith.constant 0 : i32
    return %arg0, %arg2 : i32, i32
  }
  func.func @transform_1(%arg0: i32, %arg1: i32, %arg2: i32) -> (i32, i32) {
    %c0_i32 = arith.constant 0 : i32
    return %arg2, %arg1 : i32, i32
  }
  func.func @transform_2(%arg0: i32, %arg1: i32, %arg2: i32) -> (i32, i32) {
    %c0_i32 = arith.constant 0 : i32
    %c0_i32_0 = arith.constant 0 : i32
    return %c0_i32, %arg1 : i32, i32
  }
  func.func @transform_3(%arg0: i32, %arg1: i32, %arg2: i32) -> (i32, i32) {
    %c0_i32 = arith.constant 0 : i32
    return %arg0, %arg1 : i32, i32
  }
  func.func @transform_4(%arg0: i32, %arg1: i32, %arg2: i32) -> (i32, i32) {
    %c0_i32 = arith.constant 0 : i32
    return %arg0, %arg1 : i32, i32
  }
}

module attributes {stable_mosaic.version = 11 : i64} {
  func.func @_linear_kernel(%arg0: i32, %arg1: i32, %arg2: i32, %arg3: memref<32x128xf32, #tpu.memory_space<vmem>>, %arg4: memref<128x128xf32, #tpu.memory_space<vmem>>, %arg5: memref<1x128xf32, #tpu.memory_space<vmem>>, %arg6: memref<32x128xf32, #tpu.memory_space<vmem>>, %arg7: memref<32x128xf32, #tpu.memory_space<vmem>>) attributes {dimension_semantics = [#tpu.dimension_semantics<parallel>, #tpu.dimension_semantics<parallel>, #tpu.dimension_semantics<arbitrary>], iteration_bounds = array<i64: 1, 1, 1>, scalar_prefetch = 0 : i64, scratch_operands = 1 : i64, tpu.core_type = #tpu.core_type<tc>, window_params = [{transform_indices = @transform_0, window_bounds = array<i64: 32, 128>}, {transform_indices = @transform_1, window_bounds = array<i64: 128, 128>}, {transform_indices = @transform_2, window_bounds = array<i64: 1, 128>}, {transform_indices = @transform_3, window_bounds = array<i64: 32, 128>}]} {
    %c0_i32 = arith.constant 0 : i32
    %0 = arith.cmpi eq, %arg2, %c0_i32 : i32
    %1 = arith.extui %0 : i1 to i32
    %c0_i32_0 = arith.constant 0 : i32
    %2 = arith.cmpi ne, %1, %c0_i32_0 : i32
    scf.if %2 {
      %cst_10 = arith.constant 0.000000e+00 : f32
      %14 = vector.broadcast %cst_10 : f32 to vector<32x128xf32>
      %c0_11 = arith.constant 0 : index
      %c0_12 = arith.constant 0 : index
      %15 = vector.load %arg7[%c0_11, %c0_12] : memref<32x128xf32, #tpu.memory_space<vmem>>, vector<32x128xf32>
      tpu.vector_store %arg7[%c0_11, %c0_12], %14 {strides = array<i32>} : memref<32x128xf32, #tpu.memory_space<vmem>>, vector<32x128xf32>,
    } else {
    }
    %c0 = arith.constant 0 : index
    %c0_1 = arith.constant 0 : index
    %3 = vector.load %arg7[%c0, %c0_1] : memref<32x128xf32, #tpu.memory_space<vmem>>, vector<32x128xf32>
    %c0_2 = arith.constant 0 : index
    %c0_3 = arith.constant 0 : index
    %4 = vector.load %arg3[%c0_2, %c0_3] : memref<32x128xf32, #tpu.memory_space<vmem>>, vector<32x128xf32>
    %5 = arith.truncf %4 : vector<32x128xf32> to vector<32x128xbf16>
    %c0_4 = arith.constant 0 : index
    %c0_5 = arith.constant 0 : index
    %6 = vector.load %arg4[%c0_4, %c0_5] : memref<128x128xf32, #tpu.memory_space<vmem>>, vector<128x128xf32>
    %7 = arith.truncf %6 : vector<128x128xf32> to vector<128x128xbf16>
    %cst = arith.constant dense<0.000000e+00> : vector<32x128xf32>
    %8 = tpu.matmul %5, %7, %cst {dimension_numbers = #tpu.dot_dimension_numbers<[1], [0], [0], [1], [0, 0, 1, 1], [], []>} : vector<32x128xbf16>, vector<128x128xbf16>, vector<32x128xf32> -> vector<32x128xf32>
    %9 = arith.addf %3, %8 : vector<32x128xf32>
    %c0_6 = arith.constant 0 : index
    %c0_7 = arith.constant 0 : index
    %10 = vector.load %arg7[%c0_6, %c0_7] : memref<32x128xf32, #tpu.memory_space<vmem>>, vector<32x128xf32>
    tpu.vector_store %arg7[%c0_6, %c0_7], %9 {strides = array<i32>} : memref<32x128xf32, #tpu.memory_space<vmem>>, vector<32x128xf32>,
    %c0_i32_8 = arith.constant 0 : i32
    %11 = arith.cmpi eq, %arg2, %c0_i32_8 : i32
    %12 = arith.extui %11 : i1 to i32
    %c0_i32_9 = arith.constant 0 : i32
    %13 = arith.cmpi ne, %12, %c0_i32_9 : i32
    scf.if %13 {
      %c0_10 = arith.constant 0 : index
      %c0_11 = arith.constant 0 : index
      %14 = vector.load %arg7[%c0_10, %c0_11] : memref<32x128xf32, #tpu.memory_space<vmem>>, vector<32x128xf32>
      %c0_12 = arith.constant 0 : index
      %c0_13 = arith.constant 0 : index
      %15 = vector.load %arg5[%c0_12, %c0_13] : memref<1x128xf32, #tpu.memory_space<vmem>>, vector<1x128xf32>
      %16 = vector.broadcast %15 : vector<1x128xf32> to vector<32x128xf32>
      %17 = arith.addf %14, %16 : vector<32x128xf32>
      %cst_14 = arith.constant 0.000000e+00 : f32
      %18 = vector.broadcast %cst_14 : f32 to vector<32x128xf32>
      %19 = arith.maximumf %17, %18 : vector<32x128xf32>
      %c0_15 = arith.constant 0 : index
      %c0_16 = arith.constant 0 : index
      %20 = vector.load %arg6[%c0_15, %c0_16] : memref<32x128xf32, #tpu.memory_space<vmem>>, vector<32x128xf32>
      tpu.vector_store %arg6[%c0_15, %c0_16], %19 {strides = array<i32>} : memref<32x128xf32, #tpu.memory_space<vmem>>, vector<32x128xf32>,
    } else {
    }
    return
  }
  func.func @transform_0(%arg0: i32, %arg1: i32, %arg2: i32) -> (i32, i32) {
    %c0_i32 = arith.constant 0 : i32
    return %arg0, %arg2 : i32, i32
  }
  func.func @transform_1(%arg0: i32, %arg1: i32, %arg2: i32) -> (i32, i32) {
    %c0_i32 = arith.constant 0 : i32
    return %arg2, %arg1 : i32, i32
  }
  func.func @transform_2(%arg0: i32, %arg1: i32, %arg2: i32) -> (i32, i32) {
    %c0_i32 = arith.constant 0 : i32
    %c0_i32_0 = arith.constant 0 : i32
    return %c0_i32, %arg1 : i32, i32
  }
  func.func @transform_3(%arg0: i32, %arg1: i32, %arg2: i32) -> (i32, i32) {
    %c0_i32 = arith.constant 0 : i32
    return %arg0, %arg1 : i32, i32
  }
}

module attributes {stable_mosaic.version = 11 : i64} {
  func.func @_layernorm_kernel(%arg0: i32, %arg1: memref<32x32xf32, #tpu.memory_space<vmem>>, %arg2: memref<1x32xf32, #tpu.memory_space<vmem>>, %arg3: memref<1x32xf32, #tpu.memory_space<vmem>>, %arg4: memref<32x32xf32, #tpu.memory_space<vmem>>) attributes {dimension_semantics = [#tpu.dimension_semantics<parallel>], iteration_bounds = array<i64: 1>, scalar_prefetch = 0 : i64, scratch_operands = 0 : i64, tpu.core_type = #tpu.core_type<tc>, window_params = [{transform_indices = @transform_0, window_bounds = array<i64: 32, 32>}, {pipeline_mode = #tpu.pipeline_mode<synchronous>, transform_indices = @transform_1, window_bounds = array<i64: 1, 32>}, {pipeline_mode = #tpu.pipeline_mode<synchronous>, transform_indices = @transform_2, window_bounds = array<i64: 1, 32>}, {transform_indices = @transform_3, window_bounds = array<i64: 32, 32>}]} {
    %c0 = arith.constant 0 : index
    %c0_0 = arith.constant 0 : index
    %0 = vector.load %arg1[%c0, %c0_0] : memref<32x32xf32, #tpu.memory_space<vmem>>, vector<32x32xf32>
    %cst = arith.constant dense<0.000000e+00> : vector<32xf32>
    %1 = vector.multi_reduction <add>, %0, %cst [1] : vector<32x32xf32> to vector<32xf32>
    %2 = vector.shape_cast %1 : vector<32xf32> to vector<32x1xf32>
    %cst_1 = arith.constant 3.200000e+01 : f32
    %3 = vector.broadcast %cst_1 : f32 to vector<32x1xf32>
    %4 = arith.divf %2, %3 : vector<32x1xf32>
    %5 = vector.broadcast %4 : vector<32x1xf32> to vector<32x32xf32>
    %6 = arith.subf %0, %5 : vector<32x32xf32>
    %7 = arith.mulf %6, %6 : vector<32x32xf32>
    %cst_2 = arith.constant dense<0.000000e+00> : vector<32xf32>
    %8 = vector.multi_reduction <add>, %7, %cst_2 [1] : vector<32x32xf32> to vector<32xf32>
    %9 = vector.shape_cast %8 : vector<32xf32> to vector<32x1xf32>
    %cst_3 = arith.constant 3.200000e+01 : f32
    %10 = vector.broadcast %cst_3 : f32 to vector<32x1xf32>
    %11 = arith.divf %9, %10 : vector<32x1xf32>
    %cst_4 = arith.constant 9.99999974E-6 : f32
    %12 = vector.broadcast %cst_4 : f32 to vector<32x1xf32>
    %13 = arith.addf %11, %12 : vector<32x1xf32>
    %14 = math.rsqrt %13 : vector<32x1xf32>
    %15 = vector.broadcast %14 : vector<32x1xf32> to vector<32x32xf32>
    %16 = arith.mulf %6, %15 : vector<32x32xf32>
    %c0_5 = arith.constant 0 : index
    %c0_6 = arith.constant 0 : index
    %17 = vector.load %arg2[%c0_5, %c0_6] : memref<1x32xf32, #tpu.memory_space<vmem>>, vector<1x32xf32>
    %18 = vector.broadcast %17 : vector<1x32xf32> to vector<32x32xf32>
    %19 = arith.mulf %16, %18 : vector<32x32xf32>
    %c0_7 = arith.constant 0 : index
    %c0_8 = arith.constant 0 : index
    %20 = vector.load %arg3[%c0_7, %c0_8] : memref<1x32xf32, #tpu.memory_space<vmem>>, vector<1x32xf32>
    %21 = vector.broadcast %20 : vector<1x32xf32> to vector<32x32xf32>
    %22 = arith.addf %19, %21 : vector<32x32xf32>
    %c0_9 = arith.constant 0 : index
    %c0_10 = arith.constant 0 : index
    %23 = vector.load %arg4[%c0_9, %c0_10] : memref<32x32xf32, #tpu.memory_space<vmem>>, vector<32x32xf32>
    tpu.vector_store %arg4[%c0_9, %c0_10], %22 {strides = array<i32>} : memref<32x32xf32, #tpu.memory_space<vmem>>, vector<32x32xf32>,
    return
  }
  func.func @transform_0(%arg0: i32) -> (i32, i32) {
    %c0_i32 = arith.constant 0 : i32
    %c0_i32_0 = arith.constant 0 : i32
    return %arg0, %c0_i32 : i32, i32
  }
  func.func @transform_1(%arg0: i32) -> (i32, i32) {
    %c0_i32 = arith.constant 0 : i32
    %c0_i32_0 = arith.constant 0 : i32
    %c0_i32_1 = arith.constant 0 : i32
    return %c0_i32, %c0_i32_0 : i32, i32
  }
  func.func @transform_2(%arg0: i32) -> (i32, i32) {
    %c0_i32 = arith.constant 0 : i32
    %c0_i32_0 = arith.constant 0 : i32
    %c0_i32_1 = arith.constant 0 : i32
    return %c0_i32, %c0_i32_0 : i32, i32
  }
  func.func @transform_3(%arg0: i32) -> (i32, i32) {
    %c0_i32 = arith.constant 0 : i32
    %c0_i32_0 = arith.constant 0 : i32
    return %arg0, %c0_i32 : i32, i32
  }
}

module attributes {stable_mosaic.version = 11 : i64} {
  func.func @_layernorm_kernel(%arg0: i32, %arg1: memref<16x32xf32, #tpu.memory_space<vmem>>, %arg2: memref<1x32xf32, #tpu.memory_space<vmem>>, %arg3: memref<1x32xf32, #tpu.memory_space<vmem>>, %arg4: memref<16x32xf32, #tpu.memory_space<vmem>>) attributes {dimension_semantics = [#tpu.dimension_semantics<parallel>], iteration_bounds = array<i64: 1>, scalar_prefetch = 0 : i64, scratch_operands = 0 : i64, tpu.core_type = #tpu.core_type<tc>, window_params = [{transform_indices = @transform_0, window_bounds = array<i64: 16, 32>}, {pipeline_mode = #tpu.pipeline_mode<synchronous>, transform_indices = @transform_1, window_bounds = array<i64: 1, 32>}, {pipeline_mode = #tpu.pipeline_mode<synchronous>, transform_indices = @transform_2, window_bounds = array<i64: 1, 32>}, {transform_indices = @transform_3, window_bounds = array<i64: 16, 32>}]} {
    %c0 = arith.constant 0 : index
    %c0_0 = arith.constant 0 : index
    %0 = vector.load %arg1[%c0, %c0_0] : memref<16x32xf32, #tpu.memory_space<vmem>>, vector<16x32xf32>
    %cst = arith.constant dense<0.000000e+00> : vector<16xf32>
    %1 = vector.multi_reduction <add>, %0, %cst [1] : vector<16x32xf32> to vector<16xf32>
    %2 = vector.shape_cast %1 : vector<16xf32> to vector<16x1xf32>
    %cst_1 = arith.constant 3.200000e+01 : f32
    %3 = vector.broadcast %cst_1 : f32 to vector<16x1xf32>
    %4 = arith.divf %2, %3 : vector<16x1xf32>
    %5 = vector.broadcast %4 : vector<16x1xf32> to vector<16x32xf32>
    %6 = arith.subf %0, %5 : vector<16x32xf32>
    %7 = arith.mulf %6, %6 : vector<16x32xf32>
    %cst_2 = arith.constant dense<0.000000e+00> : vector<16xf32>
    %8 = vector.multi_reduction <add>, %7, %cst_2 [1] : vector<16x32xf32> to vector<16xf32>
    %9 = vector.shape_cast %8 : vector<16xf32> to vector<16x1xf32>
    %cst_3 = arith.constant 3.200000e+01 : f32
    %10 = vector.broadcast %cst_3 : f32 to vector<16x1xf32>
    %11 = arith.divf %9, %10 : vector<16x1xf32>
    %cst_4 = arith.constant 9.99999974E-6 : f32
    %12 = vector.broadcast %cst_4 : f32 to vector<16x1xf32>
    %13 = arith.addf %11, %12 : vector<16x1xf32>
    %14 = math.rsqrt %13 : vector<16x1xf32>
    %15 = vector.broadcast %14 : vector<16x1xf32> to vector<16x32xf32>
    %16 = arith.mulf %6, %15 : vector<16x32xf32>
    %c0_5 = arith.constant 0 : index
    %c0_6 = arith.constant 0 : index
    %17 = vector.load %arg2[%c0_5, %c0_6] : memref<1x32xf32, #tpu.memory_space<vmem>>, vector<1x32xf32>
    %18 = vector.broadcast %17 : vector<1x32xf32> to vector<16x32xf32>
    %19 = arith.mulf %16, %18 : vector<16x32xf32>
    %c0_7 = arith.constant 0 : index
    %c0_8 = arith.constant 0 : index
    %20 = vector.load %arg3[%c0_7, %c0_8] : memref<1x32xf32, #tpu.memory_space<vmem>>, vector<1x32xf32>
    %21 = vector.broadcast %20 : vector<1x32xf32> to vector<16x32xf32>
    %22 = arith.addf %19, %21 : vector<16x32xf32>
    %23 = arith.negf %22 : vector<16x32xf32>
    %24 = math.exp %23 : vector<16x32xf32>
    %cst_9 = arith.constant 1.000000e+00 : f32
    %25 = vector.broadcast %cst_9 : f32 to vector<16x32xf32>
    %26 = arith.addf %25, %24 : vector<16x32xf32>
    %27 = arith.divf %25, %26 : vector<16x32xf32>
    %28 = arith.mulf %22, %27 : vector<16x32xf32>
    %c0_10 = arith.constant 0 : index
    %c0_11 = arith.constant 0 : index
    %29 = vector.load %arg4[%c0_10, %c0_11] : memref<16x32xf32, #tpu.memory_space<vmem>>, vector<16x32xf32>
    tpu.vector_store %arg4[%c0_10, %c0_11], %28 {strides = array<i32>} : memref<16x32xf32, #tpu.memory_space<vmem>>, vector<16x32xf32>,
    return
  }
  func.func @transform_0(%arg0: i32) -> (i32, i32) {
    %c0_i32 = arith.constant 0 : i32
    %c0_i32_0 = arith.constant 0 : i32
    return %arg0, %c0_i32 : i32, i32
  }
  func.func @transform_1(%arg0: i32) -> (i32, i32) {
    %c0_i32 = arith.constant 0 : i32
    %c0_i32_0 = arith.constant 0 : i32
    %c0_i32_1 = arith.constant 0 : i32
    return %c0_i32, %c0_i32_0 : i32, i32
  }
  func.func @transform_2(%arg0: i32) -> (i32, i32) {
    %c0_i32 = arith.constant 0 : i32
    %c0_i32_0 = arith.constant 0 : i32
    %c0_i32_1 = arith.constant 0 : i32
    return %c0_i32, %c0_i32_0 : i32, i32
  }
  func.func @transform_3(%arg0: i32) -> (i32, i32) {
    %c0_i32 = arith.constant 0 : i32
    %c0_i32_0 = arith.constant 0 : i32
    return %arg0, %c0_i32 : i32, i32
  }
}

module attributes {stable_mosaic.version = 11 : i64} {
  func.func @_dwconv_kernel(%arg0: memref<2x2x12x32xf32, #tpu.memory_space<vmem>>, %arg1: memref<2x5x32xf32, #tpu.memory_space<vmem>>, %arg2: memref<1x32xf32, #tpu.memory_space<vmem>>, %arg3: memref<2x8x32xf32, #tpu.memory_space<vmem>>) attributes {dimension_semantics = [], scalar_prefetch = 0 : i64, scratch_operands = 0 : i64, tpu.core_type = #tpu.core_type<tc>} {
    %c0 = arith.constant 0 : index
    %c0_0 = arith.constant 0 : index
    %c0_1 = arith.constant 0 : index
    %c0_2 = arith.constant 0 : index
    %0 = vector.load %arg0[%c0, %c0_0, %c0_1, %c0_2] : memref<2x2x12x32xf32, #tpu.memory_space<vmem>>, vector<2x2x12x32xf32>
    %c0_3 = arith.constant 0 : index
    %c0_4 = arith.constant 0 : index
    %c0_5 = arith.constant 0 : index
    %1 = vector.load %arg1[%c0_3, %c0_4, %c0_5] : memref<2x5x32xf32, #tpu.memory_space<vmem>>, vector<2x5x32xf32>
    %cst = arith.constant 0.000000e+00 : f32
    %2 = vector.broadcast %cst : f32 to vector<2x8x32xf32>
    %3 = vector.extract_strided_slice %0 {offsets = [0, 0, 0, 0], sizes = [2, 1, 12, 32], strides = [1, 1, 1, 1]} : vector<2x2x12x32xf32> to vector<2x1x12x32xf32>
    %4 = vector.shape_cast %3 : vector<2x1x12x32xf32> to vector<2x12x32xf32>
    %5 = vector.extract_strided_slice %4 {offsets = [0, 0, 0], sizes = [2, 8, 32], strides = [1, 1, 1]} : vector<2x12x32xf32> to vector<2x8x32xf32>
    %6 = vector.extract_strided_slice %1 {offsets = [0, 0, 0], sizes = [1, 1, 32], strides = [1, 1, 1]} : vector<2x5x32xf32> to vector<1x1x32xf32>
    %7 = vector.shape_cast %6 : vector<1x1x32xf32> to vector<32xf32>
    %8 = vector.shape_cast %7 : vector<32xf32> to vector<1x1x32xf32>
    %9 = vector.broadcast %8 : vector<1x1x32xf32> to vector<2x8x32xf32>
    %10 = arith.mulf %5, %9 : vector<2x8x32xf32>
    %11 = arith.addf %2, %10 : vector<2x8x32xf32>
    %12 = vector.extract_strided_slice %4 {offsets = [0, 1, 0], sizes = [2, 8, 32], strides = [1, 1, 1]} : vector<2x12x32xf32> to vector<2x8x32xf32>
    %13 = vector.extract_strided_slice %1 {offsets = [0, 1, 0], sizes = [1, 1, 32], strides = [1, 1, 1]} : vector<2x5x32xf32> to vector<1x1x32xf32>
    %14 = vector.shape_cast %13 : vector<1x1x32xf32> to vector<32xf32>
    %15 = vector.shape_cast %14 : vector<32xf32> to vector<1x1x32xf32>
    %16 = vector.broadcast %15 : vector<1x1x32xf32> to vector<2x8x32xf32>
    %17 = arith.mulf %12, %16 : vector<2x8x32xf32>
    %18 = arith.addf %11, %17 : vector<2x8x32xf32>
    %19 = vector.extract_strided_slice %4 {offsets = [0, 2, 0], sizes = [2, 8, 32], strides = [1, 1, 1]} : vector<2x12x32xf32> to vector<2x8x32xf32>
    %20 = vector.extract_strided_slice %1 {offsets = [0, 2, 0], sizes = [1, 1, 32], strides = [1, 1, 1]} : vector<2x5x32xf32> to vector<1x1x32xf32>
    %21 = vector.shape_cast %20 : vector<1x1x32xf32> to vector<32xf32>
    %22 = vector.shape_cast %21 : vector<32xf32> to vector<1x1x32xf32>
    %23 = vector.broadcast %22 : vector<1x1x32xf32> to vector<2x8x32xf32>
    %24 = arith.mulf %19, %23 : vector<2x8x32xf32>
    %25 = arith.addf %18, %24 : vector<2x8x32xf32>
    %26 = vector.extract_strided_slice %4 {offsets = [0, 3, 0], sizes = [2, 8, 32], strides = [1, 1, 1]} : vector<2x12x32xf32> to vector<2x8x32xf32>
    %27 = vector.extract_strided_slice %1 {offsets = [0, 3, 0], sizes = [1, 1, 32], strides = [1, 1, 1]} : vector<2x5x32xf32> to vector<1x1x32xf32>
    %28 = vector.shape_cast %27 : vector<1x1x32xf32> to vector<32xf32>
    %29 = vector.shape_cast %28 : vector<32xf32> to vector<1x1x32xf32>
    %30 = vector.broadcast %29 : vector<1x1x32xf32> to vector<2x8x32xf32>
    %31 = arith.mulf %26, %30 : vector<2x8x32xf32>
    %32 = arith.addf %25, %31 : vector<2x8x32xf32>
    %33 = vector.extract_strided_slice %4 {offsets = [0, 4, 0], sizes = [2, 8, 32], strides = [1, 1, 1]} : vector<2x12x32xf32> to vector<2x8x32xf32>
    %34 = vector.extract_strided_slice %1 {offsets = [0, 4, 0], sizes = [1, 1, 32], strides = [1, 1, 1]} : vector<2x5x32xf32> to vector<1x1x32xf32>
    %35 = vector.shape_cast %34 : vector<1x1x32xf32> to vector<32xf32>
    %36 = vector.shape_cast %35 : vector<32xf32> to vector<1x1x32xf32>
    %37 = vector.broadcast %36 : vector<1x1x32xf32> to vector<2x8x32xf32>
    %38 = arith.mulf %33, %37 : vector<2x8x32xf32>
    %39 = arith.addf %32, %38 : vector<2x8x32xf32>
    %40 = vector.extract_strided_slice %0 {offsets = [0, 1, 0, 0], sizes = [2, 1, 12, 32], strides = [1, 1, 1, 1]} : vector<2x2x12x32xf32> to vector<2x1x12x32xf32>
    %41 = vector.shape_cast %40 : vector<2x1x12x32xf32> to vector<2x12x32xf32>
    %42 = vector.extract_strided_slice %41 {offsets = [0, 0, 0], sizes = [2, 8, 32], strides = [1, 1, 1]} : vector<2x12x32xf32> to vector<2x8x32xf32>
    %43 = vector.extract_strided_slice %1 {offsets = [1, 0, 0], sizes = [1, 1, 32], strides = [1, 1, 1]} : vector<2x5x32xf32> to vector<1x1x32xf32>
    %44 = vector.shape_cast %43 : vector<1x1x32xf32> to vector<32xf32>
    %45 = vector.shape_cast %44 : vector<32xf32> to vector<1x1x32xf32>
    %46 = vector.broadcast %45 : vector<1x1x32xf32> to vector<2x8x32xf32>
    %47 = arith.mulf %42, %46 : vector<2x8x32xf32>
    %48 = arith.addf %39, %47 : vector<2x8x32xf32>
    %49 = vector.extract_strided_slice %41 {offsets = [0, 1, 0], sizes = [2, 8, 32], strides = [1, 1, 1]} : vector<2x12x32xf32> to vector<2x8x32xf32>
    %50 = vector.extract_strided_slice %1 {offsets = [1, 1, 0], sizes = [1, 1, 32], strides = [1, 1, 1]} : vector<2x5x32xf32> to vector<1x1x32xf32>
    %51 = vector.shape_cast %50 : vector<1x1x32xf32> to vector<32xf32>
    %52 = vector.shape_cast %51 : vector<32xf32> to vector<1x1x32xf32>
    %53 = vector.broadcast %52 : vector<1x1x32xf32> to vector<2x8x32xf32>
    %54 = arith.mulf %49, %53 : vector<2x8x32xf32>
    %55 = arith.addf %48, %54 : vector<2x8x32xf32>
    %56 = vector.extract_strided_slice %41 {offsets = [0, 2, 0], sizes = [2, 8, 32], strides = [1, 1, 1]} : vector<2x12x32xf32> to vector<2x8x32xf32>
    %57 = vector.extract_strided_slice %1 {offsets = [1, 2, 0], sizes = [1, 1, 32], strides = [1, 1, 1]} : vector<2x5x32xf32> to vector<1x1x32xf32>
    %58 = vector.shape_cast %57 : vector<1x1x32xf32> to vector<32xf32>
    %59 = vector.shape_cast %58 : vector<32xf32> to vector<1x1x32xf32>
    %60 = vector.broadcast %59 : vector<1x1x32xf32> to vector<2x8x32xf32>
    %61 = arith.mulf %56, %60 : vector<2x8x32xf32>
    %62 = arith.addf %55, %61 : vector<2x8x32xf32>
    %63 = vector.extract_strided_slice %41 {offsets = [0, 3, 0], sizes = [2, 8, 32], strides = [1, 1, 1]} : vector<2x12x32xf32> to vector<2x8x32xf32>
    %64 = vector.extract_strided_slice %1 {offsets = [1, 3, 0], sizes = [1, 1, 32], strides = [1, 1, 1]} : vector<2x5x32xf32> to vector<1x1x32xf32>
    %65 = vector.shape_cast %64 : vector<1x1x32xf32> to vector<32xf32>
    %66 = vector.shape_cast %65 : vector<32xf32> to vector<1x1x32xf32>
    %67 = vector.broadcast %66 : vector<1x1x32xf32> to vector<2x8x32xf32>
    %68 = arith.mulf %63, %67 : vector<2x8x32xf32>
    %69 = arith.addf %62, %68 : vector<2x8x32xf32>
    %70 = vector.extract_strided_slice %41 {offsets = [0, 4, 0], sizes = [2, 8, 32], strides = [1, 1, 1]} : vector<2x12x32xf32> to vector<2x8x32xf32>
    %71 = vector.extract_strided_slice %1 {offsets = [1, 4, 0], sizes = [1, 1, 32], strides = [1, 1, 1]} : vector<2x5x32xf32> to vector<1x1x32xf32>
    %72 = vector.shape_cast %71 : vector<1x1x32xf32> to vector<32xf32>
    %73 = vector.shape_cast %72 : vector<32xf32> to vector<1x1x32xf32>
    %74 = vector.broadcast %73 : vector<1x1x32xf32> to vector<2x8x32xf32>
    %75 = arith.mulf %70, %74 : vector<2x8x32xf32>
    %76 = arith.addf %69, %75 : vector<2x8x32xf32>
    %c0_6 = arith.constant 0 : index
    %c0_7 = arith.constant 0 : index
    %77 = vector.load %arg2[%c0_6, %c0_7] : memref<1x32xf32, #tpu.memory_space<vmem>>, vector<1x32xf32>
    %78 = vector.shape_cast %77 : vector<1x32xf32> to vector<1x1x32xf32>
    %79 = vector.broadcast %78 : vector<1x1x32xf32> to vector<2x8x32xf32>
    %80 = arith.addf %76, %79 : vector<2x8x32xf32>
    %c0_8 = arith.constant 0 : index
    %c0_9 = arith.constant 0 : index
    %c0_10 = arith.constant 0 : index
    %81 = vector.load %arg3[%c0_8, %c0_9, %c0_10] : memref<2x8x32xf32, #tpu.memory_space<vmem>>, vector<2x8x32xf32>
    tpu.vector_store %arg3[%c0_8, %c0_9, %c0_10], %80 {strides = array<i32>} : memref<2x8x32xf32, #tpu.memory_space<vmem>>, vector<2x8x32xf32>,
    return
  }
}

module attributes {stable_mosaic.version = 11 : i64} {
  func.func @_avgpool_kernel(%arg0: memref<2x8x2x32xf32, #tpu.memory_space<vmem>>, %arg1: memref<1x8x1xf32, #tpu.memory_space<vmem>>, %arg2: memref<2x8x32xf32, #tpu.memory_space<vmem>>) attributes {dimension_semantics = [], scalar_prefetch = 0 : i64, scratch_operands = 0 : i64, tpu.core_type = #tpu.core_type<tc>} {
    %c0 = arith.constant 0 : index
    %c0_0 = arith.constant 0 : index
    %c0_1 = arith.constant 0 : index
    %c0_2 = arith.constant 0 : index
    %0 = vector.load %arg0[%c0, %c0_0, %c0_1, %c0_2] : memref<2x8x2x32xf32, #tpu.memory_space<vmem>>, vector<2x8x2x32xf32>
    %cst = arith.constant dense<0.000000e+00> : vector<2x8x32xf32>
    %1 = vector.multi_reduction <add>, %0, %cst [2] : vector<2x8x2x32xf32> to vector<2x8x32xf32>
    %c0_3 = arith.constant 0 : index
    %c0_4 = arith.constant 0 : index
    %c0_5 = arith.constant 0 : index
    %2 = vector.load %arg1[%c0_3, %c0_4, %c0_5] : memref<1x8x1xf32, #tpu.memory_space<vmem>>, vector<1x8x1xf32>
    %3 = vector.broadcast %2 : vector<1x8x1xf32> to vector<2x8x32xf32>
    %4 = arith.mulf %1, %3 : vector<2x8x32xf32>
    %c0_6 = arith.constant 0 : index
    %c0_7 = arith.constant 0 : index
    %c0_8 = arith.constant 0 : index
    %5 = vector.load %arg2[%c0_6, %c0_7, %c0_8] : memref<2x8x32xf32, #tpu.memory_space<vmem>>, vector<2x8x32xf32>
    tpu.vector_store %arg2[%c0_6, %c0_7, %c0_8], %4 {strides = array<i32>} : memref<2x8x32xf32, #tpu.memory_space<vmem>>, vector<2x8x32xf32>,
    return
  }
}

module attributes {stable_mosaic.version = 11 : i64} {
  func.func @_linear_kernel(%arg0: i32, %arg1: i32, %arg2: i32, %arg3: memref<16x128xf32, #tpu.memory_space<vmem>>, %arg4: memref<128x128xf32, #tpu.memory_space<vmem>>, %arg5: memref<1x128xf32, #tpu.memory_space<vmem>>, %arg6: memref<16x128xf32, #tpu.memory_space<vmem>>, %arg7: memref<16x128xf32, #tpu.memory_space<vmem>>, %arg8: memref<16x128xf32, #tpu.memory_space<vmem>>) attributes {dimension_semantics = [#tpu.dimension_semantics<parallel>, #tpu.dimension_semantics<parallel>, #tpu.dimension_semantics<arbitrary>], iteration_bounds = array<i64: 1, 1, 1>, scalar_prefetch = 0 : i64, scratch_operands = 1 : i64, tpu.core_type = #tpu.core_type<tc>, window_params = [{transform_indices = @transform_0, window_bounds = array<i64: 16, 128>}, {transform_indices = @transform_1, window_bounds = array<i64: 128, 128>}, {transform_indices = @transform_2, window_bounds = array<i64: 1, 128>}, {transform_indices = @transform_3, window_bounds = array<i64: 16, 128>}, {transform_indices = @transform_4, window_bounds = array<i64: 16, 128>}]} {
    %c0_i32 = arith.constant 0 : i32
    %0 = arith.cmpi eq, %arg2, %c0_i32 : i32
    %1 = arith.extui %0 : i1 to i32
    %c0_i32_0 = arith.constant 0 : i32
    %2 = arith.cmpi ne, %1, %c0_i32_0 : i32
    scf.if %2 {
      %cst_10 = arith.constant 0.000000e+00 : f32
      %14 = vector.broadcast %cst_10 : f32 to vector<16x128xf32>
      %c0_11 = arith.constant 0 : index
      %c0_12 = arith.constant 0 : index
      %15 = vector.load %arg8[%c0_11, %c0_12] : memref<16x128xf32, #tpu.memory_space<vmem>>, vector<16x128xf32>
      tpu.vector_store %arg8[%c0_11, %c0_12], %14 {strides = array<i32>} : memref<16x128xf32, #tpu.memory_space<vmem>>, vector<16x128xf32>,
    } else {
    }
    %c0 = arith.constant 0 : index
    %c0_1 = arith.constant 0 : index
    %3 = vector.load %arg8[%c0, %c0_1] : memref<16x128xf32, #tpu.memory_space<vmem>>, vector<16x128xf32>
    %c0_2 = arith.constant 0 : index
    %c0_3 = arith.constant 0 : index
    %4 = vector.load %arg3[%c0_2, %c0_3] : memref<16x128xf32, #tpu.memory_space<vmem>>, vector<16x128xf32>
    %5 = arith.truncf %4 : vector<16x128xf32> to vector<16x128xbf16>
    %c0_4 = arith.constant 0 : index
    %c0_5 = arith.constant 0 : index
    %6 = vector.load %arg4[%c0_4, %c0_5] : memref<128x128xf32, #tpu.memory_space<vmem>>, vector<128x128xf32>
    %7 = arith.truncf %6 : vector<128x128xf32> to vector<128x128xbf16>
    %cst = arith.constant dense<0.000000e+00> : vector<16x128xf32>
    %8 = tpu.matmul %5, %7, %cst {dimension_numbers = #tpu.dot_dimension_numbers<[1], [0], [0], [1], [0, 0, 1, 1], [], []>} : vector<16x128xbf16>, vector<128x128xbf16>, vector<16x128xf32> -> vector<16x128xf32>
    %9 = arith.addf %3, %8 : vector<16x128xf32>
    %c0_6 = arith.constant 0 : index
    %c0_7 = arith.constant 0 : index
    %10 = vector.load %arg8[%c0_6, %c0_7] : memref<16x128xf32, #tpu.memory_space<vmem>>, vector<16x128xf32>
    tpu.vector_store %arg8[%c0_6, %c0_7], %9 {strides = array<i32>} : memref<16x128xf32, #tpu.memory_space<vmem>>, vector<16x128xf32>,
    %c0_i32_8 = arith.constant 0 : i32
    %11 = arith.cmpi eq, %arg2, %c0_i32_8 : i32
    %12 = arith.extui %11 : i1 to i32
    %c0_i32_9 = arith.constant 0 : i32
    %13 = arith.cmpi ne, %12, %c0_i32_9 : i32
    scf.if %13 {
      %c0_10 = arith.constant 0 : index
      %c0_11 = arith.constant 0 : index
      %14 = vector.load %arg8[%c0_10, %c0_11] : memref<16x128xf32, #tpu.memory_space<vmem>>, vector<16x128xf32>
      %c0_12 = arith.constant 0 : index
      %c0_13 = arith.constant 0 : index
      %15 = vector.load %arg5[%c0_12, %c0_13] : memref<1x128xf32, #tpu.memory_space<vmem>>, vector<1x128xf32>
      %16 = vector.broadcast %15 : vector<1x128xf32> to vector<16x128xf32>
      %17 = arith.addf %14, %16 : vector<16x128xf32>
      %c0_14 = arith.constant 0 : index
      %c0_15 = arith.constant 0 : index
      %18 = vector.load %arg6[%c0_14, %c0_15] : memref<16x128xf32, #tpu.memory_space<vmem>>, vector<16x128xf32>
      %19 = arith.addf %17, %18 : vector<16x128xf32>
      %c0_16 = arith.constant 0 : index
      %c0_17 = arith.constant 0 : index
      %20 = vector.load %arg7[%c0_16, %c0_17] : memref<16x128xf32, #tpu.memory_space<vmem>>, vector<16x128xf32>
      tpu.vector_store %arg7[%c0_16, %c0_17], %19 {strides = array<i32>} : memref<16x128xf32, #tpu.memory_space<vmem>>, vector<16x128xf32>,
    } else {
    }
    return
  }
  func.func @transform_0(%arg0: i32, %arg1: i32, %arg2: i32) -> (i32, i32) {
    %c0_i32 = arith.constant 0 : i32
    return %arg0, %arg2 : i32, i32
  }
  func.func @transform_1(%arg0: i32, %arg1: i32, %arg2: i32) -> (i32, i32) {
    %c0_i32 = arith.constant 0 : i32
    return %arg2, %arg1 : i32, i32
  }
  func.func @transform_2(%arg0: i32, %arg1: i32, %arg2: i32) -> (i32, i32) {
    %c0_i32 = arith.constant 0 : i32
    %c0_i32_0 = arith.constant 0 : i32
    return %c0_i32, %arg1 : i32, i32
  }
  func.func @transform_3(%arg0: i32, %arg1: i32, %arg2: i32) -> (i32, i32) {
    %c0_i32 = arith.constant 0 : i32
    return %arg0, %arg1 : i32, i32
  }
  func.func @transform_4(%arg0: i32, %arg1: i32, %arg2: i32) -> (i32, i32) {
    %c0_i32 = arith.constant 0 : i32
    return %arg0, %arg1 : i32, i32
  }
}

module attributes {stable_mosaic.version = 11 : i64} {
  func.func @_linear_kernel(%arg0: i32, %arg1: i32, %arg2: i32, %arg3: memref<16x128xf32, #tpu.memory_space<vmem>>, %arg4: memref<128x128xf32, #tpu.memory_space<vmem>>, %arg5: memref<1x128xf32, #tpu.memory_space<vmem>>, %arg6: memref<16x128xf32, #tpu.memory_space<vmem>>, %arg7: memref<16x128xf32, #tpu.memory_space<vmem>>) attributes {dimension_semantics = [#tpu.dimension_semantics<parallel>, #tpu.dimension_semantics<parallel>, #tpu.dimension_semantics<arbitrary>], iteration_bounds = array<i64: 1, 1, 1>, scalar_prefetch = 0 : i64, scratch_operands = 1 : i64, tpu.core_type = #tpu.core_type<tc>, window_params = [{transform_indices = @transform_0, window_bounds = array<i64: 16, 128>}, {transform_indices = @transform_1, window_bounds = array<i64: 128, 128>}, {transform_indices = @transform_2, window_bounds = array<i64: 1, 128>}, {transform_indices = @transform_3, window_bounds = array<i64: 16, 128>}]} {
    %c0_i32 = arith.constant 0 : i32
    %0 = arith.cmpi eq, %arg2, %c0_i32 : i32
    %1 = arith.extui %0 : i1 to i32
    %c0_i32_0 = arith.constant 0 : i32
    %2 = arith.cmpi ne, %1, %c0_i32_0 : i32
    scf.if %2 {
      %cst_10 = arith.constant 0.000000e+00 : f32
      %14 = vector.broadcast %cst_10 : f32 to vector<16x128xf32>
      %c0_11 = arith.constant 0 : index
      %c0_12 = arith.constant 0 : index
      %15 = vector.load %arg7[%c0_11, %c0_12] : memref<16x128xf32, #tpu.memory_space<vmem>>, vector<16x128xf32>
      tpu.vector_store %arg7[%c0_11, %c0_12], %14 {strides = array<i32>} : memref<16x128xf32, #tpu.memory_space<vmem>>, vector<16x128xf32>,
    } else {
    }
    %c0 = arith.constant 0 : index
    %c0_1 = arith.constant 0 : index
    %3 = vector.load %arg7[%c0, %c0_1] : memref<16x128xf32, #tpu.memory_space<vmem>>, vector<16x128xf32>
    %c0_2 = arith.constant 0 : index
    %c0_3 = arith.constant 0 : index
    %4 = vector.load %arg3[%c0_2, %c0_3] : memref<16x128xf32, #tpu.memory_space<vmem>>, vector<16x128xf32>
    %5 = arith.truncf %4 : vector<16x128xf32> to vector<16x128xbf16>
    %c0_4 = arith.constant 0 : index
    %c0_5 = arith.constant 0 : index
    %6 = vector.load %arg4[%c0_4, %c0_5] : memref<128x128xf32, #tpu.memory_space<vmem>>, vector<128x128xf32>
    %7 = arith.truncf %6 : vector<128x128xf32> to vector<128x128xbf16>
    %cst = arith.constant dense<0.000000e+00> : vector<16x128xf32>
    %8 = tpu.matmul %5, %7, %cst {dimension_numbers = #tpu.dot_dimension_numbers<[1], [0], [0], [1], [0, 0, 1, 1], [], []>} : vector<16x128xbf16>, vector<128x128xbf16>, vector<16x128xf32> -> vector<16x128xf32>
    %9 = arith.addf %3, %8 : vector<16x128xf32>
    %c0_6 = arith.constant 0 : index
    %c0_7 = arith.constant 0 : index
    %10 = vector.load %arg7[%c0_6, %c0_7] : memref<16x128xf32, #tpu.memory_space<vmem>>, vector<16x128xf32>
    tpu.vector_store %arg7[%c0_6, %c0_7], %9 {strides = array<i32>} : memref<16x128xf32, #tpu.memory_space<vmem>>, vector<16x128xf32>,
    %c0_i32_8 = arith.constant 0 : i32
    %11 = arith.cmpi eq, %arg2, %c0_i32_8 : i32
    %12 = arith.extui %11 : i1 to i32
    %c0_i32_9 = arith.constant 0 : i32
    %13 = arith.cmpi ne, %12, %c0_i32_9 : i32
    scf.if %13 {
      %c0_10 = arith.constant 0 : index
      %c0_11 = arith.constant 0 : index
      %14 = vector.load %arg7[%c0_10, %c0_11] : memref<16x128xf32, #tpu.memory_space<vmem>>, vector<16x128xf32>
      %c0_12 = arith.constant 0 : index
      %c0_13 = arith.constant 0 : index
      %15 = vector.load %arg5[%c0_12, %c0_13] : memref<1x128xf32, #tpu.memory_space<vmem>>, vector<1x128xf32>
      %16 = vector.broadcast %15 : vector<1x128xf32> to vector<16x128xf32>
      %17 = arith.addf %14, %16 : vector<16x128xf32>
      %cst_14 = arith.constant 0.000000e+00 : f32
      %18 = vector.broadcast %cst_14 : f32 to vector<16x128xf32>
      %19 = arith.maximumf %17, %18 : vector<16x128xf32>
      %c0_15 = arith.constant 0 : index
      %c0_16 = arith.constant 0 : index
      %20 = vector.load %arg6[%c0_15, %c0_16] : memref<16x128xf32, #tpu.memory_space<vmem>>, vector<16x128xf32>
      tpu.vector_store %arg6[%c0_15, %c0_16], %19 {strides = array<i32>} : memref<16x128xf32, #tpu.memory_space<vmem>>, vector<16x128xf32>,
    } else {
    }
    return
  }
  func.func @transform_0(%arg0: i32, %arg1: i32, %arg2: i32) -> (i32, i32) {
    %c0_i32 = arith.constant 0 : i32
    return %arg0, %arg2 : i32, i32
  }
  func.func @transform_1(%arg0: i32, %arg1: i32, %arg2: i32) -> (i32, i32) {
    %c0_i32 = arith.constant 0 : i32
    return %arg2, %arg1 : i32, i32
  }
  func.func @transform_2(%arg0: i32, %arg1: i32, %arg2: i32) -> (i32, i32) {
    %c0_i32 = arith.constant 0 : i32
    %c0_i32_0 = arith.constant 0 : i32
    return %c0_i32, %arg1 : i32, i32
  }
  func.func @transform_3(%arg0: i32, %arg1: i32, %arg2: i32) -> (i32, i32) {
    %c0_i32 = arith.constant 0 : i32
    return %arg0, %arg1 : i32, i32
  }
}

module attributes {stable_mosaic.version = 11 : i64} {
  func.func @_linear_kernel(%arg0: i32, %arg1: i32, %arg2: i32, %arg3: memref<16x128xf32, #tpu.memory_space<vmem>>, %arg4: memref<128x128xf32, #tpu.memory_space<vmem>>, %arg5: memref<1x128xf32, #tpu.memory_space<vmem>>, %arg6: memref<16x128xf32, #tpu.memory_space<vmem>>, %arg7: memref<16x128xf32, #tpu.memory_space<vmem>>, %arg8: memref<16x128xf32, #tpu.memory_space<vmem>>) attributes {dimension_semantics = [#tpu.dimension_semantics<parallel>, #tpu.dimension_semantics<parallel>, #tpu.dimension_semantics<arbitrary>], iteration_bounds = array<i64: 1, 1, 1>, scalar_prefetch = 0 : i64, scratch_operands = 1 : i64, tpu.core_type = #tpu.core_type<tc>, window_params = [{transform_indices = @transform_0, window_bounds = array<i64: 16, 128>}, {transform_indices = @transform_1, window_bounds = array<i64: 128, 128>}, {transform_indices = @transform_2, window_bounds = array<i64: 1, 128>}, {transform_indices = @transform_3, window_bounds = array<i64: 16, 128>}, {transform_indices = @transform_4, window_bounds = array<i64: 16, 128>}]} {
    %c0_i32 = arith.constant 0 : i32
    %0 = arith.cmpi eq, %arg2, %c0_i32 : i32
    %1 = arith.extui %0 : i1 to i32
    %c0_i32_0 = arith.constant 0 : i32
    %2 = arith.cmpi ne, %1, %c0_i32_0 : i32
    scf.if %2 {
      %cst_10 = arith.constant 0.000000e+00 : f32
      %14 = vector.broadcast %cst_10 : f32 to vector<16x128xf32>
      %c0_11 = arith.constant 0 : index
      %c0_12 = arith.constant 0 : index
      %15 = vector.load %arg8[%c0_11, %c0_12] : memref<16x128xf32, #tpu.memory_space<vmem>>, vector<16x128xf32>
      tpu.vector_store %arg8[%c0_11, %c0_12], %14 {strides = array<i32>} : memref<16x128xf32, #tpu.memory_space<vmem>>, vector<16x128xf32>,
    } else {
    }
    %c0 = arith.constant 0 : index
    %c0_1 = arith.constant 0 : index
    %3 = vector.load %arg8[%c0, %c0_1] : memref<16x128xf32, #tpu.memory_space<vmem>>, vector<16x128xf32>
    %c0_2 = arith.constant 0 : index
    %c0_3 = arith.constant 0 : index
    %4 = vector.load %arg3[%c0_2, %c0_3] : memref<16x128xf32, #tpu.memory_space<vmem>>, vector<16x128xf32>
    %5 = arith.truncf %4 : vector<16x128xf32> to vector<16x128xbf16>
    %c0_4 = arith.constant 0 : index
    %c0_5 = arith.constant 0 : index
    %6 = vector.load %arg4[%c0_4, %c0_5] : memref<128x128xf32, #tpu.memory_space<vmem>>, vector<128x128xf32>
    %7 = arith.truncf %6 : vector<128x128xf32> to vector<128x128xbf16>
    %cst = arith.constant dense<0.000000e+00> : vector<16x128xf32>
    %8 = tpu.matmul %5, %7, %cst {dimension_numbers = #tpu.dot_dimension_numbers<[1], [0], [0], [1], [0, 0, 1, 1], [], []>} : vector<16x128xbf16>, vector<128x128xbf16>, vector<16x128xf32> -> vector<16x128xf32>
    %9 = arith.addf %3, %8 : vector<16x128xf32>
    %c0_6 = arith.constant 0 : index
    %c0_7 = arith.constant 0 : index
    %10 = vector.load %arg8[%c0_6, %c0_7] : memref<16x128xf32, #tpu.memory_space<vmem>>, vector<16x128xf32>
    tpu.vector_store %arg8[%c0_6, %c0_7], %9 {strides = array<i32>} : memref<16x128xf32, #tpu.memory_space<vmem>>, vector<16x128xf32>,
    %c0_i32_8 = arith.constant 0 : i32
    %11 = arith.cmpi eq, %arg2, %c0_i32_8 : i32
    %12 = arith.extui %11 : i1 to i32
    %c0_i32_9 = arith.constant 0 : i32
    %13 = arith.cmpi ne, %12, %c0_i32_9 : i32
    scf.if %13 {
      %c0_10 = arith.constant 0 : index
      %c0_11 = arith.constant 0 : index
      %14 = vector.load %arg8[%c0_10, %c0_11] : memref<16x128xf32, #tpu.memory_space<vmem>>, vector<16x128xf32>
      %c0_12 = arith.constant 0 : index
      %c0_13 = arith.constant 0 : index
      %15 = vector.load %arg5[%c0_12, %c0_13] : memref<1x128xf32, #tpu.memory_space<vmem>>, vector<1x128xf32>
      %16 = vector.broadcast %15 : vector<1x128xf32> to vector<16x128xf32>
      %17 = arith.addf %14, %16 : vector<16x128xf32>
      %cst_14 = arith.constant 5.000000e-01 : f32
      %18 = vector.broadcast %cst_14 : f32 to vector<16x128xf32>
      %19 = arith.mulf %17, %18 : vector<16x128xf32>
      %c0_15 = arith.constant 0 : index
      %c0_16 = arith.constant 0 : index
      %20 = vector.load %arg6[%c0_15, %c0_16] : memref<16x128xf32, #tpu.memory_space<vmem>>, vector<16x128xf32>
      %21 = arith.addf %19, %20 : vector<16x128xf32>
      %c0_17 = arith.constant 0 : index
      %c0_18 = arith.constant 0 : index
      %22 = vector.load %arg7[%c0_17, %c0_18] : memref<16x128xf32, #tpu.memory_space<vmem>>, vector<16x128xf32>
      tpu.vector_store %arg7[%c0_17, %c0_18], %21 {strides = array<i32>} : memref<16x128xf32, #tpu.memory_space<vmem>>, vector<16x128xf32>,
    } else {
    }
    return
  }
  func.func @transform_0(%arg0: i32, %arg1: i32, %arg2: i32) -> (i32, i32) {
    %c0_i32 = arith.constant 0 : i32
    return %arg0, %arg2 : i32, i32
  }
  func.func @transform_1(%arg0: i32, %arg1: i32, %arg2: i32) -> (i32, i32) {
    %c0_i32 = arith.constant 0 : i32
    return %arg2, %arg1 : i32, i32
  }
  func.func @transform_2(%arg0: i32, %arg1: i32, %arg2: i32) -> (i32, i32) {
    %c0_i32 = arith.constant 0 : i32
    %c0_i32_0 = arith.constant 0 : i32
    return %c0_i32, %arg1 : i32, i32
  }
  func.func @transform_3(%arg0: i32, %arg1: i32, %arg2: i32) -> (i32, i32) {
    %c0_i32 = arith.constant 0 : i32
    return %arg0, %arg1 : i32, i32
  }
  func.func @transform_4(%arg0: i32, %arg1: i32, %arg2: i32) -> (i32, i32) {
    %c0_i32 = arith.constant 0 : i32
    return %arg0, %arg1 : i32, i32
  }
}

module attributes {stable_mosaic.version = 11 : i64} {
  func.func @_layernorm_kernel(%arg0: i32, %arg1: memref<16x32xf32, #tpu.memory_space<vmem>>, %arg2: memref<1x32xf32, #tpu.memory_space<vmem>>, %arg3: memref<1x32xf32, #tpu.memory_space<vmem>>, %arg4: memref<16x32xf32, #tpu.memory_space<vmem>>) attributes {dimension_semantics = [#tpu.dimension_semantics<parallel>], iteration_bounds = array<i64: 1>, scalar_prefetch = 0 : i64, scratch_operands = 0 : i64, tpu.core_type = #tpu.core_type<tc>, window_params = [{transform_indices = @transform_0, window_bounds = array<i64: 16, 32>}, {pipeline_mode = #tpu.pipeline_mode<synchronous>, transform_indices = @transform_1, window_bounds = array<i64: 1, 32>}, {pipeline_mode = #tpu.pipeline_mode<synchronous>, transform_indices = @transform_2, window_bounds = array<i64: 1, 32>}, {transform_indices = @transform_3, window_bounds = array<i64: 16, 32>}]} {
    %c0 = arith.constant 0 : index
    %c0_0 = arith.constant 0 : index
    %0 = vector.load %arg1[%c0, %c0_0] : memref<16x32xf32, #tpu.memory_space<vmem>>, vector<16x32xf32>
    %cst = arith.constant dense<0.000000e+00> : vector<16xf32>
    %1 = vector.multi_reduction <add>, %0, %cst [1] : vector<16x32xf32> to vector<16xf32>
    %2 = vector.shape_cast %1 : vector<16xf32> to vector<16x1xf32>
    %cst_1 = arith.constant 3.200000e+01 : f32
    %3 = vector.broadcast %cst_1 : f32 to vector<16x1xf32>
    %4 = arith.divf %2, %3 : vector<16x1xf32>
    %5 = vector.broadcast %4 : vector<16x1xf32> to vector<16x32xf32>
    %6 = arith.subf %0, %5 : vector<16x32xf32>
    %7 = arith.mulf %6, %6 : vector<16x32xf32>
    %cst_2 = arith.constant dense<0.000000e+00> : vector<16xf32>
    %8 = vector.multi_reduction <add>, %7, %cst_2 [1] : vector<16x32xf32> to vector<16xf32>
    %9 = vector.shape_cast %8 : vector<16xf32> to vector<16x1xf32>
    %cst_3 = arith.constant 3.200000e+01 : f32
    %10 = vector.broadcast %cst_3 : f32 to vector<16x1xf32>
    %11 = arith.divf %9, %10 : vector<16x1xf32>
    %cst_4 = arith.constant 9.99999974E-6 : f32
    %12 = vector.broadcast %cst_4 : f32 to vector<16x1xf32>
    %13 = arith.addf %11, %12 : vector<16x1xf32>
    %14 = math.rsqrt %13 : vector<16x1xf32>
    %15 = vector.broadcast %14 : vector<16x1xf32> to vector<16x32xf32>
    %16 = arith.mulf %6, %15 : vector<16x32xf32>
    %c0_5 = arith.constant 0 : index
    %c0_6 = arith.constant 0 : index
    %17 = vector.load %arg2[%c0_5, %c0_6] : memref<1x32xf32, #tpu.memory_space<vmem>>, vector<1x32xf32>
    %18 = vector.broadcast %17 : vector<1x32xf32> to vector<16x32xf32>
    %19 = arith.mulf %16, %18 : vector<16x32xf32>
    %c0_7 = arith.constant 0 : index
    %c0_8 = arith.constant 0 : index
    %20 = vector.load %arg3[%c0_7, %c0_8] : memref<1x32xf32, #tpu.memory_space<vmem>>, vector<1x32xf32>
    %21 = vector.broadcast %20 : vector<1x32xf32> to vector<16x32xf32>
    %22 = arith.addf %19, %21 : vector<16x32xf32>
    %c0_9 = arith.constant 0 : index
    %c0_10 = arith.constant 0 : index
    %23 = vector.load %arg4[%c0_9, %c0_10] : memref<16x32xf32, #tpu.memory_space<vmem>>, vector<16x32xf32>
    tpu.vector_store %arg4[%c0_9, %c0_10], %22 {strides = array<i32>} : memref<16x32xf32, #tpu.memory_space<vmem>>, vector<16x32xf32>,
    return
  }
  func.func @transform_0(%arg0: i32) -> (i32, i32) {
    %c0_i32 = arith.constant 0 : i32
    %c0_i32_0 = arith.constant 0 : i32
    return %arg0, %c0_i32 : i32, i32
  }
  func.func @transform_1(%arg0: i32) -> (i32, i32) {
    %c0_i32 = arith.constant 0 : i32
    %c0_i32_0 = arith.constant 0 : i32
    %c0_i32_1 = arith.constant 0 : i32
    return %c0_i32, %c0_i32_0 : i32, i32
  }
  func.func @transform_2(%arg0: i32) -> (i32, i32) {
    %c0_i32 = arith.constant 0 : i32
    %c0_i32_0 = arith.constant 0 : i32
    %c0_i32_1 = arith.constant 0 : i32
    return %c0_i32, %c0_i32_0 : i32, i32
  }
  func.func @transform_3(%arg0: i32) -> (i32, i32) {
    %c0_i32 = arith.constant 0 : i32
    %c0_i32_0 = arith.constant 0 : i32
    return %arg0, %c0_i32 : i32, i32
  }
}

module attributes {stable_mosaic.version = 11 : i64} {
  func.func @_linear_kernel(%arg0: i32, %arg1: i32, %arg2: i32, %arg3: memref<16x128xf32, #tpu.memory_space<vmem>>, %arg4: memref<128x128xf32, #tpu.memory_space<vmem>>, %arg5: memref<1x128xf32, #tpu.memory_space<vmem>>, %arg6: memref<16x128xf32, #tpu.memory_space<vmem>>, %arg7: memref<16x128xf32, #tpu.memory_space<vmem>>) attributes {dimension_semantics = [#tpu.dimension_semantics<parallel>, #tpu.dimension_semantics<parallel>, #tpu.dimension_semantics<arbitrary>], iteration_bounds = array<i64: 1, 1, 1>, scalar_prefetch = 0 : i64, scratch_operands = 1 : i64, tpu.core_type = #tpu.core_type<tc>, window_params = [{transform_indices = @transform_0, window_bounds = array<i64: 16, 128>}, {transform_indices = @transform_1, window_bounds = array<i64: 128, 128>}, {transform_indices = @transform_2, window_bounds = array<i64: 1, 128>}, {transform_indices = @transform_3, window_bounds = array<i64: 16, 128>}]} {
    %c0_i32 = arith.constant 0 : i32
    %0 = arith.cmpi eq, %arg2, %c0_i32 : i32
    %1 = arith.extui %0 : i1 to i32
    %c0_i32_0 = arith.constant 0 : i32
    %2 = arith.cmpi ne, %1, %c0_i32_0 : i32
    scf.if %2 {
      %cst_10 = arith.constant 0.000000e+00 : f32
      %14 = vector.broadcast %cst_10 : f32 to vector<16x128xf32>
      %c0_11 = arith.constant 0 : index
      %c0_12 = arith.constant 0 : index
      %15 = vector.load %arg7[%c0_11, %c0_12] : memref<16x128xf32, #tpu.memory_space<vmem>>, vector<16x128xf32>
      tpu.vector_store %arg7[%c0_11, %c0_12], %14 {strides = array<i32>} : memref<16x128xf32, #tpu.memory_space<vmem>>, vector<16x128xf32>,
    } else {
    }
    %c0 = arith.constant 0 : index
    %c0_1 = arith.constant 0 : index
    %3 = vector.load %arg7[%c0, %c0_1] : memref<16x128xf32, #tpu.memory_space<vmem>>, vector<16x128xf32>
    %c0_2 = arith.constant 0 : index
    %c0_3 = arith.constant 0 : index
    %4 = vector.load %arg3[%c0_2, %c0_3] : memref<16x128xf32, #tpu.memory_space<vmem>>, vector<16x128xf32>
    %5 = arith.truncf %4 : vector<16x128xf32> to vector<16x128xbf16>
    %c0_4 = arith.constant 0 : index
    %c0_5 = arith.constant 0 : index
    %6 = vector.load %arg4[%c0_4, %c0_5] : memref<128x128xf32, #tpu.memory_space<vmem>>, vector<128x128xf32>
    %7 = arith.truncf %6 : vector<128x128xf32> to vector<128x128xbf16>
    %cst = arith.constant dense<0.000000e+00> : vector<16x128xf32>
    %8 = tpu.matmul %5, %7, %cst {dimension_numbers = #tpu.dot_dimension_numbers<[1], [0], [0], [1], [0, 0, 1, 1], [], []>} : vector<16x128xbf16>, vector<128x128xbf16>, vector<16x128xf32> -> vector<16x128xf32>
    %9 = arith.addf %3, %8 : vector<16x128xf32>
    %c0_6 = arith.constant 0 : index
    %c0_7 = arith.constant 0 : index
    %10 = vector.load %arg7[%c0_6, %c0_7] : memref<16x128xf32, #tpu.memory_space<vmem>>, vector<16x128xf32>
    tpu.vector_store %arg7[%c0_6, %c0_7], %9 {strides = array<i32>} : memref<16x128xf32, #tpu.memory_space<vmem>>, vector<16x128xf32>,
    %c0_i32_8 = arith.constant 0 : i32
    %11 = arith.cmpi eq, %arg2, %c0_i32_8 : i32
    %12 = arith.extui %11 : i1 to i32
    %c0_i32_9 = arith.constant 0 : i32
    %13 = arith.cmpi ne, %12, %c0_i32_9 : i32
    scf.if %13 {
      %c0_10 = arith.constant 0 : index
      %c0_11 = arith.constant 0 : index
      %14 = vector.load %arg7[%c0_10, %c0_11] : memref<16x128xf32, #tpu.memory_space<vmem>>, vector<16x128xf32>
      %c0_12 = arith.constant 0 : index
      %c0_13 = arith.constant 0 : index
      %15 = vector.load %arg5[%c0_12, %c0_13] : memref<1x128xf32, #tpu.memory_space<vmem>>, vector<1x128xf32>
      %16 = vector.broadcast %15 : vector<1x128xf32> to vector<16x128xf32>
      %17 = arith.addf %14, %16 : vector<16x128xf32>
      %c0_14 = arith.constant 0 : index
      %c0_15 = arith.constant 0 : index
      %18 = vector.load %arg6[%c0_14, %c0_15] : memref<16x128xf32, #tpu.memory_space<vmem>>, vector<16x128xf32>
      tpu.vector_store %arg6[%c0_14, %c0_15], %17 {strides = array<i32>} : memref<16x128xf32, #tpu.memory_space<vmem>>, vector<16x128xf32>,
    } else {
    }
    return
  }
  func.func @transform_0(%arg0: i32, %arg1: i32, %arg2: i32) -> (i32, i32) {
    %c0_i32 = arith.constant 0 : i32
    return %arg0, %arg2 : i32, i32
  }
  func.func @transform_1(%arg0: i32, %arg1: i32, %arg2: i32) -> (i32, i32) {
    %c0_i32 = arith.constant 0 : i32
    return %arg2, %arg1 : i32, i32
  }
  func.func @transform_2(%arg0: i32, %arg1: i32, %arg2: i32) -> (i32, i32) {
    %c0_i32 = arith.constant 0 : i32
    %c0_i32_0 = arith.constant 0 : i32
    return %c0_i32, %arg1 : i32, i32
  }
  func.func @transform_3(%arg0: i32, %arg1: i32, %arg2: i32) -> (i32, i32) {
    %c0_i32 = arith.constant 0 : i32
    return %arg0, %arg1 : i32, i32
  }
}

module attributes {stable_mosaic.version = 11 : i64} {
  func.func @_flash_attn_kernel(%arg0: i32, %arg1: i32, %arg2: memref<4x8x16xf32, #tpu.memory_space<vmem>>, %arg3: memref<4x8x16xf32, #tpu.memory_space<vmem>>, %arg4: memref<4x8x16xf32, #tpu.memory_space<vmem>>, %arg5: memref<4x8x16xf32, #tpu.memory_space<vmem>>, %arg6: memref<4x8x1xf32, #tpu.memory_space<vmem>>, %arg7: memref<4x8x1xf32, #tpu.memory_space<vmem>>, %arg8: memref<4x8x16xf32, #tpu.memory_space<vmem>>) attributes {dimension_semantics = [#tpu.dimension_semantics<parallel>, #tpu.dimension_semantics<arbitrary>], iteration_bounds = array<i64: 1, 1>, scalar_prefetch = 0 : i64, scratch_operands = 3 : i64, tpu.core_type = #tpu.core_type<tc>, window_params = [{transform_indices = @transform_0, window_bounds = array<i64: 4, 8, 16>}, {transform_indices = @transform_1, window_bounds = array<i64: 4, 8, 16>}, {transform_indices = @transform_2, window_bounds = array<i64: 4, 8, 16>}, {transform_indices = @transform_3, window_bounds = array<i64: 4, 8, 16>}]} {
    %c0_i32 = arith.constant 0 : i32
    %0 = arith.cmpi eq, %arg1, %c0_i32 : i32
    %1 = arith.extui %0 : i1 to i32
    %c0_i32_0 = arith.constant 0 : i32
    %2 = arith.cmpi ne, %1, %c0_i32_0 : i32
    scf.if %2 {
      %cst_35 = arith.constant -1.000000e+30 : f32
      %46 = vector.broadcast %cst_35 : f32 to vector<4x8x1xf32>
      %c0_36 = arith.constant 0 : index
      %c0_37 = arith.constant 0 : index
      %c0_38 = arith.constant 0 : index
      %47 = vector.load %arg6[%c0_36, %c0_37, %c0_38] : memref<4x8x1xf32, #tpu.memory_space<vmem>>, vector<4x8x1xf32>
      tpu.vector_store %arg6[%c0_36, %c0_37, %c0_38], %46 {strides = array<i32>} : memref<4x8x1xf32, #tpu.memory_space<vmem>>, vector<4x8x1xf32>,
      %cst_39 = arith.constant 0.000000e+00 : f32
      %48 = vector.broadcast %cst_39 : f32 to vector<4x8x1xf32>
      %c0_40 = arith.constant 0 : index
      %c0_41 = arith.constant 0 : index
      %c0_42 = arith.constant 0 : index
      %49 = vector.load %arg7[%c0_40, %c0_41, %c0_42] : memref<4x8x1xf32, #tpu.memory_space<vmem>>, vector<4x8x1xf32>
      tpu.vector_store %arg7[%c0_40, %c0_41, %c0_42], %48 {strides = array<i32>} : memref<4x8x1xf32, #tpu.memory_space<vmem>>, vector<4x8x1xf32>,
      %cst_43 = arith.constant 0.000000e+00 : f32
      %50 = vector.broadcast %cst_43 : f32 to vector<4x8x16xf32>
      %c0_44 = arith.constant 0 : index
      %c0_45 = arith.constant 0 : index
      %c0_46 = arith.constant 0 : index
      %51 = vector.load %arg8[%c0_44, %c0_45, %c0_46] : memref<4x8x16xf32, #tpu.memory_space<vmem>>, vector<4x8x16xf32>
      tpu.vector_store %arg8[%c0_44, %c0_45, %c0_46], %50 {strides = array<i32>} : memref<4x8x16xf32, #tpu.memory_space<vmem>>, vector<4x8x16xf32>,
    } else {
    }
    %c0 = arith.constant 0 : index
    %c0_1 = arith.constant 0 : index
    %c0_2 = arith.constant 0 : index
    %3 = vector.load %arg2[%c0, %c0_1, %c0_2] : memref<4x8x16xf32, #tpu.memory_space<vmem>>, vector<4x8x16xf32>
    %4 = arith.truncf %3 : vector<4x8x16xf32> to vector<4x8x16xbf16>
    %c0_3 = arith.constant 0 : index
    %c0_4 = arith.constant 0 : index
    %c0_5 = arith.constant 0 : index
    %5 = vector.load %arg3[%c0_3, %c0_4, %c0_5] : memref<4x8x16xf32, #tpu.memory_space<vmem>>, vector<4x8x16xf32>
    %6 = arith.truncf %5 : vector<4x8x16xf32> to vector<4x8x16xbf16>
    "tpu.trace_start"() <{level = 10 : i32, message = "bqd,bkd->bqk"}> : () -> ()
    %cst = arith.constant dense<0.000000e+00> : vector<4x8x8xf32>
    %7 = tpu.matmul %4, %6, %cst {dimension_numbers = #tpu.dot_dimension_numbers<[2], [2], [1], [1], [0, 0, 0, 1, 1, 1], [0], [0]>} : vector<4x8x16xbf16>, vector<4x8x16xbf16>, vector<4x8x8xf32> -> vector<4x8x8xf32>
    "tpu.trace_stop"() : () -> ()
    %cst_6 = arith.constant 2.500000e-01 : f32
    %8 = vector.broadcast %cst_6 : f32 to vector<4x8x8xf32>
    %9 = arith.mulf %7, %8 : vector<4x8x8xf32>
    %c8_i32 = arith.constant 8 : i32
    %10 = arith.muli %arg1, %c8_i32 : i32
    %11 = tpu.iota {dimensions = array<i32: 2>} : vector<4x8x8xi32>
    %12 = vector.broadcast %10 : i32 to vector<4x8x8xi32>
    %13 = arith.addi %12, %11 : vector<4x8x8xi32>
    %c8_i32_7 = arith.constant 8 : i32
    %14 = vector.broadcast %c8_i32_7 : i32 to vector<4x8x8xi32>
    %15 = arith.cmpi slt, %13, %14 : vector<4x8x8xi32>
    %cst_8 = arith.constant -1.000000e+30 : f32
    %16 = vector.broadcast %cst_8 : f32 to vector<4x8x8xf32>
    %17 = arith.select %15, %9, %16 : vector<4x8x8xi1>, vector<4x8x8xf32>
    %c0_9 = arith.constant 0 : index
    %c0_10 = arith.constant 0 : index
    %c0_11 = arith.constant 0 : index
    %18 = vector.load %arg6[%c0_9, %c0_10, %c0_11] : memref<4x8x1xf32, #tpu.memory_space<vmem>>, vector<4x8x1xf32>
    %cst_12 = arith.constant dense<0xFF800000> : vector<4x8xf32>
    %19 = vector.multi_reduction <maximumf>, %17, %cst_12 [2] : vector<4x8x8xf32> to vector<4x8xf32>
    %20 = vector.shape_cast %19 : vector<4x8xf32> to vector<4x8x1xf32>
    %21 = arith.maximumf %18, %20 : vector<4x8x1xf32>
    %22 = arith.subf %18, %21 : vector<4x8x1xf32>
    %23 = math.exp %22 : vector<4x8x1xf32>
    %24 = vector.broadcast %21 : vector<4x8x1xf32> to vector<4x8x8xf32>
    %25 = arith.subf %17, %24 : vector<4x8x8xf32>
    %26 = math.exp %25 : vector<4x8x8xf32>
    %c0_13 = arith.constant 0 : index
    %c0_14 = arith.constant 0 : index
    %c0_15 = arith.constant 0 : index
    %27 = vector.load %arg7[%c0_13, %c0_14, %c0_15] : memref<4x8x1xf32, #tpu.memory_space<vmem>>, vector<4x8x1xf32>
    %28 = arith.mulf %23, %27 : vector<4x8x1xf32>
    %cst_16 = arith.constant dense<0.000000e+00> : vector<4x8xf32>
    %29 = vector.multi_reduction <add>, %26, %cst_16 [2] : vector<4x8x8xf32> to vector<4x8xf32>
    %30 = vector.shape_cast %29 : vector<4x8xf32> to vector<4x8x1xf32>
    %31 = arith.addf %28, %30 : vector<4x8x1xf32>
    %c0_17 = arith.constant 0 : index
    %c0_18 = arith.constant 0 : index
    %c0_19 = arith.constant 0 : index
    %32 = vector.load %arg7[%c0_17, %c0_18, %c0_19] : memref<4x8x1xf32, #tpu.memory_space<vmem>>, vector<4x8x1xf32>
    tpu.vector_store %arg7[%c0_17, %c0_18, %c0_19], %31 {strides = array<i32>} : memref<4x8x1xf32, #tpu.memory_space<vmem>>, vector<4x8x1xf32>,
    %c0_20 = arith.constant 0 : index
    %c0_21 = arith.constant 0 : index
    %c0_22 = arith.constant 0 : index
    %33 = vector.load %arg8[%c0_20, %c0_21, %c0_22] : memref<4x8x16xf32, #tpu.memory_space<vmem>>, vector<4x8x16xf32>
    %34 = vector.broadcast %23 : vector<4x8x1xf32> to vector<4x8x16xf32>
    %35 = arith.mulf %34, %33 : vector<4x8x16xf32>
    %36 = arith.truncf %26 : vector<4x8x8xf32> to vector<4x8x8xbf16>
    %c0_23 = arith.constant 0 : index
    %c0_24 = arith.constant 0 : index
    %c0_25 = arith.constant 0 : index
    %37 = vector.load %arg4[%c0_23, %c0_24, %c0_25] : memref<4x8x16xf32, #tpu.memory_space<vmem>>, vector<4x8x16xf32>
    %38 = arith.truncf %37 : vector<4x8x16xf32> to vector<4x8x16xbf16>
    "tpu.trace_start"() <{level = 10 : i32, message = "bqk,bkd->bqd"}> : () -> ()
    %cst_26 = arith.constant dense<0.000000e+00> : vector<4x8x16xf32>
    %39 = tpu.matmul %36, %38, %cst_26 {dimension_numbers = #tpu.dot_dimension_numbers<[2], [1], [1], [2], [0, 0, 0, 1, 1, 2], [0], [0]>} : vector<4x8x8xbf16>, vector<4x8x16xbf16>, vector<4x8x16xf32> -> vector<4x8x16xf32>
    "tpu.trace_stop"() : () -> ()
    %40 = arith.addf %35, %39 : vector<4x8x16xf32>
    %c0_27 = arith.constant 0 : index
    %c0_28 = arith.constant 0 : index
    %c0_29 = arith.constant 0 : index
    %41 = vector.load %arg8[%c0_27, %c0_28, %c0_29] : memref<4x8x16xf32, #tpu.memory_space<vmem>>, vector<4x8x16xf32>
    tpu.vector_store %arg8[%c0_27, %c0_28, %c0_29], %40 {strides = array<i32>} : memref<4x8x16xf32, #tpu.memory_space<vmem>>, vector<4x8x16xf32>,
    %c0_30 = arith.constant 0 : index
    %c0_31 = arith.constant 0 : index
    %c0_32 = arith.constant 0 : index
    %42 = vector.load %arg6[%c0_30, %c0_31, %c0_32] : memref<4x8x1xf32, #tpu.memory_space<vmem>>, vector<4x8x1xf32>
    tpu.vector_store %arg6[%c0_30, %c0_31, %c0_32], %21 {strides = array<i32>} : memref<4x8x1xf32, #tpu.memory_space<vmem>>, vector<4x8x1xf32>,
    %c0_i32_33 = arith.constant 0 : i32
    %43 = arith.cmpi eq, %arg1, %c0_i32_33 : i32
    %44 = arith.extui %43 : i1 to i32
    %c0_i32_34 = arith.constant 0 : i32
    %45 = arith.cmpi ne, %44, %c0_i32_34 : i32
    scf.if %45 {
      %c0_35 = arith.constant 0 : index
      %c0_36 = arith.constant 0 : index
      %c0_37 = arith.constant 0 : index
      %46 = vector.load %arg8[%c0_35, %c0_36, %c0_37] : memref<4x8x16xf32, #tpu.memory_space<vmem>>, vector<4x8x16xf32>
      %c0_38 = arith.constant 0 : index
      %c0_39 = arith.constant 0 : index
      %c0_40 = arith.constant 0 : index
      %47 = vector.load %arg7[%c0_38, %c0_39, %c0_40] : memref<4x8x1xf32, #tpu.memory_space<vmem>>, vector<4x8x1xf32>
      %48 = tpu.reciprocal %47 {approx = true} : vector<4x8x1xf32> -> vector<4x8x1xf32>
      %49 = vector.broadcast %48 : vector<4x8x1xf32> to vector<4x8x16xf32>
      %50 = arith.mulf %46, %49 : vector<4x8x16xf32>
      %c0_41 = arith.constant 0 : index
      %c0_42 = arith.constant 0 : index
      %c0_43 = arith.constant 0 : index
      %51 = vector.load %arg5[%c0_41, %c0_42, %c0_43] : memref<4x8x16xf32, #tpu.memory_space<vmem>>, vector<4x8x16xf32>
      tpu.vector_store %arg5[%c0_41, %c0_42, %c0_43], %50 {strides = array<i32>} : memref<4x8x16xf32, #tpu.memory_space<vmem>>, vector<4x8x16xf32>,
    } else {
    }
    return
  }
  func.func @transform_0(%arg0: i32, %arg1: i32) -> (i32, i32, i32) {
    %c0_i32 = arith.constant 0 : i32
    %c0_i32_0 = arith.constant 0 : i32
    %c0_i32_1 = arith.constant 0 : i32
    return %c0_i32, %arg0, %c0_i32_0 : i32, i32, i32
  }
  func.func @transform_1(%arg0: i32, %arg1: i32) -> (i32, i32, i32) {
    %c0_i32 = arith.constant 0 : i32
    %c0_i32_0 = arith.constant 0 : i32
    %c0_i32_1 = arith.constant 0 : i32
    return %c0_i32, %arg1, %c0_i32_0 : i32, i32, i32
  }
  func.func @transform_2(%arg0: i32, %arg1: i32) -> (i32, i32, i32) {
    %c0_i32 = arith.constant 0 : i32
    %c0_i32_0 = arith.constant 0 : i32
    %c0_i32_1 = arith.constant 0 : i32
    return %c0_i32, %arg1, %c0_i32_0 : i32, i32, i32
  }
  func.func @transform_3(%arg0: i32, %arg1: i32) -> (i32, i32, i32) {
    %c0_i32 = arith.constant 0 : i32
    %c0_i32_0 = arith.constant 0 : i32
    %c0_i32_1 = arith.constant 0 : i32
    return %c0_i32, %arg0, %c0_i32_0 : i32, i32, i32
  }
}

module attributes {stable_mosaic.version = 11 : i64} {
  func.func @_linear_glu_kernel(%arg0: i32, %arg1: i32, %arg2: i32, %arg3: memref<16x128xf32, #tpu.memory_space<vmem>>, %arg4: memref<128x128xf32, #tpu.memory_space<vmem>>, %arg5: memref<128x128xf32, #tpu.memory_space<vmem>>, %arg6: memref<1x128xf32, #tpu.memory_space<vmem>>, %arg7: memref<1x128xf32, #tpu.memory_space<vmem>>, %arg8: memref<16x128xf32, #tpu.memory_space<vmem>>, %arg9: memref<16x128xf32, #tpu.memory_space<vmem>>, %arg10: memref<16x128xf32, #tpu.memory_space<vmem>>) attributes {dimension_semantics = [#tpu.dimension_semantics<parallel>, #tpu.dimension_semantics<parallel>, #tpu.dimension_semantics<arbitrary>], iteration_bounds = array<i64: 1, 1, 1>, scalar_prefetch = 0 : i64, scratch_operands = 2 : i64, tpu.core_type = #tpu.core_type<tc>, window_params = [{transform_indices = @transform_0, window_bounds = array<i64: 16, 128>}, {transform_indices = @transform_1, window_bounds = array<i64: 128, 128>}, {transform_indices = @transform_2, window_bounds = array<i64: 128, 128>}, {transform_indices = @transform_3, window_bounds = array<i64: 1, 128>}, {transform_indices = @transform_4, window_bounds = array<i64: 1, 128>}, {transform_indices = @transform_5, window_bounds = array<i64: 16, 128>}]} {
    %c0_i32 = arith.constant 0 : i32
    %0 = arith.cmpi eq, %arg2, %c0_i32 : i32
    %1 = arith.extui %0 : i1 to i32
    %c0_i32_0 = arith.constant 0 : i32
    %2 = arith.cmpi ne, %1, %c0_i32_0 : i32
    scf.if %2 {
      %cst_17 = arith.constant 0.000000e+00 : f32
      %20 = vector.broadcast %cst_17 : f32 to vector<16x128xf32>
      %c0_18 = arith.constant 0 : index
      %c0_19 = arith.constant 0 : index
      %21 = vector.load %arg9[%c0_18, %c0_19] : memref<16x128xf32, #tpu.memory_space<vmem>>, vector<16x128xf32>
      tpu.vector_store %arg9[%c0_18, %c0_19], %20 {strides = array<i32>} : memref<16x128xf32, #tpu.memory_space<vmem>>, vector<16x128xf32>,
      %cst_20 = arith.constant 0.000000e+00 : f32
      %22 = vector.broadcast %cst_20 : f32 to vector<16x128xf32>
      %c0_21 = arith.constant 0 : index
      %c0_22 = arith.constant 0 : index
      %23 = vector.load %arg10[%c0_21, %c0_22] : memref<16x128xf32, #tpu.memory_space<vmem>>, vector<16x128xf32>
      tpu.vector_store %arg10[%c0_21, %c0_22], %22 {strides = array<i32>} : memref<16x128xf32, #tpu.memory_space<vmem>>, vector<16x128xf32>,
    } else {
    }
    %c0 = arith.constant 0 : index
    %c0_1 = arith.constant 0 : index
    %3 = vector.load %arg3[%c0, %c0_1] : memref<16x128xf32, #tpu.memory_space<vmem>>, vector<16x128xf32>
    %4 = arith.truncf %3 : vector<16x128xf32> to vector<16x128xbf16>
    %c0_2 = arith.constant 0 : index
    %c0_3 = arith.constant 0 : index
    %5 = vector.load %arg9[%c0_2, %c0_3] : memref<16x128xf32, #tpu.memory_space<vmem>>, vector<16x128xf32>
    %c0_4 = arith.constant 0 : index
    %c0_5 = arith.constant 0 : index
    %6 = vector.load %arg4[%c0_4, %c0_5] : memref<128x128xf32, #tpu.memory_space<vmem>>, vector<128x128xf32>
    %7 = arith.truncf %6 : vector<128x128xf32> to vector<128x128xbf16>
    %cst = arith.constant dense<0.000000e+00> : vector<16x128xf32>
    %8 = tpu.matmul %4, %7, %cst {dimension_numbers = #tpu.dot_dimension_numbers<[1], [0], [0], [1], [0, 0, 1, 1], [], []>} : vector<16x128xbf16>, vector<128x128xbf16>, vector<16x128xf32> -> vector<16x128xf32>
    %9 = arith.addf %5, %8 : vector<16x128xf32>
    %c0_6 = arith.constant 0 : index
    %c0_7 = arith.constant 0 : index
    %10 = vector.load %arg9[%c0_6, %c0_7] : memref<16x128xf32, #tpu.memory_space<vmem>>, vector<16x128xf32>
    tpu.vector_store %arg9[%c0_6, %c0_7], %9 {strides = array<i32>} : memref<16x128xf32, #tpu.memory_space<vmem>>, vector<16x128xf32>,
    %c0_8 = arith.constant 0 : index
    %c0_9 = arith.constant 0 : index
    %11 = vector.load %arg10[%c0_8, %c0_9] : memref<16x128xf32, #tpu.memory_space<vmem>>, vector<16x128xf32>
    %c0_10 = arith.constant 0 : index
    %c0_11 = arith.constant 0 : index
    %12 = vector.load %arg5[%c0_10, %c0_11] : memref<128x128xf32, #tpu.memory_space<vmem>>, vector<128x128xf32>
    %13 = arith.truncf %12 : vector<128x128xf32> to vector<128x128xbf16>
    %cst_12 = arith.constant dense<0.000000e+00> : vector<16x128xf32>
    %14 = tpu.matmul %4, %13, %cst_12 {dimension_numbers = #tpu.dot_dimension_numbers<[1], [0], [0], [1], [0, 0, 1, 1], [], []>} : vector<16x128xbf16>, vector<128x128xbf16>, vector<16x128xf32> -> vector<16x128xf32>
    %15 = arith.addf %11, %14 : vector<16x128xf32>
    %c0_13 = arith.constant 0 : index
    %c0_14 = arith.constant 0 : index
    %16 = vector.load %arg10[%c0_13, %c0_14] : memref<16x128xf32, #tpu.memory_space<vmem>>, vector<16x128xf32>
    tpu.vector_store %arg10[%c0_13, %c0_14], %15 {strides = array<i32>} : memref<16x128xf32, #tpu.memory_space<vmem>>, vector<16x128xf32>,
    %c0_i32_15 = arith.constant 0 : i32
    %17 = arith.cmpi eq, %arg2, %c0_i32_15 : i32
    %18 = arith.extui %17 : i1 to i32
    %c0_i32_16 = arith.constant 0 : i32
    %19 = arith.cmpi ne, %18, %c0_i32_16 : i32
    scf.if %19 {
      %c0_17 = arith.constant 0 : index
      %c0_18 = arith.constant 0 : index
      %20 = vector.load %arg9[%c0_17, %c0_18] : memref<16x128xf32, #tpu.memory_space<vmem>>, vector<16x128xf32>
      %c0_19 = arith.constant 0 : index
      %c0_20 = arith.constant 0 : index
      %21 = vector.load %arg6[%c0_19, %c0_20] : memref<1x128xf32, #tpu.memory_space<vmem>>, vector<1x128xf32>
      %22 = vector.broadcast %21 : vector<1x128xf32> to vector<16x128xf32>
      %23 = arith.addf %20, %22 : vector<16x128xf32>
      %c0_21 = arith.constant 0 : index
      %c0_22 = arith.constant 0 : index
      %24 = vector.load %arg10[%c0_21, %c0_22] : memref<16x128xf32, #tpu.memory_space<vmem>>, vector<16x128xf32>
      %c0_23 = arith.constant 0 : index
      %c0_24 = arith.constant 0 : index
      %25 = vector.load %arg7[%c0_23, %c0_24] : memref<1x128xf32, #tpu.memory_space<vmem>>, vector<1x128xf32>
      %26 = vector.broadcast %25 : vector<1x128xf32> to vector<16x128xf32>
      %27 = arith.addf %24, %26 : vector<16x128xf32>
      %28 = arith.negf %27 : vector<16x128xf32>
      %29 = math.exp %28 : vector<16x128xf32>
      %cst_25 = arith.constant 1.000000e+00 : f32
      %30 = vector.broadcast %cst_25 : f32 to vector<16x128xf32>
      %31 = arith.addf %30, %29 : vector<16x128xf32>
      %32 = arith.divf %30, %31 : vector<16x128xf32>
      %33 = arith.mulf %23, %32 : vector<16x128xf32>
      %c0_26 = arith.constant 0 : index
      %c0_27 = arith.constant 0 : index
      %34 = vector.load %arg8[%c0_26, %c0_27] : memref<16x128xf32, #tpu.memory_space<vmem>>, vector<16x128xf32>
      tpu.vector_store %arg8[%c0_26, %c0_27], %33 {strides = array<i32>} : memref<16x128xf32, #tpu.memory_space<vmem>>, vector<16x128xf32>,
    } else {
    }
    return
  }
  func.func @transform_0(%arg0: i32, %arg1: i32, %arg2: i32) -> (i32, i32) {
    %c0_i32 = arith.constant 0 : i32
    return %arg0, %arg2 : i32, i32
  }
  func.func @transform_1(%arg0: i32, %arg1: i32, %arg2: i32) -> (i32, i32) {
    %c0_i32 = arith.constant 0 : i32
    return %arg2, %arg1 : i32, i32
  }
  func.func @transform_2(%arg0: i32, %arg1: i32, %arg2: i32) -> (i32, i32) {
    %c0_i32 = arith.constant 0 : i32
    return %arg2, %arg1 : i32, i32
  }
  func.func @transform_3(%arg0: i32, %arg1: i32, %arg2: i32) -> (i32, i32) {
    %c0_i32 = arith.constant 0 : i32
    %c0_i32_0 = arith.constant 0 : i32
    return %c0_i32, %arg1 : i32, i32
  }
  func.func @transform_4(%arg0: i32, %arg1: i32, %arg2: i32) -> (i32, i32) {
    %c0_i32 = arith.constant 0 : i32
    %c0_i32_0 = arith.constant 0 : i32
    return %c0_i32, %arg1 : i32, i32
  }
  func.func @transform_5(%arg0: i32, %arg1: i32, %arg2: i32) -> (i32, i32) {
    %c0_i32 = arith.constant 0 : i32
    return %arg0, %arg1 : i32, i32
  }
}

module attributes {stable_mosaic.version = 11 : i64} {
  func.func @_dwconv_kernel(%arg0: memref<2x1x16x32xf32, #tpu.memory_space<vmem>>, %arg1: memref<1x9x32xf32, #tpu.memory_space<vmem>>, %arg2: memref<1x32xf32, #tpu.memory_space<vmem>>, %arg3: memref<2x8x32xf32, #tpu.memory_space<vmem>>) attributes {dimension_semantics = [], scalar_prefetch = 0 : i64, scratch_operands = 0 : i64, tpu.core_type = #tpu.core_type<tc>} {
    %c0 = arith.constant 0 : index
    %c0_0 = arith.constant 0 : index
    %c0_1 = arith.constant 0 : index
    %c0_2 = arith.constant 0 : index
    %0 = vector.load %arg0[%c0, %c0_0, %c0_1, %c0_2] : memref<2x1x16x32xf32, #tpu.memory_space<vmem>>, vector<2x1x16x32xf32>
    %c0_3 = arith.constant 0 : index
    %c0_4 = arith.constant 0 : index
    %c0_5 = arith.constant 0 : index
    %1 = vector.load %arg1[%c0_3, %c0_4, %c0_5] : memref<1x9x32xf32, #tpu.memory_space<vmem>>, vector<1x9x32xf32>
    %cst = arith.constant 0.000000e+00 : f32
    %2 = vector.broadcast %cst : f32 to vector<2x8x32xf32>
    %3 = vector.shape_cast %0 : vector<2x1x16x32xf32> to vector<2x16x32xf32>
    %4 = vector.extract_strided_slice %3 {offsets = [0, 0, 0], sizes = [2, 8, 32], strides = [1, 1, 1]} : vector<2x16x32xf32> to vector<2x8x32xf32>
    %5 = vector.extract_strided_slice %1 {offsets = [0, 0, 0], sizes = [1, 1, 32], strides = [1, 1, 1]} : vector<1x9x32xf32> to vector<1x1x32xf32>
    %6 = vector.shape_cast %5 : vector<1x1x32xf32> to vector<32xf32>
    %7 = vector.shape_cast %6 : vector<32xf32> to vector<1x1x32xf32>
    %8 = vector.broadcast %7 : vector<1x1x32xf32> to vector<2x8x32xf32>
    %9 = arith.mulf %4, %8 : vector<2x8x32xf32>
    %10 = arith.addf %2, %9 : vector<2x8x32xf32>
    %11 = vector.extract_strided_slice %3 {offsets = [0, 1, 0], sizes = [2, 8, 32], strides = [1, 1, 1]} : vector<2x16x32xf32> to vector<2x8x32xf32>
    %12 = vector.extract_strided_slice %1 {offsets = [0, 1, 0], sizes = [1, 1, 32], strides = [1, 1, 1]} : vector<1x9x32xf32> to vector<1x1x32xf32>
    %13 = vector.shape_cast %12 : vector<1x1x32xf32> to vector<32xf32>
    %14 = vector.shape_cast %13 : vector<32xf32> to vector<1x1x32xf32>
    %15 = vector.broadcast %14 : vector<1x1x32xf32> to vector<2x8x32xf32>
    %16 = arith.mulf %11, %15 : vector<2x8x32xf32>
    %17 = arith.addf %10, %16 : vector<2x8x32xf32>
    %18 = vector.extract_strided_slice %3 {offsets = [0, 2, 0], sizes = [2, 8, 32], strides = [1, 1, 1]} : vector<2x16x32xf32> to vector<2x8x32xf32>
    %19 = vector.extract_strided_slice %1 {offsets = [0, 2, 0], sizes = [1, 1, 32], strides = [1, 1, 1]} : vector<1x9x32xf32> to vector<1x1x32xf32>
    %20 = vector.shape_cast %19 : vector<1x1x32xf32> to vector<32xf32>
    %21 = vector.shape_cast %20 : vector<32xf32> to vector<1x1x32xf32>
    %22 = vector.broadcast %21 : vector<1x1x32xf32> to vector<2x8x32xf32>
    %23 = arith.mulf %18, %22 : vector<2x8x32xf32>
    %24 = arith.addf %17, %23 : vector<2x8x32xf32>
    %25 = vector.extract_strided_slice %3 {offsets = [0, 3, 0], sizes = [2, 8, 32], strides = [1, 1, 1]} : vector<2x16x32xf32> to vector<2x8x32xf32>
    %26 = vector.extract_strided_slice %1 {offsets = [0, 3, 0], sizes = [1, 1, 32], strides = [1, 1, 1]} : vector<1x9x32xf32> to vector<1x1x32xf32>
    %27 = vector.shape_cast %26 : vector<1x1x32xf32> to vector<32xf32>
    %28 = vector.shape_cast %27 : vector<32xf32> to vector<1x1x32xf32>
    %29 = vector.broadcast %28 : vector<1x1x32xf32> to vector<2x8x32xf32>
    %30 = arith.mulf %25, %29 : vector<2x8x32xf32>
    %31 = arith.addf %24, %30 : vector<2x8x32xf32>
    %32 = vector.extract_strided_slice %3 {offsets = [0, 4, 0], sizes = [2, 8, 32], strides = [1, 1, 1]} : vector<2x16x32xf32> to vector<2x8x32xf32>
    %33 = vector.extract_strided_slice %1 {offsets = [0, 4, 0], sizes = [1, 1, 32], strides = [1, 1, 1]} : vector<1x9x32xf32> to vector<1x1x32xf32>
    %34 = vector.shape_cast %33 : vector<1x1x32xf32> to vector<32xf32>
    %35 = vector.shape_cast %34 : vector<32xf32> to vector<1x1x32xf32>
    %36 = vector.broadcast %35 : vector<1x1x32xf32> to vector<2x8x32xf32>
    %37 = arith.mulf %32, %36 : vector<2x8x32xf32>
    %38 = arith.addf %31, %37 : vector<2x8x32xf32>
    %39 = vector.extract_strided_slice %3 {offsets = [0, 5, 0], sizes = [2, 8, 32], strides = [1, 1, 1]} : vector<2x16x32xf32> to vector<2x8x32xf32>
    %40 = vector.extract_strided_slice %1 {offsets = [0, 5, 0], sizes = [1, 1, 32], strides = [1, 1, 1]} : vector<1x9x32xf32> to vector<1x1x32xf32>
    %41 = vector.shape_cast %40 : vector<1x1x32xf32> to vector<32xf32>
    %42 = vector.shape_cast %41 : vector<32xf32> to vector<1x1x32xf32>
    %43 = vector.broadcast %42 : vector<1x1x32xf32> to vector<2x8x32xf32>
    %44 = arith.mulf %39, %43 : vector<2x8x32xf32>
    %45 = arith.addf %38, %44 : vector<2x8x32xf32>
    %46 = vector.extract_strided_slice %3 {offsets = [0, 6, 0], sizes = [2, 8, 32], strides = [1, 1, 1]} : vector<2x16x32xf32> to vector<2x8x32xf32>
    %47 = vector.extract_strided_slice %1 {offsets = [0, 6, 0], sizes = [1, 1, 32], strides = [1, 1, 1]} : vector<1x9x32xf32> to vector<1x1x32xf32>
    %48 = vector.shape_cast %47 : vector<1x1x32xf32> to vector<32xf32>
    %49 = vector.shape_cast %48 : vector<32xf32> to vector<1x1x32xf32>
    %50 = vector.broadcast %49 : vector<1x1x32xf32> to vector<2x8x32xf32>
    %51 = arith.mulf %46, %50 : vector<2x8x32xf32>
    %52 = arith.addf %45, %51 : vector<2x8x32xf32>
    %53 = vector.extract_strided_slice %3 {offsets = [0, 7, 0], sizes = [2, 8, 32], strides = [1, 1, 1]} : vector<2x16x32xf32> to vector<2x8x32xf32>
    %54 = vector.extract_strided_slice %1 {offsets = [0, 7, 0], sizes = [1, 1, 32], strides = [1, 1, 1]} : vector<1x9x32xf32> to vector<1x1x32xf32>
    %55 = vector.shape_cast %54 : vector<1x1x32xf32> to vector<32xf32>
    %56 = vector.shape_cast %55 : vector<32xf32> to vector<1x1x32xf32>
    %57 = vector.broadcast %56 : vector<1x1x32xf32> to vector<2x8x32xf32>
    %58 = arith.mulf %53, %57 : vector<2x8x32xf32>
    %59 = arith.addf %52, %58 : vector<2x8x32xf32>
    %60 = vector.extract_strided_slice %3 {offsets = [0, 8, 0], sizes = [2, 8, 32], strides = [1, 1, 1]} : vector<2x16x32xf32> to vector<2x8x32xf32>
    %61 = vector.extract_strided_slice %1 {offsets = [0, 8, 0], sizes = [1, 1, 32], strides = [1, 1, 1]} : vector<1x9x32xf32> to vector<1x1x32xf32>
    %62 = vector.shape_cast %61 : vector<1x1x32xf32> to vector<32xf32>
    %63 = vector.shape_cast %62 : vector<32xf32> to vector<1x1x32xf32>
    %64 = vector.broadcast %63 : vector<1x1x32xf32> to vector<2x8x32xf32>
    %65 = arith.mulf %60, %64 : vector<2x8x32xf32>
    %66 = arith.addf %59, %65 : vector<2x8x32xf32>
    %c0_6 = arith.constant 0 : index
    %c0_7 = arith.constant 0 : index
    %67 = vector.load %arg2[%c0_6, %c0_7] : memref<1x32xf32, #tpu.memory_space<vmem>>, vector<1x32xf32>
    %68 = vector.shape_cast %67 : vector<1x32xf32> to vector<1x1x32xf32>
    %69 = vector.broadcast %68 : vector<1x1x32xf32> to vector<2x8x32xf32>
    %70 = arith.addf %66, %69 : vector<2x8x32xf32>
    %c0_8 = arith.constant 0 : index
    %c0_9 = arith.constant 0 : index
    %c0_10 = arith.constant 0 : index
    %71 = vector.load %arg3[%c0_8, %c0_9, %c0_10] : memref<2x8x32xf32, #tpu.memory_space<vmem>>, vector<2x8x32xf32>
    tpu.vector_store %arg3[%c0_8, %c0_9, %c0_10], %70 {strides = array<i32>} : memref<2x8x32xf32, #tpu.memory_space<vmem>>, vector<2x8x32xf32>,
    return
  }
}

module attributes {stable_mosaic.version = 11 : i64} {
  func.func @_dwconv_kernel(%arg0: memref<2x2x8x32xf32, #tpu.memory_space<vmem>>, %arg1: memref<2x5x32xf32, #tpu.memory_space<vmem>>, %arg2: memref<1x32xf32, #tpu.memory_space<vmem>>, %arg3: memref<2x4x32xf32, #tpu.memory_space<vmem>>) attributes {dimension_semantics = [], scalar_prefetch = 0 : i64, scratch_operands = 0 : i64, tpu.core_type = #tpu.core_type<tc>} {
    %c0 = arith.constant 0 : index
    %c0_0 = arith.constant 0 : index
    %c0_1 = arith.constant 0 : index
    %c0_2 = arith.constant 0 : index
    %0 = vector.load %arg0[%c0, %c0_0, %c0_1, %c0_2] : memref<2x2x8x32xf32, #tpu.memory_space<vmem>>, vector<2x2x8x32xf32>
    %c0_3 = arith.constant 0 : index
    %c0_4 = arith.constant 0 : index
    %c0_5 = arith.constant 0 : index
    %1 = vector.load %arg1[%c0_3, %c0_4, %c0_5] : memref<2x5x32xf32, #tpu.memory_space<vmem>>, vector<2x5x32xf32>
    %cst = arith.constant 0.000000e+00 : f32
    %2 = vector.broadcast %cst : f32 to vector<2x4x32xf32>
    %3 = vector.extract_strided_slice %0 {offsets = [0, 0, 0, 0], sizes = [2, 1, 8, 32], strides = [1, 1, 1, 1]} : vector<2x2x8x32xf32> to vector<2x1x8x32xf32>
    %4 = vector.shape_cast %3 : vector<2x1x8x32xf32> to vector<2x8x32xf32>
    %5 = vector.extract_strided_slice %4 {offsets = [0, 0, 0], sizes = [2, 4, 32], strides = [1, 1, 1]} : vector<2x8x32xf32> to vector<2x4x32xf32>
    %6 = vector.extract_strided_slice %1 {offsets = [0, 0, 0], sizes = [1, 1, 32], strides = [1, 1, 1]} : vector<2x5x32xf32> to vector<1x1x32xf32>
    %7 = vector.shape_cast %6 : vector<1x1x32xf32> to vector<32xf32>
    %8 = vector.shape_cast %7 : vector<32xf32> to vector<1x1x32xf32>
    %9 = vector.broadcast %8 : vector<1x1x32xf32> to vector<2x4x32xf32>
    %10 = arith.mulf %5, %9 : vector<2x4x32xf32>
    %11 = arith.addf %2, %10 : vector<2x4x32xf32>
    %12 = vector.extract_strided_slice %4 {offsets = [0, 1, 0], sizes = [2, 4, 32], strides = [1, 1, 1]} : vector<2x8x32xf32> to vector<2x4x32xf32>
    %13 = vector.extract_strided_slice %1 {offsets = [0, 1, 0], sizes = [1, 1, 32], strides = [1, 1, 1]} : vector<2x5x32xf32> to vector<1x1x32xf32>
    %14 = vector.shape_cast %13 : vector<1x1x32xf32> to vector<32xf32>
    %15 = vector.shape_cast %14 : vector<32xf32> to vector<1x1x32xf32>
    %16 = vector.broadcast %15 : vector<1x1x32xf32> to vector<2x4x32xf32>
    %17 = arith.mulf %12, %16 : vector<2x4x32xf32>
    %18 = arith.addf %11, %17 : vector<2x4x32xf32>
    %19 = vector.extract_strided_slice %4 {offsets = [0, 2, 0], sizes = [2, 4, 32], strides = [1, 1, 1]} : vector<2x8x32xf32> to vector<2x4x32xf32>
    %20 = vector.extract_strided_slice %1 {offsets = [0, 2, 0], sizes = [1, 1, 32], strides = [1, 1, 1]} : vector<2x5x32xf32> to vector<1x1x32xf32>
    %21 = vector.shape_cast %20 : vector<1x1x32xf32> to vector<32xf32>
    %22 = vector.shape_cast %21 : vector<32xf32> to vector<1x1x32xf32>
    %23 = vector.broadcast %22 : vector<1x1x32xf32> to vector<2x4x32xf32>
    %24 = arith.mulf %19, %23 : vector<2x4x32xf32>
    %25 = arith.addf %18, %24 : vector<2x4x32xf32>
    %26 = vector.extract_strided_slice %4 {offsets = [0, 3, 0], sizes = [2, 4, 32], strides = [1, 1, 1]} : vector<2x8x32xf32> to vector<2x4x32xf32>
    %27 = vector.extract_strided_slice %1 {offsets = [0, 3, 0], sizes = [1, 1, 32], strides = [1, 1, 1]} : vector<2x5x32xf32> to vector<1x1x32xf32>
    %28 = vector.shape_cast %27 : vector<1x1x32xf32> to vector<32xf32>
    %29 = vector.shape_cast %28 : vector<32xf32> to vector<1x1x32xf32>
    %30 = vector.broadcast %29 : vector<1x1x32xf32> to vector<2x4x32xf32>
    %31 = arith.mulf %26, %30 : vector<2x4x32xf32>
    %32 = arith.addf %25, %31 : vector<2x4x32xf32>
    %33 = vector.extract_strided_slice %4 {offsets = [0, 4, 0], sizes = [2, 4, 32], strides = [1, 1, 1]} : vector<2x8x32xf32> to vector<2x4x32xf32>
    %34 = vector.extract_strided_slice %1 {offsets = [0, 4, 0], sizes = [1, 1, 32], strides = [1, 1, 1]} : vector<2x5x32xf32> to vector<1x1x32xf32>
    %35 = vector.shape_cast %34 : vector<1x1x32xf32> to vector<32xf32>
    %36 = vector.shape_cast %35 : vector<32xf32> to vector<1x1x32xf32>
    %37 = vector.broadcast %36 : vector<1x1x32xf32> to vector<2x4x32xf32>
    %38 = arith.mulf %33, %37 : vector<2x4x32xf32>
    %39 = arith.addf %32, %38 : vector<2x4x32xf32>
    %40 = vector.extract_strided_slice %0 {offsets = [0, 1, 0, 0], sizes = [2, 1, 8, 32], strides = [1, 1, 1, 1]} : vector<2x2x8x32xf32> to vector<2x1x8x32xf32>
    %41 = vector.shape_cast %40 : vector<2x1x8x32xf32> to vector<2x8x32xf32>
    %42 = vector.extract_strided_slice %41 {offsets = [0, 0, 0], sizes = [2, 4, 32], strides = [1, 1, 1]} : vector<2x8x32xf32> to vector<2x4x32xf32>
    %43 = vector.extract_strided_slice %1 {offsets = [1, 0, 0], sizes = [1, 1, 32], strides = [1, 1, 1]} : vector<2x5x32xf32> to vector<1x1x32xf32>
    %44 = vector.shape_cast %43 : vector<1x1x32xf32> to vector<32xf32>
    %45 = vector.shape_cast %44 : vector<32xf32> to vector<1x1x32xf32>
    %46 = vector.broadcast %45 : vector<1x1x32xf32> to vector<2x4x32xf32>
    %47 = arith.mulf %42, %46 : vector<2x4x32xf32>
    %48 = arith.addf %39, %47 : vector<2x4x32xf32>
    %49 = vector.extract_strided_slice %41 {offsets = [0, 1, 0], sizes = [2, 4, 32], strides = [1, 1, 1]} : vector<2x8x32xf32> to vector<2x4x32xf32>
    %50 = vector.extract_strided_slice %1 {offsets = [1, 1, 0], sizes = [1, 1, 32], strides = [1, 1, 1]} : vector<2x5x32xf32> to vector<1x1x32xf32>
    %51 = vector.shape_cast %50 : vector<1x1x32xf32> to vector<32xf32>
    %52 = vector.shape_cast %51 : vector<32xf32> to vector<1x1x32xf32>
    %53 = vector.broadcast %52 : vector<1x1x32xf32> to vector<2x4x32xf32>
    %54 = arith.mulf %49, %53 : vector<2x4x32xf32>
    %55 = arith.addf %48, %54 : vector<2x4x32xf32>
    %56 = vector.extract_strided_slice %41 {offsets = [0, 2, 0], sizes = [2, 4, 32], strides = [1, 1, 1]} : vector<2x8x32xf32> to vector<2x4x32xf32>
    %57 = vector.extract_strided_slice %1 {offsets = [1, 2, 0], sizes = [1, 1, 32], strides = [1, 1, 1]} : vector<2x5x32xf32> to vector<1x1x32xf32>
    %58 = vector.shape_cast %57 : vector<1x1x32xf32> to vector<32xf32>
    %59 = vector.shape_cast %58 : vector<32xf32> to vector<1x1x32xf32>
    %60 = vector.broadcast %59 : vector<1x1x32xf32> to vector<2x4x32xf32>
    %61 = arith.mulf %56, %60 : vector<2x4x32xf32>
    %62 = arith.addf %55, %61 : vector<2x4x32xf32>
    %63 = vector.extract_strided_slice %41 {offsets = [0, 3, 0], sizes = [2, 4, 32], strides = [1, 1, 1]} : vector<2x8x32xf32> to vector<2x4x32xf32>
    %64 = vector.extract_strided_slice %1 {offsets = [1, 3, 0], sizes = [1, 1, 32], strides = [1, 1, 1]} : vector<2x5x32xf32> to vector<1x1x32xf32>
    %65 = vector.shape_cast %64 : vector<1x1x32xf32> to vector<32xf32>
    %66 = vector.shape_cast %65 : vector<32xf32> to vector<1x1x32xf32>
    %67 = vector.broadcast %66 : vector<1x1x32xf32> to vector<2x4x32xf32>
    %68 = arith.mulf %63, %67 : vector<2x4x32xf32>
    %69 = arith.addf %62, %68 : vector<2x4x32xf32>
    %70 = vector.extract_strided_slice %41 {offsets = [0, 4, 0], sizes = [2, 4, 32], strides = [1, 1, 1]} : vector<2x8x32xf32> to vector<2x4x32xf32>
    %71 = vector.extract_strided_slice %1 {offsets = [1, 4, 0], sizes = [1, 1, 32], strides = [1, 1, 1]} : vector<2x5x32xf32> to vector<1x1x32xf32>
    %72 = vector.shape_cast %71 : vector<1x1x32xf32> to vector<32xf32>
    %73 = vector.shape_cast %72 : vector<32xf32> to vector<1x1x32xf32>
    %74 = vector.broadcast %73 : vector<1x1x32xf32> to vector<2x4x32xf32>
    %75 = arith.mulf %70, %74 : vector<2x4x32xf32>
    %76 = arith.addf %69, %75 : vector<2x4x32xf32>
    %c0_6 = arith.constant 0 : index
    %c0_7 = arith.constant 0 : index
    %77 = vector.load %arg2[%c0_6, %c0_7] : memref<1x32xf32, #tpu.memory_space<vmem>>, vector<1x32xf32>
    %78 = vector.shape_cast %77 : vector<1x32xf32> to vector<1x1x32xf32>
    %79 = vector.broadcast %78 : vector<1x1x32xf32> to vector<2x4x32xf32>
    %80 = arith.addf %76, %79 : vector<2x4x32xf32>
    %c0_8 = arith.constant 0 : index
    %c0_9 = arith.constant 0 : index
    %c0_10 = arith.constant 0 : index
    %81 = vector.load %arg3[%c0_8, %c0_9, %c0_10] : memref<2x4x32xf32, #tpu.memory_space<vmem>>, vector<2x4x32xf32>
    tpu.vector_store %arg3[%c0_8, %c0_9, %c0_10], %80 {strides = array<i32>} : memref<2x4x32xf32, #tpu.memory_space<vmem>>, vector<2x4x32xf32>,
    return
  }
}

module attributes {stable_mosaic.version = 11 : i64} {
  func.func @_layernorm_kernel(%arg0: i32, %arg1: memref<8x32xf32, #tpu.memory_space<vmem>>, %arg2: memref<1x32xf32, #tpu.memory_space<vmem>>, %arg3: memref<1x32xf32, #tpu.memory_space<vmem>>, %arg4: memref<8x32xf32, #tpu.memory_space<vmem>>) attributes {dimension_semantics = [#tpu.dimension_semantics<parallel>], iteration_bounds = array<i64: 1>, scalar_prefetch = 0 : i64, scratch_operands = 0 : i64, tpu.core_type = #tpu.core_type<tc>, window_params = [{transform_indices = @transform_0, window_bounds = array<i64: 8, 32>}, {pipeline_mode = #tpu.pipeline_mode<synchronous>, transform_indices = @transform_1, window_bounds = array<i64: 1, 32>}, {pipeline_mode = #tpu.pipeline_mode<synchronous>, transform_indices = @transform_2, window_bounds = array<i64: 1, 32>}, {transform_indices = @transform_3, window_bounds = array<i64: 8, 32>}]} {
    %c0 = arith.constant 0 : index
    %c0_0 = arith.constant 0 : index
    %0 = vector.load %arg1[%c0, %c0_0] : memref<8x32xf32, #tpu.memory_space<vmem>>, vector<8x32xf32>
    %cst = arith.constant dense<0.000000e+00> : vector<8xf32>
    %1 = vector.multi_reduction <add>, %0, %cst [1] : vector<8x32xf32> to vector<8xf32>
    %2 = vector.shape_cast %1 : vector<8xf32> to vector<8x1xf32>
    %cst_1 = arith.constant 3.200000e+01 : f32
    %3 = vector.broadcast %cst_1 : f32 to vector<8x1xf32>
    %4 = arith.divf %2, %3 : vector<8x1xf32>
    %5 = vector.broadcast %4 : vector<8x1xf32> to vector<8x32xf32>
    %6 = arith.subf %0, %5 : vector<8x32xf32>
    %7 = arith.mulf %6, %6 : vector<8x32xf32>
    %cst_2 = arith.constant dense<0.000000e+00> : vector<8xf32>
    %8 = vector.multi_reduction <add>, %7, %cst_2 [1] : vector<8x32xf32> to vector<8xf32>
    %9 = vector.shape_cast %8 : vector<8xf32> to vector<8x1xf32>
    %cst_3 = arith.constant 3.200000e+01 : f32
    %10 = vector.broadcast %cst_3 : f32 to vector<8x1xf32>
    %11 = arith.divf %9, %10 : vector<8x1xf32>
    %cst_4 = arith.constant 9.99999974E-6 : f32
    %12 = vector.broadcast %cst_4 : f32 to vector<8x1xf32>
    %13 = arith.addf %11, %12 : vector<8x1xf32>
    %14 = math.rsqrt %13 : vector<8x1xf32>
    %15 = vector.broadcast %14 : vector<8x1xf32> to vector<8x32xf32>
    %16 = arith.mulf %6, %15 : vector<8x32xf32>
    %c0_5 = arith.constant 0 : index
    %c0_6 = arith.constant 0 : index
    %17 = vector.load %arg2[%c0_5, %c0_6] : memref<1x32xf32, #tpu.memory_space<vmem>>, vector<1x32xf32>
    %18 = vector.broadcast %17 : vector<1x32xf32> to vector<8x32xf32>
    %19 = arith.mulf %16, %18 : vector<8x32xf32>
    %c0_7 = arith.constant 0 : index
    %c0_8 = arith.constant 0 : index
    %20 = vector.load %arg3[%c0_7, %c0_8] : memref<1x32xf32, #tpu.memory_space<vmem>>, vector<1x32xf32>
    %21 = vector.broadcast %20 : vector<1x32xf32> to vector<8x32xf32>
    %22 = arith.addf %19, %21 : vector<8x32xf32>
    %23 = arith.negf %22 : vector<8x32xf32>
    %24 = math.exp %23 : vector<8x32xf32>
    %cst_9 = arith.constant 1.000000e+00 : f32
    %25 = vector.broadcast %cst_9 : f32 to vector<8x32xf32>
    %26 = arith.addf %25, %24 : vector<8x32xf32>
    %27 = arith.divf %25, %26 : vector<8x32xf32>
    %28 = arith.mulf %22, %27 : vector<8x32xf32>
    %c0_10 = arith.constant 0 : index
    %c0_11 = arith.constant 0 : index
    %29 = vector.load %arg4[%c0_10, %c0_11] : memref<8x32xf32, #tpu.memory_space<vmem>>, vector<8x32xf32>
    tpu.vector_store %arg4[%c0_10, %c0_11], %28 {strides = array<i32>} : memref<8x32xf32, #tpu.memory_space<vmem>>, vector<8x32xf32>,
    return
  }
  func.func @transform_0(%arg0: i32) -> (i32, i32) {
    %c0_i32 = arith.constant 0 : i32
    %c0_i32_0 = arith.constant 0 : i32
    return %arg0, %c0_i32 : i32, i32
  }
  func.func @transform_1(%arg0: i32) -> (i32, i32) {
    %c0_i32 = arith.constant 0 : i32
    %c0_i32_0 = arith.constant 0 : i32
    %c0_i32_1 = arith.constant 0 : i32
    return %c0_i32, %c0_i32_0 : i32, i32
  }
  func.func @transform_2(%arg0: i32) -> (i32, i32) {
    %c0_i32 = arith.constant 0 : i32
    %c0_i32_0 = arith.constant 0 : i32
    %c0_i32_1 = arith.constant 0 : i32
    return %c0_i32, %c0_i32_0 : i32, i32
  }
  func.func @transform_3(%arg0: i32) -> (i32, i32) {
    %c0_i32 = arith.constant 0 : i32
    %c0_i32_0 = arith.constant 0 : i32
    return %arg0, %c0_i32 : i32, i32
  }
}

module attributes {stable_mosaic.version = 11 : i64} {
  func.func @_avgpool_kernel(%arg0: memref<2x4x2x32xf32, #tpu.memory_space<vmem>>, %arg1: memref<1x4x1xf32, #tpu.memory_space<vmem>>, %arg2: memref<2x4x32xf32, #tpu.memory_space<vmem>>) attributes {dimension_semantics = [], scalar_prefetch = 0 : i64, scratch_operands = 0 : i64, tpu.core_type = #tpu.core_type<tc>} {
    %c0 = arith.constant 0 : index
    %c0_0 = arith.constant 0 : index
    %c0_1 = arith.constant 0 : index
    %c0_2 = arith.constant 0 : index
    %0 = vector.load %arg0[%c0, %c0_0, %c0_1, %c0_2] : memref<2x4x2x32xf32, #tpu.memory_space<vmem>>, vector<2x4x2x32xf32>
    %cst = arith.constant dense<0.000000e+00> : vector<2x4x32xf32>
    %1 = vector.multi_reduction <add>, %0, %cst [2] : vector<2x4x2x32xf32> to vector<2x4x32xf32>
    %c0_3 = arith.constant 0 : index
    %c0_4 = arith.constant 0 : index
    %c0_5 = arith.constant 0 : index
    %2 = vector.load %arg1[%c0_3, %c0_4, %c0_5] : memref<1x4x1xf32, #tpu.memory_space<vmem>>, vector<1x4x1xf32>
    %3 = vector.broadcast %2 : vector<1x4x1xf32> to vector<2x4x32xf32>
    %4 = arith.mulf %1, %3 : vector<2x4x32xf32>
    %c0_6 = arith.constant 0 : index
    %c0_7 = arith.constant 0 : index
    %c0_8 = arith.constant 0 : index
    %5 = vector.load %arg2[%c0_6, %c0_7, %c0_8] : memref<2x4x32xf32, #tpu.memory_space<vmem>>, vector<2x4x32xf32>
    tpu.vector_store %arg2[%c0_6, %c0_7, %c0_8], %4 {strides = array<i32>} : memref<2x4x32xf32, #tpu.memory_space<vmem>>, vector<2x4x32xf32>,
    return
  }
}

module attributes {stable_mosaic.version = 11 : i64} {
  func.func @_linear_kernel(%arg0: i32, %arg1: i32, %arg2: i32, %arg3: memref<8x128xf32, #tpu.memory_space<vmem>>, %arg4: memref<128x128xf32, #tpu.memory_space<vmem>>, %arg5: memref<1x128xf32, #tpu.memory_space<vmem>>, %arg6: memref<8x128xf32, #tpu.memory_space<vmem>>, %arg7: memref<8x128xf32, #tpu.memory_space<vmem>>, %arg8: memref<8x128xf32, #tpu.memory_space<vmem>>) attributes {dimension_semantics = [#tpu.dimension_semantics<parallel>, #tpu.dimension_semantics<parallel>, #tpu.dimension_semantics<arbitrary>], iteration_bounds = array<i64: 1, 1, 1>, scalar_prefetch = 0 : i64, scratch_operands = 1 : i64, tpu.core_type = #tpu.core_type<tc>, window_params = [{transform_indices = @transform_0, window_bounds = array<i64: 8, 128>}, {transform_indices = @transform_1, window_bounds = array<i64: 128, 128>}, {transform_indices = @transform_2, window_bounds = array<i64: 1, 128>}, {transform_indices = @transform_3, window_bounds = array<i64: 8, 128>}, {transform_indices = @transform_4, window_bounds = array<i64: 8, 128>}]} {
    %c0_i32 = arith.constant 0 : i32
    %0 = arith.cmpi eq, %arg2, %c0_i32 : i32
    %1 = arith.extui %0 : i1 to i32
    %c0_i32_0 = arith.constant 0 : i32
    %2 = arith.cmpi ne, %1, %c0_i32_0 : i32
    scf.if %2 {
      %cst_10 = arith.constant 0.000000e+00 : f32
      %14 = vector.broadcast %cst_10 : f32 to vector<8x128xf32>
      %c0_11 = arith.constant 0 : index
      %c0_12 = arith.constant 0 : index
      %15 = vector.load %arg8[%c0_11, %c0_12] : memref<8x128xf32, #tpu.memory_space<vmem>>, vector<8x128xf32>
      tpu.vector_store %arg8[%c0_11, %c0_12], %14 {strides = array<i32>} : memref<8x128xf32, #tpu.memory_space<vmem>>, vector<8x128xf32>,
    } else {
    }
    %c0 = arith.constant 0 : index
    %c0_1 = arith.constant 0 : index
    %3 = vector.load %arg8[%c0, %c0_1] : memref<8x128xf32, #tpu.memory_space<vmem>>, vector<8x128xf32>
    %c0_2 = arith.constant 0 : index
    %c0_3 = arith.constant 0 : index
    %4 = vector.load %arg3[%c0_2, %c0_3] : memref<8x128xf32, #tpu.memory_space<vmem>>, vector<8x128xf32>
    %5 = arith.truncf %4 : vector<8x128xf32> to vector<8x128xbf16>
    %c0_4 = arith.constant 0 : index
    %c0_5 = arith.constant 0 : index
    %6 = vector.load %arg4[%c0_4, %c0_5] : memref<128x128xf32, #tpu.memory_space<vmem>>, vector<128x128xf32>
    %7 = arith.truncf %6 : vector<128x128xf32> to vector<128x128xbf16>
    %cst = arith.constant dense<0.000000e+00> : vector<8x128xf32>
    %8 = tpu.matmul %5, %7, %cst {dimension_numbers = #tpu.dot_dimension_numbers<[1], [0], [0], [1], [0, 0, 1, 1], [], []>} : vector<8x128xbf16>, vector<128x128xbf16>, vector<8x128xf32> -> vector<8x128xf32>
    %9 = arith.addf %3, %8 : vector<8x128xf32>
    %c0_6 = arith.constant 0 : index
    %c0_7 = arith.constant 0 : index
    %10 = vector.load %arg8[%c0_6, %c0_7] : memref<8x128xf32, #tpu.memory_space<vmem>>, vector<8x128xf32>
    tpu.vector_store %arg8[%c0_6, %c0_7], %9 {strides = array<i32>} : memref<8x128xf32, #tpu.memory_space<vmem>>, vector<8x128xf32>,
    %c0_i32_8 = arith.constant 0 : i32
    %11 = arith.cmpi eq, %arg2, %c0_i32_8 : i32
    %12 = arith.extui %11 : i1 to i32
    %c0_i32_9 = arith.constant 0 : i32
    %13 = arith.cmpi ne, %12, %c0_i32_9 : i32
    scf.if %13 {
      %c0_10 = arith.constant 0 : index
      %c0_11 = arith.constant 0 : index
      %14 = vector.load %arg8[%c0_10, %c0_11] : memref<8x128xf32, #tpu.memory_space<vmem>>, vector<8x128xf32>
      %c0_12 = arith.constant 0 : index
      %c0_13 = arith.constant 0 : index
      %15 = vector.load %arg5[%c0_12, %c0_13] : memref<1x128xf32, #tpu.memory_space<vmem>>, vector<1x128xf32>
      %16 = vector.broadcast %15 : vector<1x128xf32> to vector<8x128xf32>
      %17 = arith.addf %14, %16 : vector<8x128xf32>
      %c0_14 = arith.constant 0 : index
      %c0_15 = arith.constant 0 : index
      %18 = vector.load %arg6[%c0_14, %c0_15] : memref<8x128xf32, #tpu.memory_space<vmem>>, vector<8x128xf32>
      %19 = arith.addf %17, %18 : vector<8x128xf32>
      %c0_16 = arith.constant 0 : index
      %c0_17 = arith.constant 0 : index
      %20 = vector.load %arg7[%c0_16, %c0_17] : memref<8x128xf32, #tpu.memory_space<vmem>>, vector<8x128xf32>
      tpu.vector_store %arg7[%c0_16, %c0_17], %19 {strides = array<i32>} : memref<8x128xf32, #tpu.memory_space<vmem>>, vector<8x128xf32>,
    } else {
    }
    return
  }
  func.func @transform_0(%arg0: i32, %arg1: i32, %arg2: i32) -> (i32, i32) {
    %c0_i32 = arith.constant 0 : i32
    return %arg0, %arg2 : i32, i32
  }
  func.func @transform_1(%arg0: i32, %arg1: i32, %arg2: i32) -> (i32, i32) {
    %c0_i32 = arith.constant 0 : i32
    return %arg2, %arg1 : i32, i32
  }
  func.func @transform_2(%arg0: i32, %arg1: i32, %arg2: i32) -> (i32, i32) {
    %c0_i32 = arith.constant 0 : i32
    %c0_i32_0 = arith.constant 0 : i32
    return %c0_i32, %arg1 : i32, i32
  }
  func.func @transform_3(%arg0: i32, %arg1: i32, %arg2: i32) -> (i32, i32) {
    %c0_i32 = arith.constant 0 : i32
    return %arg0, %arg1 : i32, i32
  }
  func.func @transform_4(%arg0: i32, %arg1: i32, %arg2: i32) -> (i32, i32) {
    %c0_i32 = arith.constant 0 : i32
    return %arg0, %arg1 : i32, i32
  }
}

module attributes {stable_mosaic.version = 11 : i64} {
  func.func @_linear_kernel(%arg0: i32, %arg1: i32, %arg2: i32, %arg3: memref<8x128xf32, #tpu.memory_space<vmem>>, %arg4: memref<128x128xf32, #tpu.memory_space<vmem>>, %arg5: memref<1x128xf32, #tpu.memory_space<vmem>>, %arg6: memref<8x128xf32, #tpu.memory_space<vmem>>, %arg7: memref<8x128xf32, #tpu.memory_space<vmem>>) attributes {dimension_semantics = [#tpu.dimension_semantics<parallel>, #tpu.dimension_semantics<parallel>, #tpu.dimension_semantics<arbitrary>], iteration_bounds = array<i64: 1, 1, 1>, scalar_prefetch = 0 : i64, scratch_operands = 1 : i64, tpu.core_type = #tpu.core_type<tc>, window_params = [{transform_indices = @transform_0, window_bounds = array<i64: 8, 128>}, {transform_indices = @transform_1, window_bounds = array<i64: 128, 128>}, {transform_indices = @transform_2, window_bounds = array<i64: 1, 128>}, {transform_indices = @transform_3, window_bounds = array<i64: 8, 128>}]} {
    %c0_i32 = arith.constant 0 : i32
    %0 = arith.cmpi eq, %arg2, %c0_i32 : i32
    %1 = arith.extui %0 : i1 to i32
    %c0_i32_0 = arith.constant 0 : i32
    %2 = arith.cmpi ne, %1, %c0_i32_0 : i32
    scf.if %2 {
      %cst_10 = arith.constant 0.000000e+00 : f32
      %14 = vector.broadcast %cst_10 : f32 to vector<8x128xf32>
      %c0_11 = arith.constant 0 : index
      %c0_12 = arith.constant 0 : index
      %15 = vector.load %arg7[%c0_11, %c0_12] : memref<8x128xf32, #tpu.memory_space<vmem>>, vector<8x128xf32>
      tpu.vector_store %arg7[%c0_11, %c0_12], %14 {strides = array<i32>} : memref<8x128xf32, #tpu.memory_space<vmem>>, vector<8x128xf32>,
    } else {
    }
    %c0 = arith.constant 0 : index
    %c0_1 = arith.constant 0 : index
    %3 = vector.load %arg7[%c0, %c0_1] : memref<8x128xf32, #tpu.memory_space<vmem>>, vector<8x128xf32>
    %c0_2 = arith.constant 0 : index
    %c0_3 = arith.constant 0 : index
    %4 = vector.load %arg3[%c0_2, %c0_3] : memref<8x128xf32, #tpu.memory_space<vmem>>, vector<8x128xf32>
    %5 = arith.truncf %4 : vector<8x128xf32> to vector<8x128xbf16>
    %c0_4 = arith.constant 0 : index
    %c0_5 = arith.constant 0 : index
    %6 = vector.load %arg4[%c0_4, %c0_5] : memref<128x128xf32, #tpu.memory_space<vmem>>, vector<128x128xf32>
    %7 = arith.truncf %6 : vector<128x128xf32> to vector<128x128xbf16>
    %cst = arith.constant dense<0.000000e+00> : vector<8x128xf32>
    %8 = tpu.matmul %5, %7, %cst {dimension_numbers = #tpu.dot_dimension_numbers<[1], [0], [0], [1], [0, 0, 1, 1], [], []>} : vector<8x128xbf16>, vector<128x128xbf16>, vector<8x128xf32> -> vector<8x128xf32>
    %9 = arith.addf %3, %8 : vector<8x128xf32>
    %c0_6 = arith.constant 0 : index
    %c0_7 = arith.constant 0 : index
    %10 = vector.load %arg7[%c0_6, %c0_7] : memref<8x128xf32, #tpu.memory_space<vmem>>, vector<8x128xf32>
    tpu.vector_store %arg7[%c0_6, %c0_7], %9 {strides = array<i32>} : memref<8x128xf32, #tpu.memory_space<vmem>>, vector<8x128xf32>,
    %c0_i32_8 = arith.constant 0 : i32
    %11 = arith.cmpi eq, %arg2, %c0_i32_8 : i32
    %12 = arith.extui %11 : i1 to i32
    %c0_i32_9 = arith.constant 0 : i32
    %13 = arith.cmpi ne, %12, %c0_i32_9 : i32
    scf.if %13 {
      %c0_10 = arith.constant 0 : index
      %c0_11 = arith.constant 0 : index
      %14 = vector.load %arg7[%c0_10, %c0_11] : memref<8x128xf32, #tpu.memory_space<vmem>>, vector<8x128xf32>
      %c0_12 = arith.constant 0 : index
      %c0_13 = arith.constant 0 : index
      %15 = vector.load %arg5[%c0_12, %c0_13] : memref<1x128xf32, #tpu.memory_space<vmem>>, vector<1x128xf32>
      %16 = vector.broadcast %15 : vector<1x128xf32> to vector<8x128xf32>
      %17 = arith.addf %14, %16 : vector<8x128xf32>
      %cst_14 = arith.constant 0.000000e+00 : f32
      %18 = vector.broadcast %cst_14 : f32 to vector<8x128xf32>
      %19 = arith.maximumf %17, %18 : vector<8x128xf32>
      %c0_15 = arith.constant 0 : index
      %c0_16 = arith.constant 0 : index
      %20 = vector.load %arg6[%c0_15, %c0_16] : memref<8x128xf32, #tpu.memory_space<vmem>>, vector<8x128xf32>
      tpu.vector_store %arg6[%c0_15, %c0_16], %19 {strides = array<i32>} : memref<8x128xf32, #tpu.memory_space<vmem>>, vector<8x128xf32>,
    } else {
    }
    return
  }
  func.func @transform_0(%arg0: i32, %arg1: i32, %arg2: i32) -> (i32, i32) {
    %c0_i32 = arith.constant 0 : i32
    return %arg0, %arg2 : i32, i32
  }
  func.func @transform_1(%arg0: i32, %arg1: i32, %arg2: i32) -> (i32, i32) {
    %c0_i32 = arith.constant 0 : i32
    return %arg2, %arg1 : i32, i32
  }
  func.func @transform_2(%arg0: i32, %arg1: i32, %arg2: i32) -> (i32, i32) {
    %c0_i32 = arith.constant 0 : i32
    %c0_i32_0 = arith.constant 0 : i32
    return %c0_i32, %arg1 : i32, i32
  }
  func.func @transform_3(%arg0: i32, %arg1: i32, %arg2: i32) -> (i32, i32) {
    %c0_i32 = arith.constant 0 : i32
    return %arg0, %arg1 : i32, i32
  }
}

module attributes {stable_mosaic.version = 11 : i64} {
  func.func @_linear_kernel(%arg0: i32, %arg1: i32, %arg2: i32, %arg3: memref<8x128xf32, #tpu.memory_space<vmem>>, %arg4: memref<128x128xf32, #tpu.memory_space<vmem>>, %arg5: memref<1x128xf32, #tpu.memory_space<vmem>>, %arg6: memref<8x128xf32, #tpu.memory_space<vmem>>, %arg7: memref<8x128xf32, #tpu.memory_space<vmem>>, %arg8: memref<8x128xf32, #tpu.memory_space<vmem>>) attributes {dimension_semantics = [#tpu.dimension_semantics<parallel>, #tpu.dimension_semantics<parallel>, #tpu.dimension_semantics<arbitrary>], iteration_bounds = array<i64: 1, 1, 1>, scalar_prefetch = 0 : i64, scratch_operands = 1 : i64, tpu.core_type = #tpu.core_type<tc>, window_params = [{transform_indices = @transform_0, window_bounds = array<i64: 8, 128>}, {transform_indices = @transform_1, window_bounds = array<i64: 128, 128>}, {transform_indices = @transform_2, window_bounds = array<i64: 1, 128>}, {transform_indices = @transform_3, window_bounds = array<i64: 8, 128>}, {transform_indices = @transform_4, window_bounds = array<i64: 8, 128>}]} {
    %c0_i32 = arith.constant 0 : i32
    %0 = arith.cmpi eq, %arg2, %c0_i32 : i32
    %1 = arith.extui %0 : i1 to i32
    %c0_i32_0 = arith.constant 0 : i32
    %2 = arith.cmpi ne, %1, %c0_i32_0 : i32
    scf.if %2 {
      %cst_10 = arith.constant 0.000000e+00 : f32
      %14 = vector.broadcast %cst_10 : f32 to vector<8x128xf32>
      %c0_11 = arith.constant 0 : index
      %c0_12 = arith.constant 0 : index
      %15 = vector.load %arg8[%c0_11, %c0_12] : memref<8x128xf32, #tpu.memory_space<vmem>>, vector<8x128xf32>
      tpu.vector_store %arg8[%c0_11, %c0_12], %14 {strides = array<i32>} : memref<8x128xf32, #tpu.memory_space<vmem>>, vector<8x128xf32>,
    } else {
    }
    %c0 = arith.constant 0 : index
    %c0_1 = arith.constant 0 : index
    %3 = vector.load %arg8[%c0, %c0_1] : memref<8x128xf32, #tpu.memory_space<vmem>>, vector<8x128xf32>
    %c0_2 = arith.constant 0 : index
    %c0_3 = arith.constant 0 : index
    %4 = vector.load %arg3[%c0_2, %c0_3] : memref<8x128xf32, #tpu.memory_space<vmem>>, vector<8x128xf32>
    %5 = arith.truncf %4 : vector<8x128xf32> to vector<8x128xbf16>
    %c0_4 = arith.constant 0 : index
    %c0_5 = arith.constant 0 : index
    %6 = vector.load %arg4[%c0_4, %c0_5] : memref<128x128xf32, #tpu.memory_space<vmem>>, vector<128x128xf32>
    %7 = arith.truncf %6 : vector<128x128xf32> to vector<128x128xbf16>
    %cst = arith.constant dense<0.000000e+00> : vector<8x128xf32>
    %8 = tpu.matmul %5, %7, %cst {dimension_numbers = #tpu.dot_dimension_numbers<[1], [0], [0], [1], [0, 0, 1, 1], [], []>} : vector<8x128xbf16>, vector<128x128xbf16>, vector<8x128xf32> -> vector<8x128xf32>
    %9 = arith.addf %3, %8 : vector<8x128xf32>
    %c0_6 = arith.constant 0 : index
    %c0_7 = arith.constant 0 : index
    %10 = vector.load %arg8[%c0_6, %c0_7] : memref<8x128xf32, #tpu.memory_space<vmem>>, vector<8x128xf32>
    tpu.vector_store %arg8[%c0_6, %c0_7], %9 {strides = array<i32>} : memref<8x128xf32, #tpu.memory_space<vmem>>, vector<8x128xf32>,
    %c0_i32_8 = arith.constant 0 : i32
    %11 = arith.cmpi eq, %arg2, %c0_i32_8 : i32
    %12 = arith.extui %11 : i1 to i32
    %c0_i32_9 = arith.constant 0 : i32
    %13 = arith.cmpi ne, %12, %c0_i32_9 : i32
    scf.if %13 {
      %c0_10 = arith.constant 0 : index
      %c0_11 = arith.constant 0 : index
      %14 = vector.load %arg8[%c0_10, %c0_11] : memref<8x128xf32, #tpu.memory_space<vmem>>, vector<8x128xf32>
      %c0_12 = arith.constant 0 : index
      %c0_13 = arith.constant 0 : index
      %15 = vector.load %arg5[%c0_12, %c0_13] : memref<1x128xf32, #tpu.memory_space<vmem>>, vector<1x128xf32>
      %16 = vector.broadcast %15 : vector<1x128xf32> to vector<8x128xf32>
      %17 = arith.addf %14, %16 : vector<8x128xf32>
      %cst_14 = arith.constant 5.000000e-01 : f32
      %18 = vector.broadcast %cst_14 : f32 to vector<8x128xf32>
      %19 = arith.mulf %17, %18 : vector<8x128xf32>
      %c0_15 = arith.constant 0 : index
      %c0_16 = arith.constant 0 : index
      %20 = vector.load %arg6[%c0_15, %c0_16] : memref<8x128xf32, #tpu.memory_space<vmem>>, vector<8x128xf32>
      %21 = arith.addf %19, %20 : vector<8x128xf32>
      %c0_17 = arith.constant 0 : index
      %c0_18 = arith.constant 0 : index
      %22 = vector.load %arg7[%c0_17, %c0_18] : memref<8x128xf32, #tpu.memory_space<vmem>>, vector<8x128xf32>
      tpu.vector_store %arg7[%c0_17, %c0_18], %21 {strides = array<i32>} : memref<8x128xf32, #tpu.memory_space<vmem>>, vector<8x128xf32>,
    } else {
    }
    return
  }
  func.func @transform_0(%arg0: i32, %arg1: i32, %arg2: i32) -> (i32, i32) {
    %c0_i32 = arith.constant 0 : i32
    return %arg0, %arg2 : i32, i32
  }
  func.func @transform_1(%arg0: i32, %arg1: i32, %arg2: i32) -> (i32, i32) {
    %c0_i32 = arith.constant 0 : i32
    return %arg2, %arg1 : i32, i32
  }
  func.func @transform_2(%arg0: i32, %arg1: i32, %arg2: i32) -> (i32, i32) {
    %c0_i32 = arith.constant 0 : i32
    %c0_i32_0 = arith.constant 0 : i32
    return %c0_i32, %arg1 : i32, i32
  }
  func.func @transform_3(%arg0: i32, %arg1: i32, %arg2: i32) -> (i32, i32) {
    %c0_i32 = arith.constant 0 : i32
    return %arg0, %arg1 : i32, i32
  }
  func.func @transform_4(%arg0: i32, %arg1: i32, %arg2: i32) -> (i32, i32) {
    %c0_i32 = arith.constant 0 : i32
    return %arg0, %arg1 : i32, i32
  }
}

module attributes {stable_mosaic.version = 11 : i64} {
  func.func @_layernorm_kernel(%arg0: i32, %arg1: memref<8x32xf32, #tpu.memory_space<vmem>>, %arg2: memref<1x32xf32, #tpu.memory_space<vmem>>, %arg3: memref<1x32xf32, #tpu.memory_space<vmem>>, %arg4: memref<8x32xf32, #tpu.memory_space<vmem>>) attributes {dimension_semantics = [#tpu.dimension_semantics<parallel>], iteration_bounds = array<i64: 1>, scalar_prefetch = 0 : i64, scratch_operands = 0 : i64, tpu.core_type = #tpu.core_type<tc>, window_params = [{transform_indices = @transform_0, window_bounds = array<i64: 8, 32>}, {pipeline_mode = #tpu.pipeline_mode<synchronous>, transform_indices = @transform_1, window_bounds = array<i64: 1, 32>}, {pipeline_mode = #tpu.pipeline_mode<synchronous>, transform_indices = @transform_2, window_bounds = array<i64: 1, 32>}, {transform_indices = @transform_3, window_bounds = array<i64: 8, 32>}]} {
    %c0 = arith.constant 0 : index
    %c0_0 = arith.constant 0 : index
    %0 = vector.load %arg1[%c0, %c0_0] : memref<8x32xf32, #tpu.memory_space<vmem>>, vector<8x32xf32>
    %cst = arith.constant dense<0.000000e+00> : vector<8xf32>
    %1 = vector.multi_reduction <add>, %0, %cst [1] : vector<8x32xf32> to vector<8xf32>
    %2 = vector.shape_cast %1 : vector<8xf32> to vector<8x1xf32>
    %cst_1 = arith.constant 3.200000e+01 : f32
    %3 = vector.broadcast %cst_1 : f32 to vector<8x1xf32>
    %4 = arith.divf %2, %3 : vector<8x1xf32>
    %5 = vector.broadcast %4 : vector<8x1xf32> to vector<8x32xf32>
    %6 = arith.subf %0, %5 : vector<8x32xf32>
    %7 = arith.mulf %6, %6 : vector<8x32xf32>
    %cst_2 = arith.constant dense<0.000000e+00> : vector<8xf32>
    %8 = vector.multi_reduction <add>, %7, %cst_2 [1] : vector<8x32xf32> to vector<8xf32>
    %9 = vector.shape_cast %8 : vector<8xf32> to vector<8x1xf32>
    %cst_3 = arith.constant 3.200000e+01 : f32
    %10 = vector.broadcast %cst_3 : f32 to vector<8x1xf32>
    %11 = arith.divf %9, %10 : vector<8x1xf32>
    %cst_4 = arith.constant 9.99999974E-6 : f32
    %12 = vector.broadcast %cst_4 : f32 to vector<8x1xf32>
    %13 = arith.addf %11, %12 : vector<8x1xf32>
    %14 = math.rsqrt %13 : vector<8x1xf32>
    %15 = vector.broadcast %14 : vector<8x1xf32> to vector<8x32xf32>
    %16 = arith.mulf %6, %15 : vector<8x32xf32>
    %c0_5 = arith.constant 0 : index
    %c0_6 = arith.constant 0 : index
    %17 = vector.load %arg2[%c0_5, %c0_6] : memref<1x32xf32, #tpu.memory_space<vmem>>, vector<1x32xf32>
    %18 = vector.broadcast %17 : vector<1x32xf32> to vector<8x32xf32>
    %19 = arith.mulf %16, %18 : vector<8x32xf32>
    %c0_7 = arith.constant 0 : index
    %c0_8 = arith.constant 0 : index
    %20 = vector.load %arg3[%c0_7, %c0_8] : memref<1x32xf32, #tpu.memory_space<vmem>>, vector<1x32xf32>
    %21 = vector.broadcast %20 : vector<1x32xf32> to vector<8x32xf32>
    %22 = arith.addf %19, %21 : vector<8x32xf32>
    %c0_9 = arith.constant 0 : index
    %c0_10 = arith.constant 0 : index
    %23 = vector.load %arg4[%c0_9, %c0_10] : memref<8x32xf32, #tpu.memory_space<vmem>>, vector<8x32xf32>
    tpu.vector_store %arg4[%c0_9, %c0_10], %22 {strides = array<i32>} : memref<8x32xf32, #tpu.memory_space<vmem>>, vector<8x32xf32>,
    return
  }
  func.func @transform_0(%arg0: i32) -> (i32, i32) {
    %c0_i32 = arith.constant 0 : i32
    %c0_i32_0 = arith.constant 0 : i32
    return %arg0, %c0_i32 : i32, i32
  }
  func.func @transform_1(%arg0: i32) -> (i32, i32) {
    %c0_i32 = arith.constant 0 : i32
    %c0_i32_0 = arith.constant 0 : i32
    %c0_i32_1 = arith.constant 0 : i32
    return %c0_i32, %c0_i32_0 : i32, i32
  }
  func.func @transform_2(%arg0: i32) -> (i32, i32) {
    %c0_i32 = arith.constant 0 : i32
    %c0_i32_0 = arith.constant 0 : i32
    %c0_i32_1 = arith.constant 0 : i32
    return %c0_i32, %c0_i32_0 : i32, i32
  }
  func.func @transform_3(%arg0: i32) -> (i32, i32) {
    %c0_i32 = arith.constant 0 : i32
    %c0_i32_0 = arith.constant 0 : i32
    return %arg0, %c0_i32 : i32, i32
  }
}

module attributes {stable_mosaic.version = 11 : i64} {
  func.func @_linear_kernel(%arg0: i32, %arg1: i32, %arg2: i32, %arg3: memref<8x128xf32, #tpu.memory_space<vmem>>, %arg4: memref<128x128xf32, #tpu.memory_space<vmem>>, %arg5: memref<1x128xf32, #tpu.memory_space<vmem>>, %arg6: memref<8x128xf32, #tpu.memory_space<vmem>>, %arg7: memref<8x128xf32, #tpu.memory_space<vmem>>) attributes {dimension_semantics = [#tpu.dimension_semantics<parallel>, #tpu.dimension_semantics<parallel>, #tpu.dimension_semantics<arbitrary>], iteration_bounds = array<i64: 1, 1, 1>, scalar_prefetch = 0 : i64, scratch_operands = 1 : i64, tpu.core_type = #tpu.core_type<tc>, window_params = [{transform_indices = @transform_0, window_bounds = array<i64: 8, 128>}, {transform_indices = @transform_1, window_bounds = array<i64: 128, 128>}, {transform_indices = @transform_2, window_bounds = array<i64: 1, 128>}, {transform_indices = @transform_3, window_bounds = array<i64: 8, 128>}]} {
    %c0_i32 = arith.constant 0 : i32
    %0 = arith.cmpi eq, %arg2, %c0_i32 : i32
    %1 = arith.extui %0 : i1 to i32
    %c0_i32_0 = arith.constant 0 : i32
    %2 = arith.cmpi ne, %1, %c0_i32_0 : i32
    scf.if %2 {
      %cst_10 = arith.constant 0.000000e+00 : f32
      %14 = vector.broadcast %cst_10 : f32 to vector<8x128xf32>
      %c0_11 = arith.constant 0 : index
      %c0_12 = arith.constant 0 : index
      %15 = vector.load %arg7[%c0_11, %c0_12] : memref<8x128xf32, #tpu.memory_space<vmem>>, vector<8x128xf32>
      tpu.vector_store %arg7[%c0_11, %c0_12], %14 {strides = array<i32>} : memref<8x128xf32, #tpu.memory_space<vmem>>, vector<8x128xf32>,
    } else {
    }
    %c0 = arith.constant 0 : index
    %c0_1 = arith.constant 0 : index
    %3 = vector.load %arg7[%c0, %c0_1] : memref<8x128xf32, #tpu.memory_space<vmem>>, vector<8x128xf32>
    %c0_2 = arith.constant 0 : index
    %c0_3 = arith.constant 0 : index
    %4 = vector.load %arg3[%c0_2, %c0_3] : memref<8x128xf32, #tpu.memory_space<vmem>>, vector<8x128xf32>
    %5 = arith.truncf %4 : vector<8x128xf32> to vector<8x128xbf16>
    %c0_4 = arith.constant 0 : index
    %c0_5 = arith.constant 0 : index
    %6 = vector.load %arg4[%c0_4, %c0_5] : memref<128x128xf32, #tpu.memory_space<vmem>>, vector<128x128xf32>
    %7 = arith.truncf %6 : vector<128x128xf32> to vector<128x128xbf16>
    %cst = arith.constant dense<0.000000e+00> : vector<8x128xf32>
    %8 = tpu.matmul %5, %7, %cst {dimension_numbers = #tpu.dot_dimension_numbers<[1], [0], [0], [1], [0, 0, 1, 1], [], []>} : vector<8x128xbf16>, vector<128x128xbf16>, vector<8x128xf32> -> vector<8x128xf32>
    %9 = arith.addf %3, %8 : vector<8x128xf32>
    %c0_6 = arith.constant 0 : index
    %c0_7 = arith.constant 0 : index
    %10 = vector.load %arg7[%c0_6, %c0_7] : memref<8x128xf32, #tpu.memory_space<vmem>>, vector<8x128xf32>
    tpu.vector_store %arg7[%c0_6, %c0_7], %9 {strides = array<i32>} : memref<8x128xf32, #tpu.memory_space<vmem>>, vector<8x128xf32>,
    %c0_i32_8 = arith.constant 0 : i32
    %11 = arith.cmpi eq, %arg2, %c0_i32_8 : i32
    %12 = arith.extui %11 : i1 to i32
    %c0_i32_9 = arith.constant 0 : i32
    %13 = arith.cmpi ne, %12, %c0_i32_9 : i32
    scf.if %13 {
      %c0_10 = arith.constant 0 : index
      %c0_11 = arith.constant 0 : index
      %14 = vector.load %arg7[%c0_10, %c0_11] : memref<8x128xf32, #tpu.memory_space<vmem>>, vector<8x128xf32>
      %c0_12 = arith.constant 0 : index
      %c0_13 = arith.constant 0 : index
      %15 = vector.load %arg5[%c0_12, %c0_13] : memref<1x128xf32, #tpu.memory_space<vmem>>, vector<1x128xf32>
      %16 = vector.broadcast %15 : vector<1x128xf32> to vector<8x128xf32>
      %17 = arith.addf %14, %16 : vector<8x128xf32>
      %c0_14 = arith.constant 0 : index
      %c0_15 = arith.constant 0 : index
      %18 = vector.load %arg6[%c0_14, %c0_15] : memref<8x128xf32, #tpu.memory_space<vmem>>, vector<8x128xf32>
      tpu.vector_store %arg6[%c0_14, %c0_15], %17 {strides = array<i32>} : memref<8x128xf32, #tpu.memory_space<vmem>>, vector<8x128xf32>,
    } else {
    }
    return
  }
  func.func @transform_0(%arg0: i32, %arg1: i32, %arg2: i32) -> (i32, i32) {
    %c0_i32 = arith.constant 0 : i32
    return %arg0, %arg2 : i32, i32
  }
  func.func @transform_1(%arg0: i32, %arg1: i32, %arg2: i32) -> (i32, i32) {
    %c0_i32 = arith.constant 0 : i32
    return %arg2, %arg1 : i32, i32
  }
  func.func @transform_2(%arg0: i32, %arg1: i32, %arg2: i32) -> (i32, i32) {
    %c0_i32 = arith.constant 0 : i32
    %c0_i32_0 = arith.constant 0 : i32
    return %c0_i32, %arg1 : i32, i32
  }
  func.func @transform_3(%arg0: i32, %arg1: i32, %arg2: i32) -> (i32, i32) {
    %c0_i32 = arith.constant 0 : i32
    return %arg0, %arg1 : i32, i32
  }
}

module attributes {stable_mosaic.version = 11 : i64} {
  func.func @_flash_attn_kernel(%arg0: i32, %arg1: i32, %arg2: memref<4x8x16xf32, #tpu.memory_space<vmem>>, %arg3: memref<4x8x16xf32, #tpu.memory_space<vmem>>, %arg4: memref<4x8x16xf32, #tpu.memory_space<vmem>>, %arg5: memref<4x8x16xf32, #tpu.memory_space<vmem>>, %arg6: memref<4x8x1xf32, #tpu.memory_space<vmem>>, %arg7: memref<4x8x1xf32, #tpu.memory_space<vmem>>, %arg8: memref<4x8x16xf32, #tpu.memory_space<vmem>>) attributes {dimension_semantics = [#tpu.dimension_semantics<parallel>, #tpu.dimension_semantics<arbitrary>], iteration_bounds = array<i64: 1, 1>, scalar_prefetch = 0 : i64, scratch_operands = 3 : i64, tpu.core_type = #tpu.core_type<tc>, window_params = [{transform_indices = @transform_0, window_bounds = array<i64: 4, 8, 16>}, {transform_indices = @transform_1, window_bounds = array<i64: 4, 8, 16>}, {transform_indices = @transform_2, window_bounds = array<i64: 4, 8, 16>}, {transform_indices = @transform_3, window_bounds = array<i64: 4, 8, 16>}]} {
    %c0_i32 = arith.constant 0 : i32
    %0 = arith.cmpi eq, %arg1, %c0_i32 : i32
    %1 = arith.extui %0 : i1 to i32
    %c0_i32_0 = arith.constant 0 : i32
    %2 = arith.cmpi ne, %1, %c0_i32_0 : i32
    scf.if %2 {
      %cst_34 = arith.constant -1.000000e+30 : f32
      %46 = vector.broadcast %cst_34 : f32 to vector<4x8x1xf32>
      %c0_35 = arith.constant 0 : index
      %c0_36 = arith.constant 0 : index
      %c0_37 = arith.constant 0 : index
      %47 = vector.load %arg6[%c0_35, %c0_36, %c0_37] : memref<4x8x1xf32, #tpu.memory_space<vmem>>, vector<4x8x1xf32>
      tpu.vector_store %arg6[%c0_35, %c0_36, %c0_37], %46 {strides = array<i32>} : memref<4x8x1xf32, #tpu.memory_space<vmem>>, vector<4x8x1xf32>,
      %cst_38 = arith.constant 0.000000e+00 : f32
      %48 = vector.broadcast %cst_38 : f32 to vector<4x8x1xf32>
      %c0_39 = arith.constant 0 : index
      %c0_40 = arith.constant 0 : index
      %c0_41 = arith.constant 0 : index
      %49 = vector.load %arg7[%c0_39, %c0_40, %c0_41] : memref<4x8x1xf32, #tpu.memory_space<vmem>>, vector<4x8x1xf32>
      tpu.vector_store %arg7[%c0_39, %c0_40, %c0_41], %48 {strides = array<i32>} : memref<4x8x1xf32, #tpu.memory_space<vmem>>, vector<4x8x1xf32>,
      %cst_42 = arith.constant 0.000000e+00 : f32
      %50 = vector.broadcast %cst_42 : f32 to vector<4x8x16xf32>
      %c0_43 = arith.constant 0 : index
      %c0_44 = arith.constant 0 : index
      %c0_45 = arith.constant 0 : index
      %51 = vector.load %arg8[%c0_43, %c0_44, %c0_45] : memref<4x8x16xf32, #tpu.memory_space<vmem>>, vector<4x8x16xf32>
      tpu.vector_store %arg8[%c0_43, %c0_44, %c0_45], %50 {strides = array<i32>} : memref<4x8x16xf32, #tpu.memory_space<vmem>>, vector<4x8x16xf32>,
    } else {
    }
    %c0 = arith.constant 0 : index
    %c0_1 = arith.constant 0 : index
    %c0_2 = arith.constant 0 : index
    %3 = vector.load %arg2[%c0, %c0_1, %c0_2] : memref<4x8x16xf32, #tpu.memory_space<vmem>>, vector<4x8x16xf32>
    %4 = arith.truncf %3 : vector<4x8x16xf32> to vector<4x8x16xbf16>
    %c0_3 = arith.constant 0 : index
    %c0_4 = arith.constant 0 : index
    %c0_5 = arith.constant 0 : index
    %5 = vector.load %arg3[%c0_3, %c0_4, %c0_5] : memref<4x8x16xf32, #tpu.memory_space<vmem>>, vector<4x8x16xf32>
    %6 = arith.truncf %5 : vector<4x8x16xf32> to vector<4x8x16xbf16>
    "tpu.trace_start"() <{level = 10 : i32, message = "bqd,bkd->bqk"}> : () -> ()
    %cst = arith.constant dense<0.000000e+00> : vector<4x8x8xf32>
    %7 = tpu.matmul %4, %6, %cst {dimension_numbers = #tpu.dot_dimension_numbers<[2], [2], [1], [1], [0, 0, 0, 1, 1, 1], [0], [0]>} : vector<4x8x16xbf16>, vector<4x8x16xbf16>, vector<4x8x8xf32> -> vector<4x8x8xf32>
    "tpu.trace_stop"() : () -> ()
    %cst_6 = arith.constant 2.500000e-01 : f32
    %8 = vector.broadcast %cst_6 : f32 to vector<4x8x8xf32>
    %9 = arith.mulf %7, %8 : vector<4x8x8xf32>
    %c8_i32 = arith.constant 8 : i32
    %10 = arith.muli %arg1, %c8_i32 : i32
    %11 = tpu.iota {dimensions = array<i32: 2>} : vector<4x8x8xi32>
    %12 = vector.broadcast %10 : i32 to vector<4x8x8xi32>
    %13 = arith.addi %12, %11 : vector<4x8x8xi32>
    %c4_i32 = arith.constant 4 : i32
    %14 = vector.broadcast %c4_i32 : i32 to vector<4x8x8xi32>
    %15 = arith.cmpi slt, %13, %14 : vector<4x8x8xi32>
    %cst_7 = arith.constant -1.000000e+30 : f32
    %16 = vector.broadcast %cst_7 : f32 to vector<4x8x8xf32>
    %17 = arith.select %15, %9, %16 : vector<4x8x8xi1>, vector<4x8x8xf32>
    %c0_8 = arith.constant 0 : index
    %c0_9 = arith.constant 0 : index
    %c0_10 = arith.constant 0 : index
    %18 = vector.load %arg6[%c0_8, %c0_9, %c0_10] : memref<4x8x1xf32, #tpu.memory_space<vmem>>, vector<4x8x1xf32>
    %cst_11 = arith.constant dense<0xFF800000> : vector<4x8xf32>
    %19 = vector.multi_reduction <maximumf>, %17, %cst_11 [2] : vector<4x8x8xf32> to vector<4x8xf32>
    %20 = vector.shape_cast %19 : vector<4x8xf32> to vector<4x8x1xf32>
    %21 = arith.maximumf %18, %20 : vector<4x8x1xf32>
    %22 = arith.subf %18, %21 : vector<4x8x1xf32>
    %23 = math.exp %22 : vector<4x8x1xf32>
    %24 = vector.broadcast %21 : vector<4x8x1xf32> to vector<4x8x8xf32>
    %25 = arith.subf %17, %24 : vector<4x8x8xf32>
    %26 = math.exp %25 : vector<4x8x8xf32>
    %c0_12 = arith.constant 0 : index
    %c0_13 = arith.constant 0 : index
    %c0_14 = arith.constant 0 : index
    %27 = vector.load %arg7[%c0_12, %c0_13, %c0_14] : memref<4x8x1xf32, #tpu.memory_space<vmem>>, vector<4x8x1xf32>
    %28 = arith.mulf %23, %27 : vector<4x8x1xf32>
    %cst_15 = arith.constant dense<0.000000e+00> : vector<4x8xf32>
    %29 = vector.multi_reduction <add>, %26, %cst_15 [2] : vector<4x8x8xf32> to vector<4x8xf32>
    %30 = vector.shape_cast %29 : vector<4x8xf32> to vector<4x8x1xf32>
    %31 = arith.addf %28, %30 : vector<4x8x1xf32>
    %c0_16 = arith.constant 0 : index
    %c0_17 = arith.constant 0 : index
    %c0_18 = arith.constant 0 : index
    %32 = vector.load %arg7[%c0_16, %c0_17, %c0_18] : memref<4x8x1xf32, #tpu.memory_space<vmem>>, vector<4x8x1xf32>
    tpu.vector_store %arg7[%c0_16, %c0_17, %c0_18], %31 {strides = array<i32>} : memref<4x8x1xf32, #tpu.memory_space<vmem>>, vector<4x8x1xf32>,
    %c0_19 = arith.constant 0 : index
    %c0_20 = arith.constant 0 : index
    %c0_21 = arith.constant 0 : index
    %33 = vector.load %arg8[%c0_19, %c0_20, %c0_21] : memref<4x8x16xf32, #tpu.memory_space<vmem>>, vector<4x8x16xf32>
    %34 = vector.broadcast %23 : vector<4x8x1xf32> to vector<4x8x16xf32>
    %35 = arith.mulf %34, %33 : vector<4x8x16xf32>
    %36 = arith.truncf %26 : vector<4x8x8xf32> to vector<4x8x8xbf16>
    %c0_22 = arith.constant 0 : index
    %c0_23 = arith.constant 0 : index
    %c0_24 = arith.constant 0 : index
    %37 = vector.load %arg4[%c0_22, %c0_23, %c0_24] : memref<4x8x16xf32, #tpu.memory_space<vmem>>, vector<4x8x16xf32>
    %38 = arith.truncf %37 : vector<4x8x16xf32> to vector<4x8x16xbf16>
    "tpu.trace_start"() <{level = 10 : i32, message = "bqk,bkd->bqd"}> : () -> ()
    %cst_25 = arith.constant dense<0.000000e+00> : vector<4x8x16xf32>
    %39 = tpu.matmul %36, %38, %cst_25 {dimension_numbers = #tpu.dot_dimension_numbers<[2], [1], [1], [2], [0, 0, 0, 1, 1, 2], [0], [0]>} : vector<4x8x8xbf16>, vector<4x8x16xbf16>, vector<4x8x16xf32> -> vector<4x8x16xf32>
    "tpu.trace_stop"() : () -> ()
    %40 = arith.addf %35, %39 : vector<4x8x16xf32>
    %c0_26 = arith.constant 0 : index
    %c0_27 = arith.constant 0 : index
    %c0_28 = arith.constant 0 : index
    %41 = vector.load %arg8[%c0_26, %c0_27, %c0_28] : memref<4x8x16xf32, #tpu.memory_space<vmem>>, vector<4x8x16xf32>
    tpu.vector_store %arg8[%c0_26, %c0_27, %c0_28], %40 {strides = array<i32>} : memref<4x8x16xf32, #tpu.memory_space<vmem>>, vector<4x8x16xf32>,
    %c0_29 = arith.constant 0 : index
    %c0_30 = arith.constant 0 : index
    %c0_31 = arith.constant 0 : index
    %42 = vector.load %arg6[%c0_29, %c0_30, %c0_31] : memref<4x8x1xf32, #tpu.memory_space<vmem>>, vector<4x8x1xf32>
    tpu.vector_store %arg6[%c0_29, %c0_30, %c0_31], %21 {strides = array<i32>} : memref<4x8x1xf32, #tpu.memory_space<vmem>>, vector<4x8x1xf32>,
    %c0_i32_32 = arith.constant 0 : i32
    %43 = arith.cmpi eq, %arg1, %c0_i32_32 : i32
    %44 = arith.extui %43 : i1 to i32
    %c0_i32_33 = arith.constant 0 : i32
    %45 = arith.cmpi ne, %44, %c0_i32_33 : i32
    scf.if %45 {
      %c0_34 = arith.constant 0 : index
      %c0_35 = arith.constant 0 : index
      %c0_36 = arith.constant 0 : index
      %46 = vector.load %arg8[%c0_34, %c0_35, %c0_36] : memref<4x8x16xf32, #tpu.memory_space<vmem>>, vector<4x8x16xf32>
      %c0_37 = arith.constant 0 : index
      %c0_38 = arith.constant 0 : index
      %c0_39 = arith.constant 0 : index
      %47 = vector.load %arg7[%c0_37, %c0_38, %c0_39] : memref<4x8x1xf32, #tpu.memory_space<vmem>>, vector<4x8x1xf32>
      %48 = tpu.reciprocal %47 {approx = true} : vector<4x8x1xf32> -> vector<4x8x1xf32>
      %49 = vector.broadcast %48 : vector<4x8x1xf32> to vector<4x8x16xf32>
      %50 = arith.mulf %46, %49 : vector<4x8x16xf32>
      %c0_40 = arith.constant 0 : index
      %c0_41 = arith.constant 0 : index
      %c0_42 = arith.constant 0 : index
      %51 = vector.load %arg5[%c0_40, %c0_41, %c0_42] : memref<4x8x16xf32, #tpu.memory_space<vmem>>, vector<4x8x16xf32>
      tpu.vector_store %arg5[%c0_40, %c0_41, %c0_42], %50 {strides = array<i32>} : memref<4x8x16xf32, #tpu.memory_space<vmem>>, vector<4x8x16xf32>,
    } else {
    }
    return
  }
  func.func @transform_0(%arg0: i32, %arg1: i32) -> (i32, i32, i32) {
    %c0_i32 = arith.constant 0 : i32
    %c0_i32_0 = arith.constant 0 : i32
    %c0_i32_1 = arith.constant 0 : i32
    return %c0_i32, %arg0, %c0_i32_0 : i32, i32, i32
  }
  func.func @transform_1(%arg0: i32, %arg1: i32) -> (i32, i32, i32) {
    %c0_i32 = arith.constant 0 : i32
    %c0_i32_0 = arith.constant 0 : i32
    %c0_i32_1 = arith.constant 0 : i32
    return %c0_i32, %arg1, %c0_i32_0 : i32, i32, i32
  }
  func.func @transform_2(%arg0: i32, %arg1: i32) -> (i32, i32, i32) {
    %c0_i32 = arith.constant 0 : i32
    %c0_i32_0 = arith.constant 0 : i32
    %c0_i32_1 = arith.constant 0 : i32
    return %c0_i32, %arg1, %c0_i32_0 : i32, i32, i32
  }
  func.func @transform_3(%arg0: i32, %arg1: i32) -> (i32, i32, i32) {
    %c0_i32 = arith.constant 0 : i32
    %c0_i32_0 = arith.constant 0 : i32
    %c0_i32_1 = arith.constant 0 : i32
    return %c0_i32, %arg0, %c0_i32_0 : i32, i32, i32
  }
}

module attributes {stable_mosaic.version = 11 : i64} {
  func.func @_linear_glu_kernel(%arg0: i32, %arg1: i32, %arg2: i32, %arg3: memref<8x128xf32, #tpu.memory_space<vmem>>, %arg4: memref<128x128xf32, #tpu.memory_space<vmem>>, %arg5: memref<128x128xf32, #tpu.memory_space<vmem>>, %arg6: memref<1x128xf32, #tpu.memory_space<vmem>>, %arg7: memref<1x128xf32, #tpu.memory_space<vmem>>, %arg8: memref<8x128xf32, #tpu.memory_space<vmem>>, %arg9: memref<8x128xf32, #tpu.memory_space<vmem>>, %arg10: memref<8x128xf32, #tpu.memory_space<vmem>>) attributes {dimension_semantics = [#tpu.dimension_semantics<parallel>, #tpu.dimension_semantics<parallel>, #tpu.dimension_semantics<arbitrary>], iteration_bounds = array<i64: 1, 1, 1>, scalar_prefetch = 0 : i64, scratch_operands = 2 : i64, tpu.core_type = #tpu.core_type<tc>, window_params = [{transform_indices = @transform_0, window_bounds = array<i64: 8, 128>}, {transform_indices = @transform_1, window_bounds = array<i64: 128, 128>}, {transform_indices = @transform_2, window_bounds = array<i64: 128, 128>}, {transform_indices = @transform_3, window_bounds = array<i64: 1, 128>}, {transform_indices = @transform_4, window_bounds = array<i64: 1, 128>}, {transform_indices = @transform_5, window_bounds = array<i64: 8, 128>}]} {
    %c0_i32 = arith.constant 0 : i32
    %0 = arith.cmpi eq, %arg2, %c0_i32 : i32
    %1 = arith.extui %0 : i1 to i32
    %c0_i32_0 = arith.constant 0 : i32
    %2 = arith.cmpi ne, %1, %c0_i32_0 : i32
    scf.if %2 {
      %cst_17 = arith.constant 0.000000e+00 : f32
      %20 = vector.broadcast %cst_17 : f32 to vector<8x128xf32>
      %c0_18 = arith.constant 0 : index
      %c0_19 = arith.constant 0 : index
      %21 = vector.load %arg9[%c0_18, %c0_19] : memref<8x128xf32, #tpu.memory_space<vmem>>, vector<8x128xf32>
      tpu.vector_store %arg9[%c0_18, %c0_19], %20 {strides = array<i32>} : memref<8x128xf32, #tpu.memory_space<vmem>>, vector<8x128xf32>,
      %cst_20 = arith.constant 0.000000e+00 : f32
      %22 = vector.broadcast %cst_20 : f32 to vector<8x128xf32>
      %c0_21 = arith.constant 0 : index
      %c0_22 = arith.constant 0 : index
      %23 = vector.load %arg10[%c0_21, %c0_22] : memref<8x128xf32, #tpu.memory_space<vmem>>, vector<8x128xf32>
      tpu.vector_store %arg10[%c0_21, %c0_22], %22 {strides = array<i32>} : memref<8x128xf32, #tpu.memory_space<vmem>>, vector<8x128xf32>,
    } else {
    }
    %c0 = arith.constant 0 : index
    %c0_1 = arith.constant 0 : index
    %3 = vector.load %arg3[%c0, %c0_1] : memref<8x128xf32, #tpu.memory_space<vmem>>, vector<8x128xf32>
    %4 = arith.truncf %3 : vector<8x128xf32> to vector<8x128xbf16>
    %c0_2 = arith.constant 0 : index
    %c0_3 = arith.constant 0 : index
    %5 = vector.load %arg9[%c0_2, %c0_3] : memref<8x128xf32, #tpu.memory_space<vmem>>, vector<8x128xf32>
    %c0_4 = arith.constant 0 : index
    %c0_5 = arith.constant 0 : index
    %6 = vector.load %arg4[%c0_4, %c0_5] : memref<128x128xf32, #tpu.memory_space<vmem>>, vector<128x128xf32>
    %7 = arith.truncf %6 : vector<128x128xf32> to vector<128x128xbf16>
    %cst = arith.constant dense<0.000000e+00> : vector<8x128xf32>
    %8 = tpu.matmul %4, %7, %cst {dimension_numbers = #tpu.dot_dimension_numbers<[1], [0], [0], [1], [0, 0, 1, 1], [], []>} : vector<8x128xbf16>, vector<128x128xbf16>, vector<8x128xf32> -> vector<8x128xf32>
    %9 = arith.addf %5, %8 : vector<8x128xf32>
    %c0_6 = arith.constant 0 : index
    %c0_7 = arith.constant 0 : index
    %10 = vector.load %arg9[%c0_6, %c0_7] : memref<8x128xf32, #tpu.memory_space<vmem>>, vector<8x128xf32>
    tpu.vector_store %arg9[%c0_6, %c0_7], %9 {strides = array<i32>} : memref<8x128xf32, #tpu.memory_space<vmem>>, vector<8x128xf32>,
    %c0_8 = arith.constant 0 : index
    %c0_9 = arith.constant 0 : index
    %11 = vector.load %arg10[%c0_8, %c0_9] : memref<8x128xf32, #tpu.memory_space<vmem>>, vector<8x128xf32>
    %c0_10 = arith.constant 0 : index
    %c0_11 = arith.constant 0 : index
    %12 = vector.load %arg5[%c0_10, %c0_11] : memref<128x128xf32, #tpu.memory_space<vmem>>, vector<128x128xf32>
    %13 = arith.truncf %12 : vector<128x128xf32> to vector<128x128xbf16>
    %cst_12 = arith.constant dense<0.000000e+00> : vector<8x128xf32>
    %14 = tpu.matmul %4, %13, %cst_12 {dimension_numbers = #tpu.dot_dimension_numbers<[1], [0], [0], [1], [0, 0, 1, 1], [], []>} : vector<8x128xbf16>, vector<128x128xbf16>, vector<8x128xf32> -> vector<8x128xf32>
    %15 = arith.addf %11, %14 : vector<8x128xf32>
    %c0_13 = arith.constant 0 : index
    %c0_14 = arith.constant 0 : index
    %16 = vector.load %arg10[%c0_13, %c0_14] : memref<8x128xf32, #tpu.memory_space<vmem>>, vector<8x128xf32>
    tpu.vector_store %arg10[%c0_13, %c0_14], %15 {strides = array<i32>} : memref<8x128xf32, #tpu.memory_space<vmem>>, vector<8x128xf32>,
    %c0_i32_15 = arith.constant 0 : i32
    %17 = arith.cmpi eq, %arg2, %c0_i32_15 : i32
    %18 = arith.extui %17 : i1 to i32
    %c0_i32_16 = arith.constant 0 : i32
    %19 = arith.cmpi ne, %18, %c0_i32_16 : i32
    scf.if %19 {
      %c0_17 = arith.constant 0 : index
      %c0_18 = arith.constant 0 : index
      %20 = vector.load %arg9[%c0_17, %c0_18] : memref<8x128xf32, #tpu.memory_space<vmem>>, vector<8x128xf32>
      %c0_19 = arith.constant 0 : index
      %c0_20 = arith.constant 0 : index
      %21 = vector.load %arg6[%c0_19, %c0_20] : memref<1x128xf32, #tpu.memory_space<vmem>>, vector<1x128xf32>
      %22 = vector.broadcast %21 : vector<1x128xf32> to vector<8x128xf32>
      %23 = arith.addf %20, %22 : vector<8x128xf32>
      %c0_21 = arith.constant 0 : index
      %c0_22 = arith.constant 0 : index
      %24 = vector.load %arg10[%c0_21, %c0_22] : memref<8x128xf32, #tpu.memory_space<vmem>>, vector<8x128xf32>
      %c0_23 = arith.constant 0 : index
      %c0_24 = arith.constant 0 : index
      %25 = vector.load %arg7[%c0_23, %c0_24] : memref<1x128xf32, #tpu.memory_space<vmem>>, vector<1x128xf32>
      %26 = vector.broadcast %25 : vector<1x128xf32> to vector<8x128xf32>
      %27 = arith.addf %24, %26 : vector<8x128xf32>
      %28 = arith.negf %27 : vector<8x128xf32>
      %29 = math.exp %28 : vector<8x128xf32>
      %cst_25 = arith.constant 1.000000e+00 : f32
      %30 = vector.broadcast %cst_25 : f32 to vector<8x128xf32>
      %31 = arith.addf %30, %29 : vector<8x128xf32>
      %32 = arith.divf %30, %31 : vector<8x128xf32>
      %33 = arith.mulf %23, %32 : vector<8x128xf32>
      %c0_26 = arith.constant 0 : index
      %c0_27 = arith.constant 0 : index
      %34 = vector.load %arg8[%c0_26, %c0_27] : memref<8x128xf32, #tpu.memory_space<vmem>>, vector<8x128xf32>
      tpu.vector_store %arg8[%c0_26, %c0_27], %33 {strides = array<i32>} : memref<8x128xf32, #tpu.memory_space<vmem>>, vector<8x128xf32>,
    } else {
    }
    return
  }
  func.func @transform_0(%arg0: i32, %arg1: i32, %arg2: i32) -> (i32, i32) {
    %c0_i32 = arith.constant 0 : i32
    return %arg0, %arg2 : i32, i32
  }
  func.func @transform_1(%arg0: i32, %arg1: i32, %arg2: i32) -> (i32, i32) {
    %c0_i32 = arith.constant 0 : i32
    return %arg2, %arg1 : i32, i32
  }
  func.func @transform_2(%arg0: i32, %arg1: i32, %arg2: i32) -> (i32, i32) {
    %c0_i32 = arith.constant 0 : i32
    return %arg2, %arg1 : i32, i32
  }
  func.func @transform_3(%arg0: i32, %arg1: i32, %arg2: i32) -> (i32, i32) {
    %c0_i32 = arith.constant 0 : i32
    %c0_i32_0 = arith.constant 0 : i32
    return %c0_i32, %arg1 : i32, i32
  }
  func.func @transform_4(%arg0: i32, %arg1: i32, %arg2: i32) -> (i32, i32) {
    %c0_i32 = arith.constant 0 : i32
    %c0_i32_0 = arith.constant 0 : i32
    return %c0_i32, %arg1 : i32, i32
  }
  func.func @transform_5(%arg0: i32, %arg1: i32, %arg2: i32) -> (i32, i32) {
    %c0_i32 = arith.constant 0 : i32
    return %arg0, %arg1 : i32, i32
  }
}

module attributes {stable_mosaic.version = 11 : i64} {
  func.func @_dwconv_kernel(%arg0: memref<2x1x12x32xf32, #tpu.memory_space<vmem>>, %arg1: memref<1x9x32xf32, #tpu.memory_space<vmem>>, %arg2: memref<1x32xf32, #tpu.memory_space<vmem>>, %arg3: memref<2x4x32xf32, #tpu.memory_space<vmem>>) attributes {dimension_semantics = [], scalar_prefetch = 0 : i64, scratch_operands = 0 : i64, tpu.core_type = #tpu.core_type<tc>} {
    %c0 = arith.constant 0 : index
    %c0_0 = arith.constant 0 : index
    %c0_1 = arith.constant 0 : index
    %c0_2 = arith.constant 0 : index
    %0 = vector.load %arg0[%c0, %c0_0, %c0_1, %c0_2] : memref<2x1x12x32xf32, #tpu.memory_space<vmem>>, vector<2x1x12x32xf32>
    %c0_3 = arith.constant 0 : index
    %c0_4 = arith.constant 0 : index
    %c0_5 = arith.constant 0 : index
    %1 = vector.load %arg1[%c0_3, %c0_4, %c0_5] : memref<1x9x32xf32, #tpu.memory_space<vmem>>, vector<1x9x32xf32>
    %cst = arith.constant 0.000000e+00 : f32
    %2 = vector.broadcast %cst : f32 to vector<2x4x32xf32>
    %3 = vector.shape_cast %0 : vector<2x1x12x32xf32> to vector<2x12x32xf32>
    %4 = vector.extract_strided_slice %3 {offsets = [0, 0, 0], sizes = [2, 4, 32], strides = [1, 1, 1]} : vector<2x12x32xf32> to vector<2x4x32xf32>
    %5 = vector.extract_strided_slice %1 {offsets = [0, 0, 0], sizes = [1, 1, 32], strides = [1, 1, 1]} : vector<1x9x32xf32> to vector<1x1x32xf32>
    %6 = vector.shape_cast %5 : vector<1x1x32xf32> to vector<32xf32>
    %7 = vector.shape_cast %6 : vector<32xf32> to vector<1x1x32xf32>
    %8 = vector.broadcast %7 : vector<1x1x32xf32> to vector<2x4x32xf32>
    %9 = arith.mulf %4, %8 : vector<2x4x32xf32>
    %10 = arith.addf %2, %9 : vector<2x4x32xf32>
    %11 = vector.extract_strided_slice %3 {offsets = [0, 1, 0], sizes = [2, 4, 32], strides = [1, 1, 1]} : vector<2x12x32xf32> to vector<2x4x32xf32>
    %12 = vector.extract_strided_slice %1 {offsets = [0, 1, 0], sizes = [1, 1, 32], strides = [1, 1, 1]} : vector<1x9x32xf32> to vector<1x1x32xf32>
    %13 = vector.shape_cast %12 : vector<1x1x32xf32> to vector<32xf32>
    %14 = vector.shape_cast %13 : vector<32xf32> to vector<1x1x32xf32>
    %15 = vector.broadcast %14 : vector<1x1x32xf32> to vector<2x4x32xf32>
    %16 = arith.mulf %11, %15 : vector<2x4x32xf32>
    %17 = arith.addf %10, %16 : vector<2x4x32xf32>
    %18 = vector.extract_strided_slice %3 {offsets = [0, 2, 0], sizes = [2, 4, 32], strides = [1, 1, 1]} : vector<2x12x32xf32> to vector<2x4x32xf32>
    %19 = vector.extract_strided_slice %1 {offsets = [0, 2, 0], sizes = [1, 1, 32], strides = [1, 1, 1]} : vector<1x9x32xf32> to vector<1x1x32xf32>
    %20 = vector.shape_cast %19 : vector<1x1x32xf32> to vector<32xf32>
    %21 = vector.shape_cast %20 : vector<32xf32> to vector<1x1x32xf32>
    %22 = vector.broadcast %21 : vector<1x1x32xf32> to vector<2x4x32xf32>
    %23 = arith.mulf %18, %22 : vector<2x4x32xf32>
    %24 = arith.addf %17, %23 : vector<2x4x32xf32>
    %25 = vector.extract_strided_slice %3 {offsets = [0, 3, 0], sizes = [2, 4, 32], strides = [1, 1, 1]} : vector<2x12x32xf32> to vector<2x4x32xf32>
    %26 = vector.extract_strided_slice %1 {offsets = [0, 3, 0], sizes = [1, 1, 32], strides = [1, 1, 1]} : vector<1x9x32xf32> to vector<1x1x32xf32>
    %27 = vector.shape_cast %26 : vector<1x1x32xf32> to vector<32xf32>
    %28 = vector.shape_cast %27 : vector<32xf32> to vector<1x1x32xf32>
    %29 = vector.broadcast %28 : vector<1x1x32xf32> to vector<2x4x32xf32>
    %30 = arith.mulf %25, %29 : vector<2x4x32xf32>
    %31 = arith.addf %24, %30 : vector<2x4x32xf32>
    %32 = vector.extract_strided_slice %3 {offsets = [0, 4, 0], sizes = [2, 4, 32], strides = [1, 1, 1]} : vector<2x12x32xf32> to vector<2x4x32xf32>
    %33 = vector.extract_strided_slice %1 {offsets = [0, 4, 0], sizes = [1, 1, 32], strides = [1, 1, 1]} : vector<1x9x32xf32> to vector<1x1x32xf32>
    %34 = vector.shape_cast %33 : vector<1x1x32xf32> to vector<32xf32>
    %35 = vector.shape_cast %34 : vector<32xf32> to vector<1x1x32xf32>
    %36 = vector.broadcast %35 : vector<1x1x32xf32> to vector<2x4x32xf32>
    %37 = arith.mulf %32, %36 : vector<2x4x32xf32>
    %38 = arith.addf %31, %37 : vector<2x4x32xf32>
    %39 = vector.extract_strided_slice %3 {offsets = [0, 5, 0], sizes = [2, 4, 32], strides = [1, 1, 1]} : vector<2x12x32xf32> to vector<2x4x32xf32>
    %40 = vector.extract_strided_slice %1 {offsets = [0, 5, 0], sizes = [1, 1, 32], strides = [1, 1, 1]} : vector<1x9x32xf32> to vector<1x1x32xf32>
    %41 = vector.shape_cast %40 : vector<1x1x32xf32> to vector<32xf32>
    %42 = vector.shape_cast %41 : vector<32xf32> to vector<1x1x32xf32>
    %43 = vector.broadcast %42 : vector<1x1x32xf32> to vector<2x4x32xf32>
    %44 = arith.mulf %39, %43 : vector<2x4x32xf32>
    %45 = arith.addf %38, %44 : vector<2x4x32xf32>
    %46 = vector.extract_strided_slice %3 {offsets = [0, 6, 0], sizes = [2, 4, 32], strides = [1, 1, 1]} : vector<2x12x32xf32> to vector<2x4x32xf32>
    %47 = vector.extract_strided_slice %1 {offsets = [0, 6, 0], sizes = [1, 1, 32], strides = [1, 1, 1]} : vector<1x9x32xf32> to vector<1x1x32xf32>
    %48 = vector.shape_cast %47 : vector<1x1x32xf32> to vector<32xf32>
    %49 = vector.shape_cast %48 : vector<32xf32> to vector<1x1x32xf32>
    %50 = vector.broadcast %49 : vector<1x1x32xf32> to vector<2x4x32xf32>
    %51 = arith.mulf %46, %50 : vector<2x4x32xf32>
    %52 = arith.addf %45, %51 : vector<2x4x32xf32>
    %53 = vector.extract_strided_slice %3 {offsets = [0, 7, 0], sizes = [2, 4, 32], strides = [1, 1, 1]} : vector<2x12x32xf32> to vector<2x4x32xf32>
    %54 = vector.extract_strided_slice %1 {offsets = [0, 7, 0], sizes = [1, 1, 32], strides = [1, 1, 1]} : vector<1x9x32xf32> to vector<1x1x32xf32>
    %55 = vector.shape_cast %54 : vector<1x1x32xf32> to vector<32xf32>
    %56 = vector.shape_cast %55 : vector<32xf32> to vector<1x1x32xf32>
    %57 = vector.broadcast %56 : vector<1x1x32xf32> to vector<2x4x32xf32>
    %58 = arith.mulf %53, %57 : vector<2x4x32xf32>
    %59 = arith.addf %52, %58 : vector<2x4x32xf32>
    %60 = vector.extract_strided_slice %3 {offsets = [0, 8, 0], sizes = [2, 4, 32], strides = [1, 1, 1]} : vector<2x12x32xf32> to vector<2x4x32xf32>
    %61 = vector.extract_strided_slice %1 {offsets = [0, 8, 0], sizes = [1, 1, 32], strides = [1, 1, 1]} : vector<1x9x32xf32> to vector<1x1x32xf32>
    %62 = vector.shape_cast %61 : vector<1x1x32xf32> to vector<32xf32>
    %63 = vector.shape_cast %62 : vector<32xf32> to vector<1x1x32xf32>
    %64 = vector.broadcast %63 : vector<1x1x32xf32> to vector<2x4x32xf32>
    %65 = arith.mulf %60, %64 : vector<2x4x32xf32>
    %66 = arith.addf %59, %65 : vector<2x4x32xf32>
    %c0_6 = arith.constant 0 : index
    %c0_7 = arith.constant 0 : index
    %67 = vector.load %arg2[%c0_6, %c0_7] : memref<1x32xf32, #tpu.memory_space<vmem>>, vector<1x32xf32>
    %68 = vector.shape_cast %67 : vector<1x32xf32> to vector<1x1x32xf32>
    %69 = vector.broadcast %68 : vector<1x1x32xf32> to vector<2x4x32xf32>
    %70 = arith.addf %66, %69 : vector<2x4x32xf32>
    %c0_8 = arith.constant 0 : index
    %c0_9 = arith.constant 0 : index
    %c0_10 = arith.constant 0 : index
    %71 = vector.load %arg3[%c0_8, %c0_9, %c0_10] : memref<2x4x32xf32, #tpu.memory_space<vmem>>, vector<2x4x32xf32>
    tpu.vector_store %arg3[%c0_8, %c0_9, %c0_10], %70 {strides = array<i32>} : memref<2x4x32xf32, #tpu.memory_space<vmem>>, vector<2x4x32xf32>,
    return
  }
}

module attributes {stable_mosaic.version = 11 : i64} {
  func.func @_linear_kernel(%arg0: i32, %arg1: i32, %arg2: i32, %arg3: memref<8x128xf32, #tpu.memory_space<vmem>>, %arg4: memref<128x128xf32, #tpu.memory_space<vmem>>, %arg5: memref<1x128xf32, #tpu.memory_space<vmem>>, %arg6: memref<8x128xf32, #tpu.memory_space<vmem>>, %arg7: memref<8x128xf32, #tpu.memory_space<vmem>>) attributes {dimension_semantics = [#tpu.dimension_semantics<parallel>, #tpu.dimension_semantics<parallel>, #tpu.dimension_semantics<arbitrary>], iteration_bounds = array<i64: 1, 1, 1>, scalar_prefetch = 0 : i64, scratch_operands = 1 : i64, tpu.core_type = #tpu.core_type<tc>, window_params = [{transform_indices = @transform_0, window_bounds = array<i64: 8, 128>}, {transform_indices = @transform_1, window_bounds = array<i64: 128, 128>}, {transform_indices = @transform_2, window_bounds = array<i64: 1, 128>}, {transform_indices = @transform_3, window_bounds = array<i64: 8, 128>}]} {
    %c0_i32 = arith.constant 0 : i32
    %0 = arith.cmpi eq, %arg2, %c0_i32 : i32
    %1 = arith.extui %0 : i1 to i32
    %c0_i32_0 = arith.constant 0 : i32
    %2 = arith.cmpi ne, %1, %c0_i32_0 : i32
    scf.if %2 {
      %cst_10 = arith.constant 0.000000e+00 : f32
      %14 = vector.broadcast %cst_10 : f32 to vector<8x128xf32>
      %c0_11 = arith.constant 0 : index
      %c0_12 = arith.constant 0 : index
      %15 = vector.load %arg7[%c0_11, %c0_12] : memref<8x128xf32, #tpu.memory_space<vmem>>, vector<8x128xf32>
      tpu.vector_store %arg7[%c0_11, %c0_12], %14 {strides = array<i32>} : memref<8x128xf32, #tpu.memory_space<vmem>>, vector<8x128xf32>,
    } else {
    }
    %c0 = arith.constant 0 : index
    %c0_1 = arith.constant 0 : index
    %3 = vector.load %arg7[%c0, %c0_1] : memref<8x128xf32, #tpu.memory_space<vmem>>, vector<8x128xf32>
    %c0_2 = arith.constant 0 : index
    %c0_3 = arith.constant 0 : index
    %4 = vector.load %arg3[%c0_2, %c0_3] : memref<8x128xf32, #tpu.memory_space<vmem>>, vector<8x128xf32>
    %5 = arith.truncf %4 : vector<8x128xf32> to vector<8x128xbf16>
    %c0_4 = arith.constant 0 : index
    %c0_5 = arith.constant 0 : index
    %6 = vector.load %arg4[%c0_4, %c0_5] : memref<128x128xf32, #tpu.memory_space<vmem>>, vector<128x128xf32>
    %7 = arith.truncf %6 : vector<128x128xf32> to vector<128x128xbf16>
    %cst = arith.constant dense<0.000000e+00> : vector<8x128xf32>
    %8 = tpu.matmul %5, %7, %cst {dimension_numbers = #tpu.dot_dimension_numbers<[1], [0], [0], [1], [0, 0, 1, 1], [], []>} : vector<8x128xbf16>, vector<128x128xbf16>, vector<8x128xf32> -> vector<8x128xf32>
    %9 = arith.addf %3, %8 : vector<8x128xf32>
    %c0_6 = arith.constant 0 : index
    %c0_7 = arith.constant 0 : index
    %10 = vector.load %arg7[%c0_6, %c0_7] : memref<8x128xf32, #tpu.memory_space<vmem>>, vector<8x128xf32>
    tpu.vector_store %arg7[%c0_6, %c0_7], %9 {strides = array<i32>} : memref<8x128xf32, #tpu.memory_space<vmem>>, vector<8x128xf32>,
    %c0_i32_8 = arith.constant 0 : i32
    %11 = arith.cmpi eq, %arg2, %c0_i32_8 : i32
    %12 = arith.extui %11 : i1 to i32
    %c0_i32_9 = arith.constant 0 : i32
    %13 = arith.cmpi ne, %12, %c0_i32_9 : i32
    scf.if %13 {
      %c0_10 = arith.constant 0 : index
      %c0_11 = arith.constant 0 : index
      %14 = vector.load %arg7[%c0_10, %c0_11] : memref<8x128xf32, #tpu.memory_space<vmem>>, vector<8x128xf32>
      %c0_12 = arith.constant 0 : index
      %c0_13 = arith.constant 0 : index
      %15 = vector.load %arg5[%c0_12, %c0_13] : memref<1x128xf32, #tpu.memory_space<vmem>>, vector<1x128xf32>
      %16 = vector.broadcast %15 : vector<1x128xf32> to vector<8x128xf32>
      %17 = arith.addf %14, %16 : vector<8x128xf32>
      %c0_14 = arith.constant 0 : index
      %c0_15 = arith.constant 0 : index
      %18 = vector.load %arg6[%c0_14, %c0_15] : memref<8x128xf32, #tpu.memory_space<vmem>>, vector<8x128xf32>
      tpu.vector_store %arg6[%c0_14, %c0_15], %17 {strides = array<i32>} : memref<8x128xf32, #tpu.memory_space<vmem>>, vector<8x128xf32>,
    } else {
    }
    return
  }
  func.func @transform_0(%arg0: i32, %arg1: i32, %arg2: i32) -> (i32, i32) {
    %c0_i32 = arith.constant 0 : i32
    return %arg0, %arg2 : i32, i32
  }
  func.func @transform_1(%arg0: i32, %arg1: i32, %arg2: i32) -> (i32, i32) {
    %c0_i32 = arith.constant 0 : i32
    return %arg2, %arg1 : i32, i32
  }
  func.func @transform_2(%arg0: i32, %arg1: i32, %arg2: i32) -> (i32, i32) {
    %c0_i32 = arith.constant 0 : i32
    %c0_i32_0 = arith.constant 0 : i32
    return %c0_i32, %arg1 : i32, i32
  }
  func.func @transform_3(%arg0: i32, %arg1: i32, %arg2: i32) -> (i32, i32) {
    %c0_i32 = arith.constant 0 : i32
    return %arg0, %arg1 : i32, i32
  }
}

</mosaic_0001>

<bundles_post_ra>
// kernel: run.55
= control target key start
LH: loop header
LB: loop body
LE: loop exit
PB: predicated region body
PF: predicated region fallthrough
CT: control target
= control target key end

     0   :  { %s804_s12 = smov 0   ;;  %s806_s13 = smov 0   ;;  %s931_s0 = inlined_call_operand.vmem [shape: f32[256,128], index: 0, kind: input, shape index: {}]   ;;  %s932_s1 = inlined_call_operand.vmem [shape: f32[128,128], index: 1, kind: input, shape index: {}]   ;;  %s933_s2 = inlined_call_operand.vmem [shape: f32[1,128], index: 2, kind: input, shape index: {}]   ;;  %s934_s3 = inlined_call_operand.vmem [shape: f32[256,128], index: 3, kind: output, shape index: {}]  }
   0x1   :  { %s808_s14 = smov 0  }
   0x2 LB: > { %s32_s15 = sadd.s32 1, %s778_s13  ;;  %p664_p0 = scmp.ge.s32.totalorder %s782_s14, 1  ;;  %s782_s14 = sphi %s808_s14, %s13_s14   ;;  %s778_s13 = sphi %s806_s13, %s936_s13   ;;  %s774_s12 = sphi %s804_s12, %s935_s12  }
   0x3   : > { %p34_p1 = scmp.ge.s32.totalorder %s32_s15, 2  ;;  %p188_p2 = scmp.lt.s32.totalorder %s782_s14, 3 }
   0x5   : > { %s938_s15 = smov (%p34_p1, %s32_s15), 0  ;;  %p189_p3 = pnand %p664_p0, %p188_p2 }
   0x6   : > { %v320_v0 = vld [vmem:[%s932_s1] sm:$0xff] (!%p189_p3)  ;;  %v321_v1 = vld [vmem:[%s932_s1 + $0x8] sm:$0xff] (!%p189_p3)  ;;  %v322_v2 = vld [vmem:[%s932_s1 + $0x10] sm:$0xff] (!%p189_p3)  ;;  %s665_s22 = sshll.u32 (!%p189_p3), %s774_s12, 4 }
   0x7   : > { %192 = sbr.rel (%p189_p3) target bundleno = 269 (0x10d), region = 32  ;;  %v336_v3 = vpack.c.bf16 (!%p189_p3), %v321_v1, %v320_v0  ;;  %v323_v4 = vld [vmem:[%s932_s1 + $0x18] sm:$0xff] (!%p189_p3)  ;;  %p230_p4 = scmp.lt.s32.totalorder (!%p189_p3), %s665_s22, 31  ;;  %v324_v6 = vld [vmem:[%s932_s1 + $0x20] sm:$0xff] (!%p189_p3)  ;;  %v325_v7 = vld [vmem:[%s932_s1 + $0x28] sm:$0xff] (!%p189_p3) }
   0x8   : > { %v337_v5 = vpack.c.bf16 (!%p189_p3), %v323_v4, %v322_v2  ;;  %v338_v8 = vpack.c.bf16 (!%p189_p3), %v325_v7, %v324_v6  ;;  %v326_v9 = vld [vmem:[%s932_s1 + $0x30] sm:$0xff] (!%p189_p3)  ;;  %v327_v10 = vld [vmem:[%s932_s1 + $0x38] sm:$0xff] (!%p189_p3)  ;;  %v328_v18 = vld [vmem:[%s932_s1 + $0x40] sm:$0xff] (!%p189_p3) }
   0x9   : > { %688 = vmatprep.subr.bf16.mxu0 (!%p189_p3), %v336_v3  ;;  %720 = vmatprep.subr.bf16.mxu1 (!%p189_p3), %v336_v3  ;;  %v339_v16 = vpack.c.bf16 (!%p189_p3), %v327_v10, %v326_v9  ;;  %v329_v19 = vld [vmem:[%s932_s1 + $0x48] sm:$0xff] (!%p189_p3)  ;;  %v330_v21 = vld [vmem:[%s932_s1 + $0x50] sm:$0xff] (!%p189_p3)  ;;  %v331_v22 = vld [vmem:[%s932_s1 + $0x58] sm:$0xff] (!%p189_p3) }
   0xa   : > { %689 = vmatpush3.bf16.msra.mxu0 (!%p189_p3), %v336_v3  ;;  %728 = vmatpush3.bf16.msra.mxu1 (!%p189_p3), %v336_v3  ;;  %v340_v20 = vpack.c.bf16 (!%p189_p3), %v329_v19, %v328_v18  ;;  %v341_v23 = vpack.c.bf16 (!%p189_p3), %v331_v22, %v330_v21  ;;  %v332_v24 = vld [vmem:[%s932_s1 + $0x60] sm:$0xff] (!%p189_p3)  ;;  %v333_v25 = vld [vmem:[%s932_s1 + $0x68] sm:$0xff] (!%p189_p3)  ;;  %v334_v27 = vld [vmem:[%s932_s1 + $0x70] sm:$0xff] (!%p189_p3) }
   0xb   : > { %690 = vmatprep.subr.bf16.mxu0 (!%p189_p3), %v337_v5  ;;  %721 = vmatprep.subr.bf16.mxu1 (!%p189_p3), %v337_v5  ;;  %v342_v26 = vpack.c.bf16 (!%p189_p3), %v333_v25, %v332_v24  ;;  %v335_v28 = vld [vmem:[%s932_s1 + $0x78] sm:$0xff] (!%p189_p3)  ;;  %v669_v48 = vld [vmem:[%s933_s2] ss:$0 sm:$0xff] (!%p189_p3) }
   0xc   : > { %v343_v29 = vpack.c.bf16 (!%p189_p3), %v335_v28, %v334_v27 }
   0xe   : > { %s940_s22 = smov (!%p230_p4, %s665_s22), 31  ;;  %691 = vmatpush3.bf16.msra.mxu0 %v337_v5  ;;  %729 = vmatpush3.bf16.msra.mxu1 %v337_v5 }
   0xf   : > { %s666_s29 = sshll.u32 %s940_s22, 3  ;;  %692 = vmatprep.subr.bf16.mxu0 %v338_v8  ;;  %722 = vmatprep.subr.bf16.mxu1 %v338_v8 }
  0x10   : > { %s854_s9 = scalar_lea.vmem %s931_s0, %s666_s29  ;;  %s904_s8 = scalar_lea.vmem %s934_s3, %s666_s29 }
  0x11   : > { %v296_v11 = vld [vmem:[%s854_s9] sm:$0xff]  ;;  %v297_v12 = vld [vmem:[%s854_s9 + $0x8] sm:$0xff]  ;;  %v298_v30 = vld [vmem:[%s854_s9 + $0x10] sm:$0xff] }
  0x12   : > { %v304_v13 = vld [vmem:[%s854_s9 + $0x40] sm:$0xff]  ;;  %v312_v14 = vpack.c.bf16 %v297_v12, %v296_v11  ;;  %v305_v15 = vld [vmem:[%s854_s9 + $0x48] sm:$0xff]  ;;  %693 = vmatpush3.bf16.msra.mxu0 %v338_v8  ;;  %730 = vmatpush3.bf16.msra.mxu1 %v338_v8  ;;  %v299_v31 = vld [vmem:[%s854_s9 + $0x18] sm:$0xff] }
  0x13   : > { %v316_v17 = vpack.c.bf16 %v305_v15, %v304_v13  ;;  %694 = vmatprep.subr.bf16.mxu0 %v339_v16  ;;  %723 = vmatprep.subr.bf16.mxu1 %v339_v16  ;;  %v306_v32 = vld [vmem:[%s854_s9 + $0x50] sm:$0xff]  ;;  %v307_v33 = vld [vmem:[%s854_s9 + $0x58] sm:$0xff]  ;;  %v300_v34 = vld [vmem:[%s854_s9 + $0x20] sm:$0xff]  ;;  %v313_v38 = vpack.c.bf16 %v299_v31, %v298_v30 }
  0x14   : > { %704 = vmatprep.mubr.bf16.mxu0 %v312_v14  ;;  %v301_v35 = vld [vmem:[%s854_s9 + $0x28] sm:$0xff]  ;;  %v308_v36 = vld [vmem:[%s854_s9 + $0x60] sm:$0xff]  ;;  %v317_v39 = vpack.c.bf16 %v307_v33, %v306_v32  ;;  %v302_v42 = vld [vmem:[%s854_s9 + $0x30] sm:$0xff] }
  0x15   : > { %712 = vmatprep.mubr.bf16.mxu1 %v316_v17  ;;  %v309_v37 = vld [vmem:[%s854_s9 + $0x68] sm:$0xff]  ;;  %v314_v40 = vpack.c.bf16 %v301_v35, %v300_v34  ;;  %v303_v43 = vld [vmem:[%s854_s9 + $0x38] sm:$0xff]  ;;  %v310_v44 = vld [vmem:[%s854_s9 + $0x70] sm:$0xff] }
  0x16   : > { %695 = vmatpush3.bf16.msra.mxu0 %v339_v16  ;;  %731 = vmatpush3.bf16.msra.mxu1 %v339_v16  ;;  %v318_v41 = vpack.c.bf16 %v309_v37, %v308_v36  ;;  %v311_v45 = vld [vmem:[%s854_s9 + $0x78] sm:$0xff]  ;;  %v315_v46 = vpack.c.bf16 %v303_v43, %v302_v42 }
  0x17   : > { %696 = vmatprep.subr.bf16.mxu0 %v340_v20  ;;  %724 = vmatprep.subr.bf16.mxu1 %v340_v20  ;;  %v319_v47 = vpack.c.bf16 %v311_v45, %v310_v44 }
  0x1a   : > { %697 = vmatpush3.bf16.msra.mxu0 %v340_v20  ;;  %732 = vmatpush3.bf16.msra.mxu1 %v340_v20 }
  0x1b   : > { %698 = vmatprep.subr.bf16.mxu0 %v341_v23  ;;  %725 = vmatprep.subr.bf16.mxu1 %v341_v23 }
  0x1e   : > { %699 = vmatpush3.bf16.msra.mxu0 %v341_v23  ;;  %733 = vmatpush3.bf16.msra.mxu1 %v341_v23 }
  0x1f   : > { %700 = vmatprep.subr.bf16.mxu0 %v342_v26  ;;  %726 = vmatprep.subr.bf16.mxu1 %v342_v26 }
  0x22   : > { %701 = vmatpush3.bf16.msra.mxu0 %v342_v26  ;;  %734 = vmatpush3.bf16.msra.mxu1 %v342_v26 }
  0x23   : > { %702 = vmatprep.subr.bf16.mxu0 %v343_v29  ;;  %727 = vmatprep.subr.bf16.mxu1 %v343_v29 }
  0x26   : > { %703 = vmatpush3.bf16.msra.mxu0 %v343_v29  ;;  %735 = vmatpush3.bf16.msra.mxu1 %v343_v29 }
  0x29   : > { %705 = vmatmul.mubr.bf16.vlgmr.msra.gmra.mrb[0].mxu0 %v313_v38  ;;  %713 = vmatmul.mubr.bf16.vlgmr.msra.gmra.mrb[0].mxu1 %v317_v39 }
  0x2a   : > { %708 = vmatprep.mubr.bf16.mxu0 %v314_v40  ;;  %716 = vmatprep.mubr.bf16.mxu1 %v318_v41 }
  0x31   : > { %709 = vmatmul.mubr.bf16.gmra.mrb[4].mxu0 %v315_v46  ;;  %717 = vmatmul.mubr.bf16.gmra.mrb[4].mxu1 %v319_v47 }
  0xfc   : > { %v706_v49 = vpop.f32.mrb[0].mxu0  ;;  %v714_v50 = vpop.f32.mrb[0].mxu1 }
  0xfd   : > { %v501_v51 = vadd.f32 %v706_v49, %v669_v48  ;;  %v509_v52 = vadd.f32 %v714_v50, %v669_v48  ;;  %v378_v53 = vpop.f32.mrb[1].mxu0  ;;  %v410_v54 = vpop.f32.mrb[1].mxu1 }
  0xfe   : > { %v499_v55 = vadd.f32 %v669_v48, %v378_v53  ;;  %v507_v56 = vadd.f32 %v669_v48, %v410_v54  ;;  %v707_v57 = vpop.f32.mrb[2].mxu0  ;;  %v715_v58 = vpop.f32.mrb[2].mxu1 }
  0xff   : > { %v517_v59 = vmax.f32 %v501_v51, 0.0  ;;  %v525_v60 = vmax.f32 %v509_v52, 0.0  ;;  %v502_v61 = vadd.f32 %v707_v57, %v669_v48  ;;  %v510_v62 = vadd.f32 %v715_v58, %v669_v48  ;;  %v381_v63 = vpop.f32.mrb[3].mxu0  ;;  %v413_v0 = vpop.f32.mrb[3].mxu1 }
 0x100   : > { %v515_v1 = vmax.f32 %v499_v55, 0.0  ;;  %v523_v2 = vmax.f32 %v507_v56, 0.0  ;;  %v500_v3 = vadd.f32 %v669_v48, %v381_v63  ;;  %v508_v4 = vadd.f32 %v669_v48, %v413_v0 }
 0x101   : > { %533 = vst [vmem:[%s904_s8 + $0x10] sm:$0xff] %v517_v59  ;;  %541 = vst [vmem:[%s904_s8 + $0x50] sm:$0xff] %v525_v60  ;;  %v518_v5 = vmax.f32 %v502_v61, 0.0  ;;  %v526_v6 = vmax.f32 %v510_v62, 0.0 }
 0x102   : > { %531 = vst [vmem:[%s904_s8] sm:$0xff] %v515_v1  ;;  %539 = vst [vmem:[%s904_s8 + $0x40] sm:$0xff] %v523_v2  ;;  %v516_v7 = vmax.f32 %v500_v3, 0.0  ;;  %v524_v8 = vmax.f32 %v508_v4, 0.0 }
 0x103   : > { %534 = vst [vmem:[%s904_s8 + $0x18] sm:$0xff] %v518_v5  ;;  %542 = vst [vmem:[%s904_s8 + $0x58] sm:$0xff] %v526_v6 }
 0x104   : > { %532 = vst [vmem:[%s904_s8 + $0x8] sm:$0xff] %v516_v7  ;;  %540 = vst [vmem:[%s904_s8 + $0x48] sm:$0xff] %v524_v8  ;;  %v710_v9 = vpop.f32.mrb[4].mxu0  ;;  %v718_v10 = vpop.f32.mrb[4].mxu1 }
 0x105   : > { %v505_v11 = vadd.f32 %v710_v9, %v669_v48  ;;  %v513_v12 = vadd.f32 %v718_v10, %v669_v48  ;;  %v394_v13 = vpop.f32.mrb[5].mxu0  ;;  %v426_v14 = vpop.f32.mrb[5].mxu1 }
 0x106   : > { %v503_v15 = vadd.f32 %v669_v48, %v394_v13  ;;  %v511_v16 = vadd.f32 %v669_v48, %v426_v14  ;;  %v711_v17 = vpop.f32.mrb[6].mxu0  ;;  %v719_v18 = vpop.f32.mrb[6].mxu1 }
 0x107   : > { %v521_v19 = vmax.f32 %v505_v11, 0.0  ;;  %v529_v20 = vmax.f32 %v513_v12, 0.0  ;;  %v506_v21 = vadd.f32 %v711_v17, %v669_v48  ;;  %v514_v22 = vadd.f32 %v719_v18, %v669_v48  ;;  %v397_v23 = vpop.f32.mrb[7].mxu0  ;;  %v429_v24 = vpop.f32.mrb[7].mxu1 }
 0x108   : > { %v519_v25 = vmax.f32 %v503_v15, 0.0  ;;  %v527_v26 = vmax.f32 %v511_v16, 0.0  ;;  %v504_v27 = vadd.f32 %v669_v48, %v397_v23  ;;  %v512_v28 = vadd.f32 %v669_v48, %v429_v24 }
 0x109   : > { %537 = vst [vmem:[%s904_s8 + $0x30] sm:$0xff] %v521_v19  ;;  %545 = vst [vmem:[%s904_s8 + $0x70] sm:$0xff] %v529_v20  ;;  %v522_v29 = vmax.f32 %v506_v21, 0.0  ;;  %v530_v30 = vmax.f32 %v514_v22, 0.0 }
 0x10a   : > { %535 = vst [vmem:[%s904_s8 + $0x20] sm:$0xff] %v519_v25  ;;  %543 = vst [vmem:[%s904_s8 + $0x60] sm:$0xff] %v527_v26  ;;  %v520_v31 = vmax.f32 %v504_v27, 0.0  ;;  %v528_v32 = vmax.f32 %v512_v28, 0.0 }
 0x10b   : > { %538 = vst [vmem:[%s904_s8 + $0x38] sm:$0xff] %v522_v29  ;;  %546 = vst [vmem:[%s904_s8 + $0x78] sm:$0xff] %v530_v30 }
 0x10c   : > { %536 = vst [vmem:[%s904_s8 + $0x28] sm:$0xff] %v520_v31  ;;  %544 = vst [vmem:[%s904_s8 + $0x68] sm:$0xff] %v528_v32 }
 0x10d PF: > { %s13_s14 = sadd.s32 1, %s782_s14   ;;  %s935_s12 = smov %s778_s13 }
 0x10e   : > { %p10_p5 = scmp.ge.s32.totalorder %s13_s14, 4   ;;  %s936_s13 = smov %s938_s15 }
 0x110   :  { %12 = sbr.rel (!%p10_p5) target bundleno = 2 (0x2), region = 76 }

// kernel: run.56
= control target key start
LH: loop header
LB: loop body
LE: loop exit
PB: predicated region body
PF: predicated region fallthrough
CT: control target
= control target key end

     0   :  { %s680_s12 = smov 0   ;;  %s682_s13 = smov 0   ;;  %s786_s0 = inlined_call_operand.vmem [shape: f32[32,256], index: 0, kind: input, shape index: {}]   ;;  %s787_s1 = inlined_call_operand.vmem [shape: f32[256,128], index: 1, kind: input, shape index: {}]   ;;  %s788_s2 = inlined_call_operand.vmem [shape: f32[1,128], index: 2, kind: input, shape index: {}]   ;;  %s789_s3 = inlined_call_operand.vmem [shape: f32[32,128], index: 3, kind: output, shape index: {}]  }
   0x1   :  { %s684_s14 = smov 0   ;;  %s686_s15 = smov 0  }
   0x2   :  { %s688_s16 = smov 0  }
   0x3 LB: > { %s25_s17 = sadd.s32 1, %s653_s15  ;;  %p48_p1 = scmp.ne.s32.totalorder %s645_s13, %s641_s12  ;;  %s657_s16 = sphi %s688_s16, %s13_s16   ;;  %s653_s15 = sphi %s686_s15, %s793_s15   ;;  %s649_s14 = sphi %s684_s14, %s792_s14   ;;  %s645_s13 = sphi %s682_s13, %s791_s13   ;;  %s641_s12 = sphi %s680_s12, %s790_s12  }
   0x4   : > { %p26_p0 = scmp.ge.s32.totalorder %s25_s17, 2  ;;  %p49_p2 = scmp.eq.s32.totalorder %s657_s16, 0 }
   0x5   : > { %s41_s19 = sadd.s32 1, %s645_s13  ;;  %p534_p5 = scmp.ge.s32.totalorder %s657_s16, 2 }
   0x6   : > { %s795_s17 = smov (%p26_p0, %s25_s17), 0  ;;  %p50_p3 = por %p49_p2, %p48_p1 }
   0x7   : > { %s37_s18 = ssub.s32 %s653_s15, %s795_s17  ;;  %162 = sbr.rel (%p534_p5) target bundleno = 21 (0x15), region = 20 }
   0x8   : > { %p39_p4 = scmp.eq.s32.totalorder %s37_s18, 0 }
   0xa   : > { %s715_s20 = scalar_select %p39_p4, %s645_s13, %s41_s19  }
   0xe   : > { %165 = sbr.rel (!%p50_p3) target bundleno = 21 (0x15), region = 24  ;;  %s167_s21 = sand.u32 (%p50_p3), 1, %s645_s13  }
   0xf   : > { %s536_s22 = sshll.u32 (%p50_p3), %s653_s15, 3  ;;  %s535_s23 = sshll.u32 (%p50_p3), %s167_s21, 5 }
  0x10   : > { %s174_s26 = scalar_lea.vmem (%p50_p3), %s786_s0, %s536_s22  ;;  %s169_s27 = scalar_lea.vmem (%p50_p3), [#allocation3], %s535_s23 }
  0x11   : > { %v208_v0 = vld [vmem:[%s174_s26] sm:$0xff] (%p50_p3)  ;;  %v210_v1 = vld [vmem:[%s174_s26 + $0x10] sm:$0xff] (%p50_p3) }
  0x12   : > { %v212_v2 = vld [vmem:[%s174_s26 + $0x20] sm:$0xff] (%p50_p3)  ;;  %209 = vst [vmem:[%s169_s27] sm:$0xff] (%p50_p3), %v208_v0  ;;  %211 = vst [vmem:[%s169_s27 + $0x8] sm:$0xff] (%p50_p3), %v210_v1  ;;  %v214_v3 = vld [vmem:[%s174_s26 + $0x30] sm:$0xff] (%p50_p3) }
  0x13   : > { %213 = vst [vmem:[%s169_s27 + $0x10] sm:$0xff] (%p50_p3), %v212_v2  ;;  %215 = vst [vmem:[%s169_s27 + $0x18] sm:$0xff] (%p50_p3), %v214_v3 }
  0x15 PF: > { %p537_p6 = scmp.ge.s32.totalorder %s657_s16, 1  ;;  %p232_p7 = scmp.lt.s32.totalorder %s657_s16, 3 }
  0x17   : > { %p233_p8 = pnand %p537_p6, %p232_p7 }
  0x18   : > { %s239_s28 = sand.u32 (!%p233_p8), 1, %s641_s12   ;;  %s539_s29 = sshll.u32 (!%p233_p8), %s649_s14, 4 }
  0x19   : > { %236 = sbr.rel (%p233_p8) target bundleno = 302 (0x12e), region = 66  ;;  %s538_s30 = sshll.u32 (!%p233_p8), %s239_s28, 5 }
  0x1a   : > { %p278_p9 = scmp.lt.s32.totalorder (!%p233_p8), %s539_s29, 31  ;;  %s732_s8 = scalar_lea.vmem (!%p233_p8), [#allocation3], %s538_s30 }
  0x1b   : > { %p541_p10 = scmp.ne.s32.totalorder (!%p233_p8), %s649_s14, 0 }
  0x20   : > { %s797_s29 = smov (!%p278_p9, %s539_s29), 31  ;;  %302 = sbr.rel (%p541_p10) target bundleno = 39 (0x27), region = 74 }
  0x21   : > { %s540_s4 = sshll.u32 %s797_s29, 3  ;;  %v659_v4 = vmov (!%p541_p10), 0.0  }
  0x22   : > { %s730_s7 = scalar_lea.vmem %s787_s1, %s540_s4  ;;  %303 = vst [vmem:[#allocation2] sm:$0xff] (!%p541_p10), %v659_v4  ;;  %304 = vst [vmem:[#allocation2 + $0x8] sm:$0xff] (!%p541_p10), %v659_v4 }
  0x23   : > { %305 = vst [vmem:[#allocation2 + $0x10] sm:$0xff] (!%p541_p10), %v659_v4  ;;  %306 = vst [vmem:[#allocation2 + $0x18] sm:$0xff] (!%p541_p10), %v659_v4 }
  0x27 PF: > { %v317_v5 = vld [vmem:[%s730_s7] sm:$0xff]  ;;  %v318_v6 = vld [vmem:[%s730_s7 + $0x8] sm:$0xff]  ;;  %v319_v7 = vld [vmem:[%s730_s7 + $0x10] sm:$0xff]  ;;  %p542_p11 = scmp.ne.s32.totalorder %s649_s14, 1 }
  0x28   : > { %v333_v8 = vpack.c.bf16 %v318_v6, %v317_v5  ;;  %v320_v9 = vld [vmem:[%s730_s7 + $0x18] sm:$0xff]  ;;  %v321_v11 = vld [vmem:[%s730_s7 + $0x20] sm:$0xff]  ;;  %v322_v12 = vld [vmem:[%s730_s7 + $0x28] sm:$0xff] }
  0x29   : > { %v334_v10 = vpack.c.bf16 %v320_v9, %v319_v7  ;;  %v335_v13 = vpack.c.bf16 %v322_v12, %v321_v11  ;;  %v311_v14 = vld [vmem:[%s732_s8] sm:$0xff]  ;;  %v312_v15 = vld [vmem:[%s732_s8 + $0x8] sm:$0xff]  ;;  %v323_v16 = vld [vmem:[%s730_s7 + $0x30] sm:$0xff] }
  0x2a   : > { %558 = vmatprep.subr.bf16.mxu0 %v333_v8  ;;  %v324_v17 = vld [vmem:[%s730_s7 + $0x38] sm:$0xff]  ;;  %v315_v18 = vpack.c.bf16 %v312_v15, %v311_v14  ;;  %v325_v20 = vld [vmem:[%s730_s7 + $0x40] sm:$0xff]  ;;  %v326_v21 = vld [vmem:[%s730_s7 + $0x48] sm:$0xff] }
  0x2b   : > { %559 = vmatpush3.bf16.msra.mxu0 %v333_v8  ;;  %v336_v19 = vpack.c.bf16 %v324_v17, %v323_v16  ;;  %v337_v22 = vpack.c.bf16 %v326_v21, %v325_v20  ;;  %v327_v23 = vld [vmem:[%s730_s7 + $0x50] sm:$0xff]  ;;  %v328_v24 = vld [vmem:[%s730_s7 + $0x58] sm:$0xff]  ;;  %v329_v26 = vld [vmem:[%s730_s7 + $0x60] sm:$0xff] }
  0x2c   : > { %560 = vmatprep.subr.bf16.mxu0 %v334_v10  ;;  %574 = vmatprep.mubr.bf16.mxu0 %v315_v18  ;;  %v338_v25 = vpack.c.bf16 %v328_v24, %v327_v23  ;;  %v330_v27 = vld [vmem:[%s730_s7 + $0x68] sm:$0xff]  ;;  %v331_v29 = vld [vmem:[%s730_s7 + $0x70] sm:$0xff]  ;;  %v332_v30 = vld [vmem:[%s730_s7 + $0x78] sm:$0xff] }
  0x2d   : > { %v339_v28 = vpack.c.bf16 %v330_v27, %v329_v26  ;;  %v340_v31 = vpack.c.bf16 %v332_v30, %v331_v29  ;;  %v313_v32 = vld [vmem:[%s732_s8 + $0x10] sm:$0xff]  ;;  %v314_v33 = vld [vmem:[%s732_s8 + $0x18] sm:$0xff]  ;;  %v307_v36 = vld [vmem:[#allocation2] sm:$0xff] }
  0x2e   : > { %v316_v34 = vpack.c.bf16 %v314_v33, %v313_v32  ;;  %v309_v35 = vld [vmem:[#allocation2 + $0x10] sm:$0xff]  ;;  %v310_v38 = vld [vmem:[#allocation2 + $0x18] sm:$0xff]  ;;  %v308_v41 = vld [vmem:[#allocation2 + $0x8] sm:$0xff] }
  0x2f   : > { %561 = vmatpush3.bf16.msra.mxu0 %v334_v10  ;;  %v543_v48 = vld [vmem:[%s788_s2] ss:$0 sm:$0xff] (!%p542_p11) }
  0x30   : > { %562 = vmatprep.subr.bf16.mxu0 %v335_v13 }
  0x33   : > { %563 = vmatpush3.bf16.msra.mxu0 %v335_v13 }
  0x34   : > { %564 = vmatprep.subr.bf16.mxu0 %v336_v19 }
  0x37   : > { %565 = vmatpush3.bf16.msra.mxu0 %v336_v19 }
  0x38   : > { %566 = vmatprep.subr.bf16.mxu0 %v337_v22 }
  0x3b   : > { %567 = vmatpush3.bf16.msra.mxu0 %v337_v22 }
  0x3c   : > { %568 = vmatprep.subr.bf16.mxu0 %v338_v25 }
  0x3f   : > { %569 = vmatpush3.bf16.msra.mxu0 %v338_v25 }
  0x40   : > { %570 = vmatprep.subr.bf16.mxu0 %v339_v28 }
  0x43   : > { %571 = vmatpush3.bf16.msra.mxu0 %v339_v28 }
  0x44   : > { %572 = vmatprep.subr.bf16.mxu0 %v340_v31 }
  0x47   : > { %573 = vmatpush3.bf16.msra.mxu0 %v340_v31 }
  0x4a   : > { %575 = vmatmul.mubr.bf16.vlgmr.msra.gmra.mrb[0].mxu0 %v316_v34 }
 0x11d   : > { %v576_v37 = vpop.f32.mrb[0].mxu0  ;;  %401 = sbr.rel (%p542_p11) target bundleno = 302 (0x12e), region = 78 }
 0x11e   : > { %v392_v39 = vadd.f32 %v576_v37, %v309_v35  ;;  %v375_v40 = vpop.f32.mrb[1].mxu0 }
 0x11f   : > { %v390_v42 = vadd.f32 %v375_v40, %v307_v36  ;;  %v577_v43 = vpop.f32.mrb[2].mxu0 }
 0x120   : > { %396 = vst [vmem:[#allocation2 + $0x10] sm:$0xff] %v392_v39  ;;  %v393_v44 = vadd.f32 %v577_v43, %v310_v38  ;;  %v378_v45 = vpop.f32.mrb[3].mxu0 }
 0x121   : > { %394 = vst [vmem:[#allocation2] sm:$0xff] %v390_v42  ;;  %v391_v46 = vadd.f32 %v378_v45, %v308_v41 }
 0x122   : > { %397 = vst [vmem:[#allocation2 + $0x18] sm:$0xff] %v393_v44 }
 0x123   : > { %395 = vst [vmem:[#allocation2 + $0x8] sm:$0xff] %v391_v46 }
 0x127   : > { %v404_v52 = vld [vmem:[#allocation2 + $0x10] sm:$0xff] }
 0x128   : > { %v402_v47 = vld [vmem:[#allocation2] sm:$0xff]  ;;  %v415_v54 = vadd.f32 %v543_v48, %v404_v52 }
 0x129   : > { %v413_v50 = vadd.f32 %v543_v48, %v402_v47  ;;  %v405_v53 = vld [vmem:[#allocation2 + $0x18] sm:$0xff] }
 0x12a   : > { %v403_v49 = vld [vmem:[#allocation2 + $0x8] sm:$0xff]  ;;  %v416_v55 = vadd.f32 %v543_v48, %v405_v53  ;;  %419 = vst [vmem:[%s789_s3 + $0x10] sm:$0xff] %v415_v54 }
 0x12b   : > { %v414_v51 = vadd.f32 %v543_v48, %v403_v49  ;;  %417 = vst [vmem:[%s789_s3] sm:$0xff] %v413_v50 }
 0x12c   : > { %420 = vst [vmem:[%s789_s3 + $0x18] sm:$0xff] %v416_v55 }
 0x12d   : > { %418 = vst [vmem:[%s789_s3 + $0x8] sm:$0xff] %v414_v51 }
 0x12e PF: > { %s13_s16 = sadd.s32 1, %s657_s16   ;;  %s790_s12 = smov %s645_s13 }
 0x12f   : > { %p10_p12 = scmp.ge.s32.totalorder %s13_s16, 4   ;;  %s791_s13 = smov %s715_s20 }
 0x130   : > { %s792_s14 = smov %s653_s15  ;;  %s793_s15 = smov %s795_s17 }
 0x131   :  { %12 = sbr.rel (!%p10_p12) target bundleno = 3 (0x3), region = 119 }

// kernel: run.57
= control target key start
LH: loop header
LB: loop body
LE: loop exit
PB: predicated region body
PF: predicated region fallthrough
CT: control target
= control target key end

     0   :  { %s266_s1 = inlined_call_operand.vmem [shape: f32[128,128], index: 1, kind: input, shape index: {}]   ;;  %s267_s0 = inlined_call_operand.vmem [shape: f32[32,128], index: 0, kind: input, shape index: {}]   ;;  %s268_s2 = inlined_call_operand.vmem [shape: f32[1,128], index: 2, kind: input, shape index: {}]   ;;  %s269_s3 = inlined_call_operand.vmem [shape: f32[32,128], index: 3, kind: output, shape index: {}]  }
   0x1   :  { %v33_v0 = vld [vmem:[%s266_s1] sm:$0xff]  ;;  %v34_v1 = vld [vmem:[%s266_s1 + $0x8] sm:$0xff]  ;;  %v35_v2 = vld [vmem:[%s266_s1 + $0x10] sm:$0xff] }
   0x2   :  { %v49_v3 = vpack.c.bf16 %v34_v1, %v33_v0  ;;  %v36_v4 = vld [vmem:[%s266_s1 + $0x18] sm:$0xff]  ;;  %v37_v6 = vld [vmem:[%s266_s1 + $0x20] sm:$0xff]  ;;  %v38_v7 = vld [vmem:[%s266_s1 + $0x28] sm:$0xff] }
   0x3   :  { %v50_v5 = vpack.c.bf16 %v36_v4, %v35_v2  ;;  %v51_v8 = vpack.c.bf16 %v38_v7, %v37_v6  ;;  %v27_v9 = vld [vmem:[%s267_s0] sm:$0xff]  ;;  %v28_v10 = vld [vmem:[%s267_s0 + $0x8] sm:$0xff]  ;;  %v39_v11 = vld [vmem:[%s266_s1 + $0x30] sm:$0xff] }
   0x4   :  { %151 = vmatprep.subr.bf16.mxu0 %v49_v3  ;;  %v40_v12 = vld [vmem:[%s266_s1 + $0x38] sm:$0xff]  ;;  %v31_v13 = vpack.c.bf16 %v28_v10, %v27_v9  ;;  %v41_v15 = vld [vmem:[%s266_s1 + $0x40] sm:$0xff]  ;;  %v42_v16 = vld [vmem:[%s266_s1 + $0x48] sm:$0xff] }
   0x5   :  { %152 = vmatpush3.bf16.msra.mxu0 %v49_v3  ;;  %v52_v14 = vpack.c.bf16 %v40_v12, %v39_v11  ;;  %v53_v17 = vpack.c.bf16 %v42_v16, %v41_v15  ;;  %v43_v18 = vld [vmem:[%s266_s1 + $0x50] sm:$0xff]  ;;  %v44_v19 = vld [vmem:[%s266_s1 + $0x58] sm:$0xff]  ;;  %v45_v21 = vld [vmem:[%s266_s1 + $0x60] sm:$0xff] }
   0x6   :  { %153 = vmatprep.subr.bf16.mxu0 %v50_v5  ;;  %167 = vmatprep.mubr.bf16.mxu0 %v31_v13  ;;  %v54_v20 = vpack.c.bf16 %v44_v19, %v43_v18  ;;  %v46_v22 = vld [vmem:[%s266_s1 + $0x68] sm:$0xff]  ;;  %v47_v24 = vld [vmem:[%s266_s1 + $0x70] sm:$0xff]  ;;  %v48_v25 = vld [vmem:[%s266_s1 + $0x78] sm:$0xff] }
   0x7   :  { %v55_v23 = vpack.c.bf16 %v46_v22, %v45_v21  ;;  %v56_v26 = vpack.c.bf16 %v48_v25, %v47_v24  ;;  %v29_v27 = vld [vmem:[%s267_s0 + $0x10] sm:$0xff]  ;;  %v30_v28 = vld [vmem:[%s267_s0 + $0x18] sm:$0xff]  ;;  %v140_v30 = vld [vmem:[%s268_s2] ss:$0 sm:$0xff] }
   0x8   :  { %v32_v29 = vpack.c.bf16 %v30_v28, %v29_v27 }
   0x9   :  { %154 = vmatpush3.bf16.msra.mxu0 %v50_v5 }
   0xa   :  { %155 = vmatprep.subr.bf16.mxu0 %v51_v8 }
   0xd   :  { %156 = vmatpush3.bf16.msra.mxu0 %v51_v8 }
   0xe   :  { %157 = vmatprep.subr.bf16.mxu0 %v52_v14 }
  0x11   :  { %158 = vmatpush3.bf16.msra.mxu0 %v52_v14 }
  0x12   :  { %159 = vmatprep.subr.bf16.mxu0 %v53_v17 }
  0x15   :  { %160 = vmatpush3.bf16.msra.mxu0 %v53_v17 }
  0x16   :  { %161 = vmatprep.subr.bf16.mxu0 %v54_v20 }
  0x19   :  { %162 = vmatpush3.bf16.msra.mxu0 %v54_v20 }
  0x1a   :  { %163 = vmatprep.subr.bf16.mxu0 %v55_v23 }
  0x1d   :  { %164 = vmatpush3.bf16.msra.mxu0 %v55_v23 }
  0x1e   :  { %165 = vmatprep.subr.bf16.mxu0 %v56_v26 }
  0x21   :  { %166 = vmatpush3.bf16.msra.mxu0 %v56_v26 }
  0x24   :  { %168 = vmatmul.mubr.bf16.vlgmr.msra.gmra.mrb[0].mxu0 %v32_v29 }
  0xf7   :  { %v169_v31 = vpop.f32.mrb[0].mxu0 }
  0xf8   :  { %v130_v32 = vadd.f32 %v169_v31, %v140_v30  ;;  %v91_v33 = vpop.f32.mrb[1].mxu0 }
  0xf9   :  { %v128_v34 = vadd.f32 %v140_v30, %v91_v33  ;;  %v170_v35 = vpop.f32.mrb[2].mxu0 }
  0xfa   :  { %134 = vst [vmem:[%s269_s3 + $0x10] sm:$0xff] %v130_v32  ;;  %v131_v36 = vadd.f32 %v170_v35, %v140_v30  ;;  %v94_v37 = vpop.f32.mrb[3].mxu0 }
  0xfb   :  { %132 = vst [vmem:[%s269_s3] sm:$0xff] %v128_v34  ;;  %v129_v38 = vadd.f32 %v140_v30, %v94_v37 }
  0xfc   :  { %135 = vst [vmem:[%s269_s3 + $0x18] sm:$0xff] %v131_v36 }
  0xfd   :  { %133 = vst [vmem:[%s269_s3 + $0x8] sm:$0xff] %v129_v38 }

// kernel: run.59
= control target key start
LH: loop header
LB: loop body
LE: loop exit
PB: predicated region body
PF: predicated region fallthrough
CT: control target
= control target key end

     0   :  { %s294_s1 = inlined_call_operand.vmem [shape: f32[128,128], index: 1, kind: input, shape index: {}]   ;;  %s295_s0 = inlined_call_operand.vmem [shape: f32[32,128], index: 0, kind: input, shape index: {}]   ;;  %s296_s2 = inlined_call_operand.vmem [shape: f32[1,128], index: 2, kind: input, shape index: {}]   ;;  %s297_s3 = inlined_call_operand.vmem [shape: f32[32,128], index: 3, kind: input, shape index: {}]   ;;  %s298_s4 = inlined_call_operand.vmem [shape: f32[32,128], index: 4, kind: output, shape index: {}]  }
   0x1   :  { %v36_v0 = vld [vmem:[%s294_s1] sm:$0xff]  ;;  %v37_v1 = vld [vmem:[%s294_s1 + $0x8] sm:$0xff]  ;;  %v38_v2 = vld [vmem:[%s294_s1 + $0x10] sm:$0xff] }
   0x2   :  { %v52_v3 = vpack.c.bf16 %v37_v1, %v36_v0  ;;  %v39_v4 = vld [vmem:[%s294_s1 + $0x18] sm:$0xff]  ;;  %v40_v6 = vld [vmem:[%s294_s1 + $0x20] sm:$0xff]  ;;  %v41_v7 = vld [vmem:[%s294_s1 + $0x28] sm:$0xff] }
   0x3   :  { %v53_v5 = vpack.c.bf16 %v39_v4, %v38_v2  ;;  %v54_v8 = vpack.c.bf16 %v41_v7, %v40_v6  ;;  %v30_v9 = vld [vmem:[%s295_s0] sm:$0xff]  ;;  %v31_v10 = vld [vmem:[%s295_s0 + $0x8] sm:$0xff]  ;;  %v42_v11 = vld [vmem:[%s294_s1 + $0x30] sm:$0xff] }
   0x4   :  { %162 = vmatprep.subr.bf16.mxu0 %v52_v3  ;;  %v43_v12 = vld [vmem:[%s294_s1 + $0x38] sm:$0xff]  ;;  %v34_v13 = vpack.c.bf16 %v31_v10, %v30_v9  ;;  %v44_v15 = vld [vmem:[%s294_s1 + $0x40] sm:$0xff]  ;;  %v45_v16 = vld [vmem:[%s294_s1 + $0x48] sm:$0xff] }
   0x5   :  { %163 = vmatpush3.bf16.msra.mxu0 %v52_v3  ;;  %v55_v14 = vpack.c.bf16 %v43_v12, %v42_v11  ;;  %v56_v17 = vpack.c.bf16 %v45_v16, %v44_v15  ;;  %v46_v18 = vld [vmem:[%s294_s1 + $0x50] sm:$0xff]  ;;  %v47_v19 = vld [vmem:[%s294_s1 + $0x58] sm:$0xff]  ;;  %v48_v21 = vld [vmem:[%s294_s1 + $0x60] sm:$0xff] }
   0x6   :  { %164 = vmatprep.subr.bf16.mxu0 %v53_v5  ;;  %178 = vmatprep.mubr.bf16.mxu0 %v34_v13  ;;  %v57_v20 = vpack.c.bf16 %v47_v19, %v46_v18  ;;  %v49_v22 = vld [vmem:[%s294_s1 + $0x68] sm:$0xff]  ;;  %v50_v24 = vld [vmem:[%s294_s1 + $0x70] sm:$0xff]  ;;  %v51_v25 = vld [vmem:[%s294_s1 + $0x78] sm:$0xff] }
   0x7   :  { %v58_v23 = vpack.c.bf16 %v49_v22, %v48_v21  ;;  %v59_v26 = vpack.c.bf16 %v51_v25, %v50_v24  ;;  %v32_v27 = vld [vmem:[%s295_s0 + $0x10] sm:$0xff]  ;;  %v33_v28 = vld [vmem:[%s295_s0 + $0x18] sm:$0xff]  ;;  %v151_v30 = vld [vmem:[%s296_s2] ss:$0 sm:$0xff] }
   0x8   :  { %v35_v29 = vpack.c.bf16 %v33_v28, %v32_v27  ;;  %v137_v32 = vld [vmem:[%s297_s3 + $0x10] sm:$0xff]  ;;  %v135_v35 = vld [vmem:[%s297_s3] sm:$0xff]  ;;  %v138_v38 = vld [vmem:[%s297_s3 + $0x18] sm:$0xff] }
   0x9   :  { %165 = vmatpush3.bf16.msra.mxu0 %v53_v5  ;;  %v136_v42 = vld [vmem:[%s297_s3 + $0x8] sm:$0xff] }
   0xa   :  { %166 = vmatprep.subr.bf16.mxu0 %v54_v8 }
   0xd   :  { %167 = vmatpush3.bf16.msra.mxu0 %v54_v8 }
   0xe   :  { %168 = vmatprep.subr.bf16.mxu0 %v55_v14 }
  0x11   :  { %169 = vmatpush3.bf16.msra.mxu0 %v55_v14 }
  0x12   :  { %170 = vmatprep.subr.bf16.mxu0 %v56_v17 }
  0x15   :  { %171 = vmatpush3.bf16.msra.mxu0 %v56_v17 }
  0x16   :  { %172 = vmatprep.subr.bf16.mxu0 %v57_v20 }
  0x19   :  { %173 = vmatpush3.bf16.msra.mxu0 %v57_v20 }
  0x1a   :  { %174 = vmatprep.subr.bf16.mxu0 %v58_v23 }
  0x1d   :  { %175 = vmatpush3.bf16.msra.mxu0 %v58_v23 }
  0x1e   :  { %176 = vmatprep.subr.bf16.mxu0 %v59_v26 }
  0x21   :  { %177 = vmatpush3.bf16.msra.mxu0 %v59_v26 }
  0x24   :  { %179 = vmatmul.mubr.bf16.vlgmr.msra.gmra.mrb[0].mxu0 %v35_v29 }
  0xf7   :  { %v180_v31 = vpop.f32.mrb[0].mxu0 }
  0xf8   :  { %v133_v33 = vadd.f32 %v180_v31, %v151_v30  ;;  %v94_v34 = vpop.f32.mrb[1].mxu0 }
  0xf9   :  { %v131_v36 = vadd.f32 %v151_v30, %v94_v34  ;;  %v181_v37 = vpop.f32.mrb[2].mxu0 }
  0xfa   :  { %v141_v39 = vadd.f32 %v137_v32, %v133_v33  ;;  %v134_v40 = vadd.f32 %v181_v37, %v151_v30  ;;  %v97_v41 = vpop.f32.mrb[3].mxu0 }
  0xfb   :  { %v139_v43 = vadd.f32 %v135_v35, %v131_v36  ;;  %v132_v44 = vadd.f32 %v151_v30, %v97_v41 }
  0xfc   :  { %145 = vst [vmem:[%s298_s4 + $0x10] sm:$0xff] %v141_v39  ;;  %v142_v45 = vadd.f32 %v138_v38, %v134_v40 }
  0xfd   :  { %143 = vst [vmem:[%s298_s4] sm:$0xff] %v139_v43  ;;  %v140_v46 = vadd.f32 %v136_v42, %v132_v44 }
  0xfe   :  { %146 = vst [vmem:[%s298_s4 + $0x18] sm:$0xff] %v142_v45 }
  0xff   :  { %144 = vst [vmem:[%s298_s4 + $0x8] sm:$0xff] %v140_v46 }

// kernel: run.58
= control target key start
LH: loop header
LB: loop body
LE: loop exit
PB: predicated region body
PF: predicated region fallthrough
CT: control target
= control target key end

     0   :  { %vm36_vm0 = vcmask 130048   ;;  %v950_v0 = vmov 0.0   ;;  %vm951_vm1 = vmmov 0   ;;  %vm19_vm2 = vcmask 7168   ;;  %s1330_s1 = inlined_call_operand.vmem [shape: f32[4,16,16], index: 1, kind: input, shape index: {}]   ;;  %s1331_s0 = inlined_call_operand.vmem [shape: f32[4,16,16], index: 0, kind: input, shape index: {}]   ;;  %s1332_s2 = inlined_call_operand.vmem [shape: f32[4,16,16], index: 2, kind: input, shape index: {}]   ;;  %s1333_s3 = inlined_call_operand.vmem [shape: f32[4,16,16], index: 3, kind: output, shape index: {}]  }
   0x1   :  { %848 = vmatprep.subr.bf16.mxu0 %v950_v0  ;;  %854 = vmatprep.subr.bf16.mxu1 %v950_v0  ;;  %v57_v1 = vld [vmem:[%s1330_s1] sm:$0xff]  ;;  %v58_v2 = vld [vmem:[%s1330_s1 + $0x8] sm:$0xff]  ;;  %37 = vst.msk [vmem:[#allocation4] sm:$0xff] %vm36_vm0, %v950_v0  ;;  %38 = vst.msk [vmem:[#allocation4 + $0x8] sm:$0xff] %vm36_vm0, %v950_v0  ;;  %v952_v29 = vmov -1e+30   ;;  %v267_v30 = vlaneseq }
   0x2   :  { %39 = vst.msk [vmem:[#allocation4 + $0x10] sm:$0xff] %vm36_vm0, %v950_v0  ;;  %40 = vst.msk [vmem:[#allocation4 + $0x18] sm:$0xff] %vm36_vm0, %v950_v0  ;;  %v59_v3 = vld [vmem:[%s1330_s1 + $0x10] sm:$0xff]  ;;  %v65_v4 = vpack.c.bf16 %v58_v2, %v57_v1  ;;  %v60_v5 = vld [vmem:[%s1330_s1 + $0x18] sm:$0xff]  ;;  %850 = vmatprep.mubr.msk.bf16.mxu0 %vm951_vm1, %v950_v0  ;;  %856 = vmatprep.mubr.msk.bf16.mxu1 %vm951_vm1, %v950_v0 }
   0x3   :  { %41 = vst.msk [vmem:[#allocation4 + $0x20] sm:$0xff] %vm36_vm0, %v950_v0  ;;  %42 = vst.msk [vmem:[#allocation4 + $0x28] sm:$0xff] %vm36_vm0, %v950_v0  ;;  %v66_v6 = vpack.c.bf16 %v60_v5, %v59_v3  ;;  %v61_v7 = vld [vmem:[%s1330_s1 + $0x20] sm:$0xff]  ;;  %v62_v9 = vld [vmem:[%s1330_s1 + $0x28] sm:$0xff]  ;;  %v268_v31 = vand.u32 127, %v267_v30 }
   0x4   :  { %43 = vst.msk [vmem:[#allocation4 + $0x30] sm:$0xff] %vm36_vm0, %v950_v0  ;;  %44 = vst.msk [vmem:[#allocation4 + $0x38] sm:$0xff] %vm36_vm0, %v950_v0  ;;  %v74_v8 = vsel %vm36_vm0, %v65_v4, 0  ;;  %v63_v10 = vld [vmem:[%s1330_s1 + $0x30] sm:$0xff]  ;;  %v64_v11 = vld [vmem:[%s1330_s1 + $0x38] sm:$0xff]  ;;  %v67_v17 = vpack.c.bf16 %v62_v9, %v61_v7  ;;  %v953_v9 = vmov 0  }
   0x5   :  { %849 = vmatpush3.bf16.xpose.msra.mxu0 %v74_v8  ;;  %v121_v12 = vsel %vm36_vm0, %v66_v6, 0  ;;  %v45_v13 = vld [vmem:[%s1331_s0] sm:$0xff]  ;;  %v46_v14 = vld [vmem:[%s1331_s0 + $0x8] sm:$0xff]  ;;  %v47_v15 = vld [vmem:[%s1331_s0 + $0x10] sm:$0xff]  ;;  %v68_v18 = vpack.c.bf16 %v64_v11, %v63_v10  ;;  %22 = vst.msk [vmem:[#allocation2 + $0x10] sm:$0xff] %vm19_vm2, %v952_v29  ;;  %vm271_vm3 = vcmp.lt.s32.totalorder %v268_v31, 15  ;;  %901 = vset.pattern.permute.xlu1 %v953_v9 }
   0x6   :  { %855 = vmatpush3.bf16.xpose.msra.mxu1 %v121_v12  ;;  %v48_v16 = vld [vmem:[%s1331_s0 + $0x18] sm:$0xff]  ;;  %860 = vmatprep.subr.bf16.mxu0 %v950_v0  ;;  %v53_v19 = vpack.c.bf16 %v46_v14, %v45_v13  ;;  %v168_v21 = vsel %vm36_vm0, %v67_v17, 0  ;;  %v49_v23 = vld [vmem:[%s1331_s0 + $0x20] sm:$0xff]  ;;  %v50_v24 = vld [vmem:[%s1331_s0 + $0x28] sm:$0xff]  ;;  %20 = vst.msk [vmem:[#allocation2] sm:$0xff] %vm19_vm2, %v952_v29 }
   0x7   :  { %866 = vmatprep.subr.bf16.mxu1 %v950_v0  ;;  %v54_v20 = vpack.c.bf16 %v48_v16, %v47_v15  ;;  %v215_v22 = vsel %vm36_vm0, %v68_v18, 0  ;;  %v51_v25 = vld [vmem:[%s1331_s0 + $0x30] sm:$0xff]  ;;  %v52_v26 = vld [vmem:[%s1331_s0 + $0x38] sm:$0xff]  ;;  %v55_v27 = vpack.c.bf16 %v50_v24, %v49_v23  ;;  %21 = vst.msk [vmem:[#allocation2 + $0x8] sm:$0xff] %vm19_vm2, %v952_v29  ;;  %23 = vst.msk [vmem:[#allocation2 + $0x18] sm:$0xff] %vm19_vm2, %v952_v29  ;;  %900 = vset.pattern.permute.xlu0 %v953_v9 }
   0x8   :  { %v56_v28 = vpack.c.bf16 %v52_v26, %v51_v25  ;;  %24 = vst.msk [vmem:[#allocation2 + $0x20] sm:$0xff] %vm19_vm2, %v952_v29  ;;  %25 = vst.msk [vmem:[#allocation2 + $0x28] sm:$0xff] %vm19_vm2, %v952_v29 }
   0x9   :  { %26 = vst.msk [vmem:[#allocation2 + $0x30] sm:$0xff] %vm19_vm2, %v952_v29  ;;  %27 = vst.msk [vmem:[#allocation2 + $0x38] sm:$0xff] %vm19_vm2, %v952_v29 }
   0xa   :  { %28 = vst.msk [vmem:[#allocation3] sm:$0xff] %vm19_vm2, %v950_v0  ;;  %29 = vst.msk [vmem:[#allocation3 + $0x8] sm:$0xff] %vm19_vm2, %v950_v0 }
   0xb   :  { %30 = vst.msk [vmem:[#allocation3 + $0x10] sm:$0xff] %vm19_vm2, %v950_v0  ;;  %31 = vst.msk [vmem:[#allocation3 + $0x18] sm:$0xff] %vm19_vm2, %v950_v0 }
   0xc   :  { %851 = vmatmul.mubr.msk.bf16.vlgmr.msra.gmra.mrb[0].mxu0 %vm36_vm0, %v53_v19  ;;  %32 = vst.msk [vmem:[#allocation3 + $0x20] sm:$0xff] %vm19_vm2, %v950_v0  ;;  %33 = vst.msk [vmem:[#allocation3 + $0x28] sm:$0xff] %vm19_vm2, %v950_v0  ;;  %v1130_v11 = vld [vmem:[#allocation2 + $0x10] sm:$0xff] }
   0xd   :  { %857 = vmatmul.mubr.msk.bf16.vlgmr.msra.gmra.mrb[0].mxu1 %vm36_vm0, %v54_v20  ;;  %861 = vmatpush3.bf16.xpose.msra.mxu0 %v168_v21  ;;  %34 = vst.msk [vmem:[#allocation3 + $0x30] sm:$0xff] %vm19_vm2, %v950_v0  ;;  %35 = vst.msk [vmem:[#allocation3 + $0x38] sm:$0xff] %vm19_vm2, %v950_v0  ;;  %v1128_v10 = vld [vmem:[#allocation2] sm:$0xff] }
   0xe   :  { %867 = vmatpush3.bf16.xpose.msra.mxu1 %v215_v22  ;;  %862 = vmatprep.mubr.msk.bf16.mxu0 %vm951_vm1, %v950_v0  ;;  %v1138_v16 = vld [vmem:[#allocation2 + $0x8] sm:$0xff]  ;;  %v1145_v18 = vld [vmem:[#allocation2 + $0x18] sm:$0xff] }
   0xf   :  { %868 = vmatprep.mubr.msk.bf16.mxu1 %vm951_vm1, %v950_v0  ;;  %872 = vmatprep.subr.bf16.mxu0 %v950_v0  ;;  %v1158_v24 = vld [vmem:[#allocation2 + $0x20] sm:$0xff] }
  0x10   :  { %878 = vmatprep.subr.bf16.mxu1 %v950_v0  ;;  %v1174_v31 = vld [vmem:[#allocation2 + $0x30] sm:$0xff] }
  0x14   :  { %863 = vmatmul.mubr.msk.bf16.vlgmr.msra.gmra.mrb[4].mxu0 %vm36_vm0, %v55_v27 }
  0x15   :  { %869 = vmatmul.mubr.msk.bf16.vlgmr.msra.gmra.mrb[4].mxu1 %vm36_vm0, %v56_v28  ;;  %874 = vmatprep.mubr.msk.bf16.mxu0 %vm951_vm1, %v950_v0  ;;  %v1169_v28 = vld [vmem:[#allocation2 + $0x28] sm:$0xff] }
  0x16   :  { %880 = vmatprep.mubr.msk.bf16.mxu1 %vm951_vm1, %v950_v0 }
  0xdf   :  { %v110_v32 = vpop.f32.mrb[0].mxu0 }
  0xe0   :  { %v258_v33 = vmul.f32 0.25, %v110_v32  ;;  %v157_v34 = vpop.f32.mrb[0].mxu1  ;;  %v852_v35 = vpop.f32.mrb[1].mxu0 }
  0xe1   :  { %v260_v36 = vmul.f32 0.25, %v157_v34  ;;  %v858_v37 = vpop.f32.mrb[1].mxu1  ;;  %v113_v38 = vpop.f32.mrb[2].mxu0  ;;  %v1184_v35 = vld [vmem:[#allocation2 + $0x38] sm:$0xff] }
  0xe2   :  { %v259_v39 = vmul.f32 0.25, %v113_v38  ;;  %v160_v40 = vpop.f32.mrb[2].mxu1  ;;  %v853_v41 = vpop.f32.mrb[3].mxu0  ;;  %v1089_v42 = vsel %vm271_vm3, %v258_v33, -1e+30 }
  0xe3   :  { %v261_v43 = vmul.f32 0.25, %v160_v40  ;;  %v859_v44 = vpop.f32.mrb[3].mxu1  ;;  %v1092_v45 = vsel %vm271_vm3, %v260_v36, -1e+30  ;;  %v288_v46 = vsel %vm36_vm0, %v1089_v42, -inf }
  0xe4   :  { %v294_v47 = vsel %vm36_vm0, %v1092_v45, -inf  ;;  %289 = vmax.xlane.f32.xlu0 %v288_v46  ;;  %v1099_v48 = vsel %vm271_vm3, %v259_v39, -1e+30  ;;  %v526_v44 = vld [vmem:[%s1332_s2 + $0x8] sm:$0xff] }
  0xe5   :  { %295 = vmax.xlane.f32.xlu1 %v294_v47  ;;  %v1102_v49 = vsel %vm271_vm3, %v261_v43, -1e+30  ;;  %v291_v50 = vsel %vm36_vm0, %v1099_v48, -inf  ;;  %v525_v43 = vld [vmem:[%s1332_s2] sm:$0xff]  ;;  %v527_v47 = vld [vmem:[%s1332_s2 + $0x10] sm:$0xff] }
  0xe6   :  { %v297_v52 = vsel %vm36_vm0, %v1102_v49, -inf  ;;  %v533_v46 = vpack.c.bf16 %v526_v44, %v525_v43  ;;  %v532_v43 = vld [vmem:[%s1332_s2 + $0x38] sm:$0xff] }
  0xe7   :  { %v204_v51 = vpop.f32.mrb[4].mxu0 }
  0xe8   :  { %292 = vmax.xlane.f32.xlu0 %v291_v50  ;;  %v262_v53 = vmul.f32 0.25, %v204_v51  ;;  %v864_v54 = vpop.f32.mrb[5].mxu0  ;;  %v251_v55 = vpop.f32.mrb[4].mxu1  ;;  %873 = vmatpush3.bf16.msra.mxu0 %v533_v46  ;;  %v528_v50 = vld [vmem:[%s1332_s2 + $0x18] sm:$0xff] }
  0xe9   :  { %298 = vmax.xlane.f32.xlu1 %v297_v52  ;;  %v207_v56 = vpop.f32.mrb[6].mxu0  ;;  %v264_v57 = vmul.f32 0.25, %v251_v55  ;;  %v870_v58 = vpop.f32.mrb[5].mxu1  ;;  %884 = vmatprep.subr.bf16.mxu0 %v950_v0  ;;  %v534_v51 = vpack.c.bf16 %v528_v50, %v527_v47 }
  0xea   :  { %v263_v59 = vmul.f32 0.25, %v207_v56  ;;  %v865_v60 = vpop.f32.mrb[7].mxu0  ;;  %v254_v61 = vpop.f32.mrb[6].mxu1  ;;  %v1109_v62 = vsel %vm271_vm3, %v262_v53, -1e+30 }
  0xeb   :  { %v265_v63 = vmul.f32 0.25, %v254_v61  ;;  %v871_v1 = vpop.f32.mrb[7].mxu1  ;;  %v300_v2 = vsel %vm36_vm0, %v1109_v62, -inf  ;;  %v1114_v3 = vsel %vm271_vm3, %v264_v57, -1e+30  ;;  %879 = vmatpush3.bf16.msra.mxu1 %v534_v51 }
  0xec   :  { %301 = vmax.xlane.f32.xlu0 %v300_v2  ;;  %v1117_v4 = vsel %vm271_vm3, %v263_v59, -1e+30  ;;  %v306_v6 = vsel %vm36_vm0, %v1114_v3, -inf  ;;  %890 = vmatprep.subr.bf16.mxu1 %v950_v0 }
  0xed   :  { %v303_v5 = vsel %vm36_vm0, %v1117_v4, -inf  ;;  %v1124_v7 = vsel %vm271_vm3, %v265_v63, -1e+30 }
  0xee   :  { %304 = vmax.xlane.f32.xlu1 %v303_v5  ;;  %v309_v8 = vsel %vm36_vm0, %v1124_v7, -inf }
  0xf0   :  { %307 = vmax.xlane.f32.xlu0 %v306_v6 }
  0xf2   :  { %310 = vmax.xlane.f32.xlu1 %v309_v8 }
 0x171   :  { %v290_v12 = vpop.xlane.xlu0 %289 }
 0x172   :  { %v296_v13 = vpop.xlane.xlu1 %295  ;;  %v1133_v14 = vmax.f32 %v1128_v10, %v290_v12 }
 0x173   :  { %v1136_v15 = vmax.f32 %v1130_v11, %v296_v13 }
 0x174   :  { %v320_v17 = vsub.f32 %v1128_v10, %v1133_v14  ;;  %729 = vst.msk [vmem:[#allocation2] sm:$0xff] %vm19_vm2, %v1133_v14  ;;  %346 = vperm.xlu0 %900, %v1133_v14  }
 0x175   :  { %v322_v19 = vsub.f32 %v1130_v11, %v1136_v15  ;;  %731 = vst.msk [vmem:[#allocation2 + $0x10] sm:$0xff] %vm19_vm2, %v1136_v15  ;;  %356 = vperm.xlu1 %901, %v1136_v15   ;;  %v293_v20 = vpop.xlane.xlu0 %292 }
 0x176   :  { %v299_v21 = vpop.xlane.xlu1 %298  ;;  %v1153_v22 = vmax.f32 %v1138_v16, %v293_v20 }
 0x177   :  { %v1156_v23 = vmax.f32 %v1145_v18, %v299_v21  ;;  %v332_v10 = vmul.f32 1.442695, %v322_v19 }
 0x178   :  { %v321_v25 = vsub.f32 %v1138_v16, %v1153_v22  ;;  %730 = vst.msk [vmem:[#allocation2 + $0x8] sm:$0xff] %vm19_vm2, %v1153_v22 }
 0x179   :  { %v323_v26 = vsub.f32 %v1145_v18, %v1156_v23  ;;  %732 = vst.msk [vmem:[#allocation2 + $0x18] sm:$0xff] %vm19_vm2, %v1156_v23  ;;  %351 = vperm.xlu1 %901, %v1153_v22   ;;  %v302_v27 = vpop.xlane.xlu0 %301 }
 0x17a   :  { %v1172_v29 = vmax.f32 %v1158_v24, %v302_v27 }
 0x17b   :  { %v305_v30 = vpop.xlane.xlu1 %304 }
 0x17c   :  { %v324_v32 = vsub.f32 %v1158_v24, %v1172_v29  ;;  %733 = vst.msk [vmem:[#allocation2 + $0x20] sm:$0xff] %vm19_vm2, %v1172_v29  ;;  %v1181_v33 = vmax.f32 %v1169_v28, %v305_v30 }
 0x17d   :  { %361 = vperm.xlu1 %901, %v1156_v23   ;;  %v308_v34 = vpop.xlane.xlu0 %307 }
 0x17e   :  { %v325_v36 = vsub.f32 %v1169_v28, %v1181_v33  ;;  %734 = vst.msk [vmem:[#allocation2 + $0x28] sm:$0xff] %vm19_vm2, %v1181_v33  ;;  %v1191_v37 = vmax.f32 %v1174_v31, %v308_v34  ;;  %v336_v16 = vmul.f32 1.442695, %v324_v32  ;;  %v408_v28 = vld [vmem:[#allocation3] sm:$0xff] }
 0x17f   :  { %v311_v38 = vpop.xlane.xlu1 %310 }
 0x180   :  { %v326_v39 = vsub.f32 %v1174_v31, %v1191_v37  ;;  %735 = vst.msk [vmem:[#allocation2 + $0x30] sm:$0xff] %vm19_vm2, %v1191_v37  ;;  %v1198_v40 = vmax.f32 %v1184_v35, %v311_v38  ;;  %v531_v38 = vld [vmem:[%s1332_s2 + $0x30] sm:$0xff]  ;;  %v338_v14 = vmul.f32 1.442695, %v325_v36 }
 0x181   :  { %366 = vperm.xlu1 %901, %v1172_v29   ;;  %v536_v47 = vpack.c.bf16 %v532_v43, %v531_v38  ;;  %v410_v29 = vld [vmem:[#allocation3 + $0x10] sm:$0xff] }
 0x182   :  { %v327_v41 = vsub.f32 %v1184_v35, %v1198_v40  ;;  %736 = vst.msk [vmem:[#allocation2 + $0x38] sm:$0xff] %vm19_vm2, %v1198_v40  ;;  %v340_v11 = vmul.f32 1.442695, %v326_v39 }
 0x185   :  { %376 = vperm.xlu1 %901, %v1191_v37   ;;  %v409_v37 = vld [vmem:[#allocation3 + $0x8] sm:$0xff] }
 0x189   :  { %371 = vperm.xlu1 %901, %v1181_v33  }
 0x18d   :  { %381 = vperm.xlu1 %901, %v1198_v40  }
 0x1f3   :  { %v347_v52 = vpop.permute.xlu0 %346 }
 0x1f4   :  { %v384_v53 = vsub.f32 %v1089_v42, %v347_v52  ;;  %v357_v54 = vpop.permute.xlu1 %356 }
 0x1f5   :  { %v386_v55 = vsub.f32 %v1092_v45, %v357_v54 }
 0x1f6   :  { %v392_v56 = vmul.f32 1.442695, %v384_v53 }
 0x1f7   :  { %v396_v57 = vmul.f32 1.442695, %v386_v55 }
 0x1f8   :  { %902 = vpow2.f32 %v392_v56  ;;  %v352_v58 = vpop.permute.xlu1 %351 }
 0x1f9   :  { %904 = vpow2.f32 %v396_v57  ;;  %v385_v59 = vsub.f32 %v1099_v48, %v352_v58  ;;  %v529_v48 = vld [vmem:[%s1332_s2 + $0x20] sm:$0xff] }
 0x1fb   :  { %v394_v60 = vmul.f32 1.442695, %v385_v59 }
 0x1fc   :  { %v362_v61 = vpop.permute.xlu1 %361 }
 0x1fd   :  { %906 = vpow2.f32 %v394_v60  ;;  %v387_v63 = vsub.f32 %v1102_v49, %v362_v61  ;;  %v530_v49 = vld [vmem:[%s1332_s2 + $0x28] sm:$0xff] }
 0x1fe   :  { %v535_v21 = vpack.c.bf16 %v530_v49, %v529_v48 }
 0x1ff   :  { %v398_v1 = vmul.f32 1.442695, %v387_v63 }
 0x200   :  { %v367_v2 = vpop.permute.xlu1 %366 }
 0x201   :  { %908 = vpow2.f32 %v398_v1  ;;  %v388_v42 = vsub.f32 %v1109_v62, %v367_v2  ;;  %v330_v1 = vmul.f32 1.442695, %v321_v25  ;;  %v334_v2 = vmul.f32 1.442695, %v323_v26 }
 0x202   :  { %v903_v5 = vpop.eup %902 }
 0x203   :  { %v905_v6 = vpop.eup %904  ;;  %v400_v45 = vmul.f32 1.442695, %v388_v42  ;;  %v424_v8 = vsel %vm36_vm0, %v903_v5, 0.0  ;;  %v411_v42 = vld [vmem:[#allocation3 + $0x18] sm:$0xff] }
 0x204   :  { %v377_v9 = vpop.permute.xlu1 %376  ;;  %425 = vadd.xlane.f32.xlu1 %v424_v8  ;;  %v430_v12 = vsel %vm36_vm0, %v905_v6, 0.0  ;;  %v412_v8 = vld [vmem:[#allocation3 + $0x20] sm:$0xff] }
 0x205   :  { %910 = vpow2.f32 %v400_v45  ;;  %v390_v62 = vsub.f32 %v1114_v3, %v377_v9  ;;  %431 = vadd.xlane.f32.xlu0 %v430_v12 }
 0x207   :  { %v907_v13 = vpop.eup %906  ;;  %v404_v20 = vmul.f32 1.442695, %v390_v62 }
 0x208   :  { %v372_v27 = vpop.permute.xlu1 %371  ;;  %v427_v30 = vsel %vm36_vm0, %v907_v13, 0.0  ;;  %v521_v34 = vpack.c.bf16 %v907_v13, %v903_v5  ;;  %v414_v13 = vld [vmem:[#allocation3 + $0x30] sm:$0xff] }
 0x209   :  { %912 = vpow2.f32 %v404_v20  ;;  %v389_v44 = vsub.f32 %v1117_v4, %v372_v27  ;;  %428 = vadd.xlane.f32.xlu0 %v427_v30 }
 0x20a   :  { %875 = vmatmul.mubr.msk.bf16.vlgmr.msra.gmra.mrb[8].mxu0 %vm36_vm0, %v521_v34  ;;  %v413_v34 = vld [vmem:[#allocation3 + $0x28] sm:$0xff] }
 0x20b   :  { %v909_v3 = vpop.eup %908  ;;  %v402_v46 = vmul.f32 1.442695, %v389_v44  ;;  %885 = vmatpush3.bf16.msra.mxu0 %v535_v21  ;;  %886 = vmatprep.mubr.msk.bf16.mxu0 %vm951_vm1, %v950_v0 }
 0x20c   :  { %v382_v50 = vpop.permute.xlu1 %381  ;;  %v433_v51 = vsel %vm36_vm0, %v909_v3, 0.0  ;;  %v522_v52 = vpack.c.bf16 %v909_v3, %v905_v6 }
 0x20d   :  { %914 = vpow2.f32 %v402_v46  ;;  %v391_v53 = vsub.f32 %v1124_v7, %v382_v50  ;;  %434 = vadd.xlane.f32.xlu1 %v433_v51 }
 0x20e   :  { %881 = vmatmul.mubr.msk.bf16.vlgmr.msra.gmra.mrb[8].mxu1 %vm36_vm0, %v522_v52 }
 0x20f   :  { %v911_v4 = vpop.eup %910  ;;  %v406_v54 = vmul.f32 1.442695, %v391_v53  ;;  %891 = vmatpush3.bf16.msra.mxu1 %v536_v47  ;;  %892 = vmatprep.mubr.msk.bf16.mxu1 %vm951_vm1, %v950_v0  ;;  %v328_v0 = vmul.f32 1.442695, %v320_v17  ;;  %v342_v17 = vmul.f32 1.442695, %v327_v41 }
 0x210   :  { %v436_v55 = vsel %vm36_vm0, %v911_v4, 0.0  ;;  %v415_v47 = vld [vmem:[#allocation3 + $0x38] sm:$0xff] }
 0x211   :  { %916 = vpow2.f32 %v406_v54  ;;  %437 = vadd.xlane.f32.xlu0 %v436_v55 }
 0x212   :  { %918 = vpow2.f32 %v328_v0 }
 0x213   :  { %v913_v56 = vpop.eup %912  ;;  %920 = vpow2.f32 %v330_v1  ;;  %v465_v1 = vld [vmem:[#allocation4] sm:$0xff] }
 0x214   :  { %v442_v57 = vsel %vm36_vm0, %v913_v56, 0.0  ;;  %922 = vpow2.f32 %v334_v2 }
 0x215   :  { %443 = vadd.xlane.f32.xlu0 %v442_v57  ;;  %924 = vpow2.f32 %v332_v10  ;;  %v466_v10 = vld [vmem:[#allocation4 + $0x8] sm:$0xff] }
 0x216   :  { %926 = vpow2.f32 %v338_v14 }
 0x217   :  { %v915_v58 = vpop.eup %914  ;;  %928 = vpow2.f32 %v336_v16  ;;  %v467_v16 = vld [vmem:[#allocation4 + $0x10] sm:$0xff] }
 0x218   :  { %v439_v7 = vsel %vm36_vm0, %v915_v58, 0.0  ;;  %v523_v59 = vpack.c.bf16 %v915_v58, %v911_v4  ;;  %930 = vpow2.f32 %v342_v17 }
 0x219   :  { %440 = vadd.xlane.f32.xlu1 %v439_v7  ;;  %932 = vpow2.f32 %v340_v11 }
 0x21a   :  { %887 = vmatmul.mubr.msk.bf16.vlgmr.msra.gmra.mrb[12].mxu0 %vm36_vm0, %v523_v59 }
 0x21b   :  { %v917_v60 = vpop.eup %916 }
 0x21c   :  { %v445_v61 = vsel %vm36_vm0, %v917_v60, 0.0  ;;  %v524_v63 = vpack.c.bf16 %v917_v60, %v913_v56  ;;  %v919_v18 = vpop.eup %918 }
 0x21d   :  { %446 = vadd.xlane.f32.xlu1 %v445_v61  ;;  %v921_v15 = vpop.eup %920  ;;  %v416_v31 = vmul.f32 %v919_v18, %v408_v28 }
 0x21e   :  { %893 = vmatmul.mubr.msk.bf16.vlgmr.msra.gmra.mrb[12].mxu1 %vm36_vm0, %v524_v63  ;;  %v923_v19 = vpop.eup %922  ;;  %v417_v40 = vmul.f32 %v921_v15, %v409_v37 }
 0x21f   :  { %v925_v22 = vpop.eup %924  ;;  %v419_v6 = vmul.f32 %v923_v19, %v411_v42  ;;  %v470_v42 = vld [vmem:[#allocation4 + $0x28] sm:$0xff] }
 0x220   :  { %v927_v23 = vpop.eup %926  ;;  %v418_v32 = vmul.f32 %v925_v22, %v410_v29 }
 0x221   :  { %v929_v24 = vpop.eup %928  ;;  %v421_v44 = vmul.f32 %v927_v23, %v413_v34 }
 0x222   :  { %v931_v25 = vpop.eup %930  ;;  %v420_v48 = vmul.f32 %v929_v24, %v412_v8 }
 0x223   :  { %v933_v26 = vpop.eup %932  ;;  %v423_v52 = vmul.f32 %v931_v25, %v415_v47 }
 0x224   :  { %v422_v27 = vmul.f32 %v933_v26, %v414_v13 }
 0x22b   :  { %475 = vperm.xlu0 %900, %v919_v18  }
 0x22e   :  { %480 = vperm.xlu1 %901, %v921_v15  }
 0x22f   :  { %490 = vperm.xlu0 %900, %v923_v19  }
 0x232   :  { %485 = vperm.xlu1 %901, %v925_v22   ;;  %v468_v22 = vld [vmem:[#allocation4 + $0x18] sm:$0xff] }
 0x233   :  { %500 = vperm.xlu0 %900, %v927_v23  }
 0x236   :  { %495 = vperm.xlu1 %901, %v929_v24  }
 0x237   :  { %510 = vperm.xlu0 %900, %v931_v25  }
 0x23a   :  { %505 = vperm.xlu1 %901, %v933_v26  }
 0x291   :  { %v426_v33 = vpop.xlane.xlu1 %425 }
 0x292   :  { %v432_v35 = vpop.xlane.xlu0 %431  ;;  %v448_v36 = vadd.f32 %v426_v33, %v416_v31 }
 0x293   :  { %v450_v39 = vadd.f32 %v432_v35, %v418_v32 }
 0x294   :  { %457 = vst.msk [vmem:[#allocation3] sm:$0xff] %vm19_vm2, %v448_v36 }
 0x295   :  { %459 = vst.msk [vmem:[#allocation3 + $0x10] sm:$0xff] %vm19_vm2, %v450_v39 }
 0x296   :  { %v429_v41 = vpop.xlane.xlu0 %428 }
 0x297   :  { %v449_v5 = vadd.f32 %v429_v41, %v417_v40  ;;  %v469_v41 = vld [vmem:[#allocation4 + $0x20] sm:$0xff] }
 0x299   :  { %458 = vst.msk [vmem:[#allocation3 + $0x8] sm:$0xff] %vm19_vm2, %v449_v5 }
 0x29a   :  { %v435_v45 = vpop.xlane.xlu1 %434 }
 0x29b   :  { %v451_v9 = vadd.f32 %v435_v45, %v419_v6  ;;  %v748_v12 = vld [vmem:[#allocation3] sm:$0xff]  ;;  %v471_v6 = vld [vmem:[#allocation4 + $0x30] sm:$0xff] }
 0x29c   :  { %934 = vrcp.f32 %v748_v12  ;;  %v750_v49 = vld [vmem:[#allocation3 + $0x10] sm:$0xff] }
 0x29d   :  { %460 = vst.msk [vmem:[#allocation3 + $0x18] sm:$0xff] %vm19_vm2, %v451_v9  ;;  %936 = vrcp.f32 %v750_v49  ;;  %v472_v49 = vld [vmem:[#allocation4 + $0x38] sm:$0xff] }
 0x29e   :  { %v438_v62 = vpop.xlane.xlu0 %437 }
 0x29f   :  { %v452_v20 = vadd.f32 %v438_v62, %v420_v48 }
 0x2a0   :  { %v749_v21 = vld [vmem:[#allocation3 + $0x8] sm:$0xff] }
 0x2a1   :  { %461 = vst.msk [vmem:[#allocation3 + $0x20] sm:$0xff] %vm19_vm2, %v452_v20  ;;  %938 = vrcp.f32 %v749_v21 }
 0x2a2   :  { %v444_v30 = vpop.xlane.xlu0 %443 }
 0x2a3   :  { %v454_v38 = vadd.f32 %v444_v30, %v422_v27 }
 0x2a4   :  { %v751_v43 = vld [vmem:[#allocation3 + $0x18] sm:$0xff] }
 0x2a5   :  { %463 = vst.msk [vmem:[#allocation3 + $0x30] sm:$0xff] %vm19_vm2, %v454_v38  ;;  %940 = vrcp.f32 %v751_v43 }
 0x2a6   :  { %v935_v3 = vpop.eup %934  ;;  %v441_v46 = vpop.xlane.xlu1 %440 }
 0x2a7   :  { %v453_v50 = vadd.f32 %v441_v46, %v421_v44  ;;  %766 = vperm.xlu1 %901, %v935_v3   ;;  %v937_v53 = vpop.eup %936 }
 0x2a8   :  { %v752_v51 = vld [vmem:[#allocation3 + $0x20] sm:$0xff] }
 0x2a9   :  { %462 = vst.msk [vmem:[#allocation3 + $0x28] sm:$0xff] %vm19_vm2, %v453_v50  ;;  %942 = vrcp.f32 %v752_v51 }
 0x2aa   :  { %v447_v4 = vpop.xlane.xlu1 %446  ;;  %v476_v2 = vpop.permute.xlu0 %475 }
 0x2ab   :  { %v939_v54 = vpop.eup %938  ;;  %v455_v55 = vadd.f32 %v447_v4, %v423_v52  ;;  %776 = vperm.xlu1 %901, %v937_v53   ;;  %v513_v14 = vmul.f32 %v476_v2, %v465_v1 }
 0x2ac   :  { %771 = vperm.xlu0 %900, %v939_v54   ;;  %v754_v56 = vld [vmem:[#allocation3 + $0x30] sm:$0xff] }
 0x2ad   :  { %464 = vst.msk [vmem:[#allocation3 + $0x38] sm:$0xff] %vm19_vm2, %v455_v55  ;;  %944 = vrcp.f32 %v754_v56 }
 0x2ae   :  { %v481_v63 = vpop.permute.xlu1 %480  ;;  %v491_v23 = vpop.permute.xlu0 %490 }
 0x2af   :  { %v941_v57 = vpop.eup %940  ;;  %v514_v11 = vmul.f32 %v481_v63, %v466_v10  ;;  %v516_v31 = vmul.f32 %v491_v23, %v468_v22 }
 0x2b0   :  { %781 = vperm.xlu0 %900, %v941_v57   ;;  %v753_v58 = vld [vmem:[#allocation3 + $0x28] sm:$0xff] }
 0x2b1   :  { %946 = vrcp.f32 %v753_v58 }
 0x2b2   :  { %v486_v17 = vpop.permute.xlu1 %485  ;;  %v501_v40 = vpop.permute.xlu0 %500 }
 0x2b3   :  { %v943_v7 = vpop.eup %942  ;;  %v515_v25 = vmul.f32 %v486_v17, %v467_v16  ;;  %v518_v9 = vmul.f32 %v501_v40, %v470_v42 }
 0x2b4   :  { %786 = vperm.xlu1 %901, %v943_v7   ;;  %v755_v59 = vld [vmem:[#allocation3 + $0x38] sm:$0xff] }
 0x2b5   :  { %948 = vrcp.f32 %v755_v59 }
 0x2b6   :  { %v496_v39 = vpop.permute.xlu1 %495  ;;  %v511_v62 = vpop.permute.xlu0 %510 }
 0x2b7   :  { %v945_v60 = vpop.eup %944  ;;  %v517_v5 = vmul.f32 %v496_v39, %v469_v41  ;;  %v520_v34 = vmul.f32 %v511_v62, %v472_v49 }
 0x2b8   :  { %796 = vperm.xlu1 %901, %v945_v60  }
 0x2ba   :  { %v506_v45 = vpop.permute.xlu1 %505 }
 0x2bb   :  { %v947_v0 = vpop.eup %946  ;;  %v519_v20 = vmul.f32 %v506_v45, %v471_v6 }
 0x2bc   :  { %791 = vperm.xlu0 %900, %v947_v0  }
 0x2bf   :  { %v949_v61 = vpop.eup %948 }
 0x2c0   :  { %801 = vperm.xlu0 %900, %v949_v61  }
 0x2dd   :  { %v574_v18 = vpop.f32.mrb[8].mxu0 }
 0x2de   :  { %v713_v15 = vadd.f32 %v574_v18, %v513_v14  ;;  %v876_v19 = vpop.f32.mrb[9].mxu0 }
 0x2df   :  { %v577_v24 = vpop.f32.mrb[10].mxu0 }
 0x2e0   :  { %721 = vst.msk [vmem:[#allocation4] sm:$0xff] %vm36_vm0, %v713_v15  ;;  %v714_v26 = vadd.f32 %v577_v24, %v514_v11  ;;  %v877_v28 = vpop.f32.mrb[11].mxu0 }
 0x2e1   :  { %v618_v29 = vpop.f32.mrb[8].mxu1 }
 0x2e2   :  { %722 = vst.msk [vmem:[#allocation4 + $0x8] sm:$0xff] %vm36_vm0, %v714_v26  ;;  %v715_v32 = vadd.f32 %v618_v29, %v515_v25  ;;  %v882_v33 = vpop.f32.mrb[9].mxu1 }
 0x2e3   :  { %v621_v35 = vpop.f32.mrb[10].mxu1 }
 0x2e4   :  { %723 = vst.msk [vmem:[#allocation4 + $0x10] sm:$0xff] %vm36_vm0, %v715_v32  ;;  %v716_v36 = vadd.f32 %v621_v35, %v516_v31  ;;  %v883_v37 = vpop.f32.mrb[11].mxu1 }
 0x2e6   :  { %724 = vst.msk [vmem:[#allocation4 + $0x18] sm:$0xff] %vm36_vm0, %v716_v36 }
 0x2e7   :  { %v740_v50 = vld [vmem:[#allocation4] sm:$0xff] }
 0x2e9   :  { %v741_v54 = vld [vmem:[#allocation4 + $0x8] sm:$0xff] }
 0x2eb   :  { %v742_v52 = vld [vmem:[#allocation4 + $0x10] sm:$0xff] }
 0x2ed   :  { %v662_v8 = vpop.f32.mrb[12].mxu0  ;;  %v743_v57 = vld [vmem:[#allocation4 + $0x18] sm:$0xff] }
 0x2ee   :  { %v717_v12 = vadd.f32 %v662_v8, %v517_v5  ;;  %v888_v48 = vpop.f32.mrb[13].mxu0 }
 0x2ef   :  { %v665_v13 = vpop.f32.mrb[14].mxu0 }
 0x2f0   :  { %725 = vst.msk [vmem:[#allocation4 + $0x20] sm:$0xff] %vm36_vm0, %v717_v12  ;;  %v718_v21 = vadd.f32 %v665_v13, %v518_v9  ;;  %v889_v27 = vpop.f32.mrb[15].mxu0 }
 0x2f1   :  { %v706_v30 = vpop.f32.mrb[12].mxu1 }
 0x2f2   :  { %726 = vst.msk [vmem:[#allocation4 + $0x28] sm:$0xff] %vm36_vm0, %v718_v21  ;;  %v719_v38 = vadd.f32 %v706_v30, %v519_v20  ;;  %v894_v43 = vpop.f32.mrb[13].mxu1 }
 0x2f3   :  { %v709_v44 = vpop.f32.mrb[14].mxu1 }
 0x2f4   :  { %727 = vst.msk [vmem:[#allocation4 + $0x30] sm:$0xff] %vm36_vm0, %v719_v38  ;;  %v720_v3 = vadd.f32 %v709_v44, %v520_v34  ;;  %v895_v46 = vpop.f32.mrb[15].mxu1 }
 0x2f6   :  { %728 = vst.msk [vmem:[#allocation4 + $0x38] sm:$0xff] %vm36_vm0, %v720_v3 }
 0x2f7   :  { %v744_v60 = vld [vmem:[#allocation4 + $0x20] sm:$0xff] }
 0x2f9   :  { %v745_v10 = vld [vmem:[#allocation4 + $0x28] sm:$0xff] }
 0x2fb   :  { %v746_v61 = vld [vmem:[#allocation4 + $0x30] sm:$0xff] }
 0x2fd   :  { %v747_v16 = vld [vmem:[#allocation4 + $0x38] sm:$0xff] }
 0x326   :  { %v767_v47 = vpop.permute.xlu1 %766 }
 0x327   :  { %v804_v51 = vmul.f32 %v767_v47, %v740_v50 }
 0x329   :  { %812 = vst.msk [vmem:[%s1333_s3] sm:$0xff] %vm36_vm0, %v804_v51 }
 0x32a   :  { %v777_v53 = vpop.permute.xlu1 %776 }
 0x32b   :  { %v772_v4 = vpop.permute.xlu0 %771  ;;  %v806_v55 = vmul.f32 %v777_v53, %v742_v52 }
 0x32c   :  { %v805_v56 = vmul.f32 %v772_v4, %v741_v54 }
 0x32d   :  { %814 = vst.msk [vmem:[%s1333_s3 + $0x10] sm:$0xff] %vm36_vm0, %v806_v55 }
 0x32e   :  { %813 = vst.msk [vmem:[%s1333_s3 + $0x8] sm:$0xff] %vm36_vm0, %v805_v56 }
 0x32f   :  { %v782_v58 = vpop.permute.xlu0 %781 }
 0x330   :  { %v807_v7 = vmul.f32 %v782_v58, %v743_v57 }
 0x332   :  { %815 = vst.msk [vmem:[%s1333_s3 + $0x18] sm:$0xff] %vm36_vm0, %v807_v7 }
 0x333   :  { %v787_v59 = vpop.permute.xlu1 %786 }
 0x334   :  { %v808_v0 = vmul.f32 %v787_v59, %v744_v60 }
 0x336   :  { %816 = vst.msk [vmem:[%s1333_s3 + $0x20] sm:$0xff] %vm36_vm0, %v808_v0 }
 0x337   :  { %v797_v63 = vpop.permute.xlu1 %796 }
 0x338   :  { %v810_v1 = vmul.f32 %v797_v63, %v746_v61 }
 0x33a   :  { %818 = vst.msk [vmem:[%s1333_s3 + $0x30] sm:$0xff] %vm36_vm0, %v810_v1 }
 0x33b   :  { %v792_v2 = vpop.permute.xlu0 %791 }
 0x33c   :  { %v809_v14 = vmul.f32 %v792_v2, %v745_v10 }
 0x33e   :  { %817 = vst.msk [vmem:[%s1333_s3 + $0x28] sm:$0xff] %vm36_vm0, %v809_v14 }
 0x33f   :  { %v802_v17 = vpop.permute.xlu0 %801 }
 0x340   :  { %v811_v18 = vmul.f32 %v802_v17, %v747_v16 }
 0x342   :  { %819 = vst.msk [vmem:[%s1333_s3 + $0x38] sm:$0xff] %vm36_vm0, %v811_v18 }

// kernel: run.60
= control target key start
LH: loop header
LB: loop body
LE: loop exit
PB: predicated region body
PF: predicated region fallthrough
CT: control target
= control target key end

     0   :  { %s516_s2 = inlined_call_operand.vmem [shape: f32[128,128], index: 2, kind: input, shape index: {}]   ;;  %s517_s1 = inlined_call_operand.vmem [shape: f32[128,128], index: 1, kind: input, shape index: {}]   ;;  %s518_s0 = inlined_call_operand.vmem [shape: f32[32,128], index: 0, kind: input, shape index: {}]   ;;  %s519_s4 = inlined_call_operand.vmem [shape: f32[1,128], index: 4, kind: input, shape index: {}]   ;;  %s520_s3 = inlined_call_operand.vmem [shape: f32[1,128], index: 3, kind: input, shape index: {}]   ;;  %s521_s5 = inlined_call_operand.vmem [shape: f32[32,128], index: 5, kind: output, shape index: {}]  }
   0x1   :  { %v128_v0 = vld [vmem:[%s516_s2] sm:$0xff]  ;;  %v129_v1 = vld [vmem:[%s516_s2 + $0x8] sm:$0xff]  ;;  %v130_v2 = vld [vmem:[%s516_s2 + $0x10] sm:$0xff] }
   0x2   :  { %v144_v3 = vpack.c.bf16 %v129_v1, %v128_v0  ;;  %v131_v4 = vld [vmem:[%s516_s2 + $0x18] sm:$0xff]  ;;  %v132_v6 = vld [vmem:[%s516_s2 + $0x20] sm:$0xff]  ;;  %v133_v7 = vld [vmem:[%s516_s2 + $0x28] sm:$0xff] }
   0x3   :  { %v145_v5 = vpack.c.bf16 %v131_v4, %v130_v2  ;;  %v43_v8 = vld [vmem:[%s517_s1] sm:$0xff]  ;;  %v44_v9 = vld [vmem:[%s517_s1 + $0x8] sm:$0xff]  ;;  %v146_v10 = vpack.c.bf16 %v133_v7, %v132_v6  ;;  %v45_v12 = vld [vmem:[%s517_s1 + $0x10] sm:$0xff] }
   0x4   :  { %324 = vmatprep.subr.bf16.mxu1 %v144_v3  ;;  %v59_v11 = vpack.c.bf16 %v44_v9, %v43_v8  ;;  %v46_v13 = vld [vmem:[%s517_s1 + $0x18] sm:$0xff]  ;;  %v134_v14 = vld [vmem:[%s516_s2 + $0x30] sm:$0xff]  ;;  %v47_v17 = vld [vmem:[%s517_s1 + $0x20] sm:$0xff] }
   0x5   :  { %325 = vmatpush3.bf16.msra.mxu1 %v144_v3  ;;  %v135_v15 = vld [vmem:[%s516_s2 + $0x38] sm:$0xff]  ;;  %v60_v16 = vpack.c.bf16 %v46_v13, %v45_v12  ;;  %v48_v18 = vld [vmem:[%s517_s1 + $0x28] sm:$0xff]  ;;  %v33_v19 = vld [vmem:[%s518_s0] sm:$0xff] }
   0x6   :  { %326 = vmatprep.subr.bf16.mxu1 %v145_v5  ;;  %304 = vmatprep.subr.bf16.mxu0 %v59_v11  ;;  %v34_v20 = vld [vmem:[%s518_s0 + $0x8] sm:$0xff]  ;;  %v147_v22 = vpack.c.bf16 %v135_v15, %v134_v14  ;;  %v136_v23 = vld [vmem:[%s516_s2 + $0x40] sm:$0xff]  ;;  %v61_v24 = vpack.c.bf16 %v48_v18, %v47_v17  ;;  %v49_v26 = vld [vmem:[%s517_s1 + $0x30] sm:$0xff] }
   0x7   :  { %305 = vmatpush3.bf16.msra.mxu0 %v59_v11  ;;  %v37_v21 = vpack.c.bf16 %v34_v20, %v33_v19  ;;  %v137_v25 = vld [vmem:[%s516_s2 + $0x48] sm:$0xff]  ;;  %v50_v27 = vld [vmem:[%s517_s1 + $0x38] sm:$0xff]  ;;  %v138_v29 = vld [vmem:[%s516_s2 + $0x50] sm:$0xff] }
   0x8   :  { %306 = vmatprep.subr.bf16.mxu0 %v60_v16  ;;  %v148_v28 = vpack.c.bf16 %v137_v25, %v136_v23  ;;  %v62_v30 = vpack.c.bf16 %v50_v27, %v49_v26  ;;  %v139_v31 = vld [vmem:[%s516_s2 + $0x58] sm:$0xff]  ;;  %v51_v32 = vld [vmem:[%s517_s1 + $0x40] sm:$0xff]  ;;  %v52_v33 = vld [vmem:[%s517_s1 + $0x48] sm:$0xff] }
   0x9   :  { %327 = vmatpush3.bf16.msra.mxu1 %v145_v5  ;;  %340 = vmatprep.mubr.bf16.mxu1 %v37_v21  ;;  %v149_v34 = vpack.c.bf16 %v139_v31, %v138_v29  ;;  %v140_v35 = vld [vmem:[%s516_s2 + $0x60] sm:$0xff]  ;;  %v63_v36 = vpack.c.bf16 %v52_v33, %v51_v32  ;;  %v141_v37 = vld [vmem:[%s516_s2 + $0x68] sm:$0xff]  ;;  %v53_v38 = vld [vmem:[%s517_s1 + $0x50] sm:$0xff] }
   0xa   :  { %328 = vmatprep.subr.bf16.mxu1 %v146_v10  ;;  %320 = vmatprep.mubr.bf16.mxu0 %v37_v21  ;;  %v54_v39 = vld [vmem:[%s517_s1 + $0x58] sm:$0xff]  ;;  %v150_v40 = vpack.c.bf16 %v141_v37, %v140_v35  ;;  %v142_v41 = vld [vmem:[%s516_s2 + $0x70] sm:$0xff]  ;;  %v55_v44 = vld [vmem:[%s517_s1 + $0x60] sm:$0xff] }
   0xb   :  { %307 = vmatpush3.bf16.msra.mxu0 %v60_v16  ;;  %v64_v42 = vpack.c.bf16 %v54_v39, %v53_v38  ;;  %v143_v43 = vld [vmem:[%s516_s2 + $0x78] sm:$0xff]  ;;  %v56_v45 = vld [vmem:[%s517_s1 + $0x68] sm:$0xff]  ;;  %v57_v48 = vld [vmem:[%s517_s1 + $0x70] sm:$0xff] }
   0xc   :  { %308 = vmatprep.subr.bf16.mxu0 %v61_v24  ;;  %v151_v46 = vpack.c.bf16 %v143_v43, %v142_v41  ;;  %v65_v47 = vpack.c.bf16 %v56_v45, %v55_v44  ;;  %v58_v49 = vld [vmem:[%s517_s1 + $0x78] sm:$0xff]  ;;  %v35_v50 = vld [vmem:[%s518_s0 + $0x10] sm:$0xff]  ;;  %v279_v54 = vld [vmem:[%s519_s4] ss:$0 sm:$0xff] }
   0xd   :  { %329 = vmatpush3.bf16.msra.mxu1 %v146_v10  ;;  %v36_v51 = vld [vmem:[%s518_s0 + $0x18] sm:$0xff]  ;;  %v66_v52 = vpack.c.bf16 %v58_v49, %v57_v48  ;;  %v278_v15 = vld [vmem:[%s520_s3] ss:$0 sm:$0xff] }
   0xe   :  { %330 = vmatprep.subr.bf16.mxu1 %v147_v22  ;;  %v38_v53 = vpack.c.bf16 %v36_v51, %v35_v50 }
   0xf   :  { %309 = vmatpush3.bf16.msra.mxu0 %v61_v24 }
  0x10   :  { %310 = vmatprep.subr.bf16.mxu0 %v62_v30 }
  0x11   :  { %331 = vmatpush3.bf16.msra.mxu1 %v147_v22 }
  0x12   :  { %332 = vmatprep.subr.bf16.mxu1 %v148_v28 }
  0x13   :  { %311 = vmatpush3.bf16.msra.mxu0 %v62_v30 }
  0x14   :  { %312 = vmatprep.subr.bf16.mxu0 %v63_v36 }
  0x15   :  { %333 = vmatpush3.bf16.msra.mxu1 %v148_v28 }
  0x16   :  { %334 = vmatprep.subr.bf16.mxu1 %v149_v34 }
  0x17   :  { %313 = vmatpush3.bf16.msra.mxu0 %v63_v36 }
  0x18   :  { %314 = vmatprep.subr.bf16.mxu0 %v64_v42 }
  0x19   :  { %335 = vmatpush3.bf16.msra.mxu1 %v149_v34 }
  0x1a   :  { %336 = vmatprep.subr.bf16.mxu1 %v150_v40 }
  0x1b   :  { %315 = vmatpush3.bf16.msra.mxu0 %v64_v42 }
  0x1c   :  { %316 = vmatprep.subr.bf16.mxu0 %v65_v47 }
  0x1d   :  { %337 = vmatpush3.bf16.msra.mxu1 %v150_v40 }
  0x1e   :  { %338 = vmatprep.subr.bf16.mxu1 %v151_v46 }
  0x1f   :  { %317 = vmatpush3.bf16.msra.mxu0 %v65_v47 }
  0x20   :  { %318 = vmatprep.subr.bf16.mxu0 %v66_v52 }
  0x21   :  { %339 = vmatpush3.bf16.msra.mxu1 %v151_v46 }
  0x23   :  { %319 = vmatpush3.bf16.msra.mxu0 %v66_v52 }
  0x24   :  { %341 = vmatmul.mubr.bf16.vlgmr.msra.gmra.mrb[0].mxu1 %v38_v53 }
  0x26   :  { %321 = vmatmul.mubr.bf16.vlgmr.msra.gmra.mrb[0].mxu0 %v38_v53 }
  0xf7   :  { %v342_v55 = vpop.f32.mrb[0].mxu1 }
  0xf8   :  { %v240_v56 = vadd.f32 %v342_v55, %v279_v54  ;;  %v186_v57 = vpop.f32.mrb[1].mxu1 }
  0xf9   :  { %v238_v58 = vadd.f32 %v279_v54, %v186_v57  ;;  %v343_v59 = vpop.f32.mrb[2].mxu1  ;;  %v322_v1 = vpop.f32.mrb[0].mxu0 }
  0xfa   :  { %v282_v60 = vmul.f32 -1.442695, %v240_v56  ;;  %v241_v61 = vadd.f32 %v343_v59, %v279_v54  ;;  %v189_v62 = vpop.f32.mrb[3].mxu1  ;;  %v101_v3 = vpop.f32.mrb[1].mxu0  ;;  %v225_v16 = vadd.f32 %v322_v1, %v278_v15 }
  0xfb   :  { %v280_v63 = vmul.f32 -1.442695, %v238_v58  ;;  %v239_v0 = vadd.f32 %v279_v54, %v189_v62  ;;  %v323_v5 = vpop.f32.mrb[2].mxu0  ;;  %v223_v17 = vadd.f32 %v278_v15, %v101_v3 }
  0xfc   :  { %344 = vpow2.f32 %v282_v60  ;;  %v283_v2 = vmul.f32 -1.442695, %v241_v61  ;;  %v104_v6 = vpop.f32.mrb[3].mxu0  ;;  %v226_v21 = vadd.f32 %v323_v5, %v278_v15 }
  0xfd   :  { %346 = vpow2.f32 %v280_v63  ;;  %v281_v4 = vmul.f32 -1.442695, %v239_v0  ;;  %v224_v24 = vadd.f32 %v278_v15, %v104_v6 }
  0xfe   :  { %348 = vpow2.f32 %v283_v2 }
  0xff   :  { %350 = vpow2.f32 %v281_v4 }
 0x106   :  { %v345_v7 = vpop.eup %344 }
 0x107   :  { %v347_v8 = vpop.eup %346  ;;  %v256_v9 = vadd.f32 1.0, %v345_v7 }
 0x108   :  { %v349_v10 = vpop.eup %348  ;;  %v254_v11 = vadd.f32 1.0, %v347_v8 }
 0x109   :  { %v351_v12 = vpop.eup %350  ;;  %352 = vrcp.f32 %v256_v9  ;;  %v257_v13 = vadd.f32 1.0, %v349_v10 }
 0x10a   :  { %354 = vrcp.f32 %v254_v11  ;;  %v255_v14 = vadd.f32 1.0, %v351_v12 }
 0x10b   :  { %356 = vrcp.f32 %v257_v13 }
 0x10c   :  { %358 = vrcp.f32 %v255_v14 }
 0x113   :  { %v353_v18 = vpop.eup %352 }
 0x114   :  { %v355_v19 = vpop.eup %354  ;;  %v268_v20 = vmul.f32 %v353_v18, %v225_v16 }
 0x115   :  { %v357_v22 = vpop.eup %356  ;;  %v266_v23 = vmul.f32 %v355_v19, %v223_v17 }
 0x116   :  { %v359_v25 = vpop.eup %358  ;;  %272 = vst [vmem:[%s521_s5 + $0x10] sm:$0xff] %v268_v20  ;;  %v269_v26 = vmul.f32 %v357_v22, %v226_v21 }
 0x117   :  { %270 = vst [vmem:[%s521_s5] sm:$0xff] %v266_v23  ;;  %v267_v27 = vmul.f32 %v359_v25, %v224_v24 }
 0x118   :  { %273 = vst [vmem:[%s521_s5 + $0x18] sm:$0xff] %v269_v26 }
 0x119   :  { %271 = vst [vmem:[%s521_s5 + $0x8] sm:$0xff] %v267_v27 }

// kernel: run.61
= control target key start
LH: loop header
LB: loop body
LE: loop exit
PB: predicated region body
PF: predicated region fallthrough
CT: control target
= control target key end

     0   :  { %v22_v0 = vlaneseq  ;;  %vm46_vm0 = vcmask 1046528   ;;  %vm77_vm1 = vcmask 1045504   ;;  %vm112_vm2 = vcmask 1044480   ;;  %s498_s0 = inlined_call_operand.vmem [shape: f32[2,1,23,32], index: 0, kind: input, shape index: {}]   ;;  %s499_s1 = inlined_call_operand.vmem [shape: f32[1,9,32], index: 1, kind: input, shape index: {}]   ;;  %s500_s2 = inlined_call_operand.vmem [shape: f32[1,32], index: 2, kind: input, shape index: {}]   ;;  %s501_s3 = inlined_call_operand.vmem [shape: f32[2,15,32], index: 3, kind: output, shape index: {}]  }
   0x1   :  { %v329_v1 = vld [vmem:[%s498_s0 + $0x8] sm:$0xff]  ;;  %v20_v4 = vld [vmem:[%s499_s1] sm:$0xff]  ;;  %vm147_vm3 = vcmask 1043456   ;;  %vm182_vm4 = vcmask 1042432   ;;  %vm217_vm5 = vcmask 1041408   ;;  %vm252_vm6 = vcmask 1040384  }
   0x2   :  { %v334_v2 = vld [vmem:[%s499_s1 + $0x8] ss:$0 sm:$0xff]  ;;  %v23_v3 = vshrl.u32 %v22_v0, 7  ;;  %v14_v10 = vld [vmem:[%s498_s0] sm:$0xff]  ;;  %v16_v47 = vld [vmem:[%s498_s0 + $0x10] sm:$0x7f] }
   0x3   :  { %v341_v5 = vmul.f32 %v334_v2, %v329_v1  ;;  %vm294_vm7 = vcmask 261120   ;;  %vm296_vm8 = vcmask 260096  }
   0x4   :  { %v24_v6 = vsub.s32 0, %v23_v3  ;;  %v36_v7 = vsub.s32 1, %v23_v3  ;;  %v63_v8 = vsub.s32 2, %v23_v3  ;;  %v98_v9 = vsub.s32 3, %v23_v3 }
   0x5   :  { %v133_v11 = vsub.s32 4, %v23_v3  ;;  %v168_v12 = vsub.s32 5, %v23_v3  ;;  %v203_v13 = vsub.s32 6, %v23_v3  ;;  %v238_v14 = vsub.s32 7, %v23_v3 }
   0x6   :  { %v346_v15 = vrot.slane %v20_v4, %v24_v6  ;;  %v348_v16 = vrot.slane %v20_v4, %v36_v7  ;;  %v350_v17 = vrot.slane %v20_v4, %v63_v8  ;;  %v352_v18 = vrot.slane %v20_v4, %v98_v9 }
   0x7   :  { %v354_v19 = vrot.slane %v20_v4, %v133_v11  ;;  %v356_v20 = vrot.slane %v20_v4, %v168_v12  ;;  %v358_v21 = vrot.slane %v20_v4, %v203_v13  ;;  %v360_v22 = vrot.slane %v20_v4, %v238_v14 }
   0x8   :  { %v26_v23 = vmul.f32 %v346_v15, %v14_v10  ;;  %v38_v24 = vmul.f32 %v348_v16, %v14_v10  ;;  %v39_v25 = vmul.f32 %v348_v16, %v329_v1  ;;  %v65_v26 = vmul.f32 %v350_v17, %v14_v10 }
   0x9   :  { %v66_v27 = vmul.f32 %v350_v17, %v329_v1  ;;  %v100_v28 = vmul.f32 %v352_v18, %v14_v10  ;;  %v101_v29 = vmul.f32 %v352_v18, %v329_v1  ;;  %v135_v30 = vmul.f32 %v354_v19, %v14_v10 }
   0xa   :  { %v47_v31 = vrot.slane %v38_v24, 1  ;;  %v48_v32 = vrot.slane %v39_v25, 1  ;;  %v78_v33 = vrot.slane %v65_v26, 2  ;;  %v136_v34 = vmul.f32 %v354_v19, %v329_v1  ;;  %v17_v26 = vld [vmem:[%s498_s0 + $0x18] sm:$0xff] }
   0xb   :  { %v79_v35 = vrot.slane %v66_v27, 2  ;;  %v113_v36 = vrot.slane %v100_v28, 3  ;;  %v114_v37 = vrot.slane %v101_v29, 3  ;;  %v148_v38 = vrot.slane %v135_v30, 4  ;;  %v410_v27 = vld [vmem:[%s498_s0 + $0x20] sm:$0xff] }
   0xc   :  { %v49_v39 = vsel %vm46_vm0, %v47_v31, %v48_v32  ;;  %v149_v40 = vrot.slane %v136_v34, 4  ;;  %v170_v41 = vmul.f32 %v356_v20, %v14_v10  ;;  %v171_v42 = vmul.f32 %v356_v20, %v329_v1 }
   0xd   :  { %v57_v43 = vadd.f32 %v49_v39, %v26_v23  ;;  %v80_v44 = vsel %vm77_vm1, %v78_v33, %v79_v35  ;;  %v115_v45 = vsel %vm112_vm2, %v113_v36, %v114_v37  ;;  %v205_v46 = vmul.f32 %v358_v21, %v14_v10 }
   0xe   :  { %v150_v48 = vsel %vm147_vm3, %v148_v38, %v149_v40  ;;  %v183_v49 = vrot.slane %v170_v41, 5  ;;  %v184_v50 = vrot.slane %v171_v42, 5  ;;  %v206_v51 = vmul.f32 %v358_v21, %v329_v1 }
   0xf   :  { %v92_v52 = vadd.f32 %v80_v44, %v57_v43  ;;  %v218_v53 = vrot.slane %v205_v46, 6  ;;  %v240_v54 = vmul.f32 %v360_v22, %v14_v10  ;;  %v241_v55 = vmul.f32 %v360_v22, %v329_v1  ;;  %v429_v44 = vld [vmem:[%s500_s2] ss:$0 sm:$0xff] }
  0x10   :  { %v185_v56 = vsel %vm182_vm4, %v183_v49, %v184_v50  ;;  %v219_v57 = vrot.slane %v206_v51, 6  ;;  %v27_v58 = vmul.f32 %v346_v15, %v329_v1  ;;  %v67_v59 = vmul.f32 %v350_v17, %v16_v47 }
  0x11   :  { %v127_v60 = vadd.f32 %v115_v45, %v92_v52  ;;  %v253_v61 = vrot.slane %v240_v54, 7  ;;  %v254_v62 = vrot.slane %v241_v55, 7  ;;  %v102_v63 = vmul.f32 %v352_v18, %v16_v47 }
  0x12   :  { %v220_v0 = vsel %vm217_vm5, %v218_v53, %v219_v57  ;;  %v58_v3 = vadd.f32 %v48_v32, %v27_v58  ;;  %v81_v4 = vrot.slane %v67_v59, 2  ;;  %v137_v6 = vmul.f32 %v354_v19, %v16_v47 }
  0x13   :  { %v162_v7 = vadd.f32 %v150_v48, %v127_v60  ;;  %v255_v8 = vsel %vm252_vm6, %v253_v61, %v254_v62  ;;  %v116_v9 = vrot.slane %v102_v63, 3  ;;  %v172_v10 = vmul.f32 %v356_v20, %v16_v47 }
  0x14   :  { %v82_v1 = vsel %vm77_vm1, %v79_v35, %v81_v4  ;;  %v151_v11 = vrot.slane %v137_v6, 4  ;;  %v207_v12 = vmul.f32 %v358_v21, %v16_v47  ;;  %v242_v13 = vmul.f32 %v360_v22, %v16_v47 }
  0x15   :  { %v197_v14 = vadd.f32 %v185_v56, %v162_v7  ;;  %v93_v23 = vadd.f32 %v82_v1, %v58_v3  ;;  %v117_v24 = vsel %vm112_vm2, %v114_v37, %v116_v9  ;;  %v186_v25 = vrot.slane %v172_v10, 5 }
  0x16   :  { %v152_v28 = vsel %vm147_vm3, %v149_v40, %v151_v11  ;;  %v221_v29 = vrot.slane %v207_v12, 6  ;;  %v256_v30 = vrot.slane %v242_v13, 7  ;;  %v276_v31 = vmul.f32 %v334_v2, %v16_v47  ;;  %v19_v13 = vld [vmem:[%s498_s0 + $0x28] sm:$0x7f] }
  0x17   :  { %v232_v32 = vadd.f32 %v220_v0, %v197_v14  ;;  %v128_v33 = vadd.f32 %v117_v24, %v93_v23  ;;  %v187_v34 = vsel %vm182_vm4, %v184_v50, %v186_v25  ;;  %v28_v35 = vmul.f32 %v346_v15, %v17_v26 }
  0x18   :  { %v222_v36 = vsel %vm217_vm5, %v219_v57, %v221_v29  ;;  %v257_v37 = vsel %vm252_vm6, %v254_v62, %v256_v30  ;;  %v40_v38 = vmul.f32 %v348_v16, %v17_v26  ;;  %v41_v39 = vmul.f32 %v348_v16, %v410_v27 }
  0x19   :  { %v267_v40 = vadd.f32 %v255_v8, %v232_v32  ;;  %v163_v41 = vadd.f32 %v152_v28, %v128_v33  ;;  %v68_v42 = vmul.f32 %v350_v17, %v17_v26  ;;  %v424_v43 = vmul.f32 %v350_v17, %v410_v27 }
  0x1a   :  { %v50_v45 = vrot.slane %v40_v38, 1  ;;  %v51_v46 = vrot.slane %v41_v39, 1  ;;  %v103_v47 = vmul.f32 %v352_v18, %v17_v26  ;;  %v434_v16 = vmul.f32 %v352_v18, %v410_v27 }
  0x1b   :  { %v279_v48 = vadd.f32 %v341_v5, %v267_v40  ;;  %v198_v49 = vadd.f32 %v187_v34, %v163_v41  ;;  %v83_v50 = vrot.slane %v68_v42, 2  ;;  %v84_v51 = vrot.slane %v424_v43, 2 }
  0x1c   :  { %v52_v52 = vsel %vm46_vm0, %v50_v45, %v51_v46  ;;  %v118_v53 = vrot.slane %v103_v47, 3  ;;  %v119_v54 = vrot.slane %v434_v16, 3  ;;  %v138_v55 = vmul.f32 %v354_v19, %v17_v26 }
  0x1d   :  { %v290_v56 = vadd.f32 %v429_v44, %v279_v48  ;;  %v233_v57 = vadd.f32 %v222_v36, %v198_v49  ;;  %v59_v58 = vadd.f32 %v52_v52, %v28_v35  ;;  %v85_v59 = vsel %vm77_vm1, %v83_v50, %v84_v51 }
  0x1e   :  { %v120_v60 = vsel %vm112_vm2, %v118_v53, %v119_v54  ;;  %v139_v5 = vmul.f32 %v354_v19, %v410_v27  ;;  %v153_v61 = vrot.slane %v138_v55, 4  ;;  %v173_v62 = vmul.f32 %v356_v20, %v17_v26 }
  0x1f   :  { %295 = vst.msk [vmem:[%s501_s3] sm:$0xff] %vm294_vm7, %v290_v56  ;;  %v268_v63 = vadd.f32 %v257_v37, %v233_v57  ;;  %v94_v0 = vadd.f32 %v85_v59, %v59_v58  ;;  %v174_v3 = vmul.f32 %v356_v20, %v410_v27  ;;  %v208_v4 = vmul.f32 %v358_v21, %v17_v26 }
  0x20   :  { %v154_v6 = vrot.slane %v139_v5, 4  ;;  %v188_v7 = vrot.slane %v173_v62, 5  ;;  %v209_v8 = vmul.f32 %v358_v21, %v410_v27  ;;  %v243_v9 = vmul.f32 %v360_v22, %v17_v26 }
  0x21   :  { %v280_v10 = vadd.f32 %v276_v31, %v268_v63  ;;  %v129_v1 = vadd.f32 %v120_v60, %v94_v0  ;;  %v189_v11 = vrot.slane %v174_v3, 5  ;;  %v223_v12 = vrot.slane %v208_v4, 6 }
  0x22   :  { %v155_v14 = vsel %vm147_vm3, %v153_v61, %v154_v6  ;;  %v224_v23 = vrot.slane %v209_v8, 6  ;;  %v244_v24 = vmul.f32 %v360_v22, %v410_v27  ;;  %v258_v25 = vrot.slane %v243_v9, 7 }
  0x23   :  { %v291_v28 = vadd.f32 %v429_v44, %v280_v10  ;;  %v164_v29 = vadd.f32 %v155_v14, %v129_v1  ;;  %v190_v26 = vsel %vm182_vm4, %v188_v7, %v189_v11  ;;  %v29_v32 = vmul.f32 %v346_v15, %v410_v27 }
  0x24   :  { %v225_v30 = vsel %vm217_vm5, %v223_v12, %v224_v23  ;;  %v259_v31 = vrot.slane %v244_v24, 7  ;;  %v70_v33 = vmul.f32 %v350_v17, %v19_v13  ;;  %v105_v35 = vmul.f32 %v352_v18, %v19_v13 }
  0x25   :  { %297 = vst.msk [vmem:[%s501_s3 + $0x8] sm:$0x7f] %vm296_vm8, %v291_v28  ;;  %v199_v34 = vadd.f32 %v190_v26, %v164_v29  ;;  %v140_v36 = vmul.f32 %v354_v19, %v19_v13  ;;  %v175_v37 = vmul.f32 %v356_v20, %v19_v13  ;;  %v60_v39 = vadd.f32 %v51_v46, %v29_v32 }
  0x26   :  { %v260_v38 = vsel %vm252_vm6, %v258_v25, %v259_v31  ;;  %v86_v40 = vrot.slane %v70_v33, 2  ;;  %v210_v15 = vmul.f32 %v358_v21, %v19_v13  ;;  %v277_v17 = vmul.f32 %v334_v2, %v410_v27 }
  0x27   :  { %v234_v41 = vadd.f32 %v225_v30, %v199_v34  ;;  %v121_v42 = vrot.slane %v105_v35, 3  ;;  %v156_v43 = vrot.slane %v140_v36, 4  ;;  %v191_v47 = vrot.slane %v175_v37, 5 }
  0x28   :  { %v87_v45 = vsel %vm77_vm1, %v84_v51, %v86_v40  ;;  %v245_v18 = vmul.f32 %v360_v22, %v19_v13  ;;  %v226_v48 = vrot.slane %v210_v15, 6  ;;  %v278_v56 = vmul.f32 %v334_v2, %v19_v13 }
  0x29   :  { %v269_v19 = vadd.f32 %v260_v38, %v234_v41  ;;  %v95_v16 = vadd.f32 %v87_v45, %v60_v39  ;;  %v122_v20 = vsel %vm112_vm2, %v119_v54, %v121_v42  ;;  %v157_v46 = vsel %vm147_vm3, %v154_v6, %v156_v43 }
  0x2a   :  { %v192_v50 = vsel %vm182_vm4, %v189_v11, %v191_v47  ;;  %v261_v52 = vrot.slane %v245_v18, 7  ;;  %v227_v51 = vsel %vm217_vm5, %v224_v23, %v226_v48 }
  0x2b   :  { %v281_v49 = vadd.f32 %v277_v17, %v269_v19  ;;  %v130_v21 = vadd.f32 %v122_v20, %v95_v16 }
  0x2c   :  { %v262_v54 = vsel %vm252_vm6, %v259_v31, %v261_v52 }
  0x2d   :  { %v292_v27 = vadd.f32 %v429_v44, %v281_v49  ;;  %v165_v53 = vadd.f32 %v157_v46, %v130_v21 }
  0x2f   :  { %298 = vst.msk [vmem:[%s501_s3 + $0x10] sm:$0xff] %vm294_vm7, %v292_v27  ;;  %v200_v22 = vadd.f32 %v192_v50, %v165_v53 }
  0x31   :  { %v235_v55 = vadd.f32 %v227_v51, %v200_v22 }
  0x33   :  { %v270_v57 = vadd.f32 %v262_v54, %v235_v55 }
  0x35   :  { %v282_v58 = vadd.f32 %v278_v56, %v270_v57 }
  0x37   :  { %v293_v59 = vadd.f32 %v429_v44, %v282_v58 }
  0x39   :  { %299 = vst.msk [vmem:[%s501_s3 + $0x18] sm:$0x7f] %vm296_vm8, %v293_v59 }

// kernel: run.62
= control target key start
LH: loop header
LB: loop body
LE: loop exit
PB: predicated region body
PF: predicated region fallthrough
CT: control target
= control target key end

     0   :  { %vm18_vm0 = vcmask 261120   ;;  %s222_s0 = inlined_call_operand.vmem [shape: f32[32,32], index: 0, kind: input, shape index: {}]   ;;  %s223_s1 = inlined_call_operand.vmem [shape: f32[1,32], index: 1, kind: input, shape index: {}]   ;;  %s224_s2 = inlined_call_operand.vmem [shape: f32[1,32], index: 2, kind: input, shape index: {}]   ;;  %s225_s3 = inlined_call_operand.vmem [shape: f32[32,32], index: 3, kind: output, shape index: {}]  }
   0x1   :  { %v14_v0 = vld [vmem:[%s222_s0] sm:$0xff]  ;;  %v16_v1 = vld [vmem:[%s222_s0 + $0x10] sm:$0xff]  ;;  %v15_v2 = vld [vmem:[%s222_s0 + $0x8] sm:$0xff] }
   0x2   :  { %v19_v3 = vsel %vm18_vm0, %v14_v0, 0.0  ;;  %v25_v4 = vsel %vm18_vm0, %v16_v1, 0.0  ;;  %v17_v5 = vld [vmem:[%s222_s0 + $0x18] sm:$0xff]  ;;  %v22_v6 = vsel %vm18_vm0, %v15_v2, 0.0  ;;  %v130_v41 = vld [vmem:[%s223_s1] ss:$0 sm:$0xff] }
   0x3   :  { %20 = vadd.xlane.f32.xlu0 %v19_v3  ;;  %26 = vadd.xlane.f32.xlu1 %v25_v4  ;;  %v28_v7 = vsel %vm18_vm0, %v17_v5, 0.0  ;;  %v131_v43 = vld [vmem:[%s224_s2] ss:$0 sm:$0xff] }
   0x7   :  { %23 = vadd.xlane.f32.xlu0 %v22_v6  ;;  %29 = vadd.xlane.f32.xlu1 %v28_v7 }
  0x90   :  { %v21_v8 = vpop.xlane.xlu0 %20  ;;  %v27_v9 = vpop.xlane.xlu1 %26 }
  0x91   :  { %v32_v10 = vmul.f32 0.03125, %v21_v8  ;;  %v34_v11 = vmul.f32 0.03125, %v27_v9 }
  0x93   :  { %v36_v12 = vsub.f32 %v14_v0, %v32_v10  ;;  %v38_v13 = vsub.f32 %v16_v1, %v34_v11 }
  0x94   :  { %v24_v14 = vpop.xlane.xlu0 %23  ;;  %v30_v15 = vpop.xlane.xlu1 %29 }
  0x95   :  { %v33_v16 = vmul.f32 0.03125, %v24_v14  ;;  %v35_v17 = vmul.f32 0.03125, %v30_v15  ;;  %v40_v18 = vmul.f32 %v36_v12, %v36_v12  ;;  %v42_v19 = vmul.f32 %v38_v13, %v38_v13 }
  0x97   :  { %v37_v20 = vsub.f32 %v15_v2, %v33_v16  ;;  %v39_v21 = vsub.f32 %v17_v5, %v35_v17  ;;  %v44_v22 = vsel %vm18_vm0, %v40_v18, 0.0  ;;  %v50_v23 = vsel %vm18_vm0, %v42_v19, 0.0 }
  0x98   :  { %45 = vadd.xlane.f32.xlu0 %v44_v22 }
  0x99   :  { %v41_v24 = vmul.f32 %v37_v20, %v37_v20  ;;  %v43_v25 = vmul.f32 %v39_v21, %v39_v21 }
  0x9b   :  { %v47_v26 = vsel %vm18_vm0, %v41_v24, 0.0  ;;  %v53_v27 = vsel %vm18_vm0, %v43_v25, 0.0 }
  0x9c   :  { %51 = vadd.xlane.f32.xlu0 %v50_v23  ;;  %48 = vadd.xlane.f32.xlu1 %v47_v26 }
  0xa0   :  { %54 = vadd.xlane.f32.xlu1 %v53_v27 }
 0x125   :  { %v46_v28 = vpop.xlane.xlu0 %45 }
 0x126   :  { %v56_v29 = vmul.f32 0.03125, %v46_v28 }
 0x128   :  { %v60_v30 = vadd.f32 1e-05, %v56_v29 }
 0x129   :  { %v49_v31 = vpop.xlane.xlu1 %48  ;;  %v52_v32 = vpop.xlane.xlu0 %51 }
 0x12a   :  { %136 = vrsqrt.f32 %v60_v30  ;;  %v57_v33 = vmul.f32 0.03125, %v49_v31  ;;  %v58_v34 = vmul.f32 0.03125, %v52_v32 }
 0x12c   :  { %v61_v35 = vadd.f32 1e-05, %v57_v33  ;;  %v62_v36 = vadd.f32 1e-05, %v58_v34 }
 0x12d   :  { %v55_v37 = vpop.xlane.xlu1 %54 }
 0x12e   :  { %138 = vrsqrt.f32 %v61_v35  ;;  %v59_v38 = vmul.f32 0.03125, %v55_v37 }
 0x12f   :  { %140 = vrsqrt.f32 %v62_v36 }
 0x130   :  { %v63_v39 = vadd.f32 1e-05, %v59_v38 }
 0x132   :  { %142 = vrsqrt.f32 %v63_v39 }
 0x134   :  { %v137_v40 = vpop.eup %136 }
 0x135   :  { %v68_v42 = vmul.f32 %v137_v40, %v36_v12 }
 0x137   :  { %v79_v44 = vmul.f32 %v130_v41, %v68_v42 }
 0x138   :  { %v139_v45 = vpop.eup %138 }
 0x139   :  { %v141_v46 = vpop.eup %140  ;;  %v90_v47 = vadd.f32 %v131_v43, %v79_v44  ;;  %v69_v48 = vmul.f32 %v139_v45, %v37_v20 }
 0x13a   :  { %v70_v49 = vmul.f32 %v141_v46, %v38_v13 }
 0x13b   :  { %v132_v50 = vmul.f32 -1.442695, %v90_v47  ;;  %v80_v51 = vmul.f32 %v130_v41, %v69_v48 }
 0x13c   :  { %v143_v52 = vpop.eup %142  ;;  %v81_v53 = vmul.f32 %v130_v41, %v70_v49 }
 0x13d   :  { %144 = vpow2.f32 %v132_v50  ;;  %v91_v54 = vadd.f32 %v131_v43, %v80_v51  ;;  %v71_v55 = vmul.f32 %v143_v52, %v39_v21 }
 0x13e   :  { %v92_v56 = vadd.f32 %v131_v43, %v81_v53 }
 0x13f   :  { %v133_v57 = vmul.f32 -1.442695, %v91_v54  ;;  %v82_v58 = vmul.f32 %v130_v41, %v71_v55 }
 0x140   :  { %v134_v59 = vmul.f32 -1.442695, %v92_v56 }
 0x141   :  { %146 = vpow2.f32 %v133_v57  ;;  %v93_v60 = vadd.f32 %v131_v43, %v82_v58 }
 0x142   :  { %148 = vpow2.f32 %v134_v59 }
 0x143   :  { %v135_v61 = vmul.f32 -1.442695, %v93_v60 }
 0x145   :  { %150 = vpow2.f32 %v135_v61 }
 0x147   :  { %v145_v62 = vpop.eup %144 }
 0x148   :  { %v106_v63 = vadd.f32 1.0, %v145_v62 }
 0x14a   :  { %152 = vrcp.f32 %v106_v63 }
 0x14b   :  { %v147_v0 = vpop.eup %146 }
 0x14c   :  { %v149_v1 = vpop.eup %148  ;;  %v107_v2 = vadd.f32 1.0, %v147_v0 }
 0x14d   :  { %v108_v3 = vadd.f32 1.0, %v149_v1 }
 0x14e   :  { %154 = vrcp.f32 %v107_v2 }
 0x14f   :  { %v151_v4 = vpop.eup %150  ;;  %156 = vrcp.f32 %v108_v3 }
 0x150   :  { %v109_v5 = vadd.f32 1.0, %v151_v4 }
 0x152   :  { %158 = vrcp.f32 %v109_v5 }
 0x154   :  { %v153_v6 = vpop.eup %152 }
 0x155   :  { %v118_v7 = vmul.f32 %v153_v6, %v90_v47 }
 0x157   :  { %122 = vst.msk [vmem:[%s225_s3] sm:$0xff] %vm18_vm0, %v118_v7 }
 0x158   :  { %v155_v8 = vpop.eup %154 }
 0x159   :  { %v157_v9 = vpop.eup %156  ;;  %v119_v10 = vmul.f32 %v155_v8, %v91_v54 }
 0x15a   :  { %v120_v11 = vmul.f32 %v157_v9, %v92_v56 }
 0x15b   :  { %123 = vst.msk [vmem:[%s225_s3 + $0x8] sm:$0xff] %vm18_vm0, %v119_v10 }
 0x15c   :  { %v159_v12 = vpop.eup %158  ;;  %124 = vst.msk [vmem:[%s225_s3 + $0x10] sm:$0xff] %vm18_vm0, %v120_v11 }
 0x15d   :  { %v121_v13 = vmul.f32 %v159_v12, %v93_v60 }
 0x15f   :  { %125 = vst.msk [vmem:[%s225_s3 + $0x18] sm:$0xff] %vm18_vm0, %v121_v13 }

// kernel: run.64
= control target key start
LH: loop header
LB: loop body
LE: loop exit
PB: predicated region body
PF: predicated region fallthrough
CT: control target
= control target key end

     0   :  { %s270_s1 = inlined_call_operand.vmem [shape: f32[128,128], index: 1, kind: input, shape index: {}]   ;;  %s271_s0 = inlined_call_operand.vmem [shape: f32[32,128], index: 0, kind: input, shape index: {}]   ;;  %s272_s2 = inlined_call_operand.vmem [shape: f32[1,128], index: 2, kind: input, shape index: {}]   ;;  %s273_s3 = inlined_call_operand.vmem [shape: f32[32,128], index: 3, kind: output, shape index: {}]  }
   0x1   :  { %v33_v0 = vld [vmem:[%s270_s1] sm:$0xff]  ;;  %v34_v1 = vld [vmem:[%s270_s1 + $0x8] sm:$0xff]  ;;  %v35_v2 = vld [vmem:[%s270_s1 + $0x10] sm:$0xff] }
   0x2   :  { %v49_v3 = vpack.c.bf16 %v34_v1, %v33_v0  ;;  %v36_v4 = vld [vmem:[%s270_s1 + $0x18] sm:$0xff]  ;;  %v37_v6 = vld [vmem:[%s270_s1 + $0x20] sm:$0xff]  ;;  %v38_v7 = vld [vmem:[%s270_s1 + $0x28] sm:$0xff] }
   0x3   :  { %v50_v5 = vpack.c.bf16 %v36_v4, %v35_v2  ;;  %v51_v8 = vpack.c.bf16 %v38_v7, %v37_v6  ;;  %v27_v9 = vld [vmem:[%s271_s0] sm:$0xff]  ;;  %v28_v10 = vld [vmem:[%s271_s0 + $0x8] sm:$0xff]  ;;  %v39_v11 = vld [vmem:[%s270_s1 + $0x30] sm:$0xff] }
   0x4   :  { %155 = vmatprep.subr.bf16.mxu0 %v49_v3  ;;  %v40_v12 = vld [vmem:[%s270_s1 + $0x38] sm:$0xff]  ;;  %v31_v13 = vpack.c.bf16 %v28_v10, %v27_v9  ;;  %v41_v15 = vld [vmem:[%s270_s1 + $0x40] sm:$0xff]  ;;  %v42_v16 = vld [vmem:[%s270_s1 + $0x48] sm:$0xff] }
   0x5   :  { %156 = vmatpush3.bf16.msra.mxu0 %v49_v3  ;;  %v52_v14 = vpack.c.bf16 %v40_v12, %v39_v11  ;;  %v53_v17 = vpack.c.bf16 %v42_v16, %v41_v15  ;;  %v43_v18 = vld [vmem:[%s270_s1 + $0x50] sm:$0xff]  ;;  %v44_v19 = vld [vmem:[%s270_s1 + $0x58] sm:$0xff]  ;;  %v45_v21 = vld [vmem:[%s270_s1 + $0x60] sm:$0xff] }
   0x6   :  { %157 = vmatprep.subr.bf16.mxu0 %v50_v5  ;;  %171 = vmatprep.mubr.bf16.mxu0 %v31_v13  ;;  %v54_v20 = vpack.c.bf16 %v44_v19, %v43_v18  ;;  %v46_v22 = vld [vmem:[%s270_s1 + $0x68] sm:$0xff]  ;;  %v47_v24 = vld [vmem:[%s270_s1 + $0x70] sm:$0xff]  ;;  %v48_v25 = vld [vmem:[%s270_s1 + $0x78] sm:$0xff] }
   0x7   :  { %v55_v23 = vpack.c.bf16 %v46_v22, %v45_v21  ;;  %v56_v26 = vpack.c.bf16 %v48_v25, %v47_v24  ;;  %v29_v27 = vld [vmem:[%s271_s0 + $0x10] sm:$0xff]  ;;  %v30_v28 = vld [vmem:[%s271_s0 + $0x18] sm:$0xff]  ;;  %v144_v30 = vld [vmem:[%s272_s2] ss:$0 sm:$0xff] }
   0x8   :  { %v32_v29 = vpack.c.bf16 %v30_v28, %v29_v27 }
   0x9   :  { %158 = vmatpush3.bf16.msra.mxu0 %v50_v5 }
   0xa   :  { %159 = vmatprep.subr.bf16.mxu0 %v51_v8 }
   0xd   :  { %160 = vmatpush3.bf16.msra.mxu0 %v51_v8 }
   0xe   :  { %161 = vmatprep.subr.bf16.mxu0 %v52_v14 }
  0x11   :  { %162 = vmatpush3.bf16.msra.mxu0 %v52_v14 }
  0x12   :  { %163 = vmatprep.subr.bf16.mxu0 %v53_v17 }
  0x15   :  { %164 = vmatpush3.bf16.msra.mxu0 %v53_v17 }
  0x16   :  { %165 = vmatprep.subr.bf16.mxu0 %v54_v20 }
  0x19   :  { %166 = vmatpush3.bf16.msra.mxu0 %v54_v20 }
  0x1a   :  { %167 = vmatprep.subr.bf16.mxu0 %v55_v23 }
  0x1d   :  { %168 = vmatpush3.bf16.msra.mxu0 %v55_v23 }
  0x1e   :  { %169 = vmatprep.subr.bf16.mxu0 %v56_v26 }
  0x21   :  { %170 = vmatpush3.bf16.msra.mxu0 %v56_v26 }
  0x24   :  { %172 = vmatmul.mubr.bf16.vlgmr.msra.gmra.mrb[0].mxu0 %v32_v29 }
  0xf7   :  { %v173_v31 = vpop.f32.mrb[0].mxu0 }
  0xf8   :  { %v130_v32 = vadd.f32 %v173_v31, %v144_v30  ;;  %v91_v33 = vpop.f32.mrb[1].mxu0 }
  0xf9   :  { %v128_v34 = vadd.f32 %v144_v30, %v91_v33  ;;  %v174_v35 = vpop.f32.mrb[2].mxu0 }
  0xfa   :  { %v134_v36 = vmax.f32 %v130_v32, 0.0  ;;  %v131_v37 = vadd.f32 %v174_v35, %v144_v30  ;;  %v94_v38 = vpop.f32.mrb[3].mxu0 }
  0xfb   :  { %v132_v39 = vmax.f32 %v128_v34, 0.0  ;;  %v129_v40 = vadd.f32 %v144_v30, %v94_v38 }
  0xfc   :  { %138 = vst [vmem:[%s273_s3 + $0x10] sm:$0xff] %v134_v36  ;;  %v135_v41 = vmax.f32 %v131_v37, 0.0 }
  0xfd   :  { %136 = vst [vmem:[%s273_s3] sm:$0xff] %v132_v39  ;;  %v133_v42 = vmax.f32 %v129_v40, 0.0 }
  0xfe   :  { %139 = vst [vmem:[%s273_s3 + $0x18] sm:$0xff] %v135_v41 }
  0xff   :  { %137 = vst [vmem:[%s273_s3 + $0x8] sm:$0xff] %v133_v42 }

// kernel: run.65
= control target key start
LH: loop header
LB: loop body
LE: loop exit
PB: predicated region body
PF: predicated region fallthrough
CT: control target
= control target key end

     0   :  { %s298_s1 = inlined_call_operand.vmem [shape: f32[128,128], index: 1, kind: input, shape index: {}]   ;;  %s299_s0 = inlined_call_operand.vmem [shape: f32[32,128], index: 0, kind: input, shape index: {}]   ;;  %s300_s2 = inlined_call_operand.vmem [shape: f32[1,128], index: 2, kind: input, shape index: {}]   ;;  %s301_s3 = inlined_call_operand.vmem [shape: f32[32,128], index: 3, kind: input, shape index: {}]   ;;  %s302_s4 = inlined_call_operand.vmem [shape: f32[32,128], index: 4, kind: output, shape index: {}]  }
   0x1   :  { %v36_v0 = vld [vmem:[%s298_s1] sm:$0xff]  ;;  %v37_v1 = vld [vmem:[%s298_s1 + $0x8] sm:$0xff]  ;;  %v38_v2 = vld [vmem:[%s298_s1 + $0x10] sm:$0xff] }
   0x2   :  { %v52_v3 = vpack.c.bf16 %v37_v1, %v36_v0  ;;  %v39_v4 = vld [vmem:[%s298_s1 + $0x18] sm:$0xff]  ;;  %v40_v6 = vld [vmem:[%s298_s1 + $0x20] sm:$0xff]  ;;  %v41_v7 = vld [vmem:[%s298_s1 + $0x28] sm:$0xff] }
   0x3   :  { %v53_v5 = vpack.c.bf16 %v39_v4, %v38_v2  ;;  %v54_v8 = vpack.c.bf16 %v41_v7, %v40_v6  ;;  %v30_v9 = vld [vmem:[%s299_s0] sm:$0xff]  ;;  %v31_v10 = vld [vmem:[%s299_s0 + $0x8] sm:$0xff]  ;;  %v42_v11 = vld [vmem:[%s298_s1 + $0x30] sm:$0xff] }
   0x4   :  { %166 = vmatprep.subr.bf16.mxu0 %v52_v3  ;;  %v43_v12 = vld [vmem:[%s298_s1 + $0x38] sm:$0xff]  ;;  %v34_v13 = vpack.c.bf16 %v31_v10, %v30_v9  ;;  %v44_v15 = vld [vmem:[%s298_s1 + $0x40] sm:$0xff]  ;;  %v45_v16 = vld [vmem:[%s298_s1 + $0x48] sm:$0xff] }
   0x5   :  { %167 = vmatpush3.bf16.msra.mxu0 %v52_v3  ;;  %v55_v14 = vpack.c.bf16 %v43_v12, %v42_v11  ;;  %v56_v17 = vpack.c.bf16 %v45_v16, %v44_v15  ;;  %v46_v18 = vld [vmem:[%s298_s1 + $0x50] sm:$0xff]  ;;  %v47_v19 = vld [vmem:[%s298_s1 + $0x58] sm:$0xff]  ;;  %v48_v21 = vld [vmem:[%s298_s1 + $0x60] sm:$0xff] }
   0x6   :  { %168 = vmatprep.subr.bf16.mxu0 %v53_v5  ;;  %182 = vmatprep.mubr.bf16.mxu0 %v34_v13  ;;  %v57_v20 = vpack.c.bf16 %v47_v19, %v46_v18  ;;  %v49_v22 = vld [vmem:[%s298_s1 + $0x68] sm:$0xff]  ;;  %v50_v24 = vld [vmem:[%s298_s1 + $0x70] sm:$0xff]  ;;  %v51_v25 = vld [vmem:[%s298_s1 + $0x78] sm:$0xff] }
   0x7   :  { %v58_v23 = vpack.c.bf16 %v49_v22, %v48_v21  ;;  %v59_v26 = vpack.c.bf16 %v51_v25, %v50_v24  ;;  %v32_v27 = vld [vmem:[%s299_s0 + $0x10] sm:$0xff]  ;;  %v33_v28 = vld [vmem:[%s299_s0 + $0x18] sm:$0xff]  ;;  %v155_v30 = vld [vmem:[%s300_s2] ss:$0 sm:$0xff] }
   0x8   :  { %v35_v29 = vpack.c.bf16 %v33_v28, %v32_v27  ;;  %v141_v34 = vld [vmem:[%s301_s3 + $0x10] sm:$0xff]  ;;  %v139_v38 = vld [vmem:[%s301_s3] sm:$0xff]  ;;  %v142_v42 = vld [vmem:[%s301_s3 + $0x18] sm:$0xff] }
   0x9   :  { %169 = vmatpush3.bf16.msra.mxu0 %v53_v5  ;;  %v140_v46 = vld [vmem:[%s301_s3 + $0x8] sm:$0xff] }
   0xa   :  { %170 = vmatprep.subr.bf16.mxu0 %v54_v8 }
   0xd   :  { %171 = vmatpush3.bf16.msra.mxu0 %v54_v8 }
   0xe   :  { %172 = vmatprep.subr.bf16.mxu0 %v55_v14 }
  0x11   :  { %173 = vmatpush3.bf16.msra.mxu0 %v55_v14 }
  0x12   :  { %174 = vmatprep.subr.bf16.mxu0 %v56_v17 }
  0x15   :  { %175 = vmatpush3.bf16.msra.mxu0 %v56_v17 }
  0x16   :  { %176 = vmatprep.subr.bf16.mxu0 %v57_v20 }
  0x19   :  { %177 = vmatpush3.bf16.msra.mxu0 %v57_v20 }
  0x1a   :  { %178 = vmatprep.subr.bf16.mxu0 %v58_v23 }
  0x1d   :  { %179 = vmatpush3.bf16.msra.mxu0 %v58_v23 }
  0x1e   :  { %180 = vmatprep.subr.bf16.mxu0 %v59_v26 }
  0x21   :  { %181 = vmatpush3.bf16.msra.mxu0 %v59_v26 }
  0x24   :  { %183 = vmatmul.mubr.bf16.vlgmr.msra.gmra.mrb[0].mxu0 %v35_v29 }
  0xf7   :  { %v184_v31 = vpop.f32.mrb[0].mxu0 }
  0xf8   :  { %v133_v32 = vadd.f32 %v184_v31, %v155_v30  ;;  %v94_v33 = vpop.f32.mrb[1].mxu0 }
  0xf9   :  { %v131_v35 = vadd.f32 %v155_v30, %v94_v33  ;;  %v185_v36 = vpop.f32.mrb[2].mxu0 }
  0xfa   :  { %v137_v37 = vmul.f32 0.5, %v133_v32  ;;  %v134_v39 = vadd.f32 %v185_v36, %v155_v30  ;;  %v97_v40 = vpop.f32.mrb[3].mxu0 }
  0xfb   :  { %v135_v41 = vmul.f32 0.5, %v131_v35  ;;  %v132_v43 = vadd.f32 %v155_v30, %v97_v40 }
  0xfc   :  { %v145_v44 = vadd.f32 %v141_v34, %v137_v37  ;;  %v138_v45 = vmul.f32 0.5, %v134_v39 }
  0xfd   :  { %v143_v47 = vadd.f32 %v139_v38, %v135_v41  ;;  %v136_v48 = vmul.f32 0.5, %v132_v43 }
  0xfe   :  { %149 = vst [vmem:[%s302_s4 + $0x10] sm:$0xff] %v145_v44  ;;  %v146_v49 = vadd.f32 %v142_v42, %v138_v45 }
  0xff   :  { %147 = vst [vmem:[%s302_s4] sm:$0xff] %v143_v47  ;;  %v144_v50 = vadd.f32 %v140_v46, %v136_v48 }
 0x100   :  { %150 = vst [vmem:[%s302_s4 + $0x18] sm:$0xff] %v146_v49 }
 0x101   :  { %148 = vst [vmem:[%s302_s4 + $0x8] sm:$0xff] %v144_v50 }

// kernel: run.66
= control target key start
LH: loop header
LB: loop body
LE: loop exit
PB: predicated region body
PF: predicated region fallthrough
CT: control target
= control target key end

     0   :  { %vm18_vm0 = vcmask 261120   ;;  %s174_s0 = inlined_call_operand.vmem [shape: f32[32,32], index: 0, kind: input, shape index: {}]   ;;  %s175_s1 = inlined_call_operand.vmem [shape: f32[1,32], index: 1, kind: input, shape index: {}]   ;;  %s176_s2 = inlined_call_operand.vmem [shape: f32[1,32], index: 2, kind: input, shape index: {}]   ;;  %s177_s3 = inlined_call_operand.vmem [shape: f32[32,32], index: 3, kind: output, shape index: {}]  }
   0x1   :  { %v14_v0 = vld [vmem:[%s174_s0] sm:$0xff]  ;;  %v16_v1 = vld [vmem:[%s174_s0 + $0x10] sm:$0xff]  ;;  %v15_v2 = vld [vmem:[%s174_s0 + $0x8] sm:$0xff] }
   0x2   :  { %v19_v3 = vsel %vm18_vm0, %v14_v0, 0.0  ;;  %v25_v4 = vsel %vm18_vm0, %v16_v1, 0.0  ;;  %v17_v5 = vld [vmem:[%s174_s0 + $0x18] sm:$0xff]  ;;  %v22_v6 = vsel %vm18_vm0, %v15_v2, 0.0  ;;  %v102_v41 = vld [vmem:[%s175_s1] ss:$0 sm:$0xff] }
   0x3   :  { %20 = vadd.xlane.f32.xlu0 %v19_v3  ;;  %26 = vadd.xlane.f32.xlu1 %v25_v4  ;;  %v28_v7 = vsel %vm18_vm0, %v17_v5, 0.0  ;;  %v103_v43 = vld [vmem:[%s176_s2] ss:$0 sm:$0xff] }
   0x7   :  { %23 = vadd.xlane.f32.xlu0 %v22_v6  ;;  %29 = vadd.xlane.f32.xlu1 %v28_v7 }
  0x90   :  { %v21_v8 = vpop.xlane.xlu0 %20  ;;  %v27_v9 = vpop.xlane.xlu1 %26 }
  0x91   :  { %v32_v10 = vmul.f32 0.03125, %v21_v8  ;;  %v34_v11 = vmul.f32 0.03125, %v27_v9 }
  0x93   :  { %v36_v12 = vsub.f32 %v14_v0, %v32_v10  ;;  %v38_v13 = vsub.f32 %v16_v1, %v34_v11 }
  0x94   :  { %v24_v14 = vpop.xlane.xlu0 %23  ;;  %v30_v15 = vpop.xlane.xlu1 %29 }
  0x95   :  { %v33_v16 = vmul.f32 0.03125, %v24_v14  ;;  %v35_v17 = vmul.f32 0.03125, %v30_v15  ;;  %v40_v18 = vmul.f32 %v36_v12, %v36_v12  ;;  %v42_v19 = vmul.f32 %v38_v13, %v38_v13 }
  0x97   :  { %v37_v20 = vsub.f32 %v15_v2, %v33_v16  ;;  %v39_v21 = vsub.f32 %v17_v5, %v35_v17  ;;  %v44_v22 = vsel %vm18_vm0, %v40_v18, 0.0  ;;  %v50_v23 = vsel %vm18_vm0, %v42_v19, 0.0 }
  0x98   :  { %45 = vadd.xlane.f32.xlu0 %v44_v22 }
  0x99   :  { %v41_v24 = vmul.f32 %v37_v20, %v37_v20  ;;  %v43_v25 = vmul.f32 %v39_v21, %v39_v21 }
  0x9b   :  { %v47_v26 = vsel %vm18_vm0, %v41_v24, 0.0  ;;  %v53_v27 = vsel %vm18_vm0, %v43_v25, 0.0 }
  0x9c   :  { %51 = vadd.xlane.f32.xlu0 %v50_v23  ;;  %48 = vadd.xlane.f32.xlu1 %v47_v26 }
  0xa0   :  { %54 = vadd.xlane.f32.xlu1 %v53_v27 }
 0x125   :  { %v46_v28 = vpop.xlane.xlu0 %45 }
 0x126   :  { %v56_v29 = vmul.f32 0.03125, %v46_v28 }
 0x128   :  { %v60_v30 = vadd.f32 1e-05, %v56_v29 }
 0x129   :  { %v49_v31 = vpop.xlane.xlu1 %48  ;;  %v52_v32 = vpop.xlane.xlu0 %51 }
 0x12a   :  { %104 = vrsqrt.f32 %v60_v30  ;;  %v57_v33 = vmul.f32 0.03125, %v49_v31  ;;  %v58_v34 = vmul.f32 0.03125, %v52_v32 }
 0x12c   :  { %v61_v35 = vadd.f32 1e-05, %v57_v33  ;;  %v62_v36 = vadd.f32 1e-05, %v58_v34 }
 0x12d   :  { %v55_v37 = vpop.xlane.xlu1 %54 }
 0x12e   :  { %106 = vrsqrt.f32 %v61_v35  ;;  %v59_v38 = vmul.f32 0.03125, %v55_v37 }
 0x12f   :  { %108 = vrsqrt.f32 %v62_v36 }
 0x130   :  { %v63_v39 = vadd.f32 1e-05, %v59_v38 }
 0x132   :  { %110 = vrsqrt.f32 %v63_v39 }
 0x134   :  { %v105_v40 = vpop.eup %104 }
 0x135   :  { %v68_v42 = vmul.f32 %v105_v40, %v36_v12 }
 0x137   :  { %v79_v44 = vmul.f32 %v102_v41, %v68_v42 }
 0x138   :  { %v107_v45 = vpop.eup %106 }
 0x139   :  { %v109_v46 = vpop.eup %108  ;;  %v90_v47 = vadd.f32 %v103_v43, %v79_v44  ;;  %v69_v48 = vmul.f32 %v107_v45, %v37_v20 }
 0x13a   :  { %v70_v49 = vmul.f32 %v109_v46, %v38_v13 }
 0x13b   :  { %94 = vst.msk [vmem:[%s177_s3] sm:$0xff] %vm18_vm0, %v90_v47  ;;  %v80_v50 = vmul.f32 %v102_v41, %v69_v48 }
 0x13c   :  { %v111_v51 = vpop.eup %110  ;;  %v81_v52 = vmul.f32 %v102_v41, %v70_v49 }
 0x13d   :  { %v91_v53 = vadd.f32 %v103_v43, %v80_v50  ;;  %v71_v54 = vmul.f32 %v111_v51, %v39_v21 }
 0x13e   :  { %v92_v55 = vadd.f32 %v103_v43, %v81_v52 }
 0x13f   :  { %95 = vst.msk [vmem:[%s177_s3 + $0x8] sm:$0xff] %vm18_vm0, %v91_v53  ;;  %v82_v56 = vmul.f32 %v102_v41, %v71_v54 }
 0x140   :  { %96 = vst.msk [vmem:[%s177_s3 + $0x10] sm:$0xff] %vm18_vm0, %v92_v55 }
 0x141   :  { %v93_v57 = vadd.f32 %v103_v43, %v82_v56 }
 0x143   :  { %97 = vst.msk [vmem:[%s177_s3 + $0x18] sm:$0xff] %vm18_vm0, %v93_v57 }

// kernel: run.73
= control target key start
LH: loop header
LB: loop body
LE: loop exit
PB: predicated region body
PF: predicated region fallthrough
CT: control target
= control target key end

     0   :  { %vm16_vm0 = vcmask 261120   ;;  %s142_s0 = inlined_call_operand.vmem [shape: f32[16,32], index: 0, kind: input, shape index: {}]   ;;  %s143_s1 = inlined_call_operand.vmem [shape: f32[1,32], index: 1, kind: input, shape index: {}]   ;;  %s144_s2 = inlined_call_operand.vmem [shape: f32[1,32], index: 2, kind: input, shape index: {}]   ;;  %s145_s3 = inlined_call_operand.vmem [shape: f32[16,32], index: 3, kind: output, shape index: {}]  }
   0x1   :  { %v14_v0 = vld [vmem:[%s142_s0] sm:$0xff]  ;;  %v15_v1 = vld [vmem:[%s142_s0 + $0x8] sm:$0xff] }
   0x2   :  { %v17_v2 = vsel %vm16_vm0, %v14_v0, 0.0  ;;  %v20_v3 = vsel %vm16_vm0, %v15_v1, 0.0  ;;  %v82_v21 = vld [vmem:[%s143_s1] ss:$0 sm:$0xff] }
   0x3   :  { %18 = vadd.xlane.f32.xlu0 %v17_v2  ;;  %v83_v23 = vld [vmem:[%s144_s2] ss:$0 sm:$0xff] }
   0x7   :  { %21 = vadd.xlane.f32.xlu0 %v20_v3 }
  0x90   :  { %v19_v4 = vpop.xlane.xlu0 %18 }
  0x91   :  { %v24_v5 = vmul.f32 0.03125, %v19_v4 }
  0x93   :  { %v26_v6 = vsub.f32 %v14_v0, %v24_v5 }
  0x94   :  { %v22_v7 = vpop.xlane.xlu0 %21 }
  0x95   :  { %v25_v8 = vmul.f32 0.03125, %v22_v7  ;;  %v28_v9 = vmul.f32 %v26_v6, %v26_v6 }
  0x97   :  { %v27_v10 = vsub.f32 %v15_v1, %v25_v8  ;;  %v30_v11 = vsel %vm16_vm0, %v28_v9, 0.0 }
  0x98   :  { %31 = vadd.xlane.f32.xlu1 %v30_v11 }
  0x99   :  { %v29_v12 = vmul.f32 %v27_v10, %v27_v10 }
  0x9b   :  { %v33_v13 = vsel %vm16_vm0, %v29_v12, 0.0 }
  0x9c   :  { %34 = vadd.xlane.f32.xlu1 %v33_v13 }
 0x125   :  { %v32_v14 = vpop.xlane.xlu1 %31 }
 0x126   :  { %v36_v15 = vmul.f32 0.03125, %v32_v14 }
 0x128   :  { %v38_v16 = vadd.f32 1e-05, %v36_v15 }
 0x129   :  { %v35_v17 = vpop.xlane.xlu1 %34 }
 0x12a   :  { %86 = vrsqrt.f32 %v38_v16  ;;  %v37_v18 = vmul.f32 0.03125, %v35_v17 }
 0x12c   :  { %v39_v19 = vadd.f32 1e-05, %v37_v18 }
 0x12e   :  { %88 = vrsqrt.f32 %v39_v19 }
 0x134   :  { %v87_v20 = vpop.eup %86 }
 0x135   :  { %v42_v22 = vmul.f32 %v87_v20, %v26_v6 }
 0x137   :  { %v51_v24 = vmul.f32 %v82_v21, %v42_v22 }
 0x138   :  { %v89_v25 = vpop.eup %88 }
 0x139   :  { %v60_v26 = vadd.f32 %v83_v23, %v51_v24  ;;  %v43_v27 = vmul.f32 %v89_v25, %v27_v10 }
 0x13b   :  { %v84_v28 = vmul.f32 -1.442695, %v60_v26  ;;  %v52_v29 = vmul.f32 %v82_v21, %v43_v27 }
 0x13d   :  { %90 = vpow2.f32 %v84_v28  ;;  %v61_v30 = vadd.f32 %v83_v23, %v52_v29 }
 0x13f   :  { %v85_v31 = vmul.f32 -1.442695, %v61_v30 }
 0x141   :  { %92 = vpow2.f32 %v85_v31 }
 0x147   :  { %v91_v32 = vpop.eup %90 }
 0x148   :  { %v68_v33 = vadd.f32 1.0, %v91_v32 }
 0x14a   :  { %94 = vrcp.f32 %v68_v33 }
 0x14b   :  { %v93_v34 = vpop.eup %92 }
 0x14c   :  { %v69_v35 = vadd.f32 1.0, %v93_v34 }
 0x14e   :  { %96 = vrcp.f32 %v69_v35 }
 0x154   :  { %v95_v36 = vpop.eup %94 }
 0x155   :  { %v74_v37 = vmul.f32 %v95_v36, %v60_v26 }
 0x157   :  { %76 = vst.msk [vmem:[%s145_s3] sm:$0xff] %vm16_vm0, %v74_v37 }
 0x158   :  { %v97_v38 = vpop.eup %96 }
 0x159   :  { %v75_v39 = vmul.f32 %v97_v38, %v61_v30 }
 0x15b   :  { %77 = vst.msk [vmem:[%s145_s3 + $0x8] sm:$0xff] %vm16_vm0, %v75_v39 }

// kernel: run.72
= control target key start
LH: loop header
LB: loop body
LE: loop exit
PB: predicated region body
PF: predicated region fallthrough
CT: control target
= control target key end

     0   :  { %v24_v0 = vlaneseq  ;;  %vm44_vm0 = vcmask 1046528   ;;  %vm67_vm1 = vcmask 1045504   ;;  %vm90_vm2 = vcmask 1044480   ;;  %s340_s1 = inlined_call_operand.vmem [shape: f32[2,5,32], index: 1, kind: input, shape index: {}]   ;;  %s341_s0 = inlined_call_operand.vmem [shape: f32[2,2,12,32], index: 0, kind: input, shape index: {}]   ;;  %s342_s2 = inlined_call_operand.vmem [shape: f32[1,32], index: 2, kind: input, shape index: {}]   ;;  %s343_s3 = inlined_call_operand.vmem [shape: f32[2,8,32], index: 3, kind: output, shape index: {}]  }
   0x1   :  { %v22_v2 = vld [vmem:[%s340_s1] sm:$0x1f]  ;;  %v265_v3 = vld [vmem:[%s340_s1 + $0x8] sm:$0x1f]  ;;  %vm113_vm3 = vcmask 1043456   ;;  %v16_v49 = vld [vmem:[%s341_s0 + $0x10] sm:$0xff] }
   0x2   :  { %v257_v1 = vshrl.u32 %v24_v0, 7  ;;  %v14_v8 = vld [vmem:[%s341_s0] sm:$0xff]  ;;  %v15_v9 = vld [vmem:[%s341_s0 + $0x8] sm:$0xf]  ;;  %v20_v54 = vld [vmem:[%s341_s0 + $0x30] sm:$0xff]  ;;  %vm229_vm4 = vcmask 261120  }
   0x3   :  { %v18_v11 = vld [vmem:[%s341_s0 + $0x20] sm:$0xff]  ;;  %v19_v12 = vld [vmem:[%s341_s0 + $0x28] sm:$0xf]  ;;  %v17_v59 = vld [vmem:[%s341_s0 + $0x18] sm:$0xf] }
   0x4   :  { %v26_v4 = vsub.s32 0, %v257_v1  ;;  %v34_v5 = vsub.s32 1, %v257_v1  ;;  %v57_v6 = vsub.s32 2, %v257_v1  ;;  %v80_v7 = vsub.s32 3, %v257_v1  ;;  %v21_v0 = vld [vmem:[%s341_s0 + $0x38] sm:$0xf] }
   0x5   :  { %v103_v10 = vsub.s32 4, %v257_v1 }
   0x6   :  { %v27_v13 = vrot.slane %v22_v2, %v26_v4  ;;  %v35_v14 = vrot.slane %v22_v2, %v34_v5  ;;  %v58_v15 = vrot.slane %v22_v2, %v57_v6  ;;  %v81_v16 = vrot.slane %v22_v2, %v80_v7 }
   0x7   :  { %v104_v17 = vrot.slane %v22_v2, %v103_v10  ;;  %v127_v18 = vrot.slane %v265_v3, %v26_v4  ;;  %v135_v19 = vrot.slane %v265_v3, %v34_v5  ;;  %v291_v20 = vrot.slane %v265_v3, %v57_v6 }
   0x8   :  { %v28_v21 = vmul.f32 %v27_v13, %v14_v8  ;;  %v29_v22 = vmul.f32 %v27_v13, %v18_v11  ;;  %v36_v23 = vmul.f32 %v35_v14, %v14_v8  ;;  %v37_v24 = vmul.f32 %v35_v14, %v15_v9 }
   0x9   :  { %v38_v25 = vmul.f32 %v35_v14, %v18_v11  ;;  %v39_v26 = vmul.f32 %v35_v14, %v19_v12  ;;  %v59_v27 = vmul.f32 %v58_v15, %v14_v8  ;;  %v60_v28 = vmul.f32 %v58_v15, %v15_v9 }
   0xa   :  { %v45_v29 = vrot.slane %v36_v23, 1  ;;  %v46_v30 = vrot.slane %v37_v24, 1  ;;  %v61_v31 = vmul.f32 %v58_v15, %v18_v11  ;;  %v62_v32 = vmul.f32 %v58_v15, %v19_v12 }
   0xb   :  { %v48_v33 = vrot.slane %v38_v25, 1  ;;  %v49_v34 = vrot.slane %v39_v26, 1  ;;  %v68_v35 = vrot.slane %v59_v27, 2  ;;  %v69_v36 = vrot.slane %v60_v28, 2 }
   0xc   :  { %v47_v37 = vsel %vm44_vm0, %v45_v29, %v46_v30  ;;  %v71_v38 = vrot.slane %v61_v31, 2  ;;  %v72_v39 = vrot.slane %v62_v32, 2  ;;  %v82_v40 = vmul.f32 %v81_v16, %v14_v8 }
   0xd   :  { %v50_v41 = vsel %vm44_vm0, %v48_v33, %v49_v34  ;;  %v53_v42 = vadd.f32 %v47_v37, %v28_v21  ;;  %v70_v43 = vsel %vm67_vm1, %v68_v35, %v69_v36  ;;  %v83_v44 = vmul.f32 %v81_v16, %v15_v9 }
   0xe   :  { %v54_v45 = vadd.f32 %v50_v41, %v29_v22  ;;  %v73_v46 = vsel %vm67_vm1, %v71_v38, %v72_v39  ;;  %v84_v47 = vmul.f32 %v81_v16, %v18_v11  ;;  %v85_v48 = vmul.f32 %v81_v16, %v19_v12 }
   0xf   :  { %v76_v50 = vadd.f32 %v70_v43, %v53_v42  ;;  %v91_v51 = vrot.slane %v82_v40, 3  ;;  %v92_v52 = vrot.slane %v83_v44, 3  ;;  %v105_v53 = vmul.f32 %v104_v17, %v14_v8 }
  0x10   :  { %v77_v55 = vadd.f32 %v73_v46, %v54_v45  ;;  %v94_v56 = vrot.slane %v84_v47, 3  ;;  %v95_v57 = vrot.slane %v85_v48, 3  ;;  %v106_v58 = vmul.f32 %v104_v17, %v15_v9 }
  0x11   :  { %v93_v60 = vsel %vm90_vm2, %v91_v51, %v92_v52  ;;  %v107_v61 = vmul.f32 %v104_v17, %v18_v11  ;;  %v108_v62 = vmul.f32 %v104_v17, %v19_v12  ;;  %v114_v63 = vrot.slane %v105_v53, 4 }
  0x12   :  { %v96_v2 = vsel %vm90_vm2, %v94_v56, %v95_v57  ;;  %v99_v4 = vadd.f32 %v93_v60, %v76_v50  ;;  %v115_v5 = vrot.slane %v106_v58, 4  ;;  %v128_v6 = vmul.f32 %v127_v18, %v16_v49 }
  0x13   :  { %v100_v8 = vadd.f32 %v96_v2, %v77_v55  ;;  %v117_v9 = vrot.slane %v107_v61, 4  ;;  %v118_v13 = vrot.slane %v108_v62, 4  ;;  %v129_v14 = vmul.f32 %v127_v18, %v20_v54 }
  0x14   :  { %v116_v15 = vsel %vm113_vm3, %v114_v63, %v115_v5  ;;  %v136_v16 = vmul.f32 %v135_v19, %v16_v49  ;;  %v137_v21 = vmul.f32 %v135_v19, %v17_v59  ;;  %v138_v11 = vmul.f32 %v135_v19, %v20_v54 }
  0x15   :  { %v119_v12 = vsel %vm113_vm3, %v117_v9, %v118_v13  ;;  %v122_v17 = vadd.f32 %v116_v15, %v99_v4  ;;  %v139_v22 = vmul.f32 %v135_v19, %v21_v0  ;;  %v158_v23 = vmul.f32 %v291_v20, %v16_v49 }
  0x16   :  { %v123_v24 = vadd.f32 %v119_v12, %v100_v8  ;;  %v144_v25 = vrot.slane %v136_v16, 1  ;;  %v145_v26 = vrot.slane %v137_v21, 1  ;;  %v147_v27 = vrot.slane %v138_v11, 1 }
  0x17   :  { %v130_v28 = vadd.f32 %v128_v6, %v122_v17  ;;  %v148_v29 = vrot.slane %v139_v22, 1  ;;  %v159_v30 = vmul.f32 %v291_v20, %v17_v59  ;;  %v160_v18 = vmul.f32 %v291_v20, %v20_v54 }
  0x18   :  { %v131_v31 = vadd.f32 %v129_v14, %v123_v24  ;;  %v146_v32 = vsel %vm44_vm0, %v144_v25, %v145_v26  ;;  %v161_v33 = vmul.f32 %v291_v20, %v21_v0  ;;  %v166_v34 = vrot.slane %v158_v23, 2 }
  0x19   :  { %v149_v19 = vsel %vm44_vm0, %v147_v27, %v148_v29  ;;  %v152_v35 = vadd.f32 %v146_v32, %v130_v28  ;;  %v167_v36 = vrot.slane %v159_v30, 2  ;;  %v169_v37 = vrot.slane %v160_v18, 2 }
  0x1a   :  { %v153_v38 = vadd.f32 %v149_v19, %v131_v31  ;;  %v170_v39 = vrot.slane %v161_v33, 2  ;;  %v179_v40 = vrot.slane %v265_v3, %v80_v7  ;;  %v201_v41 = vrot.slane %v265_v3, %v103_v10 }
  0x1b   :  { %v168_v42 = vsel %vm67_vm1, %v166_v34, %v167_v36 }
  0x1c   :  { %v171_v20 = vsel %vm67_vm1, %v169_v37, %v170_v39  ;;  %v174_v43 = vadd.f32 %v168_v42, %v152_v35  ;;  %v180_v44 = vmul.f32 %v179_v40, %v16_v49  ;;  %v181_v45 = vmul.f32 %v179_v40, %v17_v59 }
  0x1d   :  { %v175_v46 = vadd.f32 %v171_v20, %v153_v38  ;;  %v182_v47 = vmul.f32 %v179_v40, %v20_v54  ;;  %v183_v48 = vmul.f32 %v179_v40, %v21_v0  ;;  %v202_v50 = vmul.f32 %v201_v41, %v16_v49  ;;  %v236_v49 = vld [vmem:[%s342_s2] ss:$0 sm:$0xff] }
  0x1e   :  { %v188_v51 = vrot.slane %v180_v44, 3  ;;  %v189_v52 = vrot.slane %v181_v45, 3  ;;  %v203_v53 = vmul.f32 %v201_v41, %v17_v59  ;;  %v204_v55 = vmul.f32 %v201_v41, %v20_v54 }
  0x1f   :  { %v191_v7 = vrot.slane %v182_v47, 3  ;;  %v192_v56 = vrot.slane %v183_v48, 3  ;;  %v205_v1 = vmul.f32 %v201_v41, %v21_v0  ;;  %v210_v57 = vrot.slane %v202_v50, 4 }
  0x20   :  { %v190_v3 = vsel %vm90_vm2, %v188_v51, %v189_v52  ;;  %v211_v10 = vrot.slane %v203_v53, 4  ;;  %v213_v58 = vrot.slane %v204_v55, 4 }
  0x21   :  { %v193_v60 = vsel %vm90_vm2, %v191_v7, %v192_v56  ;;  %v196_v61 = vadd.f32 %v190_v3, %v174_v43  ;;  %v214_v62 = vrot.slane %v205_v1, 4 }
  0x22   :  { %v197_v63 = vadd.f32 %v193_v60, %v175_v46  ;;  %v212_v2 = vsel %vm113_vm3, %v210_v57, %v211_v10 }
  0x23   :  { %v215_v54 = vsel %vm113_vm3, %v213_v58, %v214_v62  ;;  %v218_v59 = vadd.f32 %v212_v2, %v196_v61 }
  0x24   :  { %v219_v0 = vadd.f32 %v215_v54, %v197_v63 }
  0x25   :  { %v227_v4 = vadd.f32 %v236_v49, %v218_v59 }
  0x26   :  { %v228_v5 = vadd.f32 %v236_v49, %v219_v0 }
  0x27   :  { %230 = vst.msk [vmem:[%s343_s3] sm:$0xff] %vm229_vm4, %v227_v4 }
  0x28   :  { %231 = vst.msk [vmem:[%s343_s3 + $0x8] sm:$0xff] %vm229_vm4, %v228_v5 }

// kernel: run.70
= control target key start
LH: loop header
LB: loop body
LE: loop exit
PB: predicated region body
PF: predicated region fallthrough
CT: control target
= control target key end

     0   :  { %v238_v0 = vmov 0   ;;  %vm27_vm0 = vcmask 254976   ;;  %vm193_vm1 = vcmask 1041409   ;;  %vm196_vm2 = vcmask 1042434   ;;  %s343_s1 = inlined_call_operand.vmem [shape: f32[1,8,1], index: 1, kind: input, shape index: {}]   ;;  %s344_s0 = inlined_call_operand.vmem [shape: f32[2,8,2,32], index: 0, kind: input, shape index: {}]   ;;  %s345_s2 = inlined_call_operand.vmem [shape: f32[2,8,32], index: 2, kind: output, shape index: {}]  }
   0x1   :  { %237 = vset.pattern.permute.xlu0 %v238_v0  ;;  %v140_v1 = vld [vmem:[%s343_s1] sm:$0xff]  ;;  %v15_v6 = vld [vmem:[%s344_s0 + $0x8] sm:$0x3]  ;;  %v16_v7 = vld [vmem:[%s344_s0 + $0xa] sm:$0x3]  ;;  %vm199_vm3 = vcmask 1043459  }
   0x2   :  { %143 = vperm.xlu0 %237, %v140_v1   ;;  %v11_v2 = vld [vmem:[%s344_s0] sm:$0x3]  ;;  %v12_v3 = vld [vmem:[%s344_s0 + $0x2] sm:$0x3]  ;;  %v13_v4 = vld [vmem:[%s344_s0 + $0x4] sm:$0x3] }
   0x3   :  { %v14_v5 = vld [vmem:[%s344_s0 + $0x6] sm:$0x3]  ;;  %v17_v8 = vld [vmem:[%s344_s0 + $0xc] sm:$0x3]  ;;  %v18_v9 = vld [vmem:[%s344_s0 + $0xe] sm:$0x3] }
   0x4   :  { %v28_v10 = vsel %vm27_vm0, %v11_v2, 0.0  ;;  %v35_v11 = vsel %vm27_vm0, %v12_v3, 0.0  ;;  %v19_v12 = vld [vmem:[%s344_s0 + $0x10] sm:$0x3]  ;;  %v20_v13 = vld [vmem:[%s344_s0 + $0x12] sm:$0x3] }
   0x5   :  { %v42_v14 = vsel %vm27_vm0, %v13_v4, 0.0  ;;  %v49_v15 = vsel %vm27_vm0, %v14_v5, 0.0  ;;  %v21_v16 = vld [vmem:[%s344_s0 + $0x14] sm:$0x3]  ;;  %v22_v17 = vld [vmem:[%s344_s0 + $0x16] sm:$0x3] }
   0x6   :  { %v56_v18 = vsel %vm27_vm0, %v15_v6, 0.0  ;;  %v63_v19 = vsel %vm27_vm0, %v16_v7, 0.0  ;;  %v23_v20 = vld [vmem:[%s344_s0 + $0x18] sm:$0x3]  ;;  %v24_v21 = vld [vmem:[%s344_s0 + $0x1a] sm:$0x3] }
   0x7   :  { %v29_v22 = vrot.slane %v28_v10, 4  ;;  %v36_v23 = vrot.slane %v35_v11, 4  ;;  %v43_v24 = vrot.slane %v42_v14, 4  ;;  %v50_v25 = vrot.slane %v49_v15, 4  ;;  %v25_v38 = vld [vmem:[%s344_s0 + $0x1c] sm:$0x3] }
   0x8   :  { %v70_v26 = vsel %vm27_vm0, %v17_v8, 0.0  ;;  %v77_v27 = vsel %vm27_vm0, %v18_v9, 0.0  ;;  %v57_v28 = vrot.slane %v56_v18, 4  ;;  %v64_v29 = vrot.slane %v63_v19, 4  ;;  %v26_v39 = vld [vmem:[%s344_s0 + $0x1e] sm:$0x3] }
   0x9   :  { %v84_v30 = vsel %vm27_vm0, %v19_v12, 0.0  ;;  %v91_v31 = vsel %vm27_vm0, %v20_v13, 0.0  ;;  %v98_v32 = vsel %vm27_vm0, %v21_v16, 0.0  ;;  %v105_v33 = vsel %vm27_vm0, %v22_v17, 0.0 }
   0xa   :  { %v112_v34 = vsel %vm27_vm0, %v23_v20, 0.0  ;;  %v119_v35 = vsel %vm27_vm0, %v24_v21, 0.0  ;;  %v71_v36 = vrot.slane %v70_v26, 4  ;;  %v78_v37 = vrot.slane %v77_v27, 4 }
   0xb   :  { %v30_v40 = vadd.f32 %v29_v22, %v28_v10  ;;  %v37_v41 = vadd.f32 %v36_v23, %v35_v11  ;;  %v85_v42 = vrot.slane %v84_v30, 4  ;;  %v92_v43 = vrot.slane %v91_v31, 4 }
   0xc   :  { %v99_v44 = vrot.slane %v98_v32, 4  ;;  %v106_v45 = vrot.slane %v105_v33, 4  ;;  %v113_v46 = vrot.slane %v112_v34, 4  ;;  %v120_v47 = vrot.slane %v119_v35, 4 }
   0xd   :  { %v44_v48 = vadd.f32 %v43_v24, %v42_v14  ;;  %v51_v49 = vadd.f32 %v50_v25, %v49_v15  ;;  %v58_v50 = vadd.f32 %v57_v28, %v56_v18  ;;  %v65_v51 = vadd.f32 %v64_v29, %v63_v19 }
   0xe   :  { %v72_v52 = vadd.f32 %v71_v36, %v70_v26  ;;  %v79_v53 = vadd.f32 %v78_v37, %v77_v27  ;;  %v126_v54 = vsel %vm27_vm0, %v25_v38, 0.0  ;;  %v133_v55 = vsel %vm27_vm0, %v26_v39, 0.0 }
   0xf   :  { %v31_v56 = vrot.slane %v30_v40, 2  ;;  %v38_v57 = vrot.slane %v37_v41, 2  ;;  %v86_v58 = vadd.f32 %v85_v42, %v84_v30  ;;  %v93_v59 = vadd.f32 %v92_v43, %v91_v31 }
  0x10   :  { %v100_v60 = vadd.f32 %v99_v44, %v98_v32  ;;  %v107_v61 = vadd.f32 %v106_v45, %v105_v33  ;;  %v114_v62 = vadd.f32 %v113_v46, %v112_v34  ;;  %v121_v63 = vadd.f32 %v120_v47, %v119_v35 }
  0x11   :  { %v45_v0 = vrot.slane %v44_v48, 2  ;;  %v52_v1 = vrot.slane %v51_v49, 2  ;;  %v127_v2 = vrot.slane %v126_v54, 4  ;;  %v134_v3 = vrot.slane %v133_v55, 4 }
  0x12   :  { %v59_v4 = vrot.slane %v58_v50, 2  ;;  %v66_v5 = vrot.slane %v65_v51, 2  ;;  %v73_v6 = vrot.slane %v72_v52, 2  ;;  %v80_v7 = vrot.slane %v79_v53, 2 }
  0x13   :  { %v32_v8 = vadd.f32 %v31_v56, %v30_v40  ;;  %v39_v9 = vadd.f32 %v38_v57, %v37_v41  ;;  %v87_v10 = vrot.slane %v86_v58, 2  ;;  %v94_v11 = vrot.slane %v93_v59, 2 }
  0x14   :  { %v101_v12 = vrot.slane %v100_v60, 2  ;;  %v108_v13 = vrot.slane %v107_v61, 2  ;;  %v115_v14 = vrot.slane %v114_v62, 2  ;;  %v122_v15 = vrot.slane %v121_v63, 2 }
  0x15   :  { %v46_v16 = vadd.f32 %v45_v0, %v44_v48  ;;  %v53_v17 = vadd.f32 %v52_v1, %v51_v49  ;;  %v128_v18 = vadd.f32 %v127_v2, %v126_v54  ;;  %v135_v19 = vadd.f32 %v134_v3, %v133_v55 }
  0x16   :  { %v60_v20 = vadd.f32 %v59_v4, %v58_v50  ;;  %v67_v21 = vadd.f32 %v66_v5, %v65_v51  ;;  %v74_v22 = vadd.f32 %v73_v6, %v72_v52  ;;  %v81_v23 = vadd.f32 %v80_v7, %v79_v53 }
  0x17   :  { %v33_v24 = vrot.slane %v32_v8, 1  ;;  %v40_v25 = vrot.slane %v39_v9, 1  ;;  %v88_v26 = vadd.f32 %v87_v10, %v86_v58  ;;  %v95_v27 = vadd.f32 %v94_v11, %v93_v59 }
  0x18   :  { %v102_v28 = vadd.f32 %v101_v12, %v100_v60  ;;  %v109_v29 = vadd.f32 %v108_v13, %v107_v61  ;;  %v116_v30 = vadd.f32 %v115_v14, %v114_v62  ;;  %v123_v31 = vadd.f32 %v122_v15, %v121_v63 }
  0x19   :  { %v47_v32 = vrot.slane %v46_v16, 1  ;;  %v54_v33 = vrot.slane %v53_v17, 1  ;;  %v129_v34 = vrot.slane %v128_v18, 2  ;;  %v136_v35 = vrot.slane %v135_v19, 2 }
  0x1a   :  { %v61_v36 = vrot.slane %v60_v20, 1  ;;  %v68_v37 = vrot.slane %v67_v21, 1  ;;  %v75_v38 = vrot.slane %v74_v22, 1  ;;  %v82_v39 = vrot.slane %v81_v23, 1 }
  0x1b   :  { %v34_v40 = vadd.f32 %v33_v24, %v32_v8  ;;  %v41_v41 = vadd.f32 %v40_v25, %v39_v9  ;;  %v89_v42 = vrot.slane %v88_v26, 1  ;;  %v96_v43 = vrot.slane %v95_v27, 1 }
  0x1c   :  { %v103_v44 = vrot.slane %v102_v28, 1  ;;  %v110_v45 = vrot.slane %v109_v29, 1  ;;  %v117_v46 = vrot.slane %v116_v30, 1  ;;  %v124_v47 = vrot.slane %v123_v31, 1 }
  0x1d   :  { %v48_v48 = vadd.f32 %v47_v32, %v46_v16  ;;  %v55_v49 = vadd.f32 %v54_v33, %v53_v17  ;;  %v130_v50 = vadd.f32 %v129_v34, %v128_v18  ;;  %v137_v51 = vadd.f32 %v136_v35, %v135_v19 }
  0x1e   :  { %v62_v52 = vadd.f32 %v61_v36, %v60_v20  ;;  %v69_v53 = vadd.f32 %v68_v37, %v67_v21  ;;  %v76_v54 = vadd.f32 %v75_v38, %v74_v22  ;;  %v83_v55 = vadd.f32 %v82_v39, %v81_v23 }
  0x1f   :  { %v90_v56 = vadd.f32 %v89_v42, %v88_v26  ;;  %v97_v57 = vadd.f32 %v96_v43, %v95_v27  ;;  %v104_v58 = vadd.f32 %v103_v44, %v102_v28  ;;  %v111_v59 = vadd.f32 %v110_v45, %v109_v29 }
  0x20   :  { %v118_v60 = vadd.f32 %v117_v46, %v116_v30  ;;  %v125_v61 = vadd.f32 %v124_v47, %v123_v31  ;;  %v131_v63 = vrot.slane %v130_v50, 1  ;;  %v138_v0 = vrot.slane %v137_v51, 1 }
  0x21   :  { %vm202_vm4 = vcmask 1044484   ;;  %vm205_vm5 = vcmask 1045509   ;;  %vm208_vm6 = vcmask 1046534   ;;  %vm211_vm7 = vcmask 1047559  }
  0x22   :  { %v132_v10 = vadd.f32 %v131_v63, %v130_v50  ;;  %v139_v11 = vadd.f32 %v138_v0, %v137_v51  ;;  %vm229_vm8 = vcmask 261120  }
  0x81   :  { %v144_v62 = vpop.permute.xlu0 %143 }
  0x82   :  { %v145_v1 = vrot.slane %v144_v62, 1  ;;  %v146_v2 = vrot.slane %v144_v62, 2  ;;  %v147_v3 = vrot.slane %v144_v62, 3  ;;  %v148_v4 = vrot.slane %v144_v62, 4 }
  0x83   :  { %v149_v5 = vrot.slane %v144_v62, 5  ;;  %v150_v6 = vrot.slane %v144_v62, 6  ;;  %v151_v7 = vrot.slane %v144_v62, 7  ;;  %v160_v12 = vmul.f32 %v144_v62, %v34_v40 }
  0x84   :  { %v161_v8 = vmul.f32 %v145_v1, %v41_v41  ;;  %v162_v9 = vmul.f32 %v146_v2, %v48_v48  ;;  %v163_v13 = vmul.f32 %v147_v3, %v55_v49  ;;  %v164_v14 = vmul.f32 %v148_v4, %v62_v52 }
  0x85   :  { %v165_v15 = vmul.f32 %v149_v5, %v69_v53  ;;  %v169_v16 = vmul.f32 %v145_v1, %v97_v57  ;;  %v170_v17 = vmul.f32 %v146_v2, %v104_v58  ;;  %v166_v18 = vmul.f32 %v150_v6, %v76_v54 }
  0x86   :  { %v167_v19 = vmul.f32 %v151_v7, %v83_v55  ;;  %v171_v20 = vmul.f32 %v147_v3, %v111_v59  ;;  %v192_v21 = vrot.slane %v161_v8, 7  ;;  %v168_v22 = vmul.f32 %v144_v62, %v90_v56 }
  0x87   :  { %v172_v23 = vmul.f32 %v148_v4, %v118_v60  ;;  %v173_v24 = vmul.f32 %v149_v5, %v125_v61  ;;  %v195_v25 = vrot.slane %v162_v9, 6  ;;  %v174_v26 = vmul.f32 %v150_v6, %v132_v10 }
  0x88   :  { %v194_v27 = vsel %vm193_vm1, %v192_v21, %v160_v12  ;;  %v198_v28 = vrot.slane %v163_v13, 5  ;;  %v213_v29 = vrot.slane %v169_v16, 7  ;;  %v175_v30 = vmul.f32 %v151_v7, %v139_v11 }
  0x89   :  { %v197_v31 = vsel %vm196_vm2, %v195_v25, %v194_v27  ;;  %v201_v32 = vrot.slane %v164_v14, 4  ;;  %v215_v33 = vrot.slane %v170_v17, 6  ;;  %v204_v35 = vrot.slane %v165_v15, 3 }
  0x8a   :  { %v200_v34 = vsel %vm199_vm3, %v198_v28, %v197_v31  ;;  %v214_v36 = vsel %vm193_vm1, %v213_v29, %v168_v22  ;;  %v217_v37 = vrot.slane %v171_v20, 5  ;;  %v207_v39 = vrot.slane %v166_v18, 2 }
  0x8b   :  { %v203_v38 = vsel %vm202_vm4, %v201_v32, %v200_v34  ;;  %v216_v40 = vsel %vm196_vm2, %v215_v33, %v214_v36  ;;  %v219_v41 = vrot.slane %v172_v23, 4  ;;  %v210_v43 = vrot.slane %v167_v19, 1 }
  0x8c   :  { %v206_v42 = vsel %vm205_vm5, %v204_v35, %v203_v38  ;;  %v218_v44 = vsel %vm199_vm3, %v217_v37, %v216_v40  ;;  %v221_v45 = vrot.slane %v173_v24, 3  ;;  %v223_v48 = vrot.slane %v174_v26, 2 }
  0x8d   :  { %v209_v46 = vsel %vm208_vm6, %v207_v39, %v206_v42  ;;  %v220_v47 = vsel %vm202_vm4, %v219_v41, %v218_v44  ;;  %v225_v51 = vrot.slane %v175_v30, 1 }
  0x8e   :  { %v212_v49 = vsel %vm211_vm7, %v210_v43, %v209_v46  ;;  %v222_v50 = vsel %vm205_vm5, %v221_v45, %v220_v47 }
  0x8f   :  { %v224_v52 = vsel %vm208_vm6, %v223_v48, %v222_v50  ;;  %230 = vst.msk [vmem:[%s345_s2] sm:$0xff] %vm229_vm8, %v212_v49 }
  0x90   :  { %v226_v53 = vsel %vm211_vm7, %v225_v51, %v224_v52 }
  0x91   :  { %231 = vst.msk [vmem:[%s345_s2 + $0x8] sm:$0xff] %vm229_vm8, %v226_v53 }

// kernel: run.74
= control target key start
LH: loop header
LB: loop body
LE: loop exit
PB: predicated region body
PF: predicated region fallthrough
CT: control target
= control target key end

     0   :  { %v154_v0 = vmov 0.0   ;;  %vm155_vm0 = vmmov 0   ;;  %s250_s1 = inlined_call_operand.vmem [shape: f32[128,128], index: 1, kind: input, shape index: {}]   ;;  %s251_s0 = inlined_call_operand.vmem [shape: f32[16,128], index: 0, kind: input, shape index: {}]   ;;  %s252_s2 = inlined_call_operand.vmem [shape: f32[1,128], index: 2, kind: input, shape index: {}]   ;;  %s253_s3 = inlined_call_operand.vmem [shape: f32[16,128], index: 3, kind: input, shape index: {}]   ;;  %s254_s4 = inlined_call_operand.vmem [shape: f32[16,128], index: 4, kind: output, shape index: {}]  }
   0x1   :  { %132 = vmatprep.subr.bf16.mxu0 %v154_v0  ;;  %v29_v1 = vld [vmem:[%s250_s1] sm:$0xff]  ;;  %v30_v2 = vld [vmem:[%s250_s1 + $0x8] sm:$0xff]  ;;  %v31_v3 = vld [vmem:[%s250_s1 + $0x10] sm:$0xff]  ;;  %148 = vmatprep.mubr.msk.bf16.mxu0 %vm155_vm0, %v154_v0 }
   0x2   :  { %v45_v4 = vpack.c.bf16 %v30_v2, %v29_v1  ;;  %v32_v5 = vld [vmem:[%s250_s1 + $0x18] sm:$0xff]  ;;  %v33_v7 = vld [vmem:[%s250_s1 + $0x20] sm:$0xff]  ;;  %v34_v8 = vld [vmem:[%s250_s1 + $0x28] sm:$0xff] }
   0x3   :  { %v46_v6 = vpack.c.bf16 %v32_v5, %v31_v3  ;;  %v47_v9 = vpack.c.bf16 %v34_v8, %v33_v7  ;;  %v35_v10 = vld [vmem:[%s250_s1 + $0x30] sm:$0xff]  ;;  %v36_v11 = vld [vmem:[%s250_s1 + $0x38] sm:$0xff]  ;;  %v37_v13 = vld [vmem:[%s250_s1 + $0x40] sm:$0xff] }
   0x4   :  { %133 = vmatpush3.bf16.msra.mxu0 %v45_v4  ;;  %v48_v12 = vpack.c.bf16 %v36_v11, %v35_v10  ;;  %v38_v14 = vld [vmem:[%s250_s1 + $0x48] sm:$0xff]  ;;  %v39_v16 = vld [vmem:[%s250_s1 + $0x50] sm:$0xff]  ;;  %v40_v17 = vld [vmem:[%s250_s1 + $0x58] sm:$0xff] }
   0x5   :  { %134 = vmatprep.subr.bf16.mxu0 %v154_v0  ;;  %v49_v15 = vpack.c.bf16 %v38_v14, %v37_v13  ;;  %v50_v18 = vpack.c.bf16 %v40_v17, %v39_v16  ;;  %v41_v19 = vld [vmem:[%s250_s1 + $0x60] sm:$0xff]  ;;  %v42_v20 = vld [vmem:[%s250_s1 + $0x68] sm:$0xff]  ;;  %v43_v22 = vld [vmem:[%s250_s1 + $0x70] sm:$0xff] }
   0x6   :  { %v51_v21 = vpack.c.bf16 %v42_v20, %v41_v19  ;;  %v44_v23 = vld [vmem:[%s250_s1 + $0x78] sm:$0xff]  ;;  %v26_v25 = vld [vmem:[%s251_s0] sm:$0xff]  ;;  %v27_v26 = vld [vmem:[%s251_s0 + $0x8] sm:$0xff] }
   0x7   :  { %v52_v24 = vpack.c.bf16 %v44_v23, %v43_v22  ;;  %v28_v27 = vpack.c.bf16 %v27_v26, %v26_v25  ;;  %v122_v28 = vld [vmem:[%s252_s2] ss:$0 sm:$0xff]  ;;  %v113_v34 = vld [vmem:[%s253_s3 + $0x8] sm:$0xff] }
   0x8   :  { %135 = vmatpush3.bf16.msra.mxu0 %v46_v6  ;;  %v112_v30 = vld [vmem:[%s253_s3] sm:$0xff] }
   0x9   :  { %136 = vmatprep.subr.bf16.mxu0 %v154_v0 }
   0xc   :  { %137 = vmatpush3.bf16.msra.mxu0 %v47_v9 }
   0xd   :  { %138 = vmatprep.subr.bf16.mxu0 %v154_v0 }
  0x10   :  { %139 = vmatpush3.bf16.msra.mxu0 %v48_v12 }
  0x11   :  { %140 = vmatprep.subr.bf16.mxu0 %v154_v0 }
  0x14   :  { %141 = vmatpush3.bf16.msra.mxu0 %v49_v15 }
  0x15   :  { %142 = vmatprep.subr.bf16.mxu0 %v154_v0 }
  0x18   :  { %143 = vmatpush3.bf16.msra.mxu0 %v50_v18 }
  0x19   :  { %144 = vmatprep.subr.bf16.mxu0 %v154_v0 }
  0x1c   :  { %145 = vmatpush3.bf16.msra.mxu0 %v51_v21 }
  0x1d   :  { %146 = vmatprep.subr.bf16.mxu0 %v154_v0 }
  0x20   :  { %147 = vmatpush3.bf16.msra.mxu0 %v52_v24 }
  0x23   :  { %149 = vmatmul.mubr.bf16.vlgmr.msra.gmra.mrb[0].mxu0 %v28_v27 }
  0xf6   :  { %v87_v29 = vpop.f32.mrb[0].mxu0 }
  0xf7   :  { %v110_v31 = vadd.f32 %v122_v28, %v87_v29  ;;  %v150_v32 = vpop.f32.mrb[1].mxu0 }
  0xf8   :  { %v90_v33 = vpop.f32.mrb[2].mxu0 }
  0xf9   :  { %v114_v35 = vadd.f32 %v112_v30, %v110_v31  ;;  %v111_v36 = vadd.f32 %v122_v28, %v90_v33  ;;  %v151_v37 = vpop.f32.mrb[3].mxu0 }
  0xfb   :  { %116 = vst [vmem:[%s254_s4] sm:$0xff] %v114_v35  ;;  %v115_v38 = vadd.f32 %v113_v34, %v111_v36 }
  0xfd   :  { %117 = vst [vmem:[%s254_s4 + $0x8] sm:$0xff] %v115_v38 }

// kernel: run.75
= control target key start
LH: loop header
LB: loop body
LE: loop exit
PB: predicated region body
PF: predicated region fallthrough
CT: control target
= control target key end

     0   :  { %v149_v0 = vmov 0.0   ;;  %vm150_vm0 = vmmov 0   ;;  %s234_s1 = inlined_call_operand.vmem [shape: f32[128,128], index: 1, kind: input, shape index: {}]   ;;  %s235_s0 = inlined_call_operand.vmem [shape: f32[16,128], index: 0, kind: input, shape index: {}]   ;;  %s236_s2 = inlined_call_operand.vmem [shape: f32[1,128], index: 2, kind: input, shape index: {}]   ;;  %s237_s3 = inlined_call_operand.vmem [shape: f32[16,128], index: 3, kind: output, shape index: {}]  }
   0x1   :  { %127 = vmatprep.subr.bf16.mxu0 %v149_v0  ;;  %v26_v1 = vld [vmem:[%s234_s1] sm:$0xff]  ;;  %v27_v2 = vld [vmem:[%s234_s1 + $0x8] sm:$0xff]  ;;  %v28_v3 = vld [vmem:[%s234_s1 + $0x10] sm:$0xff]  ;;  %143 = vmatprep.mubr.msk.bf16.mxu0 %vm150_vm0, %v149_v0 }
   0x2   :  { %v42_v4 = vpack.c.bf16 %v27_v2, %v26_v1  ;;  %v29_v5 = vld [vmem:[%s234_s1 + $0x18] sm:$0xff]  ;;  %v30_v7 = vld [vmem:[%s234_s1 + $0x20] sm:$0xff]  ;;  %v31_v8 = vld [vmem:[%s234_s1 + $0x28] sm:$0xff] }
   0x3   :  { %v43_v6 = vpack.c.bf16 %v29_v5, %v28_v3  ;;  %v44_v9 = vpack.c.bf16 %v31_v8, %v30_v7  ;;  %v32_v10 = vld [vmem:[%s234_s1 + $0x30] sm:$0xff]  ;;  %v33_v11 = vld [vmem:[%s234_s1 + $0x38] sm:$0xff]  ;;  %v34_v13 = vld [vmem:[%s234_s1 + $0x40] sm:$0xff] }
   0x4   :  { %128 = vmatpush3.bf16.msra.mxu0 %v42_v4  ;;  %v45_v12 = vpack.c.bf16 %v33_v11, %v32_v10  ;;  %v35_v14 = vld [vmem:[%s234_s1 + $0x48] sm:$0xff]  ;;  %v36_v16 = vld [vmem:[%s234_s1 + $0x50] sm:$0xff]  ;;  %v37_v17 = vld [vmem:[%s234_s1 + $0x58] sm:$0xff] }
   0x5   :  { %129 = vmatprep.subr.bf16.mxu0 %v149_v0  ;;  %v46_v15 = vpack.c.bf16 %v35_v14, %v34_v13  ;;  %v47_v18 = vpack.c.bf16 %v37_v17, %v36_v16  ;;  %v38_v19 = vld [vmem:[%s234_s1 + $0x60] sm:$0xff]  ;;  %v39_v20 = vld [vmem:[%s234_s1 + $0x68] sm:$0xff]  ;;  %v40_v22 = vld [vmem:[%s234_s1 + $0x70] sm:$0xff] }
   0x6   :  { %v48_v21 = vpack.c.bf16 %v39_v20, %v38_v19  ;;  %v41_v23 = vld [vmem:[%s234_s1 + $0x78] sm:$0xff]  ;;  %v23_v25 = vld [vmem:[%s235_s0] sm:$0xff]  ;;  %v24_v26 = vld [vmem:[%s235_s0 + $0x8] sm:$0xff] }
   0x7   :  { %v49_v24 = vpack.c.bf16 %v41_v23, %v40_v22  ;;  %v25_v27 = vpack.c.bf16 %v24_v26, %v23_v25  ;;  %v117_v28 = vld [vmem:[%s236_s2] ss:$0 sm:$0xff] }
   0x8   :  { %130 = vmatpush3.bf16.msra.mxu0 %v43_v6 }
   0x9   :  { %131 = vmatprep.subr.bf16.mxu0 %v149_v0 }
   0xc   :  { %132 = vmatpush3.bf16.msra.mxu0 %v44_v9 }
   0xd   :  { %133 = vmatprep.subr.bf16.mxu0 %v149_v0 }
  0x10   :  { %134 = vmatpush3.bf16.msra.mxu0 %v45_v12 }
  0x11   :  { %135 = vmatprep.subr.bf16.mxu0 %v149_v0 }
  0x14   :  { %136 = vmatpush3.bf16.msra.mxu0 %v46_v15 }
  0x15   :  { %137 = vmatprep.subr.bf16.mxu0 %v149_v0 }
  0x18   :  { %138 = vmatpush3.bf16.msra.mxu0 %v47_v18 }
  0x19   :  { %139 = vmatprep.subr.bf16.mxu0 %v149_v0 }
  0x1c   :  { %140 = vmatpush3.bf16.msra.mxu0 %v48_v21 }
  0x1d   :  { %141 = vmatprep.subr.bf16.mxu0 %v149_v0 }
  0x20   :  { %142 = vmatpush3.bf16.msra.mxu0 %v49_v24 }
  0x23   :  { %144 = vmatmul.mubr.bf16.vlgmr.msra.gmra.mrb[0].mxu0 %v25_v27 }
  0xf6   :  { %v84_v29 = vpop.f32.mrb[0].mxu0 }
  0xf7   :  { %v107_v30 = vadd.f32 %v117_v28, %v84_v29  ;;  %v145_v31 = vpop.f32.mrb[1].mxu0 }
  0xf8   :  { %v87_v32 = vpop.f32.mrb[2].mxu0 }
  0xf9   :  { %v109_v33 = vmax.f32 %v107_v30, 0.0  ;;  %v108_v34 = vadd.f32 %v117_v28, %v87_v32  ;;  %v146_v35 = vpop.f32.mrb[3].mxu0 }
  0xfb   :  { %111 = vst [vmem:[%s237_s3] sm:$0xff] %v109_v33  ;;  %v110_v36 = vmax.f32 %v108_v34, 0.0 }
  0xfd   :  { %112 = vst [vmem:[%s237_s3 + $0x8] sm:$0xff] %v110_v36 }

// kernel: run.77
= control target key start
LH: loop header
LB: loop body
LE: loop exit
PB: predicated region body
PF: predicated region fallthrough
CT: control target
= control target key end

     0   :  { %vm16_vm0 = vcmask 261120   ;;  %s118_s0 = inlined_call_operand.vmem [shape: f32[16,32], index: 0, kind: input, shape index: {}]   ;;  %s119_s1 = inlined_call_operand.vmem [shape: f32[1,32], index: 1, kind: input, shape index: {}]   ;;  %s120_s2 = inlined_call_operand.vmem [shape: f32[1,32], index: 2, kind: input, shape index: {}]   ;;  %s121_s3 = inlined_call_operand.vmem [shape: f32[16,32], index: 3, kind: output, shape index: {}]  }
   0x1   :  { %v14_v0 = vld [vmem:[%s118_s0] sm:$0xff]  ;;  %v15_v1 = vld [vmem:[%s118_s0 + $0x8] sm:$0xff] }
   0x2   :  { %v17_v2 = vsel %vm16_vm0, %v14_v0, 0.0  ;;  %v20_v3 = vsel %vm16_vm0, %v15_v1, 0.0  ;;  %v68_v21 = vld [vmem:[%s119_s1] ss:$0 sm:$0xff] }
   0x3   :  { %18 = vadd.xlane.f32.xlu0 %v17_v2  ;;  %v69_v23 = vld [vmem:[%s120_s2] ss:$0 sm:$0xff] }
   0x7   :  { %21 = vadd.xlane.f32.xlu0 %v20_v3 }
  0x90   :  { %v19_v4 = vpop.xlane.xlu0 %18 }
  0x91   :  { %v24_v5 = vmul.f32 0.03125, %v19_v4 }
  0x93   :  { %v26_v6 = vsub.f32 %v14_v0, %v24_v5 }
  0x94   :  { %v22_v7 = vpop.xlane.xlu0 %21 }
  0x95   :  { %v25_v8 = vmul.f32 0.03125, %v22_v7  ;;  %v28_v9 = vmul.f32 %v26_v6, %v26_v6 }
  0x97   :  { %v27_v10 = vsub.f32 %v15_v1, %v25_v8  ;;  %v30_v11 = vsel %vm16_vm0, %v28_v9, 0.0 }
  0x98   :  { %31 = vadd.xlane.f32.xlu1 %v30_v11 }
  0x99   :  { %v29_v12 = vmul.f32 %v27_v10, %v27_v10 }
  0x9b   :  { %v33_v13 = vsel %vm16_vm0, %v29_v12, 0.0 }
  0x9c   :  { %34 = vadd.xlane.f32.xlu1 %v33_v13 }
 0x125   :  { %v32_v14 = vpop.xlane.xlu1 %31 }
 0x126   :  { %v36_v15 = vmul.f32 0.03125, %v32_v14 }
 0x128   :  { %v38_v16 = vadd.f32 1e-05, %v36_v15 }
 0x129   :  { %v35_v17 = vpop.xlane.xlu1 %34 }
 0x12a   :  { %70 = vrsqrt.f32 %v38_v16  ;;  %v37_v18 = vmul.f32 0.03125, %v35_v17 }
 0x12c   :  { %v39_v19 = vadd.f32 1e-05, %v37_v18 }
 0x12e   :  { %72 = vrsqrt.f32 %v39_v19 }
 0x134   :  { %v71_v20 = vpop.eup %70 }
 0x135   :  { %v42_v22 = vmul.f32 %v71_v20, %v26_v6 }
 0x137   :  { %v51_v24 = vmul.f32 %v68_v21, %v42_v22 }
 0x138   :  { %v73_v25 = vpop.eup %72 }
 0x139   :  { %v60_v26 = vadd.f32 %v69_v23, %v51_v24  ;;  %v43_v27 = vmul.f32 %v73_v25, %v27_v10 }
 0x13b   :  { %62 = vst.msk [vmem:[%s121_s3] sm:$0xff] %vm16_vm0, %v60_v26  ;;  %v52_v28 = vmul.f32 %v68_v21, %v43_v27 }
 0x13d   :  { %v61_v29 = vadd.f32 %v69_v23, %v52_v28 }
 0x13f   :  { %63 = vst.msk [vmem:[%s121_s3 + $0x8] sm:$0xff] %vm16_vm0, %v61_v29 }

// kernel: run.76
= control target key start
LH: loop header
LB: loop body
LE: loop exit
PB: predicated region body
PF: predicated region fallthrough
CT: control target
= control target key end

     0   :  { %v156_v0 = vmov 0.0   ;;  %vm157_vm0 = vmmov 0   ;;  %s252_s1 = inlined_call_operand.vmem [shape: f32[128,128], index: 1, kind: input, shape index: {}]   ;;  %s253_s0 = inlined_call_operand.vmem [shape: f32[16,128], index: 0, kind: input, shape index: {}]   ;;  %s254_s2 = inlined_call_operand.vmem [shape: f32[1,128], index: 2, kind: input, shape index: {}]   ;;  %s255_s3 = inlined_call_operand.vmem [shape: f32[16,128], index: 3, kind: input, shape index: {}]   ;;  %s256_s4 = inlined_call_operand.vmem [shape: f32[16,128], index: 4, kind: output, shape index: {}]  }
   0x1   :  { %134 = vmatprep.subr.bf16.mxu0 %v156_v0  ;;  %v29_v1 = vld [vmem:[%s252_s1] sm:$0xff]  ;;  %v30_v2 = vld [vmem:[%s252_s1 + $0x8] sm:$0xff]  ;;  %v31_v3 = vld [vmem:[%s252_s1 + $0x10] sm:$0xff]  ;;  %150 = vmatprep.mubr.msk.bf16.mxu0 %vm157_vm0, %v156_v0 }
   0x2   :  { %v45_v4 = vpack.c.bf16 %v30_v2, %v29_v1  ;;  %v32_v5 = vld [vmem:[%s252_s1 + $0x18] sm:$0xff]  ;;  %v33_v7 = vld [vmem:[%s252_s1 + $0x20] sm:$0xff]  ;;  %v34_v8 = vld [vmem:[%s252_s1 + $0x28] sm:$0xff] }
   0x3   :  { %v46_v6 = vpack.c.bf16 %v32_v5, %v31_v3  ;;  %v47_v9 = vpack.c.bf16 %v34_v8, %v33_v7  ;;  %v35_v10 = vld [vmem:[%s252_s1 + $0x30] sm:$0xff]  ;;  %v36_v11 = vld [vmem:[%s252_s1 + $0x38] sm:$0xff]  ;;  %v37_v13 = vld [vmem:[%s252_s1 + $0x40] sm:$0xff] }
   0x4   :  { %135 = vmatpush3.bf16.msra.mxu0 %v45_v4  ;;  %v48_v12 = vpack.c.bf16 %v36_v11, %v35_v10  ;;  %v38_v14 = vld [vmem:[%s252_s1 + $0x48] sm:$0xff]  ;;  %v39_v16 = vld [vmem:[%s252_s1 + $0x50] sm:$0xff]  ;;  %v40_v17 = vld [vmem:[%s252_s1 + $0x58] sm:$0xff] }
   0x5   :  { %136 = vmatprep.subr.bf16.mxu0 %v156_v0  ;;  %v49_v15 = vpack.c.bf16 %v38_v14, %v37_v13  ;;  %v50_v18 = vpack.c.bf16 %v40_v17, %v39_v16  ;;  %v41_v19 = vld [vmem:[%s252_s1 + $0x60] sm:$0xff]  ;;  %v42_v20 = vld [vmem:[%s252_s1 + $0x68] sm:$0xff]  ;;  %v43_v22 = vld [vmem:[%s252_s1 + $0x70] sm:$0xff] }
   0x6   :  { %v51_v21 = vpack.c.bf16 %v42_v20, %v41_v19  ;;  %v44_v23 = vld [vmem:[%s252_s1 + $0x78] sm:$0xff]  ;;  %v26_v25 = vld [vmem:[%s253_s0] sm:$0xff]  ;;  %v27_v26 = vld [vmem:[%s253_s0 + $0x8] sm:$0xff] }
   0x7   :  { %v52_v24 = vpack.c.bf16 %v44_v23, %v43_v22  ;;  %v28_v27 = vpack.c.bf16 %v27_v26, %v26_v25  ;;  %v124_v28 = vld [vmem:[%s254_s2] ss:$0 sm:$0xff]  ;;  %v115_v37 = vld [vmem:[%s255_s3 + $0x8] sm:$0xff] }
   0x8   :  { %137 = vmatpush3.bf16.msra.mxu0 %v46_v6  ;;  %v114_v32 = vld [vmem:[%s255_s3] sm:$0xff] }
   0x9   :  { %138 = vmatprep.subr.bf16.mxu0 %v156_v0 }
   0xc   :  { %139 = vmatpush3.bf16.msra.mxu0 %v47_v9 }
   0xd   :  { %140 = vmatprep.subr.bf16.mxu0 %v156_v0 }
  0x10   :  { %141 = vmatpush3.bf16.msra.mxu0 %v48_v12 }
  0x11   :  { %142 = vmatprep.subr.bf16.mxu0 %v156_v0 }
  0x14   :  { %143 = vmatpush3.bf16.msra.mxu0 %v49_v15 }
  0x15   :  { %144 = vmatprep.subr.bf16.mxu0 %v156_v0 }
  0x18   :  { %145 = vmatpush3.bf16.msra.mxu0 %v50_v18 }
  0x19   :  { %146 = vmatprep.subr.bf16.mxu0 %v156_v0 }
  0x1c   :  { %147 = vmatpush3.bf16.msra.mxu0 %v51_v21 }
  0x1d   :  { %148 = vmatprep.subr.bf16.mxu0 %v156_v0 }
  0x20   :  { %149 = vmatpush3.bf16.msra.mxu0 %v52_v24 }
  0x23   :  { %151 = vmatmul.mubr.bf16.vlgmr.msra.gmra.mrb[0].mxu0 %v28_v27 }
  0xf6   :  { %v87_v29 = vpop.f32.mrb[0].mxu0 }
  0xf7   :  { %v110_v30 = vadd.f32 %v124_v28, %v87_v29  ;;  %v152_v31 = vpop.f32.mrb[1].mxu0 }
  0xf8   :  { %v90_v33 = vpop.f32.mrb[2].mxu0 }
  0xf9   :  { %v112_v34 = vmul.f32 0.5, %v110_v30  ;;  %v111_v35 = vadd.f32 %v124_v28, %v90_v33  ;;  %v153_v36 = vpop.f32.mrb[3].mxu0 }
  0xfb   :  { %v116_v38 = vadd.f32 %v114_v32, %v112_v34  ;;  %v113_v39 = vmul.f32 0.5, %v111_v35 }
  0xfd   :  { %118 = vst [vmem:[%s256_s4] sm:$0xff] %v116_v38  ;;  %v117_v40 = vadd.f32 %v115_v37, %v113_v39 }
  0xff   :  { %119 = vst [vmem:[%s256_s4 + $0x8] sm:$0xff] %v117_v40 }

// kernel: run.78
= control target key start
LH: loop header
LB: loop body
LE: loop exit
PB: predicated region body
PF: predicated region fallthrough
CT: control target
= control target key end

     0   :  { %v147_v0 = vmov 0.0   ;;  %vm148_vm0 = vmmov 0   ;;  %s232_s1 = inlined_call_operand.vmem [shape: f32[128,128], index: 1, kind: input, shape index: {}]   ;;  %s233_s0 = inlined_call_operand.vmem [shape: f32[16,128], index: 0, kind: input, shape index: {}]   ;;  %s234_s2 = inlined_call_operand.vmem [shape: f32[1,128], index: 2, kind: input, shape index: {}]   ;;  %s235_s3 = inlined_call_operand.vmem [shape: f32[16,128], index: 3, kind: output, shape index: {}]  }
   0x1   :  { %125 = vmatprep.subr.bf16.mxu0 %v147_v0  ;;  %v26_v1 = vld [vmem:[%s232_s1] sm:$0xff]  ;;  %v27_v2 = vld [vmem:[%s232_s1 + $0x8] sm:$0xff]  ;;  %v28_v3 = vld [vmem:[%s232_s1 + $0x10] sm:$0xff]  ;;  %141 = vmatprep.mubr.msk.bf16.mxu0 %vm148_vm0, %v147_v0 }
   0x2   :  { %v42_v4 = vpack.c.bf16 %v27_v2, %v26_v1  ;;  %v29_v5 = vld [vmem:[%s232_s1 + $0x18] sm:$0xff]  ;;  %v30_v7 = vld [vmem:[%s232_s1 + $0x20] sm:$0xff]  ;;  %v31_v8 = vld [vmem:[%s232_s1 + $0x28] sm:$0xff] }
   0x3   :  { %v43_v6 = vpack.c.bf16 %v29_v5, %v28_v3  ;;  %v44_v9 = vpack.c.bf16 %v31_v8, %v30_v7  ;;  %v32_v10 = vld [vmem:[%s232_s1 + $0x30] sm:$0xff]  ;;  %v33_v11 = vld [vmem:[%s232_s1 + $0x38] sm:$0xff]  ;;  %v34_v13 = vld [vmem:[%s232_s1 + $0x40] sm:$0xff] }
   0x4   :  { %126 = vmatpush3.bf16.msra.mxu0 %v42_v4  ;;  %v45_v12 = vpack.c.bf16 %v33_v11, %v32_v10  ;;  %v35_v14 = vld [vmem:[%s232_s1 + $0x48] sm:$0xff]  ;;  %v36_v16 = vld [vmem:[%s232_s1 + $0x50] sm:$0xff]  ;;  %v37_v17 = vld [vmem:[%s232_s1 + $0x58] sm:$0xff] }
   0x5   :  { %127 = vmatprep.subr.bf16.mxu0 %v147_v0  ;;  %v46_v15 = vpack.c.bf16 %v35_v14, %v34_v13  ;;  %v47_v18 = vpack.c.bf16 %v37_v17, %v36_v16  ;;  %v38_v19 = vld [vmem:[%s232_s1 + $0x60] sm:$0xff]  ;;  %v39_v20 = vld [vmem:[%s232_s1 + $0x68] sm:$0xff]  ;;  %v40_v22 = vld [vmem:[%s232_s1 + $0x70] sm:$0xff] }
   0x6   :  { %v48_v21 = vpack.c.bf16 %v39_v20, %v38_v19  ;;  %v41_v23 = vld [vmem:[%s232_s1 + $0x78] sm:$0xff]  ;;  %v23_v25 = vld [vmem:[%s233_s0] sm:$0xff]  ;;  %v24_v26 = vld [vmem:[%s233_s0 + $0x8] sm:$0xff] }
   0x7   :  { %v49_v24 = vpack.c.bf16 %v41_v23, %v40_v22  ;;  %v25_v27 = vpack.c.bf16 %v24_v26, %v23_v25  ;;  %v115_v28 = vld [vmem:[%s234_s2] ss:$0 sm:$0xff] }
   0x8   :  { %128 = vmatpush3.bf16.msra.mxu0 %v43_v6 }
   0x9   :  { %129 = vmatprep.subr.bf16.mxu0 %v147_v0 }
   0xc   :  { %130 = vmatpush3.bf16.msra.mxu0 %v44_v9 }
   0xd   :  { %131 = vmatprep.subr.bf16.mxu0 %v147_v0 }
  0x10   :  { %132 = vmatpush3.bf16.msra.mxu0 %v45_v12 }
  0x11   :  { %133 = vmatprep.subr.bf16.mxu0 %v147_v0 }
  0x14   :  { %134 = vmatpush3.bf16.msra.mxu0 %v46_v15 }
  0x15   :  { %135 = vmatprep.subr.bf16.mxu0 %v147_v0 }
  0x18   :  { %136 = vmatpush3.bf16.msra.mxu0 %v47_v18 }
  0x19   :  { %137 = vmatprep.subr.bf16.mxu0 %v147_v0 }
  0x1c   :  { %138 = vmatpush3.bf16.msra.mxu0 %v48_v21 }
  0x1d   :  { %139 = vmatprep.subr.bf16.mxu0 %v147_v0 }
  0x20   :  { %140 = vmatpush3.bf16.msra.mxu0 %v49_v24 }
  0x23   :  { %142 = vmatmul.mubr.bf16.vlgmr.msra.gmra.mrb[0].mxu0 %v25_v27 }
  0xf6   :  { %v84_v29 = vpop.f32.mrb[0].mxu0 }
  0xf7   :  { %v107_v30 = vadd.f32 %v115_v28, %v84_v29  ;;  %v143_v31 = vpop.f32.mrb[1].mxu0 }
  0xf8   :  { %v87_v32 = vpop.f32.mrb[2].mxu0 }
  0xf9   :  { %109 = vst [vmem:[%s235_s3] sm:$0xff] %v107_v30  ;;  %v108_v33 = vadd.f32 %v115_v28, %v87_v32  ;;  %v144_v34 = vpop.f32.mrb[3].mxu0 }
  0xfb   :  { %110 = vst [vmem:[%s235_s3 + $0x8] sm:$0xff] %v108_v33 }

// kernel: run.81
= control target key start
LH: loop header
LB: loop body
LE: loop exit
PB: predicated region body
PF: predicated region fallthrough
CT: control target
= control target key end

     0   :  { %v291_v0 = vmov 0.0   ;;  %vm292_vm0 = vmmov 0   ;;  %s455_s2 = inlined_call_operand.vmem [shape: f32[128,128], index: 2, kind: input, shape index: {}]   ;;  %s456_s1 = inlined_call_operand.vmem [shape: f32[128,128], index: 1, kind: input, shape index: {}]   ;;  %s457_s0 = inlined_call_operand.vmem [shape: f32[16,128], index: 0, kind: input, shape index: {}]   ;;  %s458_s4 = inlined_call_operand.vmem [shape: f32[1,128], index: 4, kind: input, shape index: {}]   ;;  %s459_s3 = inlined_call_operand.vmem [shape: f32[1,128], index: 3, kind: input, shape index: {}]   ;;  %s460_s5 = inlined_call_operand.vmem [shape: f32[16,128], index: 5, kind: output, shape index: {}]  }
   0x1   :  { %261 = vmatprep.subr.bf16.mxu1 %v291_v0  ;;  %v105_v1 = vld [vmem:[%s455_s2] sm:$0xff]  ;;  %v106_v2 = vld [vmem:[%s455_s2 + $0x8] sm:$0xff]  ;;  %v107_v3 = vld [vmem:[%s455_s2 + $0x10] sm:$0xff]  ;;  %241 = vmatprep.subr.bf16.mxu0 %v291_v0 }
   0x2   :  { %v121_v4 = vpack.c.bf16 %v106_v2, %v105_v1  ;;  %v108_v5 = vld [vmem:[%s455_s2 + $0x18] sm:$0xff]  ;;  %277 = vmatprep.mubr.msk.bf16.mxu1 %vm292_vm0, %v291_v0  ;;  %257 = vmatprep.mubr.msk.bf16.mxu0 %vm292_vm0, %v291_v0  ;;  %v109_v7 = vld [vmem:[%s455_s2 + $0x20] sm:$0xff]  ;;  %v110_v8 = vld [vmem:[%s455_s2 + $0x28] sm:$0xff] }
   0x3   :  { %v122_v6 = vpack.c.bf16 %v108_v5, %v107_v3  ;;  %v34_v9 = vld [vmem:[%s456_s1] sm:$0xff]  ;;  %v35_v10 = vld [vmem:[%s456_s1 + $0x8] sm:$0xff]  ;;  %v36_v12 = vld [vmem:[%s456_s1 + $0x10] sm:$0xff]  ;;  %v123_v14 = vpack.c.bf16 %v110_v8, %v109_v7 }
   0x4   :  { %262 = vmatpush3.bf16.msra.mxu1 %v121_v4  ;;  %v50_v11 = vpack.c.bf16 %v35_v10, %v34_v9  ;;  %v37_v13 = vld [vmem:[%s456_s1 + $0x18] sm:$0xff]  ;;  %v111_v15 = vld [vmem:[%s455_s2 + $0x30] sm:$0xff]  ;;  %v38_v18 = vld [vmem:[%s456_s1 + $0x20] sm:$0xff] }
   0x5   :  { %263 = vmatprep.subr.bf16.mxu1 %v291_v0  ;;  %v51_v16 = vpack.c.bf16 %v37_v13, %v36_v12  ;;  %v112_v17 = vld [vmem:[%s455_s2 + $0x38] sm:$0xff]  ;;  %v39_v19 = vld [vmem:[%s456_s1 + $0x28] sm:$0xff]  ;;  %v113_v21 = vld [vmem:[%s455_s2 + $0x40] sm:$0xff] }
   0x6   :  { %242 = vmatpush3.bf16.msra.mxu0 %v50_v11  ;;  %v124_v20 = vpack.c.bf16 %v112_v17, %v111_v15  ;;  %v52_v22 = vpack.c.bf16 %v39_v19, %v38_v18  ;;  %v114_v23 = vld [vmem:[%s455_s2 + $0x48] sm:$0xff]  ;;  %v40_v24 = vld [vmem:[%s456_s1 + $0x30] sm:$0xff]  ;;  %v41_v25 = vld [vmem:[%s456_s1 + $0x38] sm:$0xff] }
   0x7   :  { %243 = vmatprep.subr.bf16.mxu0 %v291_v0  ;;  %v125_v26 = vpack.c.bf16 %v114_v23, %v113_v21  ;;  %v115_v27 = vld [vmem:[%s455_s2 + $0x50] sm:$0xff]  ;;  %v53_v28 = vpack.c.bf16 %v41_v25, %v40_v24  ;;  %v116_v29 = vld [vmem:[%s455_s2 + $0x58] sm:$0xff]  ;;  %v42_v30 = vld [vmem:[%s456_s1 + $0x40] sm:$0xff] }
   0x8   :  { %264 = vmatpush3.bf16.msra.mxu1 %v122_v6  ;;  %v43_v31 = vld [vmem:[%s456_s1 + $0x48] sm:$0xff]  ;;  %v126_v32 = vpack.c.bf16 %v116_v29, %v115_v27  ;;  %v117_v33 = vld [vmem:[%s455_s2 + $0x60] sm:$0xff]  ;;  %v44_v36 = vld [vmem:[%s456_s1 + $0x50] sm:$0xff] }
   0x9   :  { %265 = vmatprep.subr.bf16.mxu1 %v291_v0  ;;  %v54_v34 = vpack.c.bf16 %v43_v31, %v42_v30  ;;  %v118_v35 = vld [vmem:[%s455_s2 + $0x68] sm:$0xff]  ;;  %v45_v37 = vld [vmem:[%s456_s1 + $0x58] sm:$0xff]  ;;  %v119_v39 = vld [vmem:[%s455_s2 + $0x70] sm:$0xff] }
   0xa   :  { %244 = vmatpush3.bf16.msra.mxu0 %v51_v16  ;;  %v127_v38 = vpack.c.bf16 %v118_v35, %v117_v33  ;;  %v55_v40 = vpack.c.bf16 %v45_v37, %v44_v36  ;;  %v120_v41 = vld [vmem:[%s455_s2 + $0x78] sm:$0xff]  ;;  %v46_v42 = vld [vmem:[%s456_s1 + $0x60] sm:$0xff]  ;;  %v47_v43 = vld [vmem:[%s456_s1 + $0x68] sm:$0xff] }
   0xb   :  { %245 = vmatprep.subr.bf16.mxu0 %v291_v0  ;;  %v128_v44 = vpack.c.bf16 %v120_v41, %v119_v39  ;;  %v29_v45 = vld [vmem:[%s457_s0] sm:$0xff]  ;;  %v30_v46 = vld [vmem:[%s457_s0 + $0x8] sm:$0xff]  ;;  %v56_v47 = vpack.c.bf16 %v47_v43, %v46_v42  ;;  %v48_v48 = vld [vmem:[%s456_s1 + $0x70] sm:$0xff] }
   0xc   :  { %266 = vmatpush3.bf16.msra.mxu1 %v123_v14  ;;  %v49_v49 = vld [vmem:[%s456_s1 + $0x78] sm:$0xff]  ;;  %v31_v50 = vpack.c.bf16 %v30_v46, %v29_v45  ;;  %v220_v52 = vld [vmem:[%s458_s4] ss:$0 sm:$0xff] }
   0xd   :  { %267 = vmatprep.subr.bf16.mxu1 %v291_v0  ;;  %v57_v51 = vpack.c.bf16 %v49_v49, %v48_v48  ;;  %v219_v5 = vld [vmem:[%s459_s3] ss:$0 sm:$0xff] }
   0xe   :  { %246 = vmatpush3.bf16.msra.mxu0 %v52_v22 }
   0xf   :  { %247 = vmatprep.subr.bf16.mxu0 %v291_v0 }
  0x10   :  { %268 = vmatpush3.bf16.msra.mxu1 %v124_v20 }
  0x11   :  { %269 = vmatprep.subr.bf16.mxu1 %v291_v0 }
  0x12   :  { %248 = vmatpush3.bf16.msra.mxu0 %v53_v28 }
  0x13   :  { %249 = vmatprep.subr.bf16.mxu0 %v291_v0 }
  0x14   :  { %270 = vmatpush3.bf16.msra.mxu1 %v125_v26 }
  0x15   :  { %271 = vmatprep.subr.bf16.mxu1 %v291_v0 }
  0x16   :  { %250 = vmatpush3.bf16.msra.mxu0 %v54_v34 }
  0x17   :  { %251 = vmatprep.subr.bf16.mxu0 %v291_v0 }
  0x18   :  { %272 = vmatpush3.bf16.msra.mxu1 %v126_v32 }
  0x19   :  { %273 = vmatprep.subr.bf16.mxu1 %v291_v0 }
  0x1a   :  { %252 = vmatpush3.bf16.msra.mxu0 %v55_v40 }
  0x1b   :  { %253 = vmatprep.subr.bf16.mxu0 %v291_v0 }
  0x1c   :  { %274 = vmatpush3.bf16.msra.mxu1 %v127_v38 }
  0x1d   :  { %275 = vmatprep.subr.bf16.mxu1 %v291_v0 }
  0x1e   :  { %254 = vmatpush3.bf16.msra.mxu0 %v56_v47 }
  0x1f   :  { %255 = vmatprep.subr.bf16.mxu0 %v291_v0 }
  0x20   :  { %276 = vmatpush3.bf16.msra.mxu1 %v128_v44 }
  0x22   :  { %256 = vmatpush3.bf16.msra.mxu0 %v57_v51 }
  0x23   :  { %278 = vmatmul.mubr.bf16.vlgmr.msra.gmra.mrb[0].mxu1 %v31_v50 }
  0x25   :  { %258 = vmatmul.mubr.bf16.vlgmr.msra.gmra.mrb[0].mxu0 %v31_v50 }
  0xf6   :  { %v163_v53 = vpop.f32.mrb[0].mxu1 }
  0xf7   :  { %v197_v54 = vadd.f32 %v220_v52, %v163_v53  ;;  %v279_v55 = vpop.f32.mrb[1].mxu1 }
  0xf8   :  { %v166_v56 = vpop.f32.mrb[2].mxu1  ;;  %v92_v60 = vpop.f32.mrb[0].mxu0 }
  0xf9   :  { %v221_v57 = vmul.f32 -1.442695, %v197_v54  ;;  %v198_v58 = vadd.f32 %v220_v52, %v166_v56  ;;  %v280_v59 = vpop.f32.mrb[3].mxu1  ;;  %v259_v62 = vpop.f32.mrb[1].mxu0  ;;  %v186_v6 = vadd.f32 %v219_v5, %v92_v60 }
  0xfa   :  { %v95_v63 = vpop.f32.mrb[2].mxu0 }
  0xfb   :  { %283 = vpow2.f32 %v221_v57  ;;  %v222_v61 = vmul.f32 -1.442695, %v198_v58  ;;  %v260_v0 = vpop.f32.mrb[3].mxu0  ;;  %v187_v9 = vadd.f32 %v219_v5, %v95_v63 }
  0xfd   :  { %285 = vpow2.f32 %v222_v61 }
 0x105   :  { %v284_v1 = vpop.eup %283 }
 0x106   :  { %v205_v2 = vadd.f32 1.0, %v284_v1 }
 0x107   :  { %v286_v3 = vpop.eup %285 }
 0x108   :  { %287 = vrcp.f32 %v205_v2  ;;  %v206_v4 = vadd.f32 1.0, %v286_v3 }
 0x10a   :  { %289 = vrcp.f32 %v206_v4 }
 0x112   :  { %v288_v7 = vpop.eup %287 }
 0x113   :  { %v211_v8 = vmul.f32 %v288_v7, %v186_v6 }
 0x114   :  { %v290_v10 = vpop.eup %289 }
 0x115   :  { %213 = vst [vmem:[%s460_s5] sm:$0xff] %v211_v8  ;;  %v212_v11 = vmul.f32 %v290_v10, %v187_v9 }
 0x117   :  { %214 = vst [vmem:[%s460_s5 + $0x8] sm:$0xff] %v212_v11 }

// kernel: run.82
= control target key start
LH: loop header
LB: loop body
LE: loop exit
PB: predicated region body
PF: predicated region fallthrough
CT: control target
= control target key end

     0   :  { %v20_v0 = vlaneseq  ;;  %vm40_vm0 = vcmask 1046528   ;;  %vm63_vm1 = vcmask 1045504   ;;  %vm86_vm2 = vcmask 1044480   ;;  %s328_s1 = inlined_call_operand.vmem [shape: f32[1,9,32], index: 1, kind: input, shape index: {}]   ;;  %s329_s0 = inlined_call_operand.vmem [shape: f32[2,1,16,32], index: 0, kind: input, shape index: {}]   ;;  %s330_s2 = inlined_call_operand.vmem [shape: f32[1,32], index: 2, kind: input, shape index: {}]   ;;  %s331_s3 = inlined_call_operand.vmem [shape: f32[2,8,32], index: 3, kind: output, shape index: {}]  }
   0x1   :  { %v18_v2 = vld [vmem:[%s328_s1] sm:$0xff]  ;;  %v246_v8 = vld [vmem:[%s329_s0 + $0x8] sm:$0xff]  ;;  %v251_v13 = vld [vmem:[%s329_s0 + $0x10] sm:$0xff]  ;;  %vm109_vm3 = vcmask 1043456   ;;  %vm132_vm4 = vcmask 1042432   ;;  %vm155_vm5 = vcmask 1041408  }
   0x2   :  { %v21_v1 = vshrl.u32 %v20_v0, 7  ;;  %v241_v7 = vld [vmem:[%s329_s0] sm:$0xff]  ;;  %v256_v14 = vld [vmem:[%s329_s0 + $0x18] sm:$0xff]  ;;  %vm178_vm6 = vcmask 1040384   ;;  %vm206_vm7 = vcmask 261120  }
   0x4   :  { %v22_v3 = vsub.s32 0, %v21_v1  ;;  %v30_v4 = vsub.s32 1, %v21_v1  ;;  %v53_v5 = vsub.s32 2, %v21_v1  ;;  %v76_v6 = vsub.s32 3, %v21_v1 }
   0x5   :  { %v99_v9 = vsub.s32 4, %v21_v1  ;;  %v122_v10 = vsub.s32 5, %v21_v1  ;;  %v145_v11 = vsub.s32 6, %v21_v1  ;;  %v168_v12 = vsub.s32 7, %v21_v1 }
   0x6   :  { %v23_v15 = vrot.slane %v18_v2, %v22_v3  ;;  %v31_v16 = vrot.slane %v18_v2, %v30_v4  ;;  %v54_v17 = vrot.slane %v18_v2, %v53_v5  ;;  %v77_v18 = vrot.slane %v18_v2, %v76_v6 }
   0x7   :  { %v100_v19 = vrot.slane %v18_v2, %v99_v9  ;;  %v123_v20 = vrot.slane %v18_v2, %v122_v10  ;;  %v258_v21 = vrot.slane %v18_v2, %v145_v11  ;;  %v260_v22 = vrot.slane %v18_v2, %v168_v12 }
   0x8   :  { %v24_v23 = vmul.f32 %v23_v15, %v241_v7  ;;  %v25_v24 = vmul.f32 %v23_v15, %v251_v13  ;;  %v32_v25 = vmul.f32 %v31_v16, %v241_v7  ;;  %v33_v26 = vmul.f32 %v31_v16, %v246_v8 }
   0x9   :  { %v34_v27 = vmul.f32 %v31_v16, %v251_v13  ;;  %v35_v28 = vmul.f32 %v31_v16, %v256_v14  ;;  %v55_v29 = vmul.f32 %v54_v17, %v241_v7  ;;  %v56_v30 = vmul.f32 %v54_v17, %v246_v8 }
   0xa   :  { %v41_v31 = vrot.slane %v32_v25, 1  ;;  %v42_v32 = vrot.slane %v33_v26, 1  ;;  %v57_v33 = vmul.f32 %v54_v17, %v251_v13  ;;  %v58_v34 = vmul.f32 %v54_v17, %v256_v14 }
   0xb   :  { %v44_v35 = vrot.slane %v34_v27, 1  ;;  %v45_v36 = vrot.slane %v35_v28, 1  ;;  %v64_v37 = vrot.slane %v55_v29, 2  ;;  %v65_v38 = vrot.slane %v56_v30, 2 }
   0xc   :  { %v43_v39 = vsel %vm40_vm0, %v41_v31, %v42_v32  ;;  %v67_v40 = vrot.slane %v57_v33, 2  ;;  %v68_v41 = vrot.slane %v58_v34, 2  ;;  %v78_v42 = vmul.f32 %v77_v18, %v241_v7  ;;  %v213_v33 = vld [vmem:[%s328_s1 + $0x8] ss:$0 sm:$0xff] }
   0xd   :  { %v46_v43 = vsel %vm40_vm0, %v44_v35, %v45_v36  ;;  %v49_v44 = vadd.f32 %v43_v39, %v24_v23  ;;  %v66_v45 = vsel %vm63_vm1, %v64_v37, %v65_v38  ;;  %v79_v46 = vmul.f32 %v77_v18, %v246_v8 }
   0xe   :  { %v50_v47 = vadd.f32 %v46_v43, %v25_v24  ;;  %v69_v48 = vsel %vm63_vm1, %v67_v40, %v68_v41  ;;  %v80_v49 = vmul.f32 %v77_v18, %v251_v13  ;;  %v81_v50 = vmul.f32 %v77_v18, %v256_v14 }
   0xf   :  { %v72_v51 = vadd.f32 %v66_v45, %v49_v44  ;;  %v87_v52 = vrot.slane %v78_v42, 3  ;;  %v88_v53 = vrot.slane %v79_v46, 3  ;;  %v101_v54 = vmul.f32 %v100_v19, %v241_v7 }
  0x10   :  { %v73_v55 = vadd.f32 %v69_v48, %v50_v47  ;;  %v90_v56 = vrot.slane %v80_v49, 3  ;;  %v91_v57 = vrot.slane %v81_v50, 3  ;;  %v102_v58 = vmul.f32 %v100_v19, %v246_v8 }
  0x11   :  { %v89_v59 = vsel %vm86_vm2, %v87_v52, %v88_v53  ;;  %v103_v60 = vmul.f32 %v100_v19, %v251_v13  ;;  %v104_v61 = vmul.f32 %v100_v19, %v256_v14  ;;  %v110_v62 = vrot.slane %v101_v54, 4 }
  0x12   :  { %v92_v63 = vsel %vm86_vm2, %v90_v56, %v91_v57  ;;  %v95_v0 = vadd.f32 %v89_v59, %v72_v51  ;;  %v111_v1 = vrot.slane %v102_v58, 4  ;;  %v124_v2 = vmul.f32 %v123_v20, %v241_v7 }
  0x13   :  { %v96_v3 = vadd.f32 %v92_v63, %v73_v55  ;;  %v113_v4 = vrot.slane %v103_v60, 4  ;;  %v114_v5 = vrot.slane %v104_v61, 4  ;;  %v125_v6 = vmul.f32 %v123_v20, %v246_v8 }
  0x14   :  { %v112_v9 = vsel %vm109_vm3, %v110_v62, %v111_v1  ;;  %v126_v10 = vmul.f32 %v123_v20, %v251_v13  ;;  %v127_v11 = vmul.f32 %v123_v20, %v256_v14  ;;  %v133_v12 = vrot.slane %v124_v2, 5 }
  0x15   :  { %v115_v15 = vsel %vm109_vm3, %v113_v4, %v114_v5  ;;  %v118_v16 = vadd.f32 %v112_v9, %v95_v0  ;;  %v134_v17 = vrot.slane %v125_v6, 5  ;;  %v147_v18 = vmul.f32 %v258_v21, %v241_v7 }
  0x16   :  { %v119_v19 = vadd.f32 %v115_v15, %v96_v3  ;;  %v136_v23 = vrot.slane %v126_v10, 5  ;;  %v137_v24 = vrot.slane %v127_v11, 5  ;;  %v148_v25 = vmul.f32 %v258_v21, %v246_v8 }
  0x17   :  { %v135_v26 = vsel %vm132_vm4, %v133_v12, %v134_v17  ;;  %v149_v27 = vmul.f32 %v258_v21, %v251_v13  ;;  %v150_v20 = vmul.f32 %v258_v21, %v256_v14  ;;  %v156_v28 = vrot.slane %v147_v18, 6 }
  0x18   :  { %v138_v29 = vsel %vm132_vm4, %v136_v23, %v137_v24  ;;  %v141_v30 = vadd.f32 %v135_v26, %v118_v16  ;;  %v157_v31 = vrot.slane %v148_v25, 6  ;;  %v170_v32 = vmul.f32 %v260_v22, %v241_v7 }
  0x19   :  { %v142_v34 = vadd.f32 %v138_v29, %v119_v19  ;;  %v159_v35 = vrot.slane %v149_v27, 6  ;;  %v160_v36 = vrot.slane %v150_v20, 6  ;;  %v171_v37 = vmul.f32 %v260_v22, %v246_v8 }
  0x1a   :  { %v158_v21 = vsel %vm155_vm5, %v156_v28, %v157_v31  ;;  %v172_v38 = vmul.f32 %v260_v22, %v251_v13  ;;  %v173_v39 = vmul.f32 %v260_v22, %v256_v14  ;;  %v179_v40 = vrot.slane %v170_v32, 7  ;;  %v214_v22 = vld [vmem:[%s330_s2] ss:$0 sm:$0xff] }
  0x1b   :  { %v161_v7 = vsel %vm155_vm5, %v159_v35, %v160_v36  ;;  %v164_v41 = vadd.f32 %v158_v21, %v141_v30  ;;  %v180_v42 = vrot.slane %v171_v37, 7  ;;  %v193_v46 = vmul.f32 %v213_v33, %v246_v8 }
  0x1c   :  { %v165_v43 = vadd.f32 %v161_v7, %v142_v34  ;;  %v182_v44 = vrot.slane %v172_v38, 7  ;;  %v183_v45 = vrot.slane %v173_v39, 7  ;;  %v194_v48 = vmul.f32 %v213_v33, %v256_v14 }
  0x1d   :  { %v181_v47 = vsel %vm178_vm6, %v179_v40, %v180_v42 }
  0x1e   :  { %v184_v49 = vsel %vm178_vm6, %v182_v44, %v183_v45  ;;  %v187_v13 = vadd.f32 %v181_v47, %v164_v41 }
  0x1f   :  { %v188_v50 = vadd.f32 %v184_v49, %v165_v43 }
  0x20   :  { %v195_v51 = vadd.f32 %v193_v46, %v187_v13 }
  0x21   :  { %v196_v52 = vadd.f32 %v194_v48, %v188_v50 }
  0x22   :  { %v204_v53 = vadd.f32 %v214_v22, %v195_v51 }
  0x23   :  { %v205_v54 = vadd.f32 %v214_v22, %v196_v52 }
  0x24   :  { %207 = vst.msk [vmem:[%s331_s3] sm:$0xff] %vm206_vm7, %v204_v53 }
  0x25   :  { %208 = vst.msk [vmem:[%s331_s3 + $0x8] sm:$0xff] %vm206_vm7, %v205_v54 }

// kernel: run.79
= control target key start
LH: loop header
LB: loop body
LE: loop exit
PB: predicated region body
PF: predicated region fallthrough
CT: control target
= control target key end

     0   :  { %vm28_vm0 = vcmask 130048   ;;  %v728_v0 = vmov 0.0   ;;  %vm729_vm1 = vmmov 0   ;;  %vm19_vm2 = vcmask 7168   ;;  %s944_s1 = inlined_call_operand.vmem [shape: f32[4,8,16], index: 1, kind: input, shape index: {}]   ;;  %s945_s0 = inlined_call_operand.vmem [shape: f32[4,8,16], index: 0, kind: input, shape index: {}]   ;;  %s946_s2 = inlined_call_operand.vmem [shape: f32[4,8,16], index: 2, kind: input, shape index: {}]   ;;  %s947_s3 = inlined_call_operand.vmem [shape: f32[4,8,16], index: 3, kind: output, shape index: {}]  }
   0x1   :  { %650 = vmatprep.subr.bf16.mxu0 %v728_v0  ;;  %v41_v1 = vld [vmem:[%s944_s1] sm:$0xff]  ;;  %29 = vst.msk [vmem:[#allocation4] sm:$0xff] %vm28_vm0, %v728_v0  ;;  %30 = vst.msk [vmem:[#allocation4 + $0x8] sm:$0xff] %vm28_vm0, %v728_v0  ;;  %656 = vmatprep.subr.bf16.mxu1 %v728_v0  ;;  %v42_v2 = vld [vmem:[%s944_s1 + $0x8] sm:$0xff]  ;;  %v730_v21 = vmov -1e+30   ;;  %v239_v22 = vlaneseq }
   0x2   :  { %31 = vst.msk [vmem:[#allocation4 + $0x10] sm:$0xff] %vm28_vm0, %v728_v0  ;;  %32 = vst.msk [vmem:[#allocation4 + $0x18] sm:$0xff] %vm28_vm0, %v728_v0  ;;  %v45_v3 = vpack.c.bf16 %v41_v1, %v41_v1  ;;  %v46_v4 = vpack.c.bf16 %v42_v2, %v42_v2  ;;  %652 = vmatprep.mubr.msk.bf16.mxu0 %vm729_vm1, %v728_v0  ;;  %658 = vmatprep.mubr.msk.bf16.mxu1 %vm729_vm1, %v728_v0  ;;  %v43_v5 = vld [vmem:[%s944_s1 + $0x10] sm:$0xff]  ;;  %v44_v6 = vld [vmem:[%s944_s1 + $0x18] sm:$0xff]  ;;  %vm252_vm4 = vcmask 64512   ;;  %v731_v52 = vmov 0  }
   0x3   :  { %v33_v9 = vld [vmem:[%s945_s0] sm:$0xff]  ;;  %v34_v10 = vld [vmem:[%s945_s0 + $0x8] sm:$0xff]  ;;  %v47_v11 = vpack.c.bf16 %v43_v5, %v43_v5  ;;  %v48_v12 = vpack.c.bf16 %v44_v6, %v44_v6  ;;  %v35_v17 = vld [vmem:[%s945_s0 + $0x10] sm:$0xff]  ;;  %20 = vst.msk [vmem:[#allocation2] sm:$0xff] %vm19_vm2, %v730_v21  ;;  %v240_v23 = vand.u32 127, %v239_v22  ;;  %702 = vset.pattern.permute.xlu0 %v731_v52  ;;  %703 = vset.pattern.permute.xlu1 %v731_v52  ;;  %vm385_vm5 = vcmask 1043456  }
   0x4   :  { %v54_v7 = vsel %vm28_vm0, %v45_v3, 0  ;;  %v100_v8 = vsel %vm28_vm0, %v46_v4, 0  ;;  %v37_v13 = vpack.c.bf16 %v33_v9, %v33_v9  ;;  %v38_v14 = vpack.c.bf16 %v34_v10, %v34_v10  ;;  %v36_v18 = vld [vmem:[%s945_s0 + $0x18] sm:$0xff]  ;;  %21 = vst.msk [vmem:[#allocation2 + $0x8] sm:$0xff] %vm19_vm2, %v730_v21  ;;  %22 = vst.msk [vmem:[#allocation2 + $0x10] sm:$0xff] %vm19_vm2, %v730_v21  ;;  %v374_v5 = vld [vmem:[%s946_s2] sm:$0xff] }
   0x5   :  { %651 = vmatpush3.bf16.xpose.msra.mxu0 %v54_v7  ;;  %657 = vmatpush3.bf16.xpose.msra.mxu1 %v100_v8  ;;  %v146_v15 = vsel %vm28_vm0, %v47_v11, 0  ;;  %v192_v16 = vsel %vm28_vm0, %v48_v12, 0  ;;  %v39_v19 = vpack.c.bf16 %v35_v17, %v35_v17  ;;  %v40_v20 = vpack.c.bf16 %v36_v18, %v36_v18  ;;  %23 = vst.msk [vmem:[#allocation2 + $0x18] sm:$0xff] %vm19_vm2, %v730_v21  ;;  %v375_v9 = vld [vmem:[%s946_s2 + $0x8] sm:$0xff]  ;;  %v376_v12 = vld [vmem:[%s946_s2 + $0x10] sm:$0xff] }
   0x6   :  { %662 = vmatprep.subr.bf16.mxu0 %v728_v0  ;;  %668 = vmatprep.subr.bf16.mxu1 %v728_v0  ;;  %24 = vst.msk [vmem:[#allocation3] sm:$0xff] %vm19_vm2, %v728_v0  ;;  %25 = vst.msk [vmem:[#allocation3 + $0x8] sm:$0xff] %vm19_vm2, %v728_v0  ;;  %vm243_vm3 = vcmp.lt.s32.totalorder %v240_v23, 8  ;;  %v378_v6 = vpack.c.bf16 %v374_v5, %v374_v5  ;;  %v379_v10 = vpack.c.bf16 %v375_v9, %v375_v9 }
   0x7   :  { %26 = vst.msk [vmem:[#allocation3 + $0x10] sm:$0xff] %vm19_vm2, %v728_v0  ;;  %27 = vst.msk [vmem:[#allocation3 + $0x18] sm:$0xff] %vm19_vm2, %v728_v0 }
   0x8   :  { %v387_v8 = vsel %vm385_vm5, %v378_v6, 0  ;;  %v433_v11 = vsel %vm385_vm5, %v379_v10, 0  ;;  %v342_v10 = vld [vmem:[#allocation4] sm:$0xff] }
   0xa   :  { %v839_v53 = vld [vmem:[#allocation2] sm:$0xff] }
   0xb   :  { %v844_v56 = vld [vmem:[#allocation2 + $0x8] sm:$0xff]  ;;  %v854_v60 = vld [vmem:[#allocation2 + $0x10] sm:$0xff] }
   0xc   :  { %653 = vmatmul.mubr.msk.bf16.vlgmr.msra.gmra.mrb[0].mxu0 %vm28_vm0, %v37_v13  ;;  %659 = vmatmul.mubr.msk.bf16.vlgmr.msra.gmra.mrb[0].mxu1 %vm28_vm0, %v38_v14  ;;  %v864_v1 = vld [vmem:[#allocation2 + $0x18] sm:$0xff]  ;;  %v380_v13 = vpack.c.bf16 %v376_v12, %v376_v12 }
   0xd   :  { %663 = vmatpush3.bf16.xpose.msra.mxu0 %v146_v15  ;;  %669 = vmatpush3.bf16.xpose.msra.mxu1 %v192_v16  ;;  %v377_v15 = vld [vmem:[%s946_s2 + $0x18] sm:$0xff]  ;;  %v314_v52 = vld [vmem:[#allocation3 + $0x8] sm:$0xff] }
   0xe   :  { %664 = vmatprep.mubr.msk.bf16.mxu0 %vm729_vm1, %v728_v0  ;;  %670 = vmatprep.mubr.msk.bf16.mxu1 %vm729_vm1, %v728_v0  ;;  %v479_v14 = vsel %vm385_vm5, %v380_v13, 0  ;;  %v381_v16 = vpack.c.bf16 %v377_v15, %v377_v15  ;;  %v343_v13 = vld [vmem:[#allocation4 + $0x8] sm:$0xff] }
   0xf   :  { %674 = vmatprep.subr.bf16.mxu0 %v728_v0  ;;  %680 = vmatprep.subr.bf16.mxu1 %v728_v0 }
  0x10   :  { %v525_v17 = vsel %vm385_vm5, %v381_v16, 0 }
  0x14   :  { %665 = vmatmul.mubr.msk.bf16.vlgmr.msra.gmra.mrb[4].mxu0 %vm28_vm0, %v39_v19  ;;  %671 = vmatmul.mubr.msk.bf16.vlgmr.msra.gmra.mrb[4].mxu1 %vm28_vm0, %v40_v20 }
  0x15   :  { %676 = vmatprep.mubr.msk.bf16.mxu0 %vm729_vm1, %v728_v0  ;;  %682 = vmatprep.mubr.msk.bf16.mxu1 %vm729_vm1, %v728_v0 }
  0x16   :  { %675 = vmatpush3.bf16.msra.mxu0 %v387_v8  ;;  %681 = vmatpush3.bf16.msra.mxu1 %v433_v11 }
  0x17   :  { %686 = vmatprep.subr.bf16.mxu0 %v728_v0  ;;  %692 = vmatprep.subr.bf16.mxu1 %v728_v0 }
  0xdf   :  { %v90_v24 = vpop.f32.mrb[0].mxu0  ;;  %v136_v25 = vpop.f32.mrb[0].mxu1 }
  0xe0   :  { %v234_v26 = vmul.f32 0.25, %v90_v24  ;;  %v654_v27 = vpop.f32.mrb[1].mxu0  ;;  %v235_v28 = vmul.f32 0.25, %v136_v25  ;;  %v660_v29 = vpop.f32.mrb[1].mxu1 }
  0xe1   :  { %v93_v30 = vpop.f32.mrb[2].mxu0  ;;  %v139_v31 = vpop.f32.mrb[2].mxu1 }
  0xe2   :  { %v655_v32 = vpop.f32.mrb[3].mxu0  ;;  %v661_v33 = vpop.f32.mrb[3].mxu1  ;;  %v823_v34 = vsel %vm243_vm3, %v234_v26, -1e+30  ;;  %v826_v35 = vsel %vm243_vm3, %v235_v28, -1e+30 }
  0xe3   :  { %v253_v36 = vsel %vm252_vm4, %v823_v34, -inf  ;;  %v256_v37 = vsel %vm252_vm4, %v826_v35, -inf }
  0xe4   :  { %254 = vmax.xlane.f32.xlu0 %v253_v36 }
  0xe7   :  { %v182_v38 = vpop.f32.mrb[4].mxu0  ;;  %v228_v39 = vpop.f32.mrb[4].mxu1 }
  0xe8   :  { %v236_v40 = vmul.f32 0.25, %v182_v38  ;;  %257 = vmax.xlane.f32.xlu0 %v256_v37  ;;  %v666_v41 = vpop.f32.mrb[5].mxu0  ;;  %v237_v42 = vmul.f32 0.25, %v228_v39  ;;  %v672_v43 = vpop.f32.mrb[5].mxu1 }
  0xe9   :  { %v185_v44 = vpop.f32.mrb[6].mxu0  ;;  %v231_v45 = vpop.f32.mrb[6].mxu1 }
  0xea   :  { %v667_v46 = vpop.f32.mrb[7].mxu0  ;;  %v673_v47 = vpop.f32.mrb[7].mxu1  ;;  %v246_v48 = vsel %vm243_vm3, %v236_v40, -1e+30  ;;  %v834_v49 = vsel %vm243_vm3, %v237_v42, -1e+30 }
  0xeb   :  { %v259_v50 = vsel %vm252_vm4, %v246_v48, -inf  ;;  %v262_v51 = vsel %vm252_vm4, %v834_v49, -inf }
  0xec   :  { %260 = vmax.xlane.f32.xlu1 %v259_v50 }
  0xf0   :  { %263 = vmax.xlane.f32.xlu1 %v262_v51 }
 0x171   :  { %v255_v54 = vpop.xlane.xlu0 %254 }
 0x172   :  { %v842_v55 = vmax.f32 %v839_v53, %v255_v54 }
 0x174   :  { %v269_v57 = vsub.f32 %v839_v53, %v842_v55  ;;  %575 = vst.msk [vmem:[#allocation2] sm:$0xff] %vm19_vm2, %v842_v55  ;;  %283 = vperm.xlu0 %702, %v842_v55  }
 0x175   :  { %v258_v58 = vpop.xlane.xlu0 %257 }
 0x176   :  { %v852_v59 = vmax.f32 %v844_v56, %v258_v58 }
 0x178   :  { %v270_v61 = vsub.f32 %v844_v56, %v852_v59  ;;  %576 = vst.msk [vmem:[#allocation2 + $0x8] sm:$0xff] %vm19_vm2, %v852_v59  ;;  %288 = vperm.xlu1 %703, %v852_v59   ;;  %v315_v56 = vld [vmem:[#allocation3 + $0x10] sm:$0xff] }
 0x179   :  { %v261_v62 = vpop.xlane.xlu1 %260 }
 0x17a   :  { %v862_v63 = vmax.f32 %v854_v60, %v261_v62  ;;  %v275_v40 = vmul.f32 1.442695, %v270_v61 }
 0x17c   :  { %v271_v2 = vsub.f32 %v854_v60, %v862_v63  ;;  %577 = vst.msk [vmem:[#allocation2 + $0x10] sm:$0xff] %vm19_vm2, %v862_v63  ;;  %293 = vperm.xlu1 %703, %v862_v63   ;;  %v316_v60 = vld [vmem:[#allocation3 + $0x18] sm:$0xff] }
 0x17d   :  { %v264_v3 = vpop.xlane.xlu1 %263 }
 0x17e   :  { %v872_v4 = vmax.f32 %v864_v1, %v264_v3  ;;  %v277_v43 = vmul.f32 1.442695, %v271_v2 }
 0x180   :  { %v272_v7 = vsub.f32 %v864_v1, %v872_v4  ;;  %578 = vst.msk [vmem:[#allocation2 + $0x18] sm:$0xff] %vm19_vm2, %v872_v4  ;;  %298 = vperm.xlu1 %703, %v872_v4  }
 0x182   :  { %v279_v44 = vmul.f32 1.442695, %v272_v7 }
 0x1f3   :  { %v284_v18 = vpop.permute.xlu0 %283 }
 0x1f4   :  { %v301_v19 = vsub.f32 %v823_v34, %v284_v18 }
 0x1f6   :  { %v305_v20 = vmul.f32 1.442695, %v301_v19 }
 0x1f7   :  { %v289_v21 = vpop.permute.xlu1 %288 }
 0x1f8   :  { %704 = vpow2.f32 %v305_v20  ;;  %v302_v22 = vsub.f32 %v826_v35, %v289_v21 }
 0x1fa   :  { %v307_v23 = vmul.f32 1.442695, %v302_v22  ;;  %v344_v22 = vld [vmem:[#allocation4 + $0x10] sm:$0xff] }
 0x1fb   :  { %v294_v24 = vpop.permute.xlu1 %293 }
 0x1fc   :  { %706 = vpow2.f32 %v307_v23  ;;  %v303_v25 = vsub.f32 %v246_v48, %v294_v24 }
 0x1fe   :  { %v309_v26 = vmul.f32 1.442695, %v303_v25 }
 0x1ff   :  { %v299_v27 = vpop.permute.xlu1 %298 }
 0x200   :  { %708 = vpow2.f32 %v309_v26  ;;  %v304_v28 = vsub.f32 %v834_v49, %v299_v27  ;;  %v313_v49 = vld [vmem:[#allocation3] sm:$0xff] }
 0x202   :  { %v705_v29 = vpop.eup %704  ;;  %v311_v30 = vmul.f32 1.442695, %v304_v28 }
 0x203   :  { %v321_v31 = vsel %vm252_vm4, %v705_v29, 0.0  ;;  %v370_v32 = vpack.c.bf16 %v705_v29, %v705_v29  ;;  %v345_v29 = vld [vmem:[#allocation4 + $0x18] sm:$0xff] }
 0x204   :  { %710 = vpow2.f32 %v311_v30  ;;  %322 = vadd.xlane.f32.xlu1 %v321_v31 }
 0x205   :  { %677 = vmatmul.mubr.msk.bf16.vlgmr.msra.gmra.mrb[8].mxu0 %vm252_vm4, %v370_v32  ;;  %712 = vpow2.f32 %v275_v40 }
 0x206   :  { %v707_v33 = vpop.eup %706  ;;  %687 = vmatpush3.bf16.msra.mxu0 %v479_v14  ;;  %688 = vmatprep.mubr.msk.bf16.mxu0 %vm729_vm1, %v728_v0 }
 0x207   :  { %v324_v34 = vsel %vm252_vm4, %v707_v33, 0.0  ;;  %v371_v35 = vpack.c.bf16 %v707_v33, %v707_v33 }
 0x208   :  { %325 = vadd.xlane.f32.xlu0 %v324_v34 }
 0x209   :  { %683 = vmatmul.mubr.msk.bf16.vlgmr.msra.gmra.mrb[8].mxu1 %vm252_vm4, %v371_v35 }
 0x20a   :  { %v709_v36 = vpop.eup %708  ;;  %693 = vmatpush3.bf16.msra.mxu1 %v525_v17  ;;  %694 = vmatprep.mubr.msk.bf16.mxu1 %vm729_vm1, %v728_v0  ;;  %v273_v0 = vmul.f32 1.442695, %v269_v57 }
 0x20b   :  { %v327_v37 = vsel %vm252_vm4, %v709_v36, 0.0  ;;  %v372_v38 = vpack.c.bf16 %v709_v36, %v709_v36 }
 0x20c   :  { %328 = vadd.xlane.f32.xlu1 %v327_v37  ;;  %714 = vpow2.f32 %v273_v0 }
 0x20d   :  { %689 = vmatmul.mubr.msk.bf16.vlgmr.msra.gmra.mrb[12].mxu0 %vm252_vm4, %v372_v38  ;;  %716 = vpow2.f32 %v277_v43 }
 0x20e   :  { %v711_v39 = vpop.eup %710  ;;  %718 = vpow2.f32 %v279_v44 }
 0x20f   :  { %v330_v41 = vsel %vm252_vm4, %v711_v39, 0.0  ;;  %v373_v42 = vpack.c.bf16 %v711_v39, %v711_v39  ;;  %v713_v45 = vpop.eup %712 }
 0x210   :  { %331 = vadd.xlane.f32.xlu1 %v330_v41  ;;  %v318_v54 = vmul.f32 %v713_v45, %v314_v52 }
 0x211   :  { %695 = vmatmul.mubr.msk.bf16.vlgmr.msra.gmra.mrb[12].mxu1 %vm252_vm4, %v373_v42 }
 0x216   :  { %v715_v46 = vpop.eup %714 }
 0x217   :  { %v717_v47 = vpop.eup %716  ;;  %v317_v50 = vmul.f32 %v715_v46, %v313_v49 }
 0x218   :  { %v719_v48 = vpop.eup %718  ;;  %v319_v58 = vmul.f32 %v717_v47, %v315_v56 }
 0x219   :  { %v320_v63 = vmul.f32 %v719_v48, %v316_v60 }
 0x21e   :  { %353 = vperm.xlu0 %702, %v713_v45  }
 0x221   :  { %348 = vperm.xlu1 %703, %v715_v46  }
 0x225   :  { %358 = vperm.xlu1 %703, %v717_v47  }
 0x229   :  { %363 = vperm.xlu1 %703, %v719_v48  }
 0x291   :  { %v323_v51 = vpop.xlane.xlu1 %322 }
 0x292   :  { %v333_v53 = vadd.f32 %v323_v51, %v317_v50 }
 0x294   :  { %338 = vst.msk [vmem:[#allocation3] sm:$0xff] %vm19_vm2, %v333_v53 }
 0x295   :  { %v326_v55 = vpop.xlane.xlu0 %325 }
 0x296   :  { %v334_v57 = vadd.f32 %v326_v55, %v318_v54 }
 0x298   :  { %339 = vst.msk [vmem:[#allocation3 + $0x8] sm:$0xff] %vm19_vm2, %v334_v57 }
 0x299   :  { %v329_v59 = vpop.xlane.xlu1 %328 }
 0x29a   :  { %v335_v61 = vadd.f32 %v329_v59, %v319_v58 }
 0x29b   :  { %v586_v62 = vld [vmem:[#allocation3] sm:$0xff] }
 0x29c   :  { %340 = vst.msk [vmem:[#allocation3 + $0x10] sm:$0xff] %vm19_vm2, %v335_v61  ;;  %720 = vrcp.f32 %v586_v62 }
 0x29d   :  { %v332_v1 = vpop.xlane.xlu1 %331  ;;  %v354_v14 = vpop.permute.xlu0 %353 }
 0x29e   :  { %v336_v2 = vadd.f32 %v332_v1, %v320_v63  ;;  %v367_v20 = vmul.f32 %v354_v14, %v343_v13 }
 0x29f   :  { %v587_v3 = vld [vmem:[#allocation3 + $0x8] sm:$0xff] }
 0x2a0   :  { %341 = vst.msk [vmem:[#allocation3 + $0x18] sm:$0xff] %vm19_vm2, %v336_v2  ;;  %722 = vrcp.f32 %v587_v3 }
 0x2a1   :  { %v349_v11 = vpop.permute.xlu1 %348 }
 0x2a2   :  { %v366_v12 = vmul.f32 %v349_v11, %v342_v10 }
 0x2a3   :  { %v588_v4 = vld [vmem:[#allocation3 + $0x10] sm:$0xff] }
 0x2a4   :  { %724 = vrcp.f32 %v588_v4 }
 0x2a5   :  { %v359_v18 = vpop.permute.xlu1 %358 }
 0x2a6   :  { %v721_v5 = vpop.eup %720  ;;  %v368_v27 = vmul.f32 %v359_v18, %v344_v22 }
 0x2a7   :  { %596 = vperm.xlu1 %703, %v721_v5   ;;  %v589_v6 = vld [vmem:[#allocation3 + $0x18] sm:$0xff] }
 0x2a8   :  { %726 = vrcp.f32 %v589_v6 }
 0x2a9   :  { %v364_v30 = vpop.permute.xlu1 %363 }
 0x2aa   :  { %v723_v7 = vpop.eup %722  ;;  %v369_v35 = vmul.f32 %v364_v30, %v345_v29 }
 0x2ab   :  { %601 = vperm.xlu0 %702, %v723_v7  }
 0x2ae   :  { %v725_v8 = vpop.eup %724 }
 0x2af   :  { %606 = vperm.xlu1 %703, %v725_v8  }
 0x2b2   :  { %v727_v9 = vpop.eup %726 }
 0x2b3   :  { %611 = vperm.xlu0 %702, %v727_v9  }
 0x2d8   :  { %v423_v15 = vpop.f32.mrb[8].mxu0 }
 0x2d9   :  { %v567_v16 = vadd.f32 %v423_v15, %v366_v12  ;;  %v678_v17 = vpop.f32.mrb[9].mxu0 }
 0x2da   :  { %v426_v19 = vpop.f32.mrb[10].mxu0 }
 0x2db   :  { %571 = vst.msk [vmem:[#allocation4] sm:$0xff] %vm28_vm0, %v567_v16  ;;  %v679_v21 = vpop.f32.mrb[11].mxu0 }
 0x2dc   :  { %v469_v23 = vpop.f32.mrb[8].mxu1 }
 0x2dd   :  { %v568_v24 = vadd.f32 %v469_v23, %v367_v20  ;;  %v684_v25 = vpop.f32.mrb[9].mxu1 }
 0x2de   :  { %v472_v26 = vpop.f32.mrb[10].mxu1 }
 0x2df   :  { %572 = vst.msk [vmem:[#allocation4 + $0x8] sm:$0xff] %vm28_vm0, %v568_v24  ;;  %v685_v28 = vpop.f32.mrb[11].mxu1 }
 0x2e0   :  { %v515_v31 = vpop.f32.mrb[12].mxu0 }
 0x2e1   :  { %v569_v32 = vadd.f32 %v515_v31, %v368_v27  ;;  %v690_v33 = vpop.f32.mrb[13].mxu0 }
 0x2e2   :  { %v518_v34 = vpop.f32.mrb[14].mxu0  ;;  %v582_v0 = vld [vmem:[#allocation4] sm:$0xff] }
 0x2e3   :  { %573 = vst.msk [vmem:[#allocation4 + $0x10] sm:$0xff] %vm28_vm0, %v569_v32  ;;  %v691_v36 = vpop.f32.mrb[15].mxu0 }
 0x2e4   :  { %v561_v37 = vpop.f32.mrb[12].mxu1 }
 0x2e5   :  { %v570_v38 = vadd.f32 %v561_v37, %v369_v35  ;;  %v696_v39 = vpop.f32.mrb[13].mxu1 }
 0x2e6   :  { %v564_v40 = vpop.f32.mrb[14].mxu1  ;;  %v583_v44 = vld [vmem:[#allocation4 + $0x8] sm:$0xff] }
 0x2e7   :  { %574 = vst.msk [vmem:[#allocation4 + $0x18] sm:$0xff] %vm28_vm0, %v570_v38  ;;  %v697_v41 = vpop.f32.mrb[15].mxu1 }
 0x2ea   :  { %v584_v48 = vld [vmem:[#allocation4 + $0x10] sm:$0xff] }
 0x2ee   :  { %v585_v51 = vld [vmem:[#allocation4 + $0x18] sm:$0xff] }
 0x326   :  { %v597_v42 = vpop.permute.xlu1 %596 }
 0x327   :  { %v614_v43 = vmul.f32 %v597_v42, %v582_v0 }
 0x329   :  { %618 = vst.msk [vmem:[%s947_s3] sm:$0xff] %vm28_vm0, %v614_v43 }
 0x32a   :  { %v602_v45 = vpop.permute.xlu0 %601 }
 0x32b   :  { %v615_v46 = vmul.f32 %v602_v45, %v583_v44 }
 0x32d   :  { %619 = vst.msk [vmem:[%s947_s3 + $0x8] sm:$0xff] %vm28_vm0, %v615_v46 }
 0x32e   :  { %v607_v47 = vpop.permute.xlu1 %606 }
 0x32f   :  { %v616_v49 = vmul.f32 %v607_v47, %v584_v48 }
 0x331   :  { %620 = vst.msk [vmem:[%s947_s3 + $0x10] sm:$0xff] %vm28_vm0, %v616_v49 }
 0x332   :  { %v612_v50 = vpop.permute.xlu0 %611 }
 0x333   :  { %v617_v52 = vmul.f32 %v612_v50, %v585_v51 }
 0x335   :  { %621 = vst.msk [vmem:[%s947_s3 + $0x18] sm:$0xff] %vm28_vm0, %v617_v52 }

// kernel: run.93
= control target key start
LH: loop header
LB: loop body
LE: loop exit
PB: predicated region body
PF: predicated region fallthrough
CT: control target
= control target key end

     0   :  { %v20_v0 = vlaneseq  ;;  %vm157_vm0 = vcmask 257024   ;;  %s212_s1 = inlined_call_operand.vmem [shape: f32[2,5,32], index: 1, kind: input, shape index: {}]   ;;  %s213_s0 = inlined_call_operand.vmem [shape: f32[2,2,8,32], index: 0, kind: input, shape index: {}]   ;;  %s214_s2 = inlined_call_operand.vmem [shape: f32[1,32], index: 2, kind: input, shape index: {}]   ;;  %s215_s3 = inlined_call_operand.vmem [shape: f32[2,4,32], index: 3, kind: output, shape index: {}]  }
   0x1   :  { %v18_v2 = vld [vmem:[%s212_s1] sm:$0x1f]  ;;  %v16_v8 = vld [vmem:[%s213_s0 + $0x10] sm:$0xff]  ;;  %v19_v14 = vld [vmem:[%s212_s1 + $0x8] sm:$0x1f] }
   0x2   :  { %v21_v1 = vshrl.u32 %v20_v0, 7  ;;  %v14_v7 = vld [vmem:[%s213_s0] sm:$0xff]  ;;  %v15_v26 = vld [vmem:[%s213_s0 + $0x8] sm:$0xff]  ;;  %v17_v40 = vld [vmem:[%s213_s0 + $0x18] sm:$0xff] }
   0x4   :  { %v22_v3 = vsub.s32 0, %v21_v1  ;;  %v30_v4 = vsub.s32 1, %v21_v1  ;;  %v44_v5 = vsub.s32 2, %v21_v1  ;;  %v58_v6 = vsub.s32 3, %v21_v1 }
   0x5   :  { %v72_v9 = vsub.s32 4, %v21_v1 }
   0x6   :  { %v23_v10 = vrot.slane %v18_v2, %v22_v3  ;;  %v31_v11 = vrot.slane %v18_v2, %v30_v4  ;;  %v45_v12 = vrot.slane %v18_v2, %v44_v5  ;;  %v59_v13 = vrot.slane %v18_v2, %v58_v6 }
   0x7   :  { %v73_v15 = vrot.slane %v18_v2, %v72_v9  ;;  %v95_v25 = vrot.slane %v19_v14, %v30_v4  ;;  %v87_v31 = vrot.slane %v19_v14, %v22_v3  ;;  %v109_v32 = vrot.slane %v19_v14, %v44_v5 }
   0x8   :  { %v24_v16 = vmul.f32 %v23_v10, %v14_v7  ;;  %v32_v17 = vmul.f32 %v31_v11, %v14_v7  ;;  %v33_v18 = vmul.f32 %v31_v11, %v16_v8  ;;  %v46_v19 = vmul.f32 %v45_v12, %v14_v7 }
   0x9   :  { %v47_v20 = vmul.f32 %v45_v12, %v16_v8  ;;  %v60_v21 = vmul.f32 %v59_v13, %v14_v7  ;;  %v74_v24 = vmul.f32 %v73_v15, %v14_v7  ;;  %v61_v28 = vmul.f32 %v59_v13, %v16_v8 }
   0xa   :  { %v36_v22 = vrot.slane %v32_v17, 1  ;;  %v50_v23 = vrot.slane %v46_v19, 2  ;;  %v37_v27 = vrot.slane %v33_v18, 1  ;;  %v75_v34 = vmul.f32 %v73_v15, %v16_v8 }
   0xb   :  { %v64_v30 = vrot.slane %v60_v21, 3  ;;  %v51_v33 = vrot.slane %v47_v20, 2  ;;  %v25_v35 = vmul.f32 %v23_v10, %v16_v8  ;;  %v78_v37 = vrot.slane %v74_v24, 4  ;;  %v164_v8 = vld [vmem:[%s214_s2] ss:$0 sm:$0xff] }
   0xc   :  { %v40_v29 = vadd.f32 %v36_v22, %v24_v16  ;;  %v96_v38 = vmul.f32 %v95_v25, %v15_v26  ;;  %v123_v39 = vrot.slane %v19_v14, %v58_v6  ;;  %v65_v41 = vrot.slane %v61_v28, 3 }
   0xd   :  { %v41_v42 = vadd.f32 %v37_v27, %v25_v35  ;;  %v88_v44 = vmul.f32 %v87_v31, %v15_v26  ;;  %v110_v45 = vmul.f32 %v109_v32, %v15_v26  ;;  %v137_v46 = vrot.slane %v19_v14, %v72_v9 }
   0xe   :  { %v54_v36 = vadd.f32 %v50_v23, %v40_v29  ;;  %v79_v47 = vrot.slane %v75_v34, 4  ;;  %v97_v49 = vmul.f32 %v95_v25, %v17_v40  ;;  %v100_v51 = vrot.slane %v96_v38, 1 }
   0xf   :  { %v55_v48 = vadd.f32 %v51_v33, %v41_v42  ;;  %v124_v52 = vmul.f32 %v123_v39, %v15_v26  ;;  %v89_v54 = vmul.f32 %v87_v31, %v17_v40  ;;  %v111_v55 = vmul.f32 %v109_v32, %v17_v40 }
  0x10   :  { %v68_v43 = vadd.f32 %v64_v30, %v54_v36  ;;  %v114_v57 = vrot.slane %v110_v45, 2  ;;  %v138_v58 = vmul.f32 %v137_v46, %v15_v26  ;;  %v101_v60 = vrot.slane %v97_v49, 1 }
  0x11   :  { %v69_v53 = vadd.f32 %v65_v41, %v55_v48  ;;  %v125_v61 = vmul.f32 %v123_v39, %v17_v40  ;;  %v128_v63 = vrot.slane %v124_v52, 3  ;;  %v115_v1 = vrot.slane %v111_v55, 2 }
  0x12   :  { %v82_v50 = vadd.f32 %v78_v37, %v68_v43  ;;  %v139_v2 = vmul.f32 %v137_v46, %v17_v40  ;;  %v142_v4 = vrot.slane %v138_v58, 4 }
  0x13   :  { %v83_v59 = vadd.f32 %v79_v47, %v69_v53  ;;  %v129_v6 = vrot.slane %v125_v61, 3 }
  0x14   :  { %v90_v56 = vadd.f32 %v88_v44, %v82_v50  ;;  %v143_v10 = vrot.slane %v139_v2, 4 }
  0x15   :  { %v91_v0 = vadd.f32 %v89_v54, %v83_v59 }
  0x16   :  { %v104_v62 = vadd.f32 %v100_v51, %v90_v56 }
  0x17   :  { %v105_v5 = vadd.f32 %v101_v60, %v91_v0 }
  0x18   :  { %v118_v3 = vadd.f32 %v114_v57, %v104_v62 }
  0x19   :  { %v119_v9 = vadd.f32 %v115_v1, %v105_v5 }
  0x1a   :  { %v132_v7 = vadd.f32 %v128_v63, %v118_v3 }
  0x1b   :  { %v133_v12 = vadd.f32 %v129_v6, %v119_v9 }
  0x1c   :  { %v146_v11 = vadd.f32 %v142_v4, %v132_v7 }
  0x1d   :  { %v147_v14 = vadd.f32 %v143_v10, %v133_v12 }
  0x1e   :  { %v155_v13 = vadd.f32 %v164_v8, %v146_v11 }
  0x1f   :  { %v156_v15 = vadd.f32 %v164_v8, %v147_v14 }
  0x20   :  { %158 = vst.msk [vmem:[%s215_s3] sm:$0xf] %vm157_vm0, %v155_v13 }
  0x21   :  { %159 = vst.msk [vmem:[%s215_s3 + $0x4] sm:$0xf] %vm157_vm0, %v156_v15 }

// kernel: run.94
= control target key start
LH: loop header
LB: loop body
LE: loop exit
PB: predicated region body
PF: predicated region fallthrough
CT: control target
= control target key end

     0   :  { %vm15_vm0 = vcmask 261120   ;;  %s102_s0 = inlined_call_operand.vmem [shape: f32[8,32], index: 0, kind: input, shape index: {}]   ;;  %s103_s1 = inlined_call_operand.vmem [shape: f32[1,32], index: 1, kind: input, shape index: {}]   ;;  %s104_s2 = inlined_call_operand.vmem [shape: f32[1,32], index: 2, kind: input, shape index: {}]   ;;  %s105_s3 = inlined_call_operand.vmem [shape: f32[8,32], index: 3, kind: output, shape index: {}]  }
   0x1   :  { %v14_v0 = vld [vmem:[%s102_s0] sm:$0xff] }
   0x2   :  { %v16_v1 = vsel %vm15_vm0, %v14_v0, 0.0  ;;  %v58_v11 = vld [vmem:[%s103_s1] ss:$0 sm:$0xff] }
   0x3   :  { %17 = vadd.xlane.f32.xlu0 %v16_v1  ;;  %v59_v13 = vld [vmem:[%s104_s2] ss:$0 sm:$0xff] }
  0x90   :  { %v18_v2 = vpop.xlane.xlu0 %17 }
  0x91   :  { %v20_v3 = vmul.f32 0.03125, %v18_v2 }
  0x93   :  { %v21_v4 = vsub.f32 %v14_v0, %v20_v3 }
  0x95   :  { %v22_v5 = vmul.f32 %v21_v4, %v21_v4 }
  0x97   :  { %v23_v6 = vsel %vm15_vm0, %v22_v5, 0.0 }
  0x98   :  { %24 = vadd.xlane.f32.xlu0 %v23_v6 }
 0x125   :  { %v25_v7 = vpop.xlane.xlu0 %24 }
 0x126   :  { %v26_v8 = vmul.f32 0.03125, %v25_v7 }
 0x128   :  { %v27_v9 = vadd.f32 1e-05, %v26_v8 }
 0x12a   :  { %61 = vrsqrt.f32 %v27_v9 }
 0x134   :  { %v62_v10 = vpop.eup %61 }
 0x135   :  { %v29_v12 = vmul.f32 %v62_v10, %v21_v4 }
 0x137   :  { %v37_v14 = vmul.f32 %v58_v11, %v29_v12 }
 0x139   :  { %v45_v15 = vadd.f32 %v59_v13, %v37_v14 }
 0x13b   :  { %v60_v16 = vmul.f32 -1.442695, %v45_v15 }
 0x13d   :  { %63 = vpow2.f32 %v60_v16 }
 0x147   :  { %v64_v17 = vpop.eup %63 }
 0x148   :  { %v49_v18 = vadd.f32 1.0, %v64_v17 }
 0x14a   :  { %65 = vrcp.f32 %v49_v18 }
 0x154   :  { %v66_v19 = vpop.eup %65 }
 0x155   :  { %v52_v20 = vmul.f32 %v66_v19, %v45_v15 }
 0x157   :  { %53 = vst.msk [vmem:[%s105_s3] sm:$0xff] %vm15_vm0, %v52_v20 }

// kernel: run.91
= control target key start
LH: loop header
LB: loop body
LE: loop exit
PB: predicated region body
PF: predicated region fallthrough
CT: control target
= control target key end

     0   :  { %v130_v0 = vmov 0   ;;  %vm19_vm0 = vcmask 254976   ;;  %vm105_vm1 = vcmask 1041409   ;;  %vm108_vm2 = vcmask 1042434   ;;  %s191_s1 = inlined_call_operand.vmem [shape: f32[1,4,1], index: 1, kind: input, shape index: {}]   ;;  %s192_s0 = inlined_call_operand.vmem [shape: f32[2,4,2,32], index: 0, kind: input, shape index: {}]   ;;  %s193_s2 = inlined_call_operand.vmem [shape: f32[2,4,32], index: 2, kind: output, shape index: {}]  }
   0x1   :  { %129 = vset.pattern.permute.xlu0 %v130_v0  ;;  %v76_v1 = vld [vmem:[%s191_s1] sm:$0xf]  ;;  %v13_v3 = vld [vmem:[%s192_s0 + $0x4] sm:$0x3]  ;;  %v14_v4 = vld [vmem:[%s192_s0 + $0x6] sm:$0x3] }
   0x2   :  { %79 = vperm.xlu0 %129, %v76_v1   ;;  %v12_v2 = vld [vmem:[%s192_s0 + $0x2] sm:$0x3]  ;;  %v16_v5 = vld [vmem:[%s192_s0 + $0xa] sm:$0x3]  ;;  %v11_v6 = vld [vmem:[%s192_s0] sm:$0x3] }
   0x3   :  { %v17_v7 = vld [vmem:[%s192_s0 + $0xc] sm:$0x3]  ;;  %v18_v8 = vld [vmem:[%s192_s0 + $0xe] sm:$0x3]  ;;  %v15_v9 = vld [vmem:[%s192_s0 + $0x8] sm:$0x3] }
   0x4   :  { %v27_v10 = vsel %vm19_vm0, %v12_v2, 0.0  ;;  %v34_v11 = vsel %vm19_vm0, %v13_v3, 0.0  ;;  %v41_v12 = vsel %vm19_vm0, %v14_v4, 0.0  ;;  %v55_v13 = vsel %vm19_vm0, %v16_v5, 0.0 }
   0x5   :  { %v20_v14 = vsel %vm19_vm0, %v11_v6, 0.0  ;;  %v62_v15 = vsel %vm19_vm0, %v17_v7, 0.0  ;;  %v69_v16 = vsel %vm19_vm0, %v18_v8, 0.0  ;;  %v48_v17 = vsel %vm19_vm0, %v15_v9, 0.0 }
   0x6   :  { %v28_v18 = vrot.slane %v27_v10, 4  ;;  %v35_v19 = vrot.slane %v34_v11, 4  ;;  %v42_v20 = vrot.slane %v41_v12, 4  ;;  %v56_v21 = vrot.slane %v55_v13, 4 }
   0x7   :  { %v21_v22 = vrot.slane %v20_v14, 4  ;;  %v63_v23 = vrot.slane %v62_v15, 4  ;;  %v70_v24 = vrot.slane %v69_v16, 4  ;;  %v49_v25 = vrot.slane %v48_v17, 4 }
   0x8   :  { %v29_v26 = vadd.f32 %v28_v18, %v27_v10  ;;  %v36_v27 = vadd.f32 %v35_v19, %v34_v11  ;;  %v43_v28 = vadd.f32 %v42_v20, %v41_v12  ;;  %v57_v29 = vadd.f32 %v56_v21, %v55_v13 }
   0x9   :  { %v22_v30 = vadd.f32 %v21_v22, %v20_v14  ;;  %v64_v31 = vadd.f32 %v63_v23, %v62_v15  ;;  %v71_v32 = vadd.f32 %v70_v24, %v69_v16  ;;  %v50_v33 = vadd.f32 %v49_v25, %v48_v17 }
   0xa   :  { %v30_v34 = vrot.slane %v29_v26, 2  ;;  %v37_v35 = vrot.slane %v36_v27, 2  ;;  %v44_v36 = vrot.slane %v43_v28, 2  ;;  %v58_v37 = vrot.slane %v57_v29, 2 }
   0xb   :  { %v23_v38 = vrot.slane %v22_v30, 2  ;;  %v65_v39 = vrot.slane %v64_v31, 2  ;;  %v72_v40 = vrot.slane %v71_v32, 2  ;;  %v51_v41 = vrot.slane %v50_v33, 2 }
   0xc   :  { %v31_v42 = vadd.f32 %v30_v34, %v29_v26  ;;  %v38_v43 = vadd.f32 %v37_v35, %v36_v27  ;;  %v45_v44 = vadd.f32 %v44_v36, %v43_v28  ;;  %v59_v45 = vadd.f32 %v58_v37, %v57_v29 }
   0xd   :  { %v24_v46 = vadd.f32 %v23_v38, %v22_v30  ;;  %v66_v47 = vadd.f32 %v65_v39, %v64_v31  ;;  %v73_v48 = vadd.f32 %v72_v40, %v71_v32  ;;  %v52_v49 = vadd.f32 %v51_v41, %v50_v33 }
   0xe   :  { %v32_v50 = vrot.slane %v31_v42, 1  ;;  %v39_v51 = vrot.slane %v38_v43, 1  ;;  %v46_v52 = vrot.slane %v45_v44, 1  ;;  %v60_v53 = vrot.slane %v59_v45, 1 }
   0xf   :  { %v25_v54 = vrot.slane %v24_v46, 1  ;;  %v67_v55 = vrot.slane %v66_v47, 1  ;;  %v74_v56 = vrot.slane %v73_v48, 1  ;;  %v53_v57 = vrot.slane %v52_v49, 1 }
  0x10   :  { %v33_v58 = vadd.f32 %v32_v50, %v31_v42  ;;  %v40_v59 = vadd.f32 %v39_v51, %v38_v43  ;;  %v47_v60 = vadd.f32 %v46_v52, %v45_v44  ;;  %v61_v61 = vadd.f32 %v60_v53, %v59_v45 }
  0x11   :  { %v26_v63 = vadd.f32 %v25_v54, %v24_v46  ;;  %v68_v0 = vadd.f32 %v67_v55, %v66_v47  ;;  %v75_v1 = vadd.f32 %v74_v56, %v73_v48  ;;  %v54_v2 = vadd.f32 %v53_v57, %v52_v49 }
  0x12   :  { %vm111_vm3 = vcmask 1043459   ;;  %vm121_vm4 = vcmask 257024  }
  0x81   :  { %v80_v62 = vpop.permute.xlu0 %79 }
  0x82   :  { %v81_v3 = vrot.slane %v80_v62, 1  ;;  %v82_v4 = vrot.slane %v80_v62, 2  ;;  %v83_v5 = vrot.slane %v80_v62, 3  ;;  %v88_v10 = vmul.f32 %v80_v62, %v26_v63 }
  0x83   :  { %v92_v13 = vmul.f32 %v80_v62, %v54_v2 }
  0x84   :  { %v89_v6 = vmul.f32 %v81_v3, %v33_v58  ;;  %v90_v7 = vmul.f32 %v82_v4, %v40_v59  ;;  %v91_v8 = vmul.f32 %v83_v5, %v47_v60  ;;  %v93_v9 = vmul.f32 %v81_v3, %v61_v61 }
  0x85   :  { %v94_v11 = vmul.f32 %v82_v4, %v68_v0  ;;  %v95_v12 = vmul.f32 %v83_v5, %v75_v1 }
  0x86   :  { %v104_v14 = vrot.slane %v89_v6, 7  ;;  %v107_v15 = vrot.slane %v90_v7, 6  ;;  %v113_v16 = vrot.slane %v93_v9, 7  ;;  %v110_v19 = vrot.slane %v91_v8, 5 }
  0x87   :  { %v115_v17 = vrot.slane %v94_v11, 6  ;;  %v117_v21 = vrot.slane %v95_v12, 5 }
  0x88   :  { %v106_v18 = vsel %vm105_vm1, %v104_v14, %v88_v10  ;;  %v114_v20 = vsel %vm105_vm1, %v113_v16, %v92_v13 }
  0x89   :  { %v109_v22 = vsel %vm108_vm2, %v107_v15, %v106_v18  ;;  %v116_v23 = vsel %vm108_vm2, %v115_v17, %v114_v20 }
  0x8a   :  { %v112_v24 = vsel %vm111_vm3, %v110_v19, %v109_v22  ;;  %v118_v25 = vsel %vm111_vm3, %v117_v21, %v116_v23 }
  0x8b   :  { %122 = vst.msk [vmem:[%s193_s2] sm:$0xf] %vm121_vm4, %v112_v24  ;;  %123 = vst.msk [vmem:[%s193_s2 + $0x4] sm:$0xf] %vm121_vm4, %v118_v25 }

// kernel: run.95
= control target key start
LH: loop header
LB: loop body
LE: loop exit
PB: predicated region body
PF: predicated region fallthrough
CT: control target
= control target key end

     0   :  { %v143_v0 = vmov 0.0   ;;  %vm144_vm0 = vmmov 0   ;;  %s230_s1 = inlined_call_operand.vmem [shape: f32[128,128], index: 1, kind: input, shape index: {}]   ;;  %s231_s0 = inlined_call_operand.vmem [shape: f32[8,128], index: 0, kind: input, shape index: {}]   ;;  %s232_s2 = inlined_call_operand.vmem [shape: f32[1,128], index: 2, kind: input, shape index: {}]   ;;  %s233_s3 = inlined_call_operand.vmem [shape: f32[8,128], index: 3, kind: input, shape index: {}]   ;;  %s234_s4 = inlined_call_operand.vmem [shape: f32[8,128], index: 4, kind: output, shape index: {}]  }
   0x1   :  { %121 = vmatprep.subr.bf16.mxu0 %v143_v0  ;;  %v26_v1 = vld [vmem:[%s230_s1] sm:$0xff]  ;;  %v27_v2 = vld [vmem:[%s230_s1 + $0x8] sm:$0xff]  ;;  %v28_v3 = vld [vmem:[%s230_s1 + $0x10] sm:$0xff]  ;;  %137 = vmatprep.mubr.msk.bf16.mxu0 %vm144_vm0, %v143_v0 }
   0x2   :  { %v42_v4 = vpack.c.bf16 %v27_v2, %v26_v1  ;;  %v29_v5 = vld [vmem:[%s230_s1 + $0x18] sm:$0xff]  ;;  %v30_v7 = vld [vmem:[%s230_s1 + $0x20] sm:$0xff]  ;;  %v31_v8 = vld [vmem:[%s230_s1 + $0x28] sm:$0xff] }
   0x3   :  { %v43_v6 = vpack.c.bf16 %v29_v5, %v28_v3  ;;  %v44_v9 = vpack.c.bf16 %v31_v8, %v30_v7  ;;  %v32_v10 = vld [vmem:[%s230_s1 + $0x30] sm:$0xff]  ;;  %v33_v11 = vld [vmem:[%s230_s1 + $0x38] sm:$0xff]  ;;  %v34_v13 = vld [vmem:[%s230_s1 + $0x40] sm:$0xff] }
   0x4   :  { %122 = vmatpush3.bf16.msra.mxu0 %v42_v4  ;;  %v45_v12 = vpack.c.bf16 %v33_v11, %v32_v10  ;;  %v35_v14 = vld [vmem:[%s230_s1 + $0x48] sm:$0xff]  ;;  %v36_v16 = vld [vmem:[%s230_s1 + $0x50] sm:$0xff]  ;;  %v37_v17 = vld [vmem:[%s230_s1 + $0x58] sm:$0xff] }
   0x5   :  { %123 = vmatprep.subr.bf16.mxu0 %v143_v0  ;;  %v46_v15 = vpack.c.bf16 %v35_v14, %v34_v13  ;;  %v47_v18 = vpack.c.bf16 %v37_v17, %v36_v16  ;;  %v38_v19 = vld [vmem:[%s230_s1 + $0x60] sm:$0xff]  ;;  %v39_v20 = vld [vmem:[%s230_s1 + $0x68] sm:$0xff]  ;;  %v40_v22 = vld [vmem:[%s230_s1 + $0x70] sm:$0xff] }
   0x6   :  { %v48_v21 = vpack.c.bf16 %v39_v20, %v38_v19  ;;  %v41_v23 = vld [vmem:[%s230_s1 + $0x78] sm:$0xff]  ;;  %v24_v25 = vld [vmem:[%s231_s0] sm:$0xff] }
   0x7   :  { %v49_v24 = vpack.c.bf16 %v41_v23, %v40_v22  ;;  %v25_v26 = vpack.c.bf16 %v24_v25, %v24_v25  ;;  %v111_v27 = vld [vmem:[%s232_s2] ss:$0 sm:$0xff] }
   0x8   :  { %124 = vmatpush3.bf16.msra.mxu0 %v43_v6  ;;  %v104_v29 = vld [vmem:[%s233_s3] sm:$0xff] }
   0x9   :  { %125 = vmatprep.subr.bf16.mxu0 %v143_v0 }
   0xc   :  { %126 = vmatpush3.bf16.msra.mxu0 %v44_v9 }
   0xd   :  { %127 = vmatprep.subr.bf16.mxu0 %v143_v0 }
  0x10   :  { %128 = vmatpush3.bf16.msra.mxu0 %v45_v12 }
  0x11   :  { %129 = vmatprep.subr.bf16.mxu0 %v143_v0 }
  0x14   :  { %130 = vmatpush3.bf16.msra.mxu0 %v46_v15 }
  0x15   :  { %131 = vmatprep.subr.bf16.mxu0 %v143_v0 }
  0x18   :  { %132 = vmatpush3.bf16.msra.mxu0 %v47_v18 }
  0x19   :  { %133 = vmatprep.subr.bf16.mxu0 %v143_v0 }
  0x1c   :  { %134 = vmatpush3.bf16.msra.mxu0 %v48_v21 }
  0x1d   :  { %135 = vmatprep.subr.bf16.mxu0 %v143_v0 }
  0x20   :  { %136 = vmatpush3.bf16.msra.mxu0 %v49_v24 }
  0x23   :  { %138 = vmatmul.mubr.bf16.vlgmr.msra.gmra.mrb[0].mxu0 %v25_v26 }
  0xf6   :  { %v84_v28 = vpop.f32.mrb[0].mxu0 }
  0xf7   :  { %v103_v30 = vadd.f32 %v111_v27, %v84_v28  ;;  %v139_v31 = vpop.f32.mrb[1].mxu0 }
  0xf8   :  { %v87_v32 = vpop.f32.mrb[2].mxu0 }
  0xf9   :  { %v105_v33 = vadd.f32 %v104_v29, %v103_v30  ;;  %v140_v34 = vpop.f32.mrb[3].mxu0 }
  0xfb   :  { %106 = vst [vmem:[%s234_s4] sm:$0xff] %v105_v33 }

// kernel: run.96
= control target key start
LH: loop header
LB: loop body
LE: loop exit
PB: predicated region body
PF: predicated region fallthrough
CT: control target
= control target key end

     0   :  { %v139_v0 = vmov 0.0   ;;  %vm140_vm0 = vmmov 0   ;;  %s218_s1 = inlined_call_operand.vmem [shape: f32[128,128], index: 1, kind: input, shape index: {}]   ;;  %s219_s0 = inlined_call_operand.vmem [shape: f32[8,128], index: 0, kind: input, shape index: {}]   ;;  %s220_s2 = inlined_call_operand.vmem [shape: f32[1,128], index: 2, kind: input, shape index: {}]   ;;  %s221_s3 = inlined_call_operand.vmem [shape: f32[8,128], index: 3, kind: output, shape index: {}]  }
   0x1   :  { %117 = vmatprep.subr.bf16.mxu0 %v139_v0  ;;  %v23_v1 = vld [vmem:[%s218_s1] sm:$0xff]  ;;  %v24_v2 = vld [vmem:[%s218_s1 + $0x8] sm:$0xff]  ;;  %v25_v3 = vld [vmem:[%s218_s1 + $0x10] sm:$0xff]  ;;  %133 = vmatprep.mubr.msk.bf16.mxu0 %vm140_vm0, %v139_v0 }
   0x2   :  { %v39_v4 = vpack.c.bf16 %v24_v2, %v23_v1  ;;  %v26_v5 = vld [vmem:[%s218_s1 + $0x18] sm:$0xff]  ;;  %v27_v7 = vld [vmem:[%s218_s1 + $0x20] sm:$0xff]  ;;  %v28_v8 = vld [vmem:[%s218_s1 + $0x28] sm:$0xff] }
   0x3   :  { %v40_v6 = vpack.c.bf16 %v26_v5, %v25_v3  ;;  %v41_v9 = vpack.c.bf16 %v28_v8, %v27_v7  ;;  %v29_v10 = vld [vmem:[%s218_s1 + $0x30] sm:$0xff]  ;;  %v30_v11 = vld [vmem:[%s218_s1 + $0x38] sm:$0xff]  ;;  %v31_v13 = vld [vmem:[%s218_s1 + $0x40] sm:$0xff] }
   0x4   :  { %118 = vmatpush3.bf16.msra.mxu0 %v39_v4  ;;  %v42_v12 = vpack.c.bf16 %v30_v11, %v29_v10  ;;  %v32_v14 = vld [vmem:[%s218_s1 + $0x48] sm:$0xff]  ;;  %v33_v16 = vld [vmem:[%s218_s1 + $0x50] sm:$0xff]  ;;  %v34_v17 = vld [vmem:[%s218_s1 + $0x58] sm:$0xff] }
   0x5   :  { %119 = vmatprep.subr.bf16.mxu0 %v139_v0  ;;  %v43_v15 = vpack.c.bf16 %v32_v14, %v31_v13  ;;  %v44_v18 = vpack.c.bf16 %v34_v17, %v33_v16  ;;  %v35_v19 = vld [vmem:[%s218_s1 + $0x60] sm:$0xff]  ;;  %v36_v20 = vld [vmem:[%s218_s1 + $0x68] sm:$0xff]  ;;  %v37_v22 = vld [vmem:[%s218_s1 + $0x70] sm:$0xff] }
   0x6   :  { %v45_v21 = vpack.c.bf16 %v36_v20, %v35_v19  ;;  %v38_v23 = vld [vmem:[%s218_s1 + $0x78] sm:$0xff]  ;;  %v21_v25 = vld [vmem:[%s219_s0] sm:$0xff] }
   0x7   :  { %v46_v24 = vpack.c.bf16 %v38_v23, %v37_v22  ;;  %v22_v26 = vpack.c.bf16 %v21_v25, %v21_v25  ;;  %v107_v27 = vld [vmem:[%s220_s2] ss:$0 sm:$0xff] }
   0x8   :  { %120 = vmatpush3.bf16.msra.mxu0 %v40_v6 }
   0x9   :  { %121 = vmatprep.subr.bf16.mxu0 %v139_v0 }
   0xc   :  { %122 = vmatpush3.bf16.msra.mxu0 %v41_v9 }
   0xd   :  { %123 = vmatprep.subr.bf16.mxu0 %v139_v0 }
  0x10   :  { %124 = vmatpush3.bf16.msra.mxu0 %v42_v12 }
  0x11   :  { %125 = vmatprep.subr.bf16.mxu0 %v139_v0 }
  0x14   :  { %126 = vmatpush3.bf16.msra.mxu0 %v43_v15 }
  0x15   :  { %127 = vmatprep.subr.bf16.mxu0 %v139_v0 }
  0x18   :  { %128 = vmatpush3.bf16.msra.mxu0 %v44_v18 }
  0x19   :  { %129 = vmatprep.subr.bf16.mxu0 %v139_v0 }
  0x1c   :  { %130 = vmatpush3.bf16.msra.mxu0 %v45_v21 }
  0x1d   :  { %131 = vmatprep.subr.bf16.mxu0 %v139_v0 }
  0x20   :  { %132 = vmatpush3.bf16.msra.mxu0 %v46_v24 }
  0x23   :  { %134 = vmatmul.mubr.bf16.vlgmr.msra.gmra.mrb[0].mxu0 %v22_v26 }
  0xf6   :  { %v81_v28 = vpop.f32.mrb[0].mxu0 }
  0xf7   :  { %v100_v29 = vadd.f32 %v107_v27, %v81_v28  ;;  %v135_v30 = vpop.f32.mrb[1].mxu0 }
  0xf8   :  { %v84_v31 = vpop.f32.mrb[2].mxu0 }
  0xf9   :  { %v101_v32 = vmax.f32 %v100_v29, 0.0  ;;  %v136_v33 = vpop.f32.mrb[3].mxu0 }
  0xfb   :  { %102 = vst [vmem:[%s221_s3] sm:$0xff] %v101_v32 }

// kernel: run.98
= control target key start
LH: loop header
LB: loop body
LE: loop exit
PB: predicated region body
PF: predicated region fallthrough
CT: control target
= control target key end

     0   :  { %vm15_vm0 = vcmask 261120   ;;  %s90_s0 = inlined_call_operand.vmem [shape: f32[8,32], index: 0, kind: input, shape index: {}]   ;;  %s91_s1 = inlined_call_operand.vmem [shape: f32[1,32], index: 1, kind: input, shape index: {}]   ;;  %s92_s2 = inlined_call_operand.vmem [shape: f32[1,32], index: 2, kind: input, shape index: {}]   ;;  %s93_s3 = inlined_call_operand.vmem [shape: f32[8,32], index: 3, kind: output, shape index: {}]  }
   0x1   :  { %v14_v0 = vld [vmem:[%s90_s0] sm:$0xff] }
   0x2   :  { %v16_v1 = vsel %vm15_vm0, %v14_v0, 0.0  ;;  %v51_v11 = vld [vmem:[%s91_s1] ss:$0 sm:$0xff] }
   0x3   :  { %17 = vadd.xlane.f32.xlu0 %v16_v1  ;;  %v52_v13 = vld [vmem:[%s92_s2] ss:$0 sm:$0xff] }
  0x90   :  { %v18_v2 = vpop.xlane.xlu0 %17 }
  0x91   :  { %v20_v3 = vmul.f32 0.03125, %v18_v2 }
  0x93   :  { %v21_v4 = vsub.f32 %v14_v0, %v20_v3 }
  0x95   :  { %v22_v5 = vmul.f32 %v21_v4, %v21_v4 }
  0x97   :  { %v23_v6 = vsel %vm15_vm0, %v22_v5, 0.0 }
  0x98   :  { %24 = vadd.xlane.f32.xlu0 %v23_v6 }
 0x125   :  { %v25_v7 = vpop.xlane.xlu0 %24 }
 0x126   :  { %v26_v8 = vmul.f32 0.03125, %v25_v7 }
 0x128   :  { %v27_v9 = vadd.f32 1e-05, %v26_v8 }
 0x12a   :  { %53 = vrsqrt.f32 %v27_v9 }
 0x134   :  { %v54_v10 = vpop.eup %53 }
 0x135   :  { %v29_v12 = vmul.f32 %v54_v10, %v21_v4 }
 0x137   :  { %v37_v14 = vmul.f32 %v51_v11, %v29_v12 }
 0x139   :  { %v45_v15 = vadd.f32 %v52_v13, %v37_v14 }
 0x13b   :  { %46 = vst.msk [vmem:[%s93_s3] sm:$0xff] %vm15_vm0, %v45_v15 }

// kernel: run.97
= control target key start
LH: loop header
LB: loop body
LE: loop exit
PB: predicated region body
PF: predicated region fallthrough
CT: control target
= control target key end

     0   :  { %v144_v0 = vmov 0.0   ;;  %vm145_vm0 = vmmov 0   ;;  %s231_s1 = inlined_call_operand.vmem [shape: f32[128,128], index: 1, kind: input, shape index: {}]   ;;  %s232_s0 = inlined_call_operand.vmem [shape: f32[8,128], index: 0, kind: input, shape index: {}]   ;;  %s233_s2 = inlined_call_operand.vmem [shape: f32[1,128], index: 2, kind: input, shape index: {}]   ;;  %s234_s3 = inlined_call_operand.vmem [shape: f32[8,128], index: 3, kind: input, shape index: {}]   ;;  %s235_s4 = inlined_call_operand.vmem [shape: f32[8,128], index: 4, kind: output, shape index: {}]  }
   0x1   :  { %122 = vmatprep.subr.bf16.mxu0 %v144_v0  ;;  %v26_v1 = vld [vmem:[%s231_s1] sm:$0xff]  ;;  %v27_v2 = vld [vmem:[%s231_s1 + $0x8] sm:$0xff]  ;;  %v28_v3 = vld [vmem:[%s231_s1 + $0x10] sm:$0xff]  ;;  %138 = vmatprep.mubr.msk.bf16.mxu0 %vm145_vm0, %v144_v0 }
   0x2   :  { %v42_v4 = vpack.c.bf16 %v27_v2, %v26_v1  ;;  %v29_v5 = vld [vmem:[%s231_s1 + $0x18] sm:$0xff]  ;;  %v30_v7 = vld [vmem:[%s231_s1 + $0x20] sm:$0xff]  ;;  %v31_v8 = vld [vmem:[%s231_s1 + $0x28] sm:$0xff] }
   0x3   :  { %v43_v6 = vpack.c.bf16 %v29_v5, %v28_v3  ;;  %v44_v9 = vpack.c.bf16 %v31_v8, %v30_v7  ;;  %v32_v10 = vld [vmem:[%s231_s1 + $0x30] sm:$0xff]  ;;  %v33_v11 = vld [vmem:[%s231_s1 + $0x38] sm:$0xff]  ;;  %v34_v13 = vld [vmem:[%s231_s1 + $0x40] sm:$0xff] }
   0x4   :  { %123 = vmatpush3.bf16.msra.mxu0 %v42_v4  ;;  %v45_v12 = vpack.c.bf16 %v33_v11, %v32_v10  ;;  %v35_v14 = vld [vmem:[%s231_s1 + $0x48] sm:$0xff]  ;;  %v36_v16 = vld [vmem:[%s231_s1 + $0x50] sm:$0xff]  ;;  %v37_v17 = vld [vmem:[%s231_s1 + $0x58] sm:$0xff] }
   0x5   :  { %124 = vmatprep.subr.bf16.mxu0 %v144_v0  ;;  %v46_v15 = vpack.c.bf16 %v35_v14, %v34_v13  ;;  %v47_v18 = vpack.c.bf16 %v37_v17, %v36_v16  ;;  %v38_v19 = vld [vmem:[%s231_s1 + $0x60] sm:$0xff]  ;;  %v39_v20 = vld [vmem:[%s231_s1 + $0x68] sm:$0xff]  ;;  %v40_v22 = vld [vmem:[%s231_s1 + $0x70] sm:$0xff] }
   0x6   :  { %v48_v21 = vpack.c.bf16 %v39_v20, %v38_v19  ;;  %v41_v23 = vld [vmem:[%s231_s1 + $0x78] sm:$0xff]  ;;  %v24_v25 = vld [vmem:[%s232_s0] sm:$0xff] }
   0x7   :  { %v49_v24 = vpack.c.bf16 %v41_v23, %v40_v22  ;;  %v25_v26 = vpack.c.bf16 %v24_v25, %v24_v25  ;;  %v112_v27 = vld [vmem:[%s233_s2] ss:$0 sm:$0xff] }
   0x8   :  { %125 = vmatpush3.bf16.msra.mxu0 %v43_v6  ;;  %v105_v31 = vld [vmem:[%s234_s3] sm:$0xff] }
   0x9   :  { %126 = vmatprep.subr.bf16.mxu0 %v144_v0 }
   0xc   :  { %127 = vmatpush3.bf16.msra.mxu0 %v44_v9 }
   0xd   :  { %128 = vmatprep.subr.bf16.mxu0 %v144_v0 }
  0x10   :  { %129 = vmatpush3.bf16.msra.mxu0 %v45_v12 }
  0x11   :  { %130 = vmatprep.subr.bf16.mxu0 %v144_v0 }
  0x14   :  { %131 = vmatpush3.bf16.msra.mxu0 %v46_v15 }
  0x15   :  { %132 = vmatprep.subr.bf16.mxu0 %v144_v0 }
  0x18   :  { %133 = vmatpush3.bf16.msra.mxu0 %v47_v18 }
  0x19   :  { %134 = vmatprep.subr.bf16.mxu0 %v144_v0 }
  0x1c   :  { %135 = vmatpush3.bf16.msra.mxu0 %v48_v21 }
  0x1d   :  { %136 = vmatprep.subr.bf16.mxu0 %v144_v0 }
  0x20   :  { %137 = vmatpush3.bf16.msra.mxu0 %v49_v24 }
  0x23   :  { %139 = vmatmul.mubr.bf16.vlgmr.msra.gmra.mrb[0].mxu0 %v25_v26 }
  0xf6   :  { %v84_v28 = vpop.f32.mrb[0].mxu0 }
  0xf7   :  { %v103_v29 = vadd.f32 %v112_v27, %v84_v28  ;;  %v140_v30 = vpop.f32.mrb[1].mxu0 }
  0xf8   :  { %v87_v32 = vpop.f32.mrb[2].mxu0 }
  0xf9   :  { %v104_v33 = vmul.f32 0.5, %v103_v29  ;;  %v141_v34 = vpop.f32.mrb[3].mxu0 }
  0xfb   :  { %v106_v35 = vadd.f32 %v105_v31, %v104_v33 }
  0xfd   :  { %107 = vst [vmem:[%s235_s4] sm:$0xff] %v106_v35 }

// kernel: run.99
= control target key start
LH: loop header
LB: loop body
LE: loop exit
PB: predicated region body
PF: predicated region fallthrough
CT: control target
= control target key end

     0   :  { %v138_v0 = vmov 0.0   ;;  %vm139_vm0 = vmmov 0   ;;  %s217_s1 = inlined_call_operand.vmem [shape: f32[128,128], index: 1, kind: input, shape index: {}]   ;;  %s218_s0 = inlined_call_operand.vmem [shape: f32[8,128], index: 0, kind: input, shape index: {}]   ;;  %s219_s2 = inlined_call_operand.vmem [shape: f32[1,128], index: 2, kind: input, shape index: {}]   ;;  %s220_s3 = inlined_call_operand.vmem [shape: f32[8,128], index: 3, kind: output, shape index: {}]  }
   0x1   :  { %116 = vmatprep.subr.bf16.mxu0 %v138_v0  ;;  %v23_v1 = vld [vmem:[%s217_s1] sm:$0xff]  ;;  %v24_v2 = vld [vmem:[%s217_s1 + $0x8] sm:$0xff]  ;;  %v25_v3 = vld [vmem:[%s217_s1 + $0x10] sm:$0xff]  ;;  %132 = vmatprep.mubr.msk.bf16.mxu0 %vm139_vm0, %v138_v0 }
   0x2   :  { %v39_v4 = vpack.c.bf16 %v24_v2, %v23_v1  ;;  %v26_v5 = vld [vmem:[%s217_s1 + $0x18] sm:$0xff]  ;;  %v27_v7 = vld [vmem:[%s217_s1 + $0x20] sm:$0xff]  ;;  %v28_v8 = vld [vmem:[%s217_s1 + $0x28] sm:$0xff] }
   0x3   :  { %v40_v6 = vpack.c.bf16 %v26_v5, %v25_v3  ;;  %v41_v9 = vpack.c.bf16 %v28_v8, %v27_v7  ;;  %v29_v10 = vld [vmem:[%s217_s1 + $0x30] sm:$0xff]  ;;  %v30_v11 = vld [vmem:[%s217_s1 + $0x38] sm:$0xff]  ;;  %v31_v13 = vld [vmem:[%s217_s1 + $0x40] sm:$0xff] }
   0x4   :  { %117 = vmatpush3.bf16.msra.mxu0 %v39_v4  ;;  %v42_v12 = vpack.c.bf16 %v30_v11, %v29_v10  ;;  %v32_v14 = vld [vmem:[%s217_s1 + $0x48] sm:$0xff]  ;;  %v33_v16 = vld [vmem:[%s217_s1 + $0x50] sm:$0xff]  ;;  %v34_v17 = vld [vmem:[%s217_s1 + $0x58] sm:$0xff] }
   0x5   :  { %118 = vmatprep.subr.bf16.mxu0 %v138_v0  ;;  %v43_v15 = vpack.c.bf16 %v32_v14, %v31_v13  ;;  %v44_v18 = vpack.c.bf16 %v34_v17, %v33_v16  ;;  %v35_v19 = vld [vmem:[%s217_s1 + $0x60] sm:$0xff]  ;;  %v36_v20 = vld [vmem:[%s217_s1 + $0x68] sm:$0xff]  ;;  %v37_v22 = vld [vmem:[%s217_s1 + $0x70] sm:$0xff] }
   0x6   :  { %v45_v21 = vpack.c.bf16 %v36_v20, %v35_v19  ;;  %v38_v23 = vld [vmem:[%s217_s1 + $0x78] sm:$0xff]  ;;  %v21_v25 = vld [vmem:[%s218_s0] sm:$0xff] }
   0x7   :  { %v46_v24 = vpack.c.bf16 %v38_v23, %v37_v22  ;;  %v22_v26 = vpack.c.bf16 %v21_v25, %v21_v25  ;;  %v106_v27 = vld [vmem:[%s219_s2] ss:$0 sm:$0xff] }
   0x8   :  { %119 = vmatpush3.bf16.msra.mxu0 %v40_v6 }
   0x9   :  { %120 = vmatprep.subr.bf16.mxu0 %v138_v0 }
   0xc   :  { %121 = vmatpush3.bf16.msra.mxu0 %v41_v9 }
   0xd   :  { %122 = vmatprep.subr.bf16.mxu0 %v138_v0 }
  0x10   :  { %123 = vmatpush3.bf16.msra.mxu0 %v42_v12 }
  0x11   :  { %124 = vmatprep.subr.bf16.mxu0 %v138_v0 }
  0x14   :  { %125 = vmatpush3.bf16.msra.mxu0 %v43_v15 }
  0x15   :  { %126 = vmatprep.subr.bf16.mxu0 %v138_v0 }
  0x18   :  { %127 = vmatpush3.bf16.msra.mxu0 %v44_v18 }
  0x19   :  { %128 = vmatprep.subr.bf16.mxu0 %v138_v0 }
  0x1c   :  { %129 = vmatpush3.bf16.msra.mxu0 %v45_v21 }
  0x1d   :  { %130 = vmatprep.subr.bf16.mxu0 %v138_v0 }
  0x20   :  { %131 = vmatpush3.bf16.msra.mxu0 %v46_v24 }
  0x23   :  { %133 = vmatmul.mubr.bf16.vlgmr.msra.gmra.mrb[0].mxu0 %v22_v26 }
  0xf6   :  { %v81_v28 = vpop.f32.mrb[0].mxu0 }
  0xf7   :  { %v100_v29 = vadd.f32 %v106_v27, %v81_v28  ;;  %v134_v30 = vpop.f32.mrb[1].mxu0 }
  0xf8   :  { %v84_v31 = vpop.f32.mrb[2].mxu0 }
  0xf9   :  { %101 = vst [vmem:[%s220_s3] sm:$0xff] %v100_v29  ;;  %v135_v32 = vpop.f32.mrb[3].mxu0 }

// kernel: run.103
= control target key start
LH: loop header
LB: loop body
LE: loop exit
PB: predicated region body
PF: predicated region fallthrough
CT: control target
= control target key end

     0   :  { %v20_v0 = vlaneseq  ;;  %vm96_vm0 = vcmask 1042432   ;;  %vm119_vm1 = vcmask 1041408   ;;  %vm142_vm2 = vcmask 1040384   ;;  %s238_s1 = inlined_call_operand.vmem [shape: f32[1,9,32], index: 1, kind: input, shape index: {}]   ;;  %s239_s0 = inlined_call_operand.vmem [shape: f32[2,1,12,32], index: 0, kind: input, shape index: {}]   ;;  %s240_s2 = inlined_call_operand.vmem [shape: f32[1,32], index: 2, kind: input, shape index: {}]   ;;  %s241_s3 = inlined_call_operand.vmem [shape: f32[2,4,32], index: 3, kind: output, shape index: {}]  }
   0x1   :  { %v18_v2 = vld [vmem:[%s238_s1] sm:$0xff]  ;;  %v208_v12 = vld [vmem:[%s239_s0 + $0x8] sm:$0xf]  ;;  %v16_v28 = vld [vmem:[%s239_s0 + $0x10] sm:$0xff]  ;;  %vm170_vm3 = vcmask 257024  }
   0x2   :  { %v21_v1 = vshrl.u32 %v20_v0, 7  ;;  %v14_v7 = vld [vmem:[%s239_s0] sm:$0xff]  ;;  %v17_v41 = vld [vmem:[%s239_s0 + $0x18] sm:$0xf]  ;;  %v177_v61 = vld [vmem:[%s238_s1 + $0x8] ss:$0 sm:$0xff] }
   0x4   :  { %v22_v3 = vsub.s32 0, %v21_v1  ;;  %v30_v4 = vsub.s32 1, %v21_v1  ;;  %v44_v5 = vsub.s32 2, %v21_v1  ;;  %v58_v6 = vsub.s32 3, %v21_v1 }
   0x5   :  { %v72_v8 = vsub.s32 4, %v21_v1  ;;  %v86_v9 = vsub.s32 5, %v21_v1  ;;  %v109_v10 = vsub.s32 6, %v21_v1  ;;  %v132_v11 = vsub.s32 7, %v21_v1 }
   0x6   :  { %v23_v13 = vrot.slane %v18_v2, %v22_v3  ;;  %v31_v14 = vrot.slane %v18_v2, %v30_v4  ;;  %v45_v15 = vrot.slane %v18_v2, %v44_v5  ;;  %v59_v16 = vrot.slane %v18_v2, %v58_v6 }
   0x7   :  { %v73_v17 = vrot.slane %v18_v2, %v72_v8  ;;  %v87_v18 = vrot.slane %v18_v2, %v86_v9  ;;  %v110_v19 = vrot.slane %v18_v2, %v109_v10  ;;  %v133_v20 = vrot.slane %v18_v2, %v132_v11 }
   0x8   :  { %v24_v21 = vmul.f32 %v23_v13, %v14_v7  ;;  %v32_v22 = vmul.f32 %v31_v14, %v14_v7  ;;  %v46_v23 = vmul.f32 %v45_v15, %v14_v7  ;;  %v60_v24 = vmul.f32 %v59_v16, %v14_v7 }
   0x9   :  { %v88_v25 = vmul.f32 %v87_v18, %v14_v7  ;;  %v89_v26 = vmul.f32 %v87_v18, %v208_v12  ;;  %v111_v27 = vmul.f32 %v110_v19, %v14_v7  ;;  %v74_v31 = vmul.f32 %v73_v17, %v14_v7 }
   0xa   :  { %v36_v29 = vrot.slane %v32_v22, 1  ;;  %v50_v30 = vrot.slane %v46_v23, 2  ;;  %v112_v32 = vmul.f32 %v110_v19, %v208_v12  ;;  %v64_v37 = vrot.slane %v60_v24, 3 }
   0xb   :  { %v97_v33 = vrot.slane %v88_v25, 5  ;;  %v98_v34 = vrot.slane %v89_v26, 5  ;;  %v120_v35 = vrot.slane %v111_v27, 6  ;;  %v134_v39 = vmul.f32 %v133_v20, %v14_v7 }
   0xc   :  { %v40_v36 = vadd.f32 %v36_v29, %v24_v21  ;;  %v121_v38 = vrot.slane %v112_v32, 6  ;;  %v135_v40 = vmul.f32 %v133_v20, %v208_v12  ;;  %v25_v42 = vmul.f32 %v23_v13, %v16_v28 }
   0xd   :  { %v33_v43 = vmul.f32 %v31_v14, %v16_v28  ;;  %v47_v44 = vmul.f32 %v45_v15, %v16_v28  ;;  %v78_v46 = vrot.slane %v74_v31, 4  ;;  %v99_v47 = vsel %vm96_vm0, %v97_v33, %v98_v34 }
   0xe   :  { %v54_v45 = vadd.f32 %v50_v30, %v40_v36  ;;  %v122_v48 = vsel %vm119_vm1, %v120_v35, %v121_v38  ;;  %v61_v51 = vmul.f32 %v59_v16, %v16_v28  ;;  %v75_v52 = vmul.f32 %v73_v17, %v16_v28 }
   0xf   :  { %v37_v49 = vrot.slane %v33_v43, 1  ;;  %v51_v50 = vrot.slane %v47_v44, 2  ;;  %v143_v54 = vrot.slane %v134_v39, 7  ;;  %v90_v55 = vmul.f32 %v87_v18, %v16_v28 }
  0x10   :  { %v68_v53 = vadd.f32 %v64_v37, %v54_v45  ;;  %v91_v56 = vmul.f32 %v87_v18, %v17_v41  ;;  %v144_v57 = vrot.slane %v135_v40, 7  ;;  %v65_v59 = vrot.slane %v61_v51, 3 }
  0x11   :  { %v41_v58 = vadd.f32 %v37_v49, %v25_v42  ;;  %v113_v60 = vmul.f32 %v110_v19, %v16_v28  ;;  %v100_v63 = vrot.slane %v90_v55, 5  ;;  %v114_v1 = vmul.f32 %v110_v19, %v17_v41 }
  0x12   :  { %v82_v62 = vadd.f32 %v78_v46, %v68_v53  ;;  %v101_v0 = vrot.slane %v91_v56, 5  ;;  %v79_v3 = vrot.slane %v75_v52, 4  ;;  %v136_v4 = vmul.f32 %v133_v20, %v16_v28 }
  0x13   :  { %v55_v2 = vadd.f32 %v51_v50, %v41_v58  ;;  %v137_v5 = vmul.f32 %v133_v20, %v17_v41  ;;  %v123_v7 = vrot.slane %v113_v60, 6  ;;  %v124_v8 = vrot.slane %v114_v1, 6  ;;  %v178_v20 = vld [vmem:[%s240_s2] ss:$0 sm:$0xff] }
  0x14   :  { %v105_v6 = vadd.f32 %v99_v47, %v82_v62  ;;  %v145_v9 = vsel %vm142_vm2, %v143_v54, %v144_v57  ;;  %v157_v10 = vmul.f32 %v177_v61, %v208_v12  ;;  %v102_v14 = vsel %vm96_vm0, %v100_v63, %v101_v0 }
  0x15   :  { %v69_v11 = vadd.f32 %v65_v59, %v55_v2  ;;  %v146_v15 = vrot.slane %v136_v4, 7  ;;  %v147_v16 = vrot.slane %v137_v5, 7  ;;  %v125_v19 = vsel %vm119_vm1, %v123_v7, %v124_v8 }
  0x16   :  { %v128_v13 = vadd.f32 %v122_v48, %v105_v6  ;;  %v158_v24 = vmul.f32 %v177_v61, %v17_v41 }
  0x17   :  { %v83_v17 = vadd.f32 %v79_v3, %v69_v11  ;;  %v148_v23 = vsel %vm142_vm2, %v146_v15, %v147_v16 }
  0x18   :  { %v151_v18 = vadd.f32 %v145_v9, %v128_v13 }
  0x19   :  { %v106_v21 = vadd.f32 %v102_v14, %v83_v17 }
  0x1a   :  { %v159_v22 = vadd.f32 %v157_v10, %v151_v18 }
  0x1b   :  { %v129_v12 = vadd.f32 %v125_v19, %v106_v21 }
  0x1c   :  { %v168_v25 = vadd.f32 %v178_v20, %v159_v22 }
  0x1d   :  { %v152_v26 = vadd.f32 %v148_v23, %v129_v12 }
  0x1e   :  { %171 = vst.msk [vmem:[%s241_s3] sm:$0xf] %vm170_vm3, %v168_v25 }
  0x1f   :  { %v160_v27 = vadd.f32 %v158_v24, %v152_v26 }
  0x21   :  { %v169_v28 = vadd.f32 %v178_v20, %v160_v27 }
  0x23   :  { %172 = vst.msk [vmem:[%s241_s3 + $0x4] sm:$0xf] %vm170_vm3, %v169_v28 }

// kernel: run.102
= control target key start
LH: loop header
LB: loop body
LE: loop exit
PB: predicated region body
PF: predicated region fallthrough
CT: control target
= control target key end

     0   :  { %v263_v0 = vmov 0.0   ;;  %vm264_vm0 = vmmov 0   ;;  %s421_s2 = inlined_call_operand.vmem [shape: f32[128,128], index: 2, kind: input, shape index: {}]   ;;  %s422_s1 = inlined_call_operand.vmem [shape: f32[128,128], index: 1, kind: input, shape index: {}]   ;;  %s423_s0 = inlined_call_operand.vmem [shape: f32[8,128], index: 0, kind: input, shape index: {}]   ;;  %s424_s4 = inlined_call_operand.vmem [shape: f32[1,128], index: 4, kind: input, shape index: {}]   ;;  %s425_s3 = inlined_call_operand.vmem [shape: f32[1,128], index: 3, kind: input, shape index: {}]   ;;  %s426_s5 = inlined_call_operand.vmem [shape: f32[8,128], index: 5, kind: output, shape index: {}]  }
   0x1   :  { %237 = vmatprep.subr.bf16.mxu1 %v263_v0  ;;  %v97_v1 = vld [vmem:[%s421_s2] sm:$0xff]  ;;  %v98_v2 = vld [vmem:[%s421_s2 + $0x8] sm:$0xff]  ;;  %v99_v3 = vld [vmem:[%s421_s2 + $0x10] sm:$0xff]  ;;  %217 = vmatprep.subr.bf16.mxu0 %v263_v0 }
   0x2   :  { %v113_v4 = vpack.c.bf16 %v98_v2, %v97_v1  ;;  %v100_v5 = vld [vmem:[%s421_s2 + $0x18] sm:$0xff]  ;;  %253 = vmatprep.mubr.msk.bf16.mxu1 %vm264_vm0, %v263_v0  ;;  %233 = vmatprep.mubr.msk.bf16.mxu0 %vm264_vm0, %v263_v0  ;;  %v101_v7 = vld [vmem:[%s421_s2 + $0x20] sm:$0xff]  ;;  %v102_v8 = vld [vmem:[%s421_s2 + $0x28] sm:$0xff] }
   0x3   :  { %v114_v6 = vpack.c.bf16 %v100_v5, %v99_v3  ;;  %v30_v9 = vld [vmem:[%s422_s1] sm:$0xff]  ;;  %v31_v10 = vld [vmem:[%s422_s1 + $0x8] sm:$0xff]  ;;  %v32_v12 = vld [vmem:[%s422_s1 + $0x10] sm:$0xff]  ;;  %v115_v14 = vpack.c.bf16 %v102_v8, %v101_v7 }
   0x4   :  { %238 = vmatpush3.bf16.msra.mxu1 %v113_v4  ;;  %v46_v11 = vpack.c.bf16 %v31_v10, %v30_v9  ;;  %v33_v13 = vld [vmem:[%s422_s1 + $0x18] sm:$0xff]  ;;  %v103_v15 = vld [vmem:[%s421_s2 + $0x30] sm:$0xff]  ;;  %v34_v18 = vld [vmem:[%s422_s1 + $0x20] sm:$0xff] }
   0x5   :  { %239 = vmatprep.subr.bf16.mxu1 %v263_v0  ;;  %v47_v16 = vpack.c.bf16 %v33_v13, %v32_v12  ;;  %v104_v17 = vld [vmem:[%s421_s2 + $0x38] sm:$0xff]  ;;  %v35_v19 = vld [vmem:[%s422_s1 + $0x28] sm:$0xff]  ;;  %v105_v21 = vld [vmem:[%s421_s2 + $0x40] sm:$0xff] }
   0x6   :  { %218 = vmatpush3.bf16.msra.mxu0 %v46_v11  ;;  %v116_v20 = vpack.c.bf16 %v104_v17, %v103_v15  ;;  %v48_v22 = vpack.c.bf16 %v35_v19, %v34_v18  ;;  %v106_v23 = vld [vmem:[%s421_s2 + $0x48] sm:$0xff]  ;;  %v36_v24 = vld [vmem:[%s422_s1 + $0x30] sm:$0xff]  ;;  %v37_v25 = vld [vmem:[%s422_s1 + $0x38] sm:$0xff] }
   0x7   :  { %219 = vmatprep.subr.bf16.mxu0 %v263_v0  ;;  %v117_v26 = vpack.c.bf16 %v106_v23, %v105_v21  ;;  %v107_v27 = vld [vmem:[%s421_s2 + $0x50] sm:$0xff]  ;;  %v49_v28 = vpack.c.bf16 %v37_v25, %v36_v24  ;;  %v108_v29 = vld [vmem:[%s421_s2 + $0x58] sm:$0xff]  ;;  %v38_v30 = vld [vmem:[%s422_s1 + $0x40] sm:$0xff] }
   0x8   :  { %240 = vmatpush3.bf16.msra.mxu1 %v114_v6  ;;  %v39_v31 = vld [vmem:[%s422_s1 + $0x48] sm:$0xff]  ;;  %v118_v32 = vpack.c.bf16 %v108_v29, %v107_v27  ;;  %v109_v33 = vld [vmem:[%s421_s2 + $0x60] sm:$0xff]  ;;  %v40_v36 = vld [vmem:[%s422_s1 + $0x50] sm:$0xff] }
   0x9   :  { %241 = vmatprep.subr.bf16.mxu1 %v263_v0  ;;  %v50_v34 = vpack.c.bf16 %v39_v31, %v38_v30  ;;  %v110_v35 = vld [vmem:[%s421_s2 + $0x68] sm:$0xff]  ;;  %v41_v37 = vld [vmem:[%s422_s1 + $0x58] sm:$0xff]  ;;  %v111_v39 = vld [vmem:[%s421_s2 + $0x70] sm:$0xff] }
   0xa   :  { %220 = vmatpush3.bf16.msra.mxu0 %v47_v16  ;;  %v119_v38 = vpack.c.bf16 %v110_v35, %v109_v33  ;;  %v51_v40 = vpack.c.bf16 %v41_v37, %v40_v36  ;;  %v112_v41 = vld [vmem:[%s421_s2 + $0x78] sm:$0xff]  ;;  %v42_v42 = vld [vmem:[%s422_s1 + $0x60] sm:$0xff]  ;;  %v43_v43 = vld [vmem:[%s422_s1 + $0x68] sm:$0xff] }
   0xb   :  { %221 = vmatprep.subr.bf16.mxu0 %v263_v0  ;;  %v120_v44 = vpack.c.bf16 %v112_v41, %v111_v39  ;;  %v27_v45 = vld [vmem:[%s423_s0] sm:$0xff]  ;;  %v52_v46 = vpack.c.bf16 %v43_v43, %v42_v42  ;;  %v44_v47 = vld [vmem:[%s422_s1 + $0x70] sm:$0xff]  ;;  %v45_v48 = vld [vmem:[%s422_s1 + $0x78] sm:$0xff] }
   0xc   :  { %242 = vmatpush3.bf16.msra.mxu1 %v115_v14  ;;  %v28_v49 = vpack.c.bf16 %v27_v45, %v27_v45  ;;  %v53_v50 = vpack.c.bf16 %v45_v48, %v44_v47  ;;  %v197_v51 = vld [vmem:[%s424_s4] ss:$0 sm:$0xff] }
   0xd   :  { %243 = vmatprep.subr.bf16.mxu1 %v263_v0 }
   0xe   :  { %222 = vmatpush3.bf16.msra.mxu0 %v48_v22 }
   0xf   :  { %223 = vmatprep.subr.bf16.mxu0 %v263_v0 }
  0x10   :  { %244 = vmatpush3.bf16.msra.mxu1 %v116_v20 }
  0x11   :  { %245 = vmatprep.subr.bf16.mxu1 %v263_v0 }
  0x12   :  { %224 = vmatpush3.bf16.msra.mxu0 %v49_v28 }
  0x13   :  { %225 = vmatprep.subr.bf16.mxu0 %v263_v0 }
  0x14   :  { %246 = vmatpush3.bf16.msra.mxu1 %v117_v26 }
  0x15   :  { %247 = vmatprep.subr.bf16.mxu1 %v263_v0 }
  0x16   :  { %226 = vmatpush3.bf16.msra.mxu0 %v50_v34 }
  0x17   :  { %227 = vmatprep.subr.bf16.mxu0 %v263_v0 }
  0x18   :  { %248 = vmatpush3.bf16.msra.mxu1 %v118_v32 }
  0x19   :  { %249 = vmatprep.subr.bf16.mxu1 %v263_v0 }
  0x1a   :  { %228 = vmatpush3.bf16.msra.mxu0 %v51_v40 }
  0x1b   :  { %229 = vmatprep.subr.bf16.mxu0 %v263_v0 }
  0x1c   :  { %250 = vmatpush3.bf16.msra.mxu1 %v119_v38 }
  0x1d   :  { %251 = vmatprep.subr.bf16.mxu1 %v263_v0 }
  0x1e   :  { %230 = vmatpush3.bf16.msra.mxu0 %v52_v46 }
  0x1f   :  { %231 = vmatprep.subr.bf16.mxu0 %v263_v0  ;;  %v196_v0 = vld [vmem:[%s425_s3] ss:$0 sm:$0xff] }
  0x20   :  { %252 = vmatpush3.bf16.msra.mxu1 %v120_v44 }
  0x22   :  { %232 = vmatpush3.bf16.msra.mxu0 %v53_v50 }
  0x23   :  { %254 = vmatmul.mubr.bf16.vlgmr.msra.gmra.mrb[0].mxu1 %v28_v49 }
  0x25   :  { %234 = vmatmul.mubr.bf16.vlgmr.msra.gmra.mrb[0].mxu0 %v28_v49 }
  0xf6   :  { %v155_v52 = vpop.f32.mrb[0].mxu1 }
  0xf7   :  { %v183_v53 = vadd.f32 %v197_v51, %v155_v52  ;;  %v255_v54 = vpop.f32.mrb[1].mxu1 }
  0xf8   :  { %v158_v55 = vpop.f32.mrb[2].mxu1  ;;  %v88_v58 = vpop.f32.mrb[0].mxu0 }
  0xf9   :  { %v198_v56 = vmul.f32 -1.442695, %v183_v53  ;;  %v256_v57 = vpop.f32.mrb[3].mxu1  ;;  %v235_v59 = vpop.f32.mrb[1].mxu0  ;;  %v174_v1 = vadd.f32 %v196_v0, %v88_v58 }
  0xfa   :  { %v91_v60 = vpop.f32.mrb[2].mxu0 }
  0xfb   :  { %259 = vpow2.f32 %v198_v56  ;;  %v236_v61 = vpop.f32.mrb[3].mxu0 }
 0x105   :  { %v260_v62 = vpop.eup %259 }
 0x106   :  { %v187_v63 = vadd.f32 1.0, %v260_v62 }
 0x108   :  { %261 = vrcp.f32 %v187_v63 }
 0x112   :  { %v262_v2 = vpop.eup %261 }
 0x113   :  { %v190_v3 = vmul.f32 %v262_v2, %v174_v1 }
 0x115   :  { %191 = vst [vmem:[%s426_s5] sm:$0xff] %v190_v3 }

// kernel: run.100
= control target key start
LH: loop header
LB: loop body
LE: loop exit
PB: predicated region body
PF: predicated region fallthrough
CT: control target
= control target key end

     0   :  { %vm28_vm0 = vcmask 130048   ;;  %v728_v0 = vmov 0.0   ;;  %vm729_vm1 = vmmov 0   ;;  %vm19_vm2 = vcmask 7168   ;;  %s944_s1 = inlined_call_operand.vmem [shape: f32[4,8,16], index: 1, kind: input, shape index: {}]   ;;  %s945_s0 = inlined_call_operand.vmem [shape: f32[4,8,16], index: 0, kind: input, shape index: {}]   ;;  %s946_s2 = inlined_call_operand.vmem [shape: f32[4,8,16], index: 2, kind: input, shape index: {}]   ;;  %s947_s3 = inlined_call_operand.vmem [shape: f32[4,8,16], index: 3, kind: output, shape index: {}]  }
   0x1   :  { %650 = vmatprep.subr.bf16.mxu0 %v728_v0  ;;  %v41_v1 = vld [vmem:[%s944_s1] sm:$0xff]  ;;  %29 = vst.msk [vmem:[#allocation4] sm:$0xff] %vm28_vm0, %v728_v0  ;;  %30 = vst.msk [vmem:[#allocation4 + $0x8] sm:$0xff] %vm28_vm0, %v728_v0  ;;  %656 = vmatprep.subr.bf16.mxu1 %v728_v0  ;;  %v42_v2 = vld [vmem:[%s944_s1 + $0x8] sm:$0xff]  ;;  %v730_v21 = vmov -1e+30   ;;  %v239_v22 = vlaneseq }
   0x2   :  { %31 = vst.msk [vmem:[#allocation4 + $0x10] sm:$0xff] %vm28_vm0, %v728_v0  ;;  %32 = vst.msk [vmem:[#allocation4 + $0x18] sm:$0xff] %vm28_vm0, %v728_v0  ;;  %v45_v3 = vpack.c.bf16 %v41_v1, %v41_v1  ;;  %v46_v4 = vpack.c.bf16 %v42_v2, %v42_v2  ;;  %652 = vmatprep.mubr.msk.bf16.mxu0 %vm729_vm1, %v728_v0  ;;  %658 = vmatprep.mubr.msk.bf16.mxu1 %vm729_vm1, %v728_v0  ;;  %v43_v5 = vld [vmem:[%s944_s1 + $0x10] sm:$0xff]  ;;  %v44_v6 = vld [vmem:[%s944_s1 + $0x18] sm:$0xff]  ;;  %vm252_vm4 = vcmask 64512   ;;  %v731_v52 = vmov 0  }
   0x3   :  { %v33_v9 = vld [vmem:[%s945_s0] sm:$0xff]  ;;  %v34_v10 = vld [vmem:[%s945_s0 + $0x8] sm:$0xff]  ;;  %v47_v11 = vpack.c.bf16 %v43_v5, %v43_v5  ;;  %v48_v12 = vpack.c.bf16 %v44_v6, %v44_v6  ;;  %v35_v17 = vld [vmem:[%s945_s0 + $0x10] sm:$0xff]  ;;  %20 = vst.msk [vmem:[#allocation2] sm:$0xff] %vm19_vm2, %v730_v21  ;;  %v240_v23 = vand.u32 127, %v239_v22  ;;  %702 = vset.pattern.permute.xlu0 %v731_v52  ;;  %703 = vset.pattern.permute.xlu1 %v731_v52  ;;  %vm385_vm5 = vcmask 1043456  }
   0x4   :  { %v54_v7 = vsel %vm28_vm0, %v45_v3, 0  ;;  %v100_v8 = vsel %vm28_vm0, %v46_v4, 0  ;;  %v37_v13 = vpack.c.bf16 %v33_v9, %v33_v9  ;;  %v38_v14 = vpack.c.bf16 %v34_v10, %v34_v10  ;;  %v36_v18 = vld [vmem:[%s945_s0 + $0x18] sm:$0xff]  ;;  %21 = vst.msk [vmem:[#allocation2 + $0x8] sm:$0xff] %vm19_vm2, %v730_v21  ;;  %22 = vst.msk [vmem:[#allocation2 + $0x10] sm:$0xff] %vm19_vm2, %v730_v21  ;;  %v374_v5 = vld [vmem:[%s946_s2] sm:$0xff] }
   0x5   :  { %651 = vmatpush3.bf16.xpose.msra.mxu0 %v54_v7  ;;  %657 = vmatpush3.bf16.xpose.msra.mxu1 %v100_v8  ;;  %v146_v15 = vsel %vm28_vm0, %v47_v11, 0  ;;  %v192_v16 = vsel %vm28_vm0, %v48_v12, 0  ;;  %v39_v19 = vpack.c.bf16 %v35_v17, %v35_v17  ;;  %v40_v20 = vpack.c.bf16 %v36_v18, %v36_v18  ;;  %23 = vst.msk [vmem:[#allocation2 + $0x18] sm:$0xff] %vm19_vm2, %v730_v21  ;;  %v375_v9 = vld [vmem:[%s946_s2 + $0x8] sm:$0xff]  ;;  %v376_v12 = vld [vmem:[%s946_s2 + $0x10] sm:$0xff] }
   0x6   :  { %662 = vmatprep.subr.bf16.mxu0 %v728_v0  ;;  %668 = vmatprep.subr.bf16.mxu1 %v728_v0  ;;  %24 = vst.msk [vmem:[#allocation3] sm:$0xff] %vm19_vm2, %v728_v0  ;;  %25 = vst.msk [vmem:[#allocation3 + $0x8] sm:$0xff] %vm19_vm2, %v728_v0  ;;  %vm243_vm3 = vcmp.lt.s32.totalorder %v240_v23, 4  ;;  %v378_v6 = vpack.c.bf16 %v374_v5, %v374_v5  ;;  %v379_v10 = vpack.c.bf16 %v375_v9, %v375_v9 }
   0x7   :  { %26 = vst.msk [vmem:[#allocation3 + $0x10] sm:$0xff] %vm19_vm2, %v728_v0  ;;  %27 = vst.msk [vmem:[#allocation3 + $0x18] sm:$0xff] %vm19_vm2, %v728_v0 }
   0x8   :  { %v387_v8 = vsel %vm385_vm5, %v378_v6, 0  ;;  %v433_v11 = vsel %vm385_vm5, %v379_v10, 0  ;;  %v342_v10 = vld [vmem:[#allocation4] sm:$0xff] }
   0xa   :  { %v839_v53 = vld [vmem:[#allocation2] sm:$0xff] }
   0xb   :  { %v844_v56 = vld [vmem:[#allocation2 + $0x8] sm:$0xff]  ;;  %v854_v60 = vld [vmem:[#allocation2 + $0x10] sm:$0xff] }
   0xc   :  { %653 = vmatmul.mubr.msk.bf16.vlgmr.msra.gmra.mrb[0].mxu0 %vm28_vm0, %v37_v13  ;;  %659 = vmatmul.mubr.msk.bf16.vlgmr.msra.gmra.mrb[0].mxu1 %vm28_vm0, %v38_v14  ;;  %v864_v1 = vld [vmem:[#allocation2 + $0x18] sm:$0xff]  ;;  %v380_v13 = vpack.c.bf16 %v376_v12, %v376_v12 }
   0xd   :  { %663 = vmatpush3.bf16.xpose.msra.mxu0 %v146_v15  ;;  %669 = vmatpush3.bf16.xpose.msra.mxu1 %v192_v16  ;;  %v377_v15 = vld [vmem:[%s946_s2 + $0x18] sm:$0xff]  ;;  %v314_v52 = vld [vmem:[#allocation3 + $0x8] sm:$0xff] }
   0xe   :  { %664 = vmatprep.mubr.msk.bf16.mxu0 %vm729_vm1, %v728_v0  ;;  %670 = vmatprep.mubr.msk.bf16.mxu1 %vm729_vm1, %v728_v0  ;;  %v479_v14 = vsel %vm385_vm5, %v380_v13, 0  ;;  %v381_v16 = vpack.c.bf16 %v377_v15, %v377_v15  ;;  %v343_v13 = vld [vmem:[#allocation4 + $0x8] sm:$0xff] }
   0xf   :  { %674 = vmatprep.subr.bf16.mxu0 %v728_v0  ;;  %680 = vmatprep.subr.bf16.mxu1 %v728_v0 }
  0x10   :  { %v525_v17 = vsel %vm385_vm5, %v381_v16, 0 }
  0x14   :  { %665 = vmatmul.mubr.msk.bf16.vlgmr.msra.gmra.mrb[4].mxu0 %vm28_vm0, %v39_v19  ;;  %671 = vmatmul.mubr.msk.bf16.vlgmr.msra.gmra.mrb[4].mxu1 %vm28_vm0, %v40_v20 }
  0x15   :  { %676 = vmatprep.mubr.msk.bf16.mxu0 %vm729_vm1, %v728_v0  ;;  %682 = vmatprep.mubr.msk.bf16.mxu1 %vm729_vm1, %v728_v0 }
  0x16   :  { %675 = vmatpush3.bf16.msra.mxu0 %v387_v8  ;;  %681 = vmatpush3.bf16.msra.mxu1 %v433_v11 }
  0x17   :  { %686 = vmatprep.subr.bf16.mxu0 %v728_v0  ;;  %692 = vmatprep.subr.bf16.mxu1 %v728_v0 }
  0xdf   :  { %v90_v24 = vpop.f32.mrb[0].mxu0  ;;  %v136_v25 = vpop.f32.mrb[0].mxu1 }
  0xe0   :  { %v234_v26 = vmul.f32 0.25, %v90_v24  ;;  %v654_v27 = vpop.f32.mrb[1].mxu0  ;;  %v235_v28 = vmul.f32 0.25, %v136_v25  ;;  %v660_v29 = vpop.f32.mrb[1].mxu1 }
  0xe1   :  { %v93_v30 = vpop.f32.mrb[2].mxu0  ;;  %v139_v31 = vpop.f32.mrb[2].mxu1 }
  0xe2   :  { %v655_v32 = vpop.f32.mrb[3].mxu0  ;;  %v661_v33 = vpop.f32.mrb[3].mxu1  ;;  %v823_v34 = vsel %vm243_vm3, %v234_v26, -1e+30  ;;  %v826_v35 = vsel %vm243_vm3, %v235_v28, -1e+30 }
  0xe3   :  { %v253_v36 = vsel %vm252_vm4, %v823_v34, -inf  ;;  %v256_v37 = vsel %vm252_vm4, %v826_v35, -inf }
  0xe4   :  { %254 = vmax.xlane.f32.xlu0 %v253_v36 }
  0xe7   :  { %v182_v38 = vpop.f32.mrb[4].mxu0  ;;  %v228_v39 = vpop.f32.mrb[4].mxu1 }
  0xe8   :  { %v236_v40 = vmul.f32 0.25, %v182_v38  ;;  %257 = vmax.xlane.f32.xlu0 %v256_v37  ;;  %v666_v41 = vpop.f32.mrb[5].mxu0  ;;  %v237_v42 = vmul.f32 0.25, %v228_v39  ;;  %v672_v43 = vpop.f32.mrb[5].mxu1 }
  0xe9   :  { %v185_v44 = vpop.f32.mrb[6].mxu0  ;;  %v231_v45 = vpop.f32.mrb[6].mxu1 }
  0xea   :  { %v667_v46 = vpop.f32.mrb[7].mxu0  ;;  %v673_v47 = vpop.f32.mrb[7].mxu1  ;;  %v246_v48 = vsel %vm243_vm3, %v236_v40, -1e+30  ;;  %v834_v49 = vsel %vm243_vm3, %v237_v42, -1e+30 }
  0xeb   :  { %v259_v50 = vsel %vm252_vm4, %v246_v48, -inf  ;;  %v262_v51 = vsel %vm252_vm4, %v834_v49, -inf }
  0xec   :  { %260 = vmax.xlane.f32.xlu1 %v259_v50 }
  0xf0   :  { %263 = vmax.xlane.f32.xlu1 %v262_v51 }
 0x171   :  { %v255_v54 = vpop.xlane.xlu0 %254 }
 0x172   :  { %v842_v55 = vmax.f32 %v839_v53, %v255_v54 }
 0x174   :  { %v269_v57 = vsub.f32 %v839_v53, %v842_v55  ;;  %575 = vst.msk [vmem:[#allocation2] sm:$0xff] %vm19_vm2, %v842_v55  ;;  %283 = vperm.xlu0 %702, %v842_v55  }
 0x175   :  { %v258_v58 = vpop.xlane.xlu0 %257 }
 0x176   :  { %v852_v59 = vmax.f32 %v844_v56, %v258_v58 }
 0x178   :  { %v270_v61 = vsub.f32 %v844_v56, %v852_v59  ;;  %576 = vst.msk [vmem:[#allocation2 + $0x8] sm:$0xff] %vm19_vm2, %v852_v59  ;;  %288 = vperm.xlu1 %703, %v852_v59   ;;  %v315_v56 = vld [vmem:[#allocation3 + $0x10] sm:$0xff] }
 0x179   :  { %v261_v62 = vpop.xlane.xlu1 %260 }
 0x17a   :  { %v862_v63 = vmax.f32 %v854_v60, %v261_v62  ;;  %v275_v40 = vmul.f32 1.442695, %v270_v61 }
 0x17c   :  { %v271_v2 = vsub.f32 %v854_v60, %v862_v63  ;;  %577 = vst.msk [vmem:[#allocation2 + $0x10] sm:$0xff] %vm19_vm2, %v862_v63  ;;  %293 = vperm.xlu1 %703, %v862_v63   ;;  %v316_v60 = vld [vmem:[#allocation3 + $0x18] sm:$0xff] }
 0x17d   :  { %v264_v3 = vpop.xlane.xlu1 %263 }
 0x17e   :  { %v872_v4 = vmax.f32 %v864_v1, %v264_v3  ;;  %v277_v43 = vmul.f32 1.442695, %v271_v2 }
 0x180   :  { %v272_v7 = vsub.f32 %v864_v1, %v872_v4  ;;  %578 = vst.msk [vmem:[#allocation2 + $0x18] sm:$0xff] %vm19_vm2, %v872_v4  ;;  %298 = vperm.xlu1 %703, %v872_v4  }
 0x182   :  { %v279_v44 = vmul.f32 1.442695, %v272_v7 }
 0x1f3   :  { %v284_v18 = vpop.permute.xlu0 %283 }
 0x1f4   :  { %v301_v19 = vsub.f32 %v823_v34, %v284_v18 }
 0x1f6   :  { %v305_v20 = vmul.f32 1.442695, %v301_v19 }
 0x1f7   :  { %v289_v21 = vpop.permute.xlu1 %288 }
 0x1f8   :  { %704 = vpow2.f32 %v305_v20  ;;  %v302_v22 = vsub.f32 %v826_v35, %v289_v21 }
 0x1fa   :  { %v307_v23 = vmul.f32 1.442695, %v302_v22  ;;  %v344_v22 = vld [vmem:[#allocation4 + $0x10] sm:$0xff] }
 0x1fb   :  { %v294_v24 = vpop.permute.xlu1 %293 }
 0x1fc   :  { %706 = vpow2.f32 %v307_v23  ;;  %v303_v25 = vsub.f32 %v246_v48, %v294_v24 }
 0x1fe   :  { %v309_v26 = vmul.f32 1.442695, %v303_v25 }
 0x1ff   :  { %v299_v27 = vpop.permute.xlu1 %298 }
 0x200   :  { %708 = vpow2.f32 %v309_v26  ;;  %v304_v28 = vsub.f32 %v834_v49, %v299_v27  ;;  %v313_v49 = vld [vmem:[#allocation3] sm:$0xff] }
 0x202   :  { %v705_v29 = vpop.eup %704  ;;  %v311_v30 = vmul.f32 1.442695, %v304_v28 }
 0x203   :  { %v321_v31 = vsel %vm252_vm4, %v705_v29, 0.0  ;;  %v370_v32 = vpack.c.bf16 %v705_v29, %v705_v29  ;;  %v345_v29 = vld [vmem:[#allocation4 + $0x18] sm:$0xff] }
 0x204   :  { %710 = vpow2.f32 %v311_v30  ;;  %322 = vadd.xlane.f32.xlu1 %v321_v31 }
 0x205   :  { %677 = vmatmul.mubr.msk.bf16.vlgmr.msra.gmra.mrb[8].mxu0 %vm252_vm4, %v370_v32  ;;  %712 = vpow2.f32 %v275_v40 }
 0x206   :  { %v707_v33 = vpop.eup %706  ;;  %687 = vmatpush3.bf16.msra.mxu0 %v479_v14  ;;  %688 = vmatprep.mubr.msk.bf16.mxu0 %vm729_vm1, %v728_v0 }
 0x207   :  { %v324_v34 = vsel %vm252_vm4, %v707_v33, 0.0  ;;  %v371_v35 = vpack.c.bf16 %v707_v33, %v707_v33 }
 0x208   :  { %325 = vadd.xlane.f32.xlu0 %v324_v34 }
 0x209   :  { %683 = vmatmul.mubr.msk.bf16.vlgmr.msra.gmra.mrb[8].mxu1 %vm252_vm4, %v371_v35 }
 0x20a   :  { %v709_v36 = vpop.eup %708  ;;  %693 = vmatpush3.bf16.msra.mxu1 %v525_v17  ;;  %694 = vmatprep.mubr.msk.bf16.mxu1 %vm729_vm1, %v728_v0  ;;  %v273_v0 = vmul.f32 1.442695, %v269_v57 }
 0x20b   :  { %v327_v37 = vsel %vm252_vm4, %v709_v36, 0.0  ;;  %v372_v38 = vpack.c.bf16 %v709_v36, %v709_v36 }
 0x20c   :  { %328 = vadd.xlane.f32.xlu1 %v327_v37  ;;  %714 = vpow2.f32 %v273_v0 }
 0x20d   :  { %689 = vmatmul.mubr.msk.bf16.vlgmr.msra.gmra.mrb[12].mxu0 %vm252_vm4, %v372_v38  ;;  %716 = vpow2.f32 %v277_v43 }
 0x20e   :  { %v711_v39 = vpop.eup %710  ;;  %718 = vpow2.f32 %v279_v44 }
 0x20f   :  { %v330_v41 = vsel %vm252_vm4, %v711_v39, 0.0  ;;  %v373_v42 = vpack.c.bf16 %v711_v39, %v711_v39  ;;  %v713_v45 = vpop.eup %712 }
 0x210   :  { %331 = vadd.xlane.f32.xlu1 %v330_v41  ;;  %v318_v54 = vmul.f32 %v713_v45, %v314_v52 }
 0x211   :  { %695 = vmatmul.mubr.msk.bf16.vlgmr.msra.gmra.mrb[12].mxu1 %vm252_vm4, %v373_v42 }
 0x216   :  { %v715_v46 = vpop.eup %714 }
 0x217   :  { %v717_v47 = vpop.eup %716  ;;  %v317_v50 = vmul.f32 %v715_v46, %v313_v49 }
 0x218   :  { %v719_v48 = vpop.eup %718  ;;  %v319_v58 = vmul.f32 %v717_v47, %v315_v56 }
 0x219   :  { %v320_v63 = vmul.f32 %v719_v48, %v316_v60 }
 0x21e   :  { %353 = vperm.xlu0 %702, %v713_v45  }
 0x221   :  { %348 = vperm.xlu1 %703, %v715_v46  }
 0x225   :  { %358 = vperm.xlu1 %703, %v717_v47  }
 0x229   :  { %363 = vperm.xlu1 %703, %v719_v48  }
 0x291   :  { %v323_v51 = vpop.xlane.xlu1 %322 }
 0x292   :  { %v333_v53 = vadd.f32 %v323_v51, %v317_v50 }
 0x294   :  { %338 = vst.msk [vmem:[#allocation3] sm:$0xff] %vm19_vm2, %v333_v53 }
 0x295   :  { %v326_v55 = vpop.xlane.xlu0 %325 }
 0x296   :  { %v334_v57 = vadd.f32 %v326_v55, %v318_v54 }
 0x298   :  { %339 = vst.msk [vmem:[#allocation3 + $0x8] sm:$0xff] %vm19_vm2, %v334_v57 }
 0x299   :  { %v329_v59 = vpop.xlane.xlu1 %328 }
 0x29a   :  { %v335_v61 = vadd.f32 %v329_v59, %v319_v58 }
 0x29b   :  { %v586_v62 = vld [vmem:[#allocation3] sm:$0xff] }
 0x29c   :  { %340 = vst.msk [vmem:[#allocation3 + $0x10] sm:$0xff] %vm19_vm2, %v335_v61  ;;  %720 = vrcp.f32 %v586_v62 }
 0x29d   :  { %v332_v1 = vpop.xlane.xlu1 %331  ;;  %v354_v14 = vpop.permute.xlu0 %353 }
 0x29e   :  { %v336_v2 = vadd.f32 %v332_v1, %v320_v63  ;;  %v367_v20 = vmul.f32 %v354_v14, %v343_v13 }
 0x29f   :  { %v587_v3 = vld [vmem:[#allocation3 + $0x8] sm:$0xff] }
 0x2a0   :  { %341 = vst.msk [vmem:[#allocation3 + $0x18] sm:$0xff] %vm19_vm2, %v336_v2  ;;  %722 = vrcp.f32 %v587_v3 }
 0x2a1   :  { %v349_v11 = vpop.permute.xlu1 %348 }
 0x2a2   :  { %v366_v12 = vmul.f32 %v349_v11, %v342_v10 }
 0x2a3   :  { %v588_v4 = vld [vmem:[#allocation3 + $0x10] sm:$0xff] }
 0x2a4   :  { %724 = vrcp.f32 %v588_v4 }
 0x2a5   :  { %v359_v18 = vpop.permute.xlu1 %358 }
 0x2a6   :  { %v721_v5 = vpop.eup %720  ;;  %v368_v27 = vmul.f32 %v359_v18, %v344_v22 }
 0x2a7   :  { %596 = vperm.xlu1 %703, %v721_v5   ;;  %v589_v6 = vld [vmem:[#allocation3 + $0x18] sm:$0xff] }
 0x2a8   :  { %726 = vrcp.f32 %v589_v6 }
 0x2a9   :  { %v364_v30 = vpop.permute.xlu1 %363 }
 0x2aa   :  { %v723_v7 = vpop.eup %722  ;;  %v369_v35 = vmul.f32 %v364_v30, %v345_v29 }
 0x2ab   :  { %601 = vperm.xlu0 %702, %v723_v7  }
 0x2ae   :  { %v725_v8 = vpop.eup %724 }
 0x2af   :  { %606 = vperm.xlu1 %703, %v725_v8  }
 0x2b2   :  { %v727_v9 = vpop.eup %726 }
 0x2b3   :  { %611 = vperm.xlu0 %702, %v727_v9  }
 0x2d8   :  { %v423_v15 = vpop.f32.mrb[8].mxu0 }
 0x2d9   :  { %v567_v16 = vadd.f32 %v423_v15, %v366_v12  ;;  %v678_v17 = vpop.f32.mrb[9].mxu0 }
 0x2da   :  { %v426_v19 = vpop.f32.mrb[10].mxu0 }
 0x2db   :  { %571 = vst.msk [vmem:[#allocation4] sm:$0xff] %vm28_vm0, %v567_v16  ;;  %v679_v21 = vpop.f32.mrb[11].mxu0 }
 0x2dc   :  { %v469_v23 = vpop.f32.mrb[8].mxu1 }
 0x2dd   :  { %v568_v24 = vadd.f32 %v469_v23, %v367_v20  ;;  %v684_v25 = vpop.f32.mrb[9].mxu1 }
 0x2de   :  { %v472_v26 = vpop.f32.mrb[10].mxu1 }
 0x2df   :  { %572 = vst.msk [vmem:[#allocation4 + $0x8] sm:$0xff] %vm28_vm0, %v568_v24  ;;  %v685_v28 = vpop.f32.mrb[11].mxu1 }
 0x2e0   :  { %v515_v31 = vpop.f32.mrb[12].mxu0 }
 0x2e1   :  { %v569_v32 = vadd.f32 %v515_v31, %v368_v27  ;;  %v690_v33 = vpop.f32.mrb[13].mxu0 }
 0x2e2   :  { %v518_v34 = vpop.f32.mrb[14].mxu0  ;;  %v582_v0 = vld [vmem:[#allocation4] sm:$0xff] }
 0x2e3   :  { %573 = vst.msk [vmem:[#allocation4 + $0x10] sm:$0xff] %vm28_vm0, %v569_v32  ;;  %v691_v36 = vpop.f32.mrb[15].mxu0 }
 0x2e4   :  { %v561_v37 = vpop.f32.mrb[12].mxu1 }
 0x2e5   :  { %v570_v38 = vadd.f32 %v561_v37, %v369_v35  ;;  %v696_v39 = vpop.f32.mrb[13].mxu1 }
 0x2e6   :  { %v564_v40 = vpop.f32.mrb[14].mxu1  ;;  %v583_v44 = vld [vmem:[#allocation4 + $0x8] sm:$0xff] }
 0x2e7   :  { %574 = vst.msk [vmem:[#allocation4 + $0x18] sm:$0xff] %vm28_vm0, %v570_v38  ;;  %v697_v41 = vpop.f32.mrb[15].mxu1 }
 0x2ea   :  { %v584_v48 = vld [vmem:[#allocation4 + $0x10] sm:$0xff] }
 0x2ee   :  { %v585_v51 = vld [vmem:[#allocation4 + $0x18] sm:$0xff] }
 0x326   :  { %v597_v42 = vpop.permute.xlu1 %596 }
 0x327   :  { %v614_v43 = vmul.f32 %v597_v42, %v582_v0 }
 0x329   :  { %618 = vst.msk [vmem:[%s947_s3] sm:$0xff] %vm28_vm0, %v614_v43 }
 0x32a   :  { %v602_v45 = vpop.permute.xlu0 %601 }
 0x32b   :  { %v615_v46 = vmul.f32 %v602_v45, %v583_v44 }
 0x32d   :  { %619 = vst.msk [vmem:[%s947_s3 + $0x8] sm:$0xff] %vm28_vm0, %v615_v46 }
 0x32e   :  { %v607_v47 = vpop.permute.xlu1 %606 }
 0x32f   :  { %v616_v49 = vmul.f32 %v607_v47, %v584_v48 }
 0x331   :  { %620 = vst.msk [vmem:[%s947_s3 + $0x10] sm:$0xff] %vm28_vm0, %v616_v49 }
 0x332   :  { %v612_v50 = vpop.permute.xlu0 %611 }
 0x333   :  { %v617_v52 = vmul.f32 %v612_v50, %v585_v51 }
 0x335   :  { %621 = vst.msk [vmem:[%s947_s3 + $0x18] sm:$0xff] %vm28_vm0, %v617_v52 }

// kernel: run.109
= control target key start
LH: loop header
LB: loop body
LE: loop exit
PB: predicated region body
PF: predicated region fallthrough
CT: control target
= control target key end

     0   :  { %v174_v3 = vmov 0.0   ;;  %vm175_vm0 = vmmov 0   ;;  %s263_s0 = inlined_call_operand.vmem [shape: f32[8,128], index: 0, kind: input, shape index: {}]   ;;  %s264_s1 = inlined_call_operand.vmem [shape: f32[128,128], index: 1, kind: input, shape index: {}]   ;;  %s265_s2 = inlined_call_operand.vmem [shape: f32[1,128], index: 2, kind: input, shape index: {}]   ;;  %s266_s3 = inlined_call_operand.hbm [shape: f32[8,128], index: 3, kind: output, shape index: {}]  }
   0x1   :  { %v24_v0 = vld [vmem:[%s264_s1] sm:$0xff]  ;;  %v25_v1 = vld [vmem:[%s264_s1 + $0x8] sm:$0xff]  ;;  %v26_v2 = vld [vmem:[%s264_s1 + $0x10] sm:$0xff]  ;;  %127 = vmatprep.subr.bf16.mxu0 %v174_v3  ;;  %143 = vmatprep.mubr.msk.bf16.mxu0 %vm175_vm0, %v174_v3 }
   0x2   :  { %v40_v4 = vpack.c.bf16 %v25_v1, %v24_v0  ;;  %v27_v5 = vld [vmem:[%s264_s1 + $0x18] sm:$0xff]  ;;  %v28_v7 = vld [vmem:[%s264_s1 + $0x20] sm:$0xff]  ;;  %v29_v8 = vld [vmem:[%s264_s1 + $0x28] sm:$0xff] }
   0x3   :  { %v41_v6 = vpack.c.bf16 %v27_v5, %v26_v2 }
   0x4   :  { %128 = vmatpush3.bf16.msra.mxu0 %v40_v4 }
   0x5   :  { %129 = vmatprep.subr.bf16.mxu0 %v174_v3 }
   0x6   :  { %8 = vsyncpa [#allocation4], 0  ;;  %v42_v9 = vpack.c.bf16 %v29_v8, %v28_v7  ;;  %v30_v10 = vld [vmem:[%s264_s1 + $0x30] sm:$0xff]  ;;  %v31_v11 = vld [vmem:[%s264_s1 + $0x38] sm:$0xff]  ;;  %s176_s21 = smov [#allocation3]  }
   0x7   :  { %v43_v12 = vpack.c.bf16 %v31_v11, %v30_v10  ;;  %v32_v13 = vld [vmem:[%s264_s1 + $0x40] sm:$0xff]  ;;  %v33_v14 = vld [vmem:[%s264_s1 + $0x48] sm:$0xff]  ;;  %v34_v16 = vld [vmem:[%s264_s1 + $0x50] sm:$0xff]  ;;  %s109_s22 = sshll.u32 %s176_s21, 4  ;;  %s110_s22 = int_to_ptr.vmem [resolvable:$true] %s109_s22 }
   0x8   :  { %130 = vmatpush3.bf16.msra.mxu0 %v41_v6  ;;  %v44_v15 = vpack.c.bf16 %v33_v14, %v32_v13  ;;  %v35_v17 = vld [vmem:[%s264_s1 + $0x58] sm:$0xff]  ;;  %v36_v19 = vld [vmem:[%s264_s1 + $0x60] sm:$0xff]  ;;  %v37_v20 = vld [vmem:[%s264_s1 + $0x68] sm:$0xff]  ;;  %p155_p1 = scmp.lt.s32.totalorder %s110_s22, %s110_s22 }
   0x9   :  { %131 = vmatprep.subr.bf16.mxu0 %v174_v3  ;;  %v45_v18 = vpack.c.bf16 %v35_v17, %v34_v16  ;;  %v46_v21 = vpack.c.bf16 %v37_v20, %v36_v19  ;;  %v38_v22 = vld [vmem:[%s264_s1 + $0x70] sm:$0xff]  ;;  %v39_v23 = vld [vmem:[%s264_s1 + $0x78] sm:$0xff]  ;;  %v22_v25 = vld [vmem:[%s263_s0] sm:$0xff]  ;;  %s150_s1 = scalar_lea.vmem %s110_s22, 128 }
   0xa   :  { %v47_v24 = vpack.c.bf16 %v39_v23, %v38_v22  ;;  %v23_v26 = vpack.c.bf16 %v22_v25, %v22_v25  ;;  %v117_v27 = vld [vmem:[%s265_s2] ss:$0 sm:$0xff]  ;;  %p151_p0 = scmp.ne.s32.totalorder %s110_s22, %s150_s1  ;;  %p156_p2 = scmp.lt.s32.totalorder %s150_s1, %s150_s1 }
   0xc   :  { %132 = vmatpush3.bf16.msra.mxu0 %v42_v9  ;;  %p157_p3 = por %p156_p2, %p155_p1 }
   0xd   :  { %133 = vmatprep.subr.bf16.mxu0 %v174_v3 }
   0xe   :  { %p158_p4 = pnand %p157_p3, %p151_p0 }
  0x10   :  { %134 = vmatpush3.bf16.msra.mxu0 %v43_v12 }
  0x11   :  { %135 = vmatprep.subr.bf16.mxu0 %v174_v3 }
  0x14   :  { %136 = vmatpush3.bf16.msra.mxu0 %v44_v15 }
  0x15   :  { %137 = vmatprep.subr.bf16.mxu0 %v174_v3 }
  0x18   :  { %138 = vmatpush3.bf16.msra.mxu0 %v45_v18 }
  0x19   :  { %139 = vmatprep.subr.bf16.mxu0 %v174_v3 }
  0x1c   :  { %140 = vmatpush3.bf16.msra.mxu0 %v46_v21 }
  0x1d   :  { %141 = vmatprep.subr.bf16.mxu0 %v174_v3 }
  0x20   :  { %142 = vmatpush3.bf16.msra.mxu0 %v47_v24 }
  0x23   :  { %144 = vmatmul.mubr.bf16.vlgmr.msra.gmra.mrb[0].mxu0 %v23_v26 }
  0xf6   :  { %v82_v28 = vpop.f32.mrb[0].mxu0 }
  0xf7   :  { %v101_v29 = vadd.f32 %v117_v27, %v82_v28  ;;  %v145_v30 = vpop.f32.mrb[1].mxu0 }
  0xf8   :  { %v85_v31 = vpop.f32.mrb[2].mxu0 }
  0xf9   :  { %102 = vst [vmem:[#allocation3] sm:$0xff] %v101_v29  ;;  %v146_v32 = vpop.f32.mrb[3].mxu0 }
  0xfa   :  { %161 = shalt.err (!%p158_p4)
}
  0xfb   :  { %s162_s2 = scalar_lea.hbm %s266_s3, 128 }
  0xfc   :  { %p163_p5 = scmp.ne.s32.totalorder %s266_s3, %s162_s2  ;;  %p166_p6 = scmp.lt.u32.totalorder %s162_s2, %s266_s3 }
  0xfe   :  { %p168_p7 = pnand %p166_p6, %p163_p5 }
 0x100   :  { %171 = shalt.err (!%p168_p7)
}
 0x101   :  { %112 = dma.vmem_to_hbm [thread:$0]  %s110_s22, 128, %s266_s3, [#allocation4]  }
 0x102   :  { %172 = dma.done.wait [#allocation4], 128  }
 0x103   :  { %173 = vsyncadd [#allocation4], 4294967168 }
 0x104   :  { %116 = vsyncpa [#allocation4], 1 }

</bundles_post_ra>
